<compile_context>
chip_gen: v7x
topology: tpu7x:2x2x1
jax: 0.10.0
libtpu: 0.0.40
codegen_flags: <defaults>
</compile_context>

<pallas_src>
import jax
import jax.numpy as jnp
from jax.experimental import pallas as pl
from jax.experimental.pallas import tpu as pltpu

BN_EPS = 1e-5
VMEM_LIMIT = 48 * 1024 * 1024          # <= v7x 64 MiB/TC with headroom
TM_MAX, TN_MAX, TK_MAX = 256, 256, 512

# Static ResNet-18 layer structure: (cin, cout, stride_of_first_block)
LAYER_CFG = [(64, 64, 1), (64, 128, 2), (128, 256, 2), (256, 512, 2)]


def _round_up(x, m):
    return ((x + m - 1) // m) * m


# ----------------------------------------------------------------------------
# Pallas kernels
# ----------------------------------------------------------------------------
def fused_matmul_bn(a, b, shift, residual=None, relu=True, out_dtype=jnp.bfloat16):
    """out = act(a @ b + shift [+ residual]) as a tiled, double-buffered TPU GEMM.

    a        : (M, K)  im2col patches (cast to bf16 inside)
    b        : (K, N)  weights with BN scale already folded in (bf16)
    shift    : (N,)    folded BN shift (f32)
    residual : optional (M, N) activation to add before the ReLU (bf16)
    """
    M, K = a.shape
    N = b.shape[1]
    has_res = residual is not None

    tm = min(_round_up(M, 16), TM_MAX)
    tn = min(_round_up(N, 128), TN_MAX)
    tk = min(_round_up(K, 128), TK_MAX)
    Mp, Np, Kp = _round_up(M, tm), _round_up(N, tn), _round_up(K, tk)

    a_p = jnp.pad(a.astype(jnp.bfloat16), ((0, Mp - M), (0, Kp - K)))
    b_p = jnp.pad(b.astype(jnp.bfloat16), ((0, Kp - K), (0, Np - N)))
    sh_p = jnp.pad(shift.astype(jnp.float32), (0, Np - N)).reshape(1, Np)

    inputs = [a_p, b_p, sh_p]
    in_specs = [
        pl.BlockSpec((tm, tk), lambda i, j, k: (i, k)),
        pl.BlockSpec((tk, tn), lambda i, j, k: (k, j)),
        pl.BlockSpec((1, tn), lambda i, j, k: (0, j)),
    ]
    if has_res:
        r_p = jnp.pad(residual.astype(jnp.bfloat16), ((0, Mp - M), (0, Np - N)))
        inputs.append(r_p)
        in_specs.append(pl.BlockSpec((tm, tn), lambda i, j, k: (i, j)))

    def kernel(*refs):
        if has_res:
            a_ref, b_ref, sh_ref, r_ref, o_ref, acc_ref = refs
        else:
            a_ref, b_ref, sh_ref, o_ref, acc_ref = refs
        k = pl.program_id(2)

        @pl.when(k == 0)
        def _():
            acc_ref[...] = jnp.zeros_like(acc_ref)

        acc_ref[...] += jnp.dot(a_ref[...], b_ref[...],
                                preferred_element_type=jnp.float32)

        @pl.when(k == pl.num_programs(2) - 1)
        def _():
            acc = acc_ref[...] + sh_ref[...]            # f32 epilogue (BN shift)
            if has_res:
                acc = acc + r_ref[...].astype(jnp.float32)
            if relu:
                acc = jnp.maximum(acc, 0.0)
            o_ref[...] = acc.astype(o_ref.dtype)

    out = pl.pallas_call(
        kernel,
        grid=(Mp // tm, Np // tn, Kp // tk),
        in_specs=in_specs,
        out_specs=pl.BlockSpec((tm, tn), lambda i, j, k: (i, j)),
        out_shape=jax.ShapeDtypeStruct((Mp, Np), out_dtype),
        scratch_shapes=[pltpu.VMEM((tm, tn), jnp.float32)],
        compiler_params=pltpu.CompilerParams(
            dimension_semantics=("parallel", "parallel", "arbitrary"),
            vmem_limit_bytes=VMEM_LIMIT),
    )(*inputs)
    return out[:M, :N]


def avgpool_fc(x_nhwc, fc_w, fc_b):
    """AdaptiveAvgPool2d(1) + flatten + Linear, fused; takes NHWC directly."""
    N, H, W, C = x_nhwc.shape
    num_classes = fc_w.shape[0]
    x_r = x_nhwc.reshape(N, H * W, C)                    # pure reshape, no transpose
    w_mat = fc_w.T.astype(jnp.float32)                   # (C, num_classes)
    b = fc_b.reshape(1, num_classes).astype(jnp.float32)

    def kernel(x_ref, w_ref, b_ref, o_ref):
        pooled = jnp.mean(x_ref[...].astype(jnp.float32), axis=1)    # (N, C)
        o_ref[...] = jnp.dot(pooled, w_ref[...],
                             preferred_element_type=jnp.float32) + b_ref[...]

    return pl.pallas_call(
        kernel,
        grid=(1,),
        in_specs=[pl.BlockSpec((N, H * W, C), lambda i: (0, 0, 0)),
                  pl.BlockSpec((C, num_classes), lambda i: (0, 0)),
                  pl.BlockSpec((1, num_classes), lambda i: (0, 0))],
        out_specs=pl.BlockSpec((N, num_classes), lambda i: (0, 0)),
        out_shape=jax.ShapeDtypeStruct((N, num_classes), jnp.float32),
        compiler_params=pltpu.CompilerParams(vmem_limit_bytes=VMEM_LIMIT),
    )(x_r, w_mat, b)


# ----------------------------------------------------------------------------
# Glue: NHWC im2col, BN folding, ResNet-18 structure (plain JAX reshapes only)
# ----------------------------------------------------------------------------
def im2col_nhwc(x, kh, kw, stride, padding):
    """kh/kw/stride/padding must be static Python ints."""
    N, H, W, C = x.shape
    Ho = (H + 2 * padding - kh) // stride + 1
    Wo = (W + 2 * padding - kw) // stride + 1
    x_pad = jnp.pad(x, ((0, 0), (padding, padding), (padding, padding), (0, 0)))
    cols = []
    for di in range(kh):
        for dj in range(kw):
            cols.append(x_pad[:, di:di + stride * Ho:stride,
                              dj:dj + stride * Wo:stride, :])
    cols = jnp.stack(cols, axis=3)                       # (N, Ho, Wo, kh*kw, C)
    return cols.reshape(N * Ho * Wo, kh * kw * C), Ho, Wo


def fold_bn(bn):
    scale = bn['gamma'] / jnp.sqrt(bn['var'] + BN_EPS)
    shift = bn['beta'] - bn['mean'] * scale
    return scale, shift


def conv_bn(x, weight, bn, stride, padding, relu=True, residual=None):
    """x / residual: NHWC bf16. weight: (Cout, Cin, kh, kw). Returns NHWC bf16."""
    Cout, Cin, kh, kw = weight.shape
    N = x.shape[0]
    scale, shift = fold_bn(bn)
    # fold BN scale into the weight matrix in f32, then cast operands to bf16
    w_mat = jnp.transpose(weight, (2, 3, 1, 0)).reshape(kh * kw * Cin, Cout)
    w_mat = (w_mat * scale[None, :]).astype(jnp.bfloat16)
    patches, Ho, Wo = im2col_nhwc(x.astype(jnp.bfloat16), kh, kw, stride, padding)
    res_flat = None
    if residual is not None:
        res_flat = residual.reshape(N * Ho * Wo, Cout)   # NHWC -> pure reshape
    out = fused_matmul_bn(patches, w_mat, shift, residual=res_flat, relu=relu)
    return out.reshape(N, Ho, Wo, Cout)


def basic_block(x, blk, stride):
    """`stride` is a static Python int (NOT stored in the traced params)."""
    identity = x
    out = conv_bn(x, blk['conv1_w'], blk['bn1'], stride=stride, padding=1, relu=True)
    if 'down_w' in blk:
        identity = conv_bn(x, blk['down_w'], blk['down_bn'],
                           stride=stride, padding=0, relu=False)
    # conv2 -> bn2 -> (+ identity) -> relu, all fused in the Pallas GEMM epilogue
    out = conv_bn(out, blk['conv2_w'], blk['bn2'], stride=1, padding=1,
                  relu=True, residual=identity)
    return out


def classifier_forward(params, x):
    # Classifier.forward: conv1 -> bn1 -> relu -> layer1..4 -> avgpool
    #                     -> flatten -> dropout -> fc   (maxpool is NOT called)
    x = jnp.transpose(x, (0, 2, 3, 1)).astype(jnp.bfloat16)   # NCHW -> NHWC once
    x = conv_bn(x, params['conv1_w'], params['bn1'], stride=2, padding=3, relu=True)
    for li, (_, _, layer_stride) in enumerate(LAYER_CFG, start=1):
        for bi, blk in enumerate(params[f'layer{li}']):
            stride = layer_stride if bi == 0 else 1            # static
            x = basic_block(x, blk, stride)
    # TODO(synk): nn.Dropout(0.5) is identity in eval/inference; training-mode RNG dropout not implemented.
    return avgpool_fc(x, params['fc_w'], params['fc_b'])


# ----------------------------------------------------------------------------
# Deterministic parameter initialization (ResNet-18 shapes); arrays only.
# ----------------------------------------------------------------------------
def init_bn(key, c):
    k1, k2, k3, k4 = jax.random.split(key, 4)
    return dict(gamma=jax.random.uniform(k1, (c,), minval=0.8, maxval=1.2),
                beta=jax.random.normal(k2, (c,)) * 0.1,
                mean=jax.random.normal(k3, (c,)) * 0.1,
                var=jax.random.uniform(k4, (c,), minval=0.5, maxval=1.5))


def init_conv(key, cout, cin, k):
    fan_out = cout * k * k
    std = (2.0 / fan_out) ** 0.5
    return jax.random.normal(key, (cout, cin, k, k)) * std


def init_params(key, in_channels, num_classes):
    keys = iter(jax.random.split(key, 128))
    nk = lambda: next(keys)
    p = {'conv1_w': init_conv(nk(), 64, in_channels, 7), 'bn1': init_bn(nk(), 64)}
    for li, (cin, cout, stride) in enumerate(LAYER_CFG, start=1):
        blocks = []
        for b in range(2):
            bcin = cin if b == 0 else cout
            bstride = stride if b == 0 else 1
            blk = {'conv1_w': init_conv(nk(), cout, bcin, 3),
                   'bn1': init_bn(nk(), cout),
                   'conv2_w': init_conv(nk(), cout, cout, 3),
                   'bn2': init_bn(nk(), cout)}
            if bstride != 1 or bcin != cout:
                blk['down_w'] = init_conv(nk(), cout, bcin, 1)
                blk['down_bn'] = init_bn(nk(), cout)
            blocks.append(blk)
        p[f'layer{li}'] = blocks
    p['fc_w'] = jax.random.normal(nk(), (num_classes, 512)) * (1.0 / 512.0) ** 0.5
    p['fc_b'] = jax.random.normal(nk(), (num_classes,)) * 0.01
    return p


# ----------------------------------------------------------------------------
if __name__ == "__main__":
    key = jax.random.PRNGKey(0)
    k_params, k_x = jax.random.split(key)

    num_classes = 10
    in_channels = 3
    x = jax.random.normal(k_x, (2, in_channels, 16, 16), dtype=jnp.float32)

    params = init_params(k_params, in_channels, num_classes)

    out = jax.jit(classifier_forward)(params, x)
    out = jax.block_until_ready(out)

    assert out.shape == (2, num_classes), out.shape
    assert out.dtype == jnp.float32
    print("KERNEL_OK")
</pallas_src>

<mosaic_0001>
module attributes {stable_mosaic.version = 11 : i64} {
  func.func @kernel(%arg0: i32, %arg1: i32, %arg2: i32, %arg3: memref<128x256xbf16, #tpu.memory_space<vmem>>, %arg4: memref<256x128xbf16, #tpu.memory_space<vmem>>, %arg5: memref<1x128xf32, #tpu.memory_space<vmem>>, %arg6: memref<128x128xbf16, #tpu.memory_space<vmem>>, %arg7: memref<128x128xf32, #tpu.memory_space<vmem>>) attributes {dimension_semantics = [#tpu.dimension_semantics<parallel>, #tpu.dimension_semantics<parallel>, #tpu.dimension_semantics<arbitrary>], iteration_bounds = array<i64: 1, 1, 1>, scalar_prefetch = 0 : i64, scratch_operands = 1 : i64, tpu.core_type = #tpu.core_type<tc>, window_params = [{transform_indices = @transform_0, window_bounds = array<i64: 128, 256>}, {transform_indices = @transform_1, window_bounds = array<i64: 256, 128>}, {transform_indices = @transform_2, window_bounds = array<i64: 1, 128>}, {transform_indices = @transform_3, window_bounds = array<i64: 128, 128>}]} {
    %c0_i32 = arith.constant 0 : i32
    %0 = arith.cmpi eq, %arg2, %c0_i32 : i32
    %1 = arith.extui %0 : i1 to i32
    %c0_i32_0 = arith.constant 0 : i32
    %2 = arith.cmpi ne, %1, %c0_i32_0 : i32
    scf.if %2 {
      %cst_10 = arith.constant 0.000000e+00 : f32
      %12 = vector.broadcast %cst_10 : f32 to vector<128x128xf32>
      %c0_11 = arith.constant 0 : index
      %c0_12 = arith.constant 0 : index
      %13 = vector.load %arg7[%c0_11, %c0_12] : memref<128x128xf32, #tpu.memory_space<vmem>>, vector<128x128xf32>
      tpu.vector_store %arg7[%c0_11, %c0_12], %12 {strides = array<i32>} : memref<128x128xf32, #tpu.memory_space<vmem>>, vector<128x128xf32>,
    } else {
    }
    %c0 = arith.constant 0 : index
    %c0_1 = arith.constant 0 : index
    %3 = vector.load %arg7[%c0, %c0_1] : memref<128x128xf32, #tpu.memory_space<vmem>>, vector<128x128xf32>
    %c0_2 = arith.constant 0 : index
    %c0_3 = arith.constant 0 : index
    %4 = vector.load %arg3[%c0_2, %c0_3] : memref<128x256xbf16, #tpu.memory_space<vmem>>, vector<128x256xbf16>
    %c0_4 = arith.constant 0 : index
    %c0_5 = arith.constant 0 : index
    %5 = vector.load %arg4[%c0_4, %c0_5] : memref<256x128xbf16, #tpu.memory_space<vmem>>, vector<256x128xbf16>
    %cst = arith.constant dense<0.000000e+00> : vector<128x128xf32>
    %6 = tpu.matmul %4, %5, %cst {dimension_numbers = #tpu.dot_dimension_numbers<[1], [0], [0], [1], [0, 0, 1, 1], [], []>} : vector<128x256xbf16>, vector<256x128xbf16>, vector<128x128xf32> -> vector<128x128xf32>
    %7 = arith.addf %3, %6 : vector<128x128xf32>
    %c0_6 = arith.constant 0 : index
    %c0_7 = arith.constant 0 : index
    %8 = vector.load %arg7[%c0_6, %c0_7] : memref<128x128xf32, #tpu.memory_space<vmem>>, vector<128x128xf32>
    tpu.vector_store %arg7[%c0_6, %c0_7], %7 {strides = array<i32>} : memref<128x128xf32, #tpu.memory_space<vmem>>, vector<128x128xf32>,
    %c0_i32_8 = arith.constant 0 : i32
    %9 = arith.cmpi eq, %arg2, %c0_i32_8 : i32
    %10 = arith.extui %9 : i1 to i32
    %c0_i32_9 = arith.constant 0 : i32
    %11 = arith.cmpi ne, %10, %c0_i32_9 : i32
    scf.if %11 {
      %c0_10 = arith.constant 0 : index
      %c0_11 = arith.constant 0 : index
      %12 = vector.load %arg7[%c0_10, %c0_11] : memref<128x128xf32, #tpu.memory_space<vmem>>, vector<128x128xf32>
      %c0_12 = arith.constant 0 : index
      %c0_13 = arith.constant 0 : index
      %13 = vector.load %arg5[%c0_12, %c0_13] : memref<1x128xf32, #tpu.memory_space<vmem>>, vector<1x128xf32>
      %14 = vector.broadcast %13 : vector<1x128xf32> to vector<128x128xf32>
      %15 = arith.addf %12, %14 : vector<128x128xf32>
      %cst_14 = arith.constant 0.000000e+00 : f32
      %16 = vector.broadcast %cst_14 : f32 to vector<128x128xf32>
      %17 = arith.maximumf %15, %16 : vector<128x128xf32>
      %18 = arith.truncf %17 : vector<128x128xf32> to vector<128x128xbf16>
      %c0_15 = arith.constant 0 : index
      %c0_16 = arith.constant 0 : index
      %19 = vector.load %arg6[%c0_15, %c0_16] : memref<128x128xbf16, #tpu.memory_space<vmem>>, vector<128x128xbf16>
      tpu.vector_store %arg6[%c0_15, %c0_16], %18 {strides = array<i32>} : memref<128x128xbf16, #tpu.memory_space<vmem>>, vector<128x128xbf16>,
    } else {
    }
    return
  }
  func.func @transform_0(%arg0: i32, %arg1: i32, %arg2: i32) -> (i32, i32) {
    %c0_i32 = arith.constant 0 : i32
    return %arg0, %arg2 : i32, i32
  }
  func.func @transform_1(%arg0: i32, %arg1: i32, %arg2: i32) -> (i32, i32) {
    %c0_i32 = arith.constant 0 : i32
    return %arg2, %arg1 : i32, i32
  }
  func.func @transform_2(%arg0: i32, %arg1: i32, %arg2: i32) -> (i32, i32) {
    %c0_i32 = arith.constant 0 : i32
    %c0_i32_0 = arith.constant 0 : i32
    return %c0_i32, %arg1 : i32, i32
  }
  func.func @transform_3(%arg0: i32, %arg1: i32, %arg2: i32) -> (i32, i32) {
    %c0_i32 = arith.constant 0 : i32
    return %arg0, %arg1 : i32, i32
  }
}

module attributes {stable_mosaic.version = 11 : i64} {
  func.func @kernel(%arg0: i32, %arg1: i32, %arg2: i32, %arg3: memref<128x512xbf16, #tpu.memory_space<vmem>>, %arg4: memref<512x128xbf16, #tpu.memory_space<vmem>>, %arg5: memref<1x128xf32, #tpu.memory_space<vmem>>, %arg6: memref<128x128xbf16, #tpu.memory_space<vmem>>, %arg7: memref<128x128xbf16, #tpu.memory_space<vmem>>, %arg8: memref<128x128xf32, #tpu.memory_space<vmem>>) attributes {dimension_semantics = [#tpu.dimension_semantics<parallel>, #tpu.dimension_semantics<parallel>, #tpu.dimension_semantics<arbitrary>], iteration_bounds = array<i64: 1, 1, 2>, scalar_prefetch = 0 : i64, scratch_operands = 1 : i64, tpu.core_type = #tpu.core_type<tc>, window_params = [{transform_indices = @transform_0, window_bounds = array<i64: 128, 512>}, {transform_indices = @transform_1, window_bounds = array<i64: 512, 128>}, {transform_indices = @transform_2, window_bounds = array<i64: 1, 128>}, {transform_indices = @transform_3, window_bounds = array<i64: 128, 128>}, {transform_indices = @transform_4, window_bounds = array<i64: 128, 128>}]} {
    %c0_i32 = arith.constant 0 : i32
    %0 = arith.cmpi eq, %arg2, %c0_i32 : i32
    %1 = arith.extui %0 : i1 to i32
    %c0_i32_0 = arith.constant 0 : i32
    %2 = arith.cmpi ne, %1, %c0_i32_0 : i32
    scf.if %2 {
      %cst_9 = arith.constant 0.000000e+00 : f32
      %12 = vector.broadcast %cst_9 : f32 to vector<128x128xf32>
      %c0_10 = arith.constant 0 : index
      %c0_11 = arith.constant 0 : index
      %13 = vector.load %arg8[%c0_10, %c0_11] : memref<128x128xf32, #tpu.memory_space<vmem>>, vector<128x128xf32>
      tpu.vector_store %arg8[%c0_10, %c0_11], %12 {strides = array<i32>} : memref<128x128xf32, #tpu.memory_space<vmem>>, vector<128x128xf32>,
    } else {
    }
    %c0 = arith.constant 0 : index
    %c0_1 = arith.constant 0 : index
    %3 = vector.load %arg8[%c0, %c0_1] : memref<128x128xf32, #tpu.memory_space<vmem>>, vector<128x128xf32>
    %c0_2 = arith.constant 0 : index
    %c0_3 = arith.constant 0 : index
    %4 = vector.load %arg3[%c0_2, %c0_3] : memref<128x512xbf16, #tpu.memory_space<vmem>>, vector<128x512xbf16>
    %c0_4 = arith.constant 0 : index
    %c0_5 = arith.constant 0 : index
    %5 = vector.load %arg4[%c0_4, %c0_5] : memref<512x128xbf16, #tpu.memory_space<vmem>>, vector<512x128xbf16>
    %cst = arith.constant dense<0.000000e+00> : vector<128x128xf32>
    %6 = tpu.matmul %4, %5, %cst {dimension_numbers = #tpu.dot_dimension_numbers<[1], [0], [0], [1], [0, 0, 1, 1], [], []>} : vector<128x512xbf16>, vector<512x128xbf16>, vector<128x128xf32> -> vector<128x128xf32>
    %7 = arith.addf %3, %6 : vector<128x128xf32>
    %c0_6 = arith.constant 0 : index
    %c0_7 = arith.constant 0 : index
    %8 = vector.load %arg8[%c0_6, %c0_7] : memref<128x128xf32, #tpu.memory_space<vmem>>, vector<128x128xf32>
    tpu.vector_store %arg8[%c0_6, %c0_7], %7 {strides = array<i32>} : memref<128x128xf32, #tpu.memory_space<vmem>>, vector<128x128xf32>,
    %c1_i32 = arith.constant 1 : i32
    %9 = arith.cmpi eq, %arg2, %c1_i32 : i32
    %10 = arith.extui %9 : i1 to i32
    %c0_i32_8 = arith.constant 0 : i32
    %11 = arith.cmpi ne, %10, %c0_i32_8 : i32
    scf.if %11 {
      %c0_9 = arith.constant 0 : index
      %c0_10 = arith.constant 0 : index
      %12 = vector.load %arg8[%c0_9, %c0_10] : memref<128x128xf32, #tpu.memory_space<vmem>>, vector<128x128xf32>
      %c0_11 = arith.constant 0 : index
      %c0_12 = arith.constant 0 : index
      %13 = vector.load %arg5[%c0_11, %c0_12] : memref<1x128xf32, #tpu.memory_space<vmem>>, vector<1x128xf32>
      %14 = vector.broadcast %13 : vector<1x128xf32> to vector<128x128xf32>
      %15 = arith.addf %12, %14 : vector<128x128xf32>
      %c0_13 = arith.constant 0 : index
      %c0_14 = arith.constant 0 : index
      %16 = vector.load %arg6[%c0_13, %c0_14] : memref<128x128xbf16, #tpu.memory_space<vmem>>, vector<128x128xbf16>
      %17 = arith.extf %16 : vector<128x128xbf16> to vector<128x128xf32>
      %18 = arith.addf %15, %17 : vector<128x128xf32>
      %cst_15 = arith.constant 0.000000e+00 : f32
      %19 = vector.broadcast %cst_15 : f32 to vector<128x128xf32>
      %20 = arith.maximumf %18, %19 : vector<128x128xf32>
      %21 = arith.truncf %20 : vector<128x128xf32> to vector<128x128xbf16>
      %c0_16 = arith.constant 0 : index
      %c0_17 = arith.constant 0 : index
      %22 = vector.load %arg7[%c0_16, %c0_17] : memref<128x128xbf16, #tpu.memory_space<vmem>>, vector<128x128xbf16>
      tpu.vector_store %arg7[%c0_16, %c0_17], %21 {strides = array<i32>} : memref<128x128xbf16, #tpu.memory_space<vmem>>, vector<128x128xbf16>,
    } else {
    }
    return
  }
  func.func @transform_0(%arg0: i32, %arg1: i32, %arg2: i32) -> (i32, i32) {
    %c0_i32 = arith.constant 0 : i32
    return %arg0, %arg2 : i32, i32
  }
  func.func @transform_1(%arg0: i32, %arg1: i32, %arg2: i32) -> (i32, i32) {
    %c0_i32 = arith.constant 0 : i32
    return %arg2, %arg1 : i32, i32
  }
  func.func @transform_2(%arg0: i32, %arg1: i32, %arg2: i32) -> (i32, i32) {
    %c0_i32 = arith.constant 0 : i32
    %c0_i32_0 = arith.constant 0 : i32
    return %c0_i32, %arg1 : i32, i32
  }
  func.func @transform_3(%arg0: i32, %arg1: i32, %arg2: i32) -> (i32, i32) {
    %c0_i32 = arith.constant 0 : i32
    return %arg0, %arg1 : i32, i32
  }
  func.func @transform_4(%arg0: i32, %arg1: i32, %arg2: i32) -> (i32, i32) {
    %c0_i32 = arith.constant 0 : i32
    return %arg0, %arg1 : i32, i32
  }
}

module attributes {stable_mosaic.version = 11 : i64} {
  func.func @kernel(%arg0: i32, %arg1: i32, %arg2: i32, %arg3: memref<128x512xbf16, #tpu.memory_space<vmem>>, %arg4: memref<512x128xbf16, #tpu.memory_space<vmem>>, %arg5: memref<1x128xf32, #tpu.memory_space<vmem>>, %arg6: memref<128x128xbf16, #tpu.memory_space<vmem>>, %arg7: memref<128x128xf32, #tpu.memory_space<vmem>>) attributes {dimension_semantics = [#tpu.dimension_semantics<parallel>, #tpu.dimension_semantics<parallel>, #tpu.dimension_semantics<arbitrary>], iteration_bounds = array<i64: 1, 1, 2>, scalar_prefetch = 0 : i64, scratch_operands = 1 : i64, tpu.core_type = #tpu.core_type<tc>, window_params = [{transform_indices = @transform_0, window_bounds = array<i64: 128, 512>}, {transform_indices = @transform_1, window_bounds = array<i64: 512, 128>}, {transform_indices = @transform_2, window_bounds = array<i64: 1, 128>}, {transform_indices = @transform_3, window_bounds = array<i64: 128, 128>}]} {
    %c0_i32 = arith.constant 0 : i32
    %0 = arith.cmpi eq, %arg2, %c0_i32 : i32
    %1 = arith.extui %0 : i1 to i32
    %c0_i32_0 = arith.constant 0 : i32
    %2 = arith.cmpi ne, %1, %c0_i32_0 : i32
    scf.if %2 {
      %cst_9 = arith.constant 0.000000e+00 : f32
      %12 = vector.broadcast %cst_9 : f32 to vector<128x128xf32>
      %c0_10 = arith.constant 0 : index
      %c0_11 = arith.constant 0 : index
      %13 = vector.load %arg7[%c0_10, %c0_11] : memref<128x128xf32, #tpu.memory_space<vmem>>, vector<128x128xf32>
      tpu.vector_store %arg7[%c0_10, %c0_11], %12 {strides = array<i32>} : memref<128x128xf32, #tpu.memory_space<vmem>>, vector<128x128xf32>,
    } else {
    }
    %c0 = arith.constant 0 : index
    %c0_1 = arith.constant 0 : index
    %3 = vector.load %arg7[%c0, %c0_1] : memref<128x128xf32, #tpu.memory_space<vmem>>, vector<128x128xf32>
    %c0_2 = arith.constant 0 : index
    %c0_3 = arith.constant 0 : index
    %4 = vector.load %arg3[%c0_2, %c0_3] : memref<128x512xbf16, #tpu.memory_space<vmem>>, vector<128x512xbf16>
    %c0_4 = arith.constant 0 : index
    %c0_5 = arith.constant 0 : index
    %5 = vector.load %arg4[%c0_4, %c0_5] : memref<512x128xbf16, #tpu.memory_space<vmem>>, vector<512x128xbf16>
    %cst = arith.constant dense<0.000000e+00> : vector<128x128xf32>
    %6 = tpu.matmul %4, %5, %cst {dimension_numbers = #tpu.dot_dimension_numbers<[1], [0], [0], [1], [0, 0, 1, 1], [], []>} : vector<128x512xbf16>, vector<512x128xbf16>, vector<128x128xf32> -> vector<128x128xf32>
    %7 = arith.addf %3, %6 : vector<128x128xf32>
    %c0_6 = arith.constant 0 : index
    %c0_7 = arith.constant 0 : index
    %8 = vector.load %arg7[%c0_6, %c0_7] : memref<128x128xf32, #tpu.memory_space<vmem>>, vector<128x128xf32>
    tpu.vector_store %arg7[%c0_6, %c0_7], %7 {strides = array<i32>} : memref<128x128xf32, #tpu.memory_space<vmem>>, vector<128x128xf32>,
    %c1_i32 = arith.constant 1 : i32
    %9 = arith.cmpi eq, %arg2, %c1_i32 : i32
    %10 = arith.extui %9 : i1 to i32
    %c0_i32_8 = arith.constant 0 : i32
    %11 = arith.cmpi ne, %10, %c0_i32_8 : i32
    scf.if %11 {
      %c0_9 = arith.constant 0 : index
      %c0_10 = arith.constant 0 : index
      %12 = vector.load %arg7[%c0_9, %c0_10] : memref<128x128xf32, #tpu.memory_space<vmem>>, vector<128x128xf32>
      %c0_11 = arith.constant 0 : index
      %c0_12 = arith.constant 0 : index
      %13 = vector.load %arg5[%c0_11, %c0_12] : memref<1x128xf32, #tpu.memory_space<vmem>>, vector<1x128xf32>
      %14 = vector.broadcast %13 : vector<1x128xf32> to vector<128x128xf32>
      %15 = arith.addf %12, %14 : vector<128x128xf32>
      %cst_13 = arith.constant 0.000000e+00 : f32
      %16 = vector.broadcast %cst_13 : f32 to vector<128x128xf32>
      %17 = arith.maximumf %15, %16 : vector<128x128xf32>
      %18 = arith.truncf %17 : vector<128x128xf32> to vector<128x128xbf16>
      %c0_14 = arith.constant 0 : index
      %c0_15 = arith.constant 0 : index
      %19 = vector.load %arg6[%c0_14, %c0_15] : memref<128x128xbf16, #tpu.memory_space<vmem>>, vector<128x128xbf16>
      tpu.vector_store %arg6[%c0_14, %c0_15], %18 {strides = array<i32>} : memref<128x128xbf16, #tpu.memory_space<vmem>>, vector<128x128xbf16>,
    } else {
    }
    return
  }
  func.func @transform_0(%arg0: i32, %arg1: i32, %arg2: i32) -> (i32, i32) {
    %c0_i32 = arith.constant 0 : i32
    return %arg0, %arg2 : i32, i32
  }
  func.func @transform_1(%arg0: i32, %arg1: i32, %arg2: i32) -> (i32, i32) {
    %c0_i32 = arith.constant 0 : i32
    return %arg2, %arg1 : i32, i32
  }
  func.func @transform_2(%arg0: i32, %arg1: i32, %arg2: i32) -> (i32, i32) {
    %c0_i32 = arith.constant 0 : i32
    %c0_i32_0 = arith.constant 0 : i32
    return %c0_i32, %arg1 : i32, i32
  }
  func.func @transform_3(%arg0: i32, %arg1: i32, %arg2: i32) -> (i32, i32) {
    %c0_i32 = arith.constant 0 : i32
    return %arg0, %arg1 : i32, i32
  }
}

module attributes {stable_mosaic.version = 11 : i64} {
  func.func @kernel(%arg0: i32, %arg1: i32, %arg2: i32, %arg3: memref<32x512xbf16, #tpu.memory_space<vmem>>, %arg4: memref<512x128xbf16, #tpu.memory_space<vmem>>, %arg5: memref<1x128xf32, #tpu.memory_space<vmem>>, %arg6: memref<32x128xbf16, #tpu.memory_space<vmem>>, %arg7: memref<32x128xf32, #tpu.memory_space<vmem>>) attributes {dimension_semantics = [#tpu.dimension_semantics<parallel>, #tpu.dimension_semantics<parallel>, #tpu.dimension_semantics<arbitrary>], iteration_bounds = array<i64: 1, 1, 2>, scalar_prefetch = 0 : i64, scratch_operands = 1 : i64, tpu.core_type = #tpu.core_type<tc>, window_params = [{transform_indices = @transform_0, window_bounds = array<i64: 32, 512>}, {transform_indices = @transform_1, window_bounds = array<i64: 512, 128>}, {transform_indices = @transform_2, window_bounds = array<i64: 1, 128>}, {transform_indices = @transform_3, window_bounds = array<i64: 32, 128>}]} {
    %c0_i32 = arith.constant 0 : i32
    %0 = arith.cmpi eq, %arg2, %c0_i32 : i32
    %1 = arith.extui %0 : i1 to i32
    %c0_i32_0 = arith.constant 0 : i32
    %2 = arith.cmpi ne, %1, %c0_i32_0 : i32
    scf.if %2 {
      %cst_9 = arith.constant 0.000000e+00 : f32
      %12 = vector.broadcast %cst_9 : f32 to vector<32x128xf32>
      %c0_10 = arith.constant 0 : index
      %c0_11 = arith.constant 0 : index
      %13 = vector.load %arg7[%c0_10, %c0_11] : memref<32x128xf32, #tpu.memory_space<vmem>>, vector<32x128xf32>
      tpu.vector_store %arg7[%c0_10, %c0_11], %12 {strides = array<i32>} : memref<32x128xf32, #tpu.memory_space<vmem>>, vector<32x128xf32>,
    } else {
    }
    %c0 = arith.constant 0 : index
    %c0_1 = arith.constant 0 : index
    %3 = vector.load %arg7[%c0, %c0_1] : memref<32x128xf32, #tpu.memory_space<vmem>>, vector<32x128xf32>
    %c0_2 = arith.constant 0 : index
    %c0_3 = arith.constant 0 : index
    %4 = vector.load %arg3[%c0_2, %c0_3] : memref<32x512xbf16, #tpu.memory_space<vmem>>, vector<32x512xbf16>
    %c0_4 = arith.constant 0 : index
    %c0_5 = arith.constant 0 : index
    %5 = vector.load %arg4[%c0_4, %c0_5] : memref<512x128xbf16, #tpu.memory_space<vmem>>, vector<512x128xbf16>
    %cst = arith.constant dense<0.000000e+00> : vector<32x128xf32>
    %6 = tpu.matmul %4, %5, %cst {dimension_numbers = #tpu.dot_dimension_numbers<[1], [0], [0], [1], [0, 0, 1, 1], [], []>} : vector<32x512xbf16>, vector<512x128xbf16>, vector<32x128xf32> -> vector<32x128xf32>
    %7 = arith.addf %3, %6 : vector<32x128xf32>
    %c0_6 = arith.constant 0 : index
    %c0_7 = arith.constant 0 : index
    %8 = vector.load %arg7[%c0_6, %c0_7] : memref<32x128xf32, #tpu.memory_space<vmem>>, vector<32x128xf32>
    tpu.vector_store %arg7[%c0_6, %c0_7], %7 {strides = array<i32>} : memref<32x128xf32, #tpu.memory_space<vmem>>, vector<32x128xf32>,
    %c1_i32 = arith.constant 1 : i32
    %9 = arith.cmpi eq, %arg2, %c1_i32 : i32
    %10 = arith.extui %9 : i1 to i32
    %c0_i32_8 = arith.constant 0 : i32
    %11 = arith.cmpi ne, %10, %c0_i32_8 : i32
    scf.if %11 {
      %c0_9 = arith.constant 0 : index
      %c0_10 = arith.constant 0 : index
      %12 = vector.load %arg7[%c0_9, %c0_10] : memref<32x128xf32, #tpu.memory_space<vmem>>, vector<32x128xf32>
      %c0_11 = arith.constant 0 : index
      %c0_12 = arith.constant 0 : index
      %13 = vector.load %arg5[%c0_11, %c0_12] : memref<1x128xf32, #tpu.memory_space<vmem>>, vector<1x128xf32>
      %14 = vector.broadcast %13 : vector<1x128xf32> to vector<32x128xf32>
      %15 = arith.addf %12, %14 : vector<32x128xf32>
      %cst_13 = arith.constant 0.000000e+00 : f32
      %16 = vector.broadcast %cst_13 : f32 to vector<32x128xf32>
      %17 = arith.maximumf %15, %16 : vector<32x128xf32>
      %18 = arith.truncf %17 : vector<32x128xf32> to vector<32x128xbf16>
      %c0_14 = arith.constant 0 : index
      %c0_15 = arith.constant 0 : index
      %19 = vector.load %arg6[%c0_14, %c0_15] : memref<32x128xbf16, #tpu.memory_space<vmem>>, vector<32x128xbf16>
      tpu.vector_store %arg6[%c0_14, %c0_15], %18 {strides = array<i32>} : memref<32x128xbf16, #tpu.memory_space<vmem>>, vector<32x128xbf16>,
    } else {
    }
    return
  }
  func.func @transform_0(%arg0: i32, %arg1: i32, %arg2: i32) -> (i32, i32) {
    %c0_i32 = arith.constant 0 : i32
    return %arg0, %arg2 : i32, i32
  }
  func.func @transform_1(%arg0: i32, %arg1: i32, %arg2: i32) -> (i32, i32) {
    %c0_i32 = arith.constant 0 : i32
    return %arg2, %arg1 : i32, i32
  }
  func.func @transform_2(%arg0: i32, %arg1: i32, %arg2: i32) -> (i32, i32) {
    %c0_i32 = arith.constant 0 : i32
    %c0_i32_0 = arith.constant 0 : i32
    return %c0_i32, %arg1 : i32, i32
  }
  func.func @transform_3(%arg0: i32, %arg1: i32, %arg2: i32) -> (i32, i32) {
    %c0_i32 = arith.constant 0 : i32
    return %arg0, %arg1 : i32, i32
  }
}

module attributes {stable_mosaic.version = 11 : i64} {
  func.func @kernel(%arg0: i32, %arg1: i32, %arg2: i32, %arg3: memref<32x128xbf16, #tpu.memory_space<vmem>>, %arg4: memref<128x128xbf16, #tpu.memory_space<vmem>>, %arg5: memref<1x128xf32, #tpu.memory_space<vmem>>, %arg6: memref<32x128xbf16, #tpu.memory_space<vmem>>, %arg7: memref<32x128xf32, #tpu.memory_space<vmem>>) attributes {dimension_semantics = [#tpu.dimension_semantics<parallel>, #tpu.dimension_semantics<parallel>, #tpu.dimension_semantics<arbitrary>], iteration_bounds = array<i64: 1, 1, 1>, scalar_prefetch = 0 : i64, scratch_operands = 1 : i64, tpu.core_type = #tpu.core_type<tc>, window_params = [{transform_indices = @transform_0, window_bounds = array<i64: 32, 128>}, {transform_indices = @transform_1, window_bounds = array<i64: 128, 128>}, {transform_indices = @transform_2, window_bounds = array<i64: 1, 128>}, {transform_indices = @transform_3, window_bounds = array<i64: 32, 128>}]} {
    %c0_i32 = arith.constant 0 : i32
    %0 = arith.cmpi eq, %arg2, %c0_i32 : i32
    %1 = arith.extui %0 : i1 to i32
    %c0_i32_0 = arith.constant 0 : i32
    %2 = arith.cmpi ne, %1, %c0_i32_0 : i32
    scf.if %2 {
      %cst_10 = arith.constant 0.000000e+00 : f32
      %12 = vector.broadcast %cst_10 : f32 to vector<32x128xf32>
      %c0_11 = arith.constant 0 : index
      %c0_12 = arith.constant 0 : index
      %13 = vector.load %arg7[%c0_11, %c0_12] : memref<32x128xf32, #tpu.memory_space<vmem>>, vector<32x128xf32>
      tpu.vector_store %arg7[%c0_11, %c0_12], %12 {strides = array<i32>} : memref<32x128xf32, #tpu.memory_space<vmem>>, vector<32x128xf32>,
    } else {
    }
    %c0 = arith.constant 0 : index
    %c0_1 = arith.constant 0 : index
    %3 = vector.load %arg7[%c0, %c0_1] : memref<32x128xf32, #tpu.memory_space<vmem>>, vector<32x128xf32>
    %c0_2 = arith.constant 0 : index
    %c0_3 = arith.constant 0 : index
    %4 = vector.load %arg3[%c0_2, %c0_3] : memref<32x128xbf16, #tpu.memory_space<vmem>>, vector<32x128xbf16>
    %c0_4 = arith.constant 0 : index
    %c0_5 = arith.constant 0 : index
    %5 = vector.load %arg4[%c0_4, %c0_5] : memref<128x128xbf16, #tpu.memory_space<vmem>>, vector<128x128xbf16>
    %cst = arith.constant dense<0.000000e+00> : vector<32x128xf32>
    %6 = tpu.matmul %4, %5, %cst {dimension_numbers = #tpu.dot_dimension_numbers<[1], [0], [0], [1], [0, 0, 1, 1], [], []>} : vector<32x128xbf16>, vector<128x128xbf16>, vector<32x128xf32> -> vector<32x128xf32>
    %7 = arith.addf %3, %6 : vector<32x128xf32>
    %c0_6 = arith.constant 0 : index
    %c0_7 = arith.constant 0 : index
    %8 = vector.load %arg7[%c0_6, %c0_7] : memref<32x128xf32, #tpu.memory_space<vmem>>, vector<32x128xf32>
    tpu.vector_store %arg7[%c0_6, %c0_7], %7 {strides = array<i32>} : memref<32x128xf32, #tpu.memory_space<vmem>>, vector<32x128xf32>,
    %c0_i32_8 = arith.constant 0 : i32
    %9 = arith.cmpi eq, %arg2, %c0_i32_8 : i32
    %10 = arith.extui %9 : i1 to i32
    %c0_i32_9 = arith.constant 0 : i32
    %11 = arith.cmpi ne, %10, %c0_i32_9 : i32
    scf.if %11 {
      %c0_10 = arith.constant 0 : index
      %c0_11 = arith.constant 0 : index
      %12 = vector.load %arg7[%c0_10, %c0_11] : memref<32x128xf32, #tpu.memory_space<vmem>>, vector<32x128xf32>
      %c0_12 = arith.constant 0 : index
      %c0_13 = arith.constant 0 : index
      %13 = vector.load %arg5[%c0_12, %c0_13] : memref<1x128xf32, #tpu.memory_space<vmem>>, vector<1x128xf32>
      %14 = vector.broadcast %13 : vector<1x128xf32> to vector<32x128xf32>
      %15 = arith.addf %12, %14 : vector<32x128xf32>
      %16 = arith.truncf %15 : vector<32x128xf32> to vector<32x128xbf16>
      %c0_14 = arith.constant 0 : index
      %c0_15 = arith.constant 0 : index
      %17 = vector.load %arg6[%c0_14, %c0_15] : memref<32x128xbf16, #tpu.memory_space<vmem>>, vector<32x128xbf16>
      tpu.vector_store %arg6[%c0_14, %c0_15], %16 {strides = array<i32>} : memref<32x128xbf16, #tpu.memory_space<vmem>>, vector<32x128xbf16>,
    } else {
    }
    return
  }
  func.func @transform_0(%arg0: i32, %arg1: i32, %arg2: i32) -> (i32, i32) {
    %c0_i32 = arith.constant 0 : i32
    return %arg0, %arg2 : i32, i32
  }
  func.func @transform_1(%arg0: i32, %arg1: i32, %arg2: i32) -> (i32, i32) {
    %c0_i32 = arith.constant 0 : i32
    return %arg2, %arg1 : i32, i32
  }
  func.func @transform_2(%arg0: i32, %arg1: i32, %arg2: i32) -> (i32, i32) {
    %c0_i32 = arith.constant 0 : i32
    %c0_i32_0 = arith.constant 0 : i32
    return %c0_i32, %arg1 : i32, i32
  }
  func.func @transform_3(%arg0: i32, %arg1: i32, %arg2: i32) -> (i32, i32) {
    %c0_i32 = arith.constant 0 : i32
    return %arg0, %arg1 : i32, i32
  }
}

module attributes {stable_mosaic.version = 11 : i64} {
  func.func @kernel(%arg0: i32, %arg1: i32, %arg2: i32, %arg3: memref<32x512xbf16, #tpu.memory_space<vmem>>, %arg4: memref<512x128xbf16, #tpu.memory_space<vmem>>, %arg5: memref<1x128xf32, #tpu.memory_space<vmem>>, %arg6: memref<32x128xbf16, #tpu.memory_space<vmem>>, %arg7: memref<32x128xbf16, #tpu.memory_space<vmem>>, %arg8: memref<32x128xf32, #tpu.memory_space<vmem>>) attributes {dimension_semantics = [#tpu.dimension_semantics<parallel>, #tpu.dimension_semantics<parallel>, #tpu.dimension_semantics<arbitrary>], iteration_bounds = array<i64: 1, 1, 3>, scalar_prefetch = 0 : i64, scratch_operands = 1 : i64, tpu.core_type = #tpu.core_type<tc>, window_params = [{transform_indices = @transform_0, window_bounds = array<i64: 32, 512>}, {transform_indices = @transform_1, window_bounds = array<i64: 512, 128>}, {transform_indices = @transform_2, window_bounds = array<i64: 1, 128>}, {transform_indices = @transform_3, window_bounds = array<i64: 32, 128>}, {transform_indices = @transform_4, window_bounds = array<i64: 32, 128>}]} {
    %c0_i32 = arith.constant 0 : i32
    %0 = arith.cmpi eq, %arg2, %c0_i32 : i32
    %1 = arith.extui %0 : i1 to i32
    %c0_i32_0 = arith.constant 0 : i32
    %2 = arith.cmpi ne, %1, %c0_i32_0 : i32
    scf.if %2 {
      %cst_9 = arith.constant 0.000000e+00 : f32
      %12 = vector.broadcast %cst_9 : f32 to vector<32x128xf32>
      %c0_10 = arith.constant 0 : index
      %c0_11 = arith.constant 0 : index
      %13 = vector.load %arg8[%c0_10, %c0_11] : memref<32x128xf32, #tpu.memory_space<vmem>>, vector<32x128xf32>
      tpu.vector_store %arg8[%c0_10, %c0_11], %12 {strides = array<i32>} : memref<32x128xf32, #tpu.memory_space<vmem>>, vector<32x128xf32>,
    } else {
    }
    %c0 = arith.constant 0 : index
    %c0_1 = arith.constant 0 : index
    %3 = vector.load %arg8[%c0, %c0_1] : memref<32x128xf32, #tpu.memory_space<vmem>>, vector<32x128xf32>
    %c0_2 = arith.constant 0 : index
    %c0_3 = arith.constant 0 : index
    %4 = vector.load %arg3[%c0_2, %c0_3] : memref<32x512xbf16, #tpu.memory_space<vmem>>, vector<32x512xbf16>
    %c0_4 = arith.constant 0 : index
    %c0_5 = arith.constant 0 : index
    %5 = vector.load %arg4[%c0_4, %c0_5] : memref<512x128xbf16, #tpu.memory_space<vmem>>, vector<512x128xbf16>
    %cst = arith.constant dense<0.000000e+00> : vector<32x128xf32>
    %6 = tpu.matmul %4, %5, %cst {dimension_numbers = #tpu.dot_dimension_numbers<[1], [0], [0], [1], [0, 0, 1, 1], [], []>} : vector<32x512xbf16>, vector<512x128xbf16>, vector<32x128xf32> -> vector<32x128xf32>
    %7 = arith.addf %3, %6 : vector<32x128xf32>
    %c0_6 = arith.constant 0 : index
    %c0_7 = arith.constant 0 : index
    %8 = vector.load %arg8[%c0_6, %c0_7] : memref<32x128xf32, #tpu.memory_space<vmem>>, vector<32x128xf32>
    tpu.vector_store %arg8[%c0_6, %c0_7], %7 {strides = array<i32>} : memref<32x128xf32, #tpu.memory_space<vmem>>, vector<32x128xf32>,
    %c2_i32 = arith.constant 2 : i32
    %9 = arith.cmpi eq, %arg2, %c2_i32 : i32
    %10 = arith.extui %9 : i1 to i32
    %c0_i32_8 = arith.constant 0 : i32
    %11 = arith.cmpi ne, %10, %c0_i32_8 : i32
    scf.if %11 {
      %c0_9 = arith.constant 0 : index
      %c0_10 = arith.constant 0 : index
      %12 = vector.load %arg8[%c0_9, %c0_10] : memref<32x128xf32, #tpu.memory_space<vmem>>, vector<32x128xf32>
      %c0_11 = arith.constant 0 : index
      %c0_12 = arith.constant 0 : index
      %13 = vector.load %arg5[%c0_11, %c0_12] : memref<1x128xf32, #tpu.memory_space<vmem>>, vector<1x128xf32>
      %14 = vector.broadcast %13 : vector<1x128xf32> to vector<32x128xf32>
      %15 = arith.addf %12, %14 : vector<32x128xf32>
      %c0_13 = arith.constant 0 : index
      %c0_14 = arith.constant 0 : index
      %16 = vector.load %arg6[%c0_13, %c0_14] : memref<32x128xbf16, #tpu.memory_space<vmem>>, vector<32x128xbf16>
      %17 = arith.extf %16 : vector<32x128xbf16> to vector<32x128xf32>
      %18 = arith.addf %15, %17 : vector<32x128xf32>
      %cst_15 = arith.constant 0.000000e+00 : f32
      %19 = vector.broadcast %cst_15 : f32 to vector<32x128xf32>
      %20 = arith.maximumf %18, %19 : vector<32x128xf32>
      %21 = arith.truncf %20 : vector<32x128xf32> to vector<32x128xbf16>
      %c0_16 = arith.constant 0 : index
      %c0_17 = arith.constant 0 : index
      %22 = vector.load %arg7[%c0_16, %c0_17] : memref<32x128xbf16, #tpu.memory_space<vmem>>, vector<32x128xbf16>
      tpu.vector_store %arg7[%c0_16, %c0_17], %21 {strides = array<i32>} : memref<32x128xbf16, #tpu.memory_space<vmem>>, vector<32x128xbf16>,
    } else {
    }
    return
  }
  func.func @transform_0(%arg0: i32, %arg1: i32, %arg2: i32) -> (i32, i32) {
    %c0_i32 = arith.constant 0 : i32
    return %arg0, %arg2 : i32, i32
  }
  func.func @transform_1(%arg0: i32, %arg1: i32, %arg2: i32) -> (i32, i32) {
    %c0_i32 = arith.constant 0 : i32
    return %arg2, %arg1 : i32, i32
  }
  func.func @transform_2(%arg0: i32, %arg1: i32, %arg2: i32) -> (i32, i32) {
    %c0_i32 = arith.constant 0 : i32
    %c0_i32_0 = arith.constant 0 : i32
    return %c0_i32, %arg1 : i32, i32
  }
  func.func @transform_3(%arg0: i32, %arg1: i32, %arg2: i32) -> (i32, i32) {
    %c0_i32 = arith.constant 0 : i32
    return %arg0, %arg1 : i32, i32
  }
  func.func @transform_4(%arg0: i32, %arg1: i32, %arg2: i32) -> (i32, i32) {
    %c0_i32 = arith.constant 0 : i32
    return %arg0, %arg1 : i32, i32
  }
}

module attributes {stable_mosaic.version = 11 : i64} {
  func.func @kernel(%arg0: i32, %arg1: i32, %arg2: i32, %arg3: memref<32x512xbf16, #tpu.memory_space<vmem>>, %arg4: memref<512x128xbf16, #tpu.memory_space<vmem>>, %arg5: memref<1x128xf32, #tpu.memory_space<vmem>>, %arg6: memref<32x128xbf16, #tpu.memory_space<vmem>>, %arg7: memref<32x128xf32, #tpu.memory_space<vmem>>) attributes {dimension_semantics = [#tpu.dimension_semantics<parallel>, #tpu.dimension_semantics<parallel>, #tpu.dimension_semantics<arbitrary>], iteration_bounds = array<i64: 1, 1, 3>, scalar_prefetch = 0 : i64, scratch_operands = 1 : i64, tpu.core_type = #tpu.core_type<tc>, window_params = [{transform_indices = @transform_0, window_bounds = array<i64: 32, 512>}, {transform_indices = @transform_1, window_bounds = array<i64: 512, 128>}, {transform_indices = @transform_2, window_bounds = array<i64: 1, 128>}, {transform_indices = @transform_3, window_bounds = array<i64: 32, 128>}]} {
    %c0_i32 = arith.constant 0 : i32
    %0 = arith.cmpi eq, %arg2, %c0_i32 : i32
    %1 = arith.extui %0 : i1 to i32
    %c0_i32_0 = arith.constant 0 : i32
    %2 = arith.cmpi ne, %1, %c0_i32_0 : i32
    scf.if %2 {
      %cst_9 = arith.constant 0.000000e+00 : f32
      %12 = vector.broadcast %cst_9 : f32 to vector<32x128xf32>
      %c0_10 = arith.constant 0 : index
      %c0_11 = arith.constant 0 : index
      %13 = vector.load %arg7[%c0_10, %c0_11] : memref<32x128xf32, #tpu.memory_space<vmem>>, vector<32x128xf32>
      tpu.vector_store %arg7[%c0_10, %c0_11], %12 {strides = array<i32>} : memref<32x128xf32, #tpu.memory_space<vmem>>, vector<32x128xf32>,
    } else {
    }
    %c0 = arith.constant 0 : index
    %c0_1 = arith.constant 0 : index
    %3 = vector.load %arg7[%c0, %c0_1] : memref<32x128xf32, #tpu.memory_space<vmem>>, vector<32x128xf32>
    %c0_2 = arith.constant 0 : index
    %c0_3 = arith.constant 0 : index
    %4 = vector.load %arg3[%c0_2, %c0_3] : memref<32x512xbf16, #tpu.memory_space<vmem>>, vector<32x512xbf16>
    %c0_4 = arith.constant 0 : index
    %c0_5 = arith.constant 0 : index
    %5 = vector.load %arg4[%c0_4, %c0_5] : memref<512x128xbf16, #tpu.memory_space<vmem>>, vector<512x128xbf16>
    %cst = arith.constant dense<0.000000e+00> : vector<32x128xf32>
    %6 = tpu.matmul %4, %5, %cst {dimension_numbers = #tpu.dot_dimension_numbers<[1], [0], [0], [1], [0, 0, 1, 1], [], []>} : vector<32x512xbf16>, vector<512x128xbf16>, vector<32x128xf32> -> vector<32x128xf32>
    %7 = arith.addf %3, %6 : vector<32x128xf32>
    %c0_6 = arith.constant 0 : index
    %c0_7 = arith.constant 0 : index
    %8 = vector.load %arg7[%c0_6, %c0_7] : memref<32x128xf32, #tpu.memory_space<vmem>>, vector<32x128xf32>
    tpu.vector_store %arg7[%c0_6, %c0_7], %7 {strides = array<i32>} : memref<32x128xf32, #tpu.memory_space<vmem>>, vector<32x128xf32>,
    %c2_i32 = arith.constant 2 : i32
    %9 = arith.cmpi eq, %arg2, %c2_i32 : i32
    %10 = arith.extui %9 : i1 to i32
    %c0_i32_8 = arith.constant 0 : i32
    %11 = arith.cmpi ne, %10, %c0_i32_8 : i32
    scf.if %11 {
      %c0_9 = arith.constant 0 : index
      %c0_10 = arith.constant 0 : index
      %12 = vector.load %arg7[%c0_9, %c0_10] : memref<32x128xf32, #tpu.memory_space<vmem>>, vector<32x128xf32>
      %c0_11 = arith.constant 0 : index
      %c0_12 = arith.constant 0 : index
      %13 = vector.load %arg5[%c0_11, %c0_12] : memref<1x128xf32, #tpu.memory_space<vmem>>, vector<1x128xf32>
      %14 = vector.broadcast %13 : vector<1x128xf32> to vector<32x128xf32>
      %15 = arith.addf %12, %14 : vector<32x128xf32>
      %cst_13 = arith.constant 0.000000e+00 : f32
      %16 = vector.broadcast %cst_13 : f32 to vector<32x128xf32>
      %17 = arith.maximumf %15, %16 : vector<32x128xf32>
      %18 = arith.truncf %17 : vector<32x128xf32> to vector<32x128xbf16>
      %c0_14 = arith.constant 0 : index
      %c0_15 = arith.constant 0 : index
      %19 = vector.load %arg6[%c0_14, %c0_15] : memref<32x128xbf16, #tpu.memory_space<vmem>>, vector<32x128xbf16>
      tpu.vector_store %arg6[%c0_14, %c0_15], %18 {strides = array<i32>} : memref<32x128xbf16, #tpu.memory_space<vmem>>, vector<32x128xbf16>,
    } else {
    }
    return
  }
  func.func @transform_0(%arg0: i32, %arg1: i32, %arg2: i32) -> (i32, i32) {
    %c0_i32 = arith.constant 0 : i32
    return %arg0, %arg2 : i32, i32
  }
  func.func @transform_1(%arg0: i32, %arg1: i32, %arg2: i32) -> (i32, i32) {
    %c0_i32 = arith.constant 0 : i32
    return %arg2, %arg1 : i32, i32
  }
  func.func @transform_2(%arg0: i32, %arg1: i32, %arg2: i32) -> (i32, i32) {
    %c0_i32 = arith.constant 0 : i32
    %c0_i32_0 = arith.constant 0 : i32
    return %c0_i32, %arg1 : i32, i32
  }
  func.func @transform_3(%arg0: i32, %arg1: i32, %arg2: i32) -> (i32, i32) {
    %c0_i32 = arith.constant 0 : i32
    return %arg0, %arg1 : i32, i32
  }
}

module attributes {stable_mosaic.version = 11 : i64} {
  func.func @kernel(%arg0: i32, %arg1: i32, %arg2: i32, %arg3: memref<16x512xbf16, #tpu.memory_space<vmem>>, %arg4: memref<512x256xbf16, #tpu.memory_space<vmem>>, %arg5: memref<1x256xf32, #tpu.memory_space<vmem>>, %arg6: memref<16x256xbf16, #tpu.memory_space<vmem>>, %arg7: memref<16x256xf32, #tpu.memory_space<vmem>>) attributes {dimension_semantics = [#tpu.dimension_semantics<parallel>, #tpu.dimension_semantics<parallel>, #tpu.dimension_semantics<arbitrary>], iteration_bounds = array<i64: 1, 1, 3>, scalar_prefetch = 0 : i64, scratch_operands = 1 : i64, tpu.core_type = #tpu.core_type<tc>, window_params = [{transform_indices = @transform_0, window_bounds = array<i64: 16, 512>}, {transform_indices = @transform_1, window_bounds = array<i64: 512, 256>}, {transform_indices = @transform_2, window_bounds = array<i64: 1, 256>}, {transform_indices = @transform_3, window_bounds = array<i64: 16, 256>}]} {
    %c0_i32 = arith.constant 0 : i32
    %0 = arith.cmpi eq, %arg2, %c0_i32 : i32
    %1 = arith.extui %0 : i1 to i32
    %c0_i32_0 = arith.constant 0 : i32
    %2 = arith.cmpi ne, %1, %c0_i32_0 : i32
    scf.if %2 {
      %cst_9 = arith.constant 0.000000e+00 : f32
      %12 = vector.broadcast %cst_9 : f32 to vector<16x256xf32>
      %c0_10 = arith.constant 0 : index
      %c0_11 = arith.constant 0 : index
      %13 = vector.load %arg7[%c0_10, %c0_11] : memref<16x256xf32, #tpu.memory_space<vmem>>, vector<16x256xf32>
      tpu.vector_store %arg7[%c0_10, %c0_11], %12 {strides = array<i32>} : memref<16x256xf32, #tpu.memory_space<vmem>>, vector<16x256xf32>,
    } else {
    }
    %c0 = arith.constant 0 : index
    %c0_1 = arith.constant 0 : index
    %3 = vector.load %arg7[%c0, %c0_1] : memref<16x256xf32, #tpu.memory_space<vmem>>, vector<16x256xf32>
    %c0_2 = arith.constant 0 : index
    %c0_3 = arith.constant 0 : index
    %4 = vector.load %arg3[%c0_2, %c0_3] : memref<16x512xbf16, #tpu.memory_space<vmem>>, vector<16x512xbf16>
    %c0_4 = arith.constant 0 : index
    %c0_5 = arith.constant 0 : index
    %5 = vector.load %arg4[%c0_4, %c0_5] : memref<512x256xbf16, #tpu.memory_space<vmem>>, vector<512x256xbf16>
    %cst = arith.constant dense<0.000000e+00> : vector<16x256xf32>
    %6 = tpu.matmul %4, %5, %cst {dimension_numbers = #tpu.dot_dimension_numbers<[1], [0], [0], [1], [0, 0, 1, 1], [], []>} : vector<16x512xbf16>, vector<512x256xbf16>, vector<16x256xf32> -> vector<16x256xf32>
    %7 = arith.addf %3, %6 : vector<16x256xf32>
    %c0_6 = arith.constant 0 : index
    %c0_7 = arith.constant 0 : index
    %8 = vector.load %arg7[%c0_6, %c0_7] : memref<16x256xf32, #tpu.memory_space<vmem>>, vector<16x256xf32>
    tpu.vector_store %arg7[%c0_6, %c0_7], %7 {strides = array<i32>} : memref<16x256xf32, #tpu.memory_space<vmem>>, vector<16x256xf32>,
    %c2_i32 = arith.constant 2 : i32
    %9 = arith.cmpi eq, %arg2, %c2_i32 : i32
    %10 = arith.extui %9 : i1 to i32
    %c0_i32_8 = arith.constant 0 : i32
    %11 = arith.cmpi ne, %10, %c0_i32_8 : i32
    scf.if %11 {
      %c0_9 = arith.constant 0 : index
      %c0_10 = arith.constant 0 : index
      %12 = vector.load %arg7[%c0_9, %c0_10] : memref<16x256xf32, #tpu.memory_space<vmem>>, vector<16x256xf32>
      %c0_11 = arith.constant 0 : index
      %c0_12 = arith.constant 0 : index
      %13 = vector.load %arg5[%c0_11, %c0_12] : memref<1x256xf32, #tpu.memory_space<vmem>>, vector<1x256xf32>
      %14 = vector.broadcast %13 : vector<1x256xf32> to vector<16x256xf32>
      %15 = arith.addf %12, %14 : vector<16x256xf32>
      %cst_13 = arith.constant 0.000000e+00 : f32
      %16 = vector.broadcast %cst_13 : f32 to vector<16x256xf32>
      %17 = arith.maximumf %15, %16 : vector<16x256xf32>
      %18 = arith.truncf %17 : vector<16x256xf32> to vector<16x256xbf16>
      %c0_14 = arith.constant 0 : index
      %c0_15 = arith.constant 0 : index
      %19 = vector.load %arg6[%c0_14, %c0_15] : memref<16x256xbf16, #tpu.memory_space<vmem>>, vector<16x256xbf16>
      tpu.vector_store %arg6[%c0_14, %c0_15], %18 {strides = array<i32>} : memref<16x256xbf16, #tpu.memory_space<vmem>>, vector<16x256xbf16>,
    } else {
    }
    return
  }
  func.func @transform_0(%arg0: i32, %arg1: i32, %arg2: i32) -> (i32, i32) {
    %c0_i32 = arith.constant 0 : i32
    return %arg0, %arg2 : i32, i32
  }
  func.func @transform_1(%arg0: i32, %arg1: i32, %arg2: i32) -> (i32, i32) {
    %c0_i32 = arith.constant 0 : i32
    return %arg2, %arg1 : i32, i32
  }
  func.func @transform_2(%arg0: i32, %arg1: i32, %arg2: i32) -> (i32, i32) {
    %c0_i32 = arith.constant 0 : i32
    %c0_i32_0 = arith.constant 0 : i32
    return %c0_i32, %arg1 : i32, i32
  }
  func.func @transform_3(%arg0: i32, %arg1: i32, %arg2: i32) -> (i32, i32) {
    %c0_i32 = arith.constant 0 : i32
    return %arg0, %arg1 : i32, i32
  }
}

module attributes {stable_mosaic.version = 11 : i64} {
  func.func @kernel(%arg0: i32, %arg1: i32, %arg2: i32, %arg3: memref<16x128xbf16, #tpu.memory_space<vmem>>, %arg4: memref<128x256xbf16, #tpu.memory_space<vmem>>, %arg5: memref<1x256xf32, #tpu.memory_space<vmem>>, %arg6: memref<16x256xbf16, #tpu.memory_space<vmem>>, %arg7: memref<16x256xf32, #tpu.memory_space<vmem>>) attributes {dimension_semantics = [#tpu.dimension_semantics<parallel>, #tpu.dimension_semantics<parallel>, #tpu.dimension_semantics<arbitrary>], iteration_bounds = array<i64: 1, 1, 1>, scalar_prefetch = 0 : i64, scratch_operands = 1 : i64, tpu.core_type = #tpu.core_type<tc>, window_params = [{transform_indices = @transform_0, window_bounds = array<i64: 16, 128>}, {transform_indices = @transform_1, window_bounds = array<i64: 128, 256>}, {transform_indices = @transform_2, window_bounds = array<i64: 1, 256>}, {transform_indices = @transform_3, window_bounds = array<i64: 16, 256>}]} {
    %c0_i32 = arith.constant 0 : i32
    %0 = arith.cmpi eq, %arg2, %c0_i32 : i32
    %1 = arith.extui %0 : i1 to i32
    %c0_i32_0 = arith.constant 0 : i32
    %2 = arith.cmpi ne, %1, %c0_i32_0 : i32
    scf.if %2 {
      %cst_10 = arith.constant 0.000000e+00 : f32
      %12 = vector.broadcast %cst_10 : f32 to vector<16x256xf32>
      %c0_11 = arith.constant 0 : index
      %c0_12 = arith.constant 0 : index
      %13 = vector.load %arg7[%c0_11, %c0_12] : memref<16x256xf32, #tpu.memory_space<vmem>>, vector<16x256xf32>
      tpu.vector_store %arg7[%c0_11, %c0_12], %12 {strides = array<i32>} : memref<16x256xf32, #tpu.memory_space<vmem>>, vector<16x256xf32>,
    } else {
    }
    %c0 = arith.constant 0 : index
    %c0_1 = arith.constant 0 : index
    %3 = vector.load %arg7[%c0, %c0_1] : memref<16x256xf32, #tpu.memory_space<vmem>>, vector<16x256xf32>
    %c0_2 = arith.constant 0 : index
    %c0_3 = arith.constant 0 : index
    %4 = vector.load %arg3[%c0_2, %c0_3] : memref<16x128xbf16, #tpu.memory_space<vmem>>, vector<16x128xbf16>
    %c0_4 = arith.constant 0 : index
    %c0_5 = arith.constant 0 : index
    %5 = vector.load %arg4[%c0_4, %c0_5] : memref<128x256xbf16, #tpu.memory_space<vmem>>, vector<128x256xbf16>
    %cst = arith.constant dense<0.000000e+00> : vector<16x256xf32>
    %6 = tpu.matmul %4, %5, %cst {dimension_numbers = #tpu.dot_dimension_numbers<[1], [0], [0], [1], [0, 0, 1, 1], [], []>} : vector<16x128xbf16>, vector<128x256xbf16>, vector<16x256xf32> -> vector<16x256xf32>
    %7 = arith.addf %3, %6 : vector<16x256xf32>
    %c0_6 = arith.constant 0 : index
    %c0_7 = arith.constant 0 : index
    %8 = vector.load %arg7[%c0_6, %c0_7] : memref<16x256xf32, #tpu.memory_space<vmem>>, vector<16x256xf32>
    tpu.vector_store %arg7[%c0_6, %c0_7], %7 {strides = array<i32>} : memref<16x256xf32, #tpu.memory_space<vmem>>, vector<16x256xf32>,
    %c0_i32_8 = arith.constant 0 : i32
    %9 = arith.cmpi eq, %arg2, %c0_i32_8 : i32
    %10 = arith.extui %9 : i1 to i32
    %c0_i32_9 = arith.constant 0 : i32
    %11 = arith.cmpi ne, %10, %c0_i32_9 : i32
    scf.if %11 {
      %c0_10 = arith.constant 0 : index
      %c0_11 = arith.constant 0 : index
      %12 = vector.load %arg7[%c0_10, %c0_11] : memref<16x256xf32, #tpu.memory_space<vmem>>, vector<16x256xf32>
      %c0_12 = arith.constant 0 : index
      %c0_13 = arith.constant 0 : index
      %13 = vector.load %arg5[%c0_12, %c0_13] : memref<1x256xf32, #tpu.memory_space<vmem>>, vector<1x256xf32>
      %14 = vector.broadcast %13 : vector<1x256xf32> to vector<16x256xf32>
      %15 = arith.addf %12, %14 : vector<16x256xf32>
      %16 = arith.truncf %15 : vector<16x256xf32> to vector<16x256xbf16>
      %c0_14 = arith.constant 0 : index
      %c0_15 = arith.constant 0 : index
      %17 = vector.load %arg6[%c0_14, %c0_15] : memref<16x256xbf16, #tpu.memory_space<vmem>>, vector<16x256xbf16>
      tpu.vector_store %arg6[%c0_14, %c0_15], %16 {strides = array<i32>} : memref<16x256xbf16, #tpu.memory_space<vmem>>, vector<16x256xbf16>,
    } else {
    }
    return
  }
  func.func @transform_0(%arg0: i32, %arg1: i32, %arg2: i32) -> (i32, i32) {
    %c0_i32 = arith.constant 0 : i32
    return %arg0, %arg2 : i32, i32
  }
  func.func @transform_1(%arg0: i32, %arg1: i32, %arg2: i32) -> (i32, i32) {
    %c0_i32 = arith.constant 0 : i32
    return %arg2, %arg1 : i32, i32
  }
  func.func @transform_2(%arg0: i32, %arg1: i32, %arg2: i32) -> (i32, i32) {
    %c0_i32 = arith.constant 0 : i32
    %c0_i32_0 = arith.constant 0 : i32
    return %c0_i32, %arg1 : i32, i32
  }
  func.func @transform_3(%arg0: i32, %arg1: i32, %arg2: i32) -> (i32, i32) {
    %c0_i32 = arith.constant 0 : i32
    return %arg0, %arg1 : i32, i32
  }
}

module attributes {stable_mosaic.version = 11 : i64} {
  func.func @kernel(%arg0: i32, %arg1: i32, %arg2: i32, %arg3: memref<16x512xbf16, #tpu.memory_space<vmem>>, %arg4: memref<512x256xbf16, #tpu.memory_space<vmem>>, %arg5: memref<1x256xf32, #tpu.memory_space<vmem>>, %arg6: memref<16x256xbf16, #tpu.memory_space<vmem>>, %arg7: memref<16x256xbf16, #tpu.memory_space<vmem>>, %arg8: memref<16x256xf32, #tpu.memory_space<vmem>>) attributes {dimension_semantics = [#tpu.dimension_semantics<parallel>, #tpu.dimension_semantics<parallel>, #tpu.dimension_semantics<arbitrary>], iteration_bounds = array<i64: 1, 1, 5>, scalar_prefetch = 0 : i64, scratch_operands = 1 : i64, tpu.core_type = #tpu.core_type<tc>, window_params = [{transform_indices = @transform_0, window_bounds = array<i64: 16, 512>}, {transform_indices = @transform_1, window_bounds = array<i64: 512, 256>}, {transform_indices = @transform_2, window_bounds = array<i64: 1, 256>}, {transform_indices = @transform_3, window_bounds = array<i64: 16, 256>}, {transform_indices = @transform_4, window_bounds = array<i64: 16, 256>}]} {
    %c0_i32 = arith.constant 0 : i32
    %0 = arith.cmpi eq, %arg2, %c0_i32 : i32
    %1 = arith.extui %0 : i1 to i32
    %c0_i32_0 = arith.constant 0 : i32
    %2 = arith.cmpi ne, %1, %c0_i32_0 : i32
    scf.if %2 {
      %cst_9 = arith.constant 0.000000e+00 : f32
      %12 = vector.broadcast %cst_9 : f32 to vector<16x256xf32>
      %c0_10 = arith.constant 0 : index
      %c0_11 = arith.constant 0 : index
      %13 = vector.load %arg8[%c0_10, %c0_11] : memref<16x256xf32, #tpu.memory_space<vmem>>, vector<16x256xf32>
      tpu.vector_store %arg8[%c0_10, %c0_11], %12 {strides = array<i32>} : memref<16x256xf32, #tpu.memory_space<vmem>>, vector<16x256xf32>,
    } else {
    }
    %c0 = arith.constant 0 : index
    %c0_1 = arith.constant 0 : index
    %3 = vector.load %arg8[%c0, %c0_1] : memref<16x256xf32, #tpu.memory_space<vmem>>, vector<16x256xf32>
    %c0_2 = arith.constant 0 : index
    %c0_3 = arith.constant 0 : index
    %4 = vector.load %arg3[%c0_2, %c0_3] : memref<16x512xbf16, #tpu.memory_space<vmem>>, vector<16x512xbf16>
    %c0_4 = arith.constant 0 : index
    %c0_5 = arith.constant 0 : index
    %5 = vector.load %arg4[%c0_4, %c0_5] : memref<512x256xbf16, #tpu.memory_space<vmem>>, vector<512x256xbf16>
    %cst = arith.constant dense<0.000000e+00> : vector<16x256xf32>
    %6 = tpu.matmul %4, %5, %cst {dimension_numbers = #tpu.dot_dimension_numbers<[1], [0], [0], [1], [0, 0, 1, 1], [], []>} : vector<16x512xbf16>, vector<512x256xbf16>, vector<16x256xf32> -> vector<16x256xf32>
    %7 = arith.addf %3, %6 : vector<16x256xf32>
    %c0_6 = arith.constant 0 : index
    %c0_7 = arith.constant 0 : index
    %8 = vector.load %arg8[%c0_6, %c0_7] : memref<16x256xf32, #tpu.memory_space<vmem>>, vector<16x256xf32>
    tpu.vector_store %arg8[%c0_6, %c0_7], %7 {strides = array<i32>} : memref<16x256xf32, #tpu.memory_space<vmem>>, vector<16x256xf32>,
    %c4_i32 = arith.constant 4 : i32
    %9 = arith.cmpi eq, %arg2, %c4_i32 : i32
    %10 = arith.extui %9 : i1 to i32
    %c0_i32_8 = arith.constant 0 : i32
    %11 = arith.cmpi ne, %10, %c0_i32_8 : i32
    scf.if %11 {
      %c0_9 = arith.constant 0 : index
      %c0_10 = arith.constant 0 : index
      %12 = vector.load %arg8[%c0_9, %c0_10] : memref<16x256xf32, #tpu.memory_space<vmem>>, vector<16x256xf32>
      %c0_11 = arith.constant 0 : index
      %c0_12 = arith.constant 0 : index
      %13 = vector.load %arg5[%c0_11, %c0_12] : memref<1x256xf32, #tpu.memory_space<vmem>>, vector<1x256xf32>
      %14 = vector.broadcast %13 : vector<1x256xf32> to vector<16x256xf32>
      %15 = arith.addf %12, %14 : vector<16x256xf32>
      %c0_13 = arith.constant 0 : index
      %c0_14 = arith.constant 0 : index
      %16 = vector.load %arg6[%c0_13, %c0_14] : memref<16x256xbf16, #tpu.memory_space<vmem>>, vector<16x256xbf16>
      %17 = arith.extf %16 : vector<16x256xbf16> to vector<16x256xf32>
      %18 = arith.addf %15, %17 : vector<16x256xf32>
      %cst_15 = arith.constant 0.000000e+00 : f32
      %19 = vector.broadcast %cst_15 : f32 to vector<16x256xf32>
      %20 = arith.maximumf %18, %19 : vector<16x256xf32>
      %21 = arith.truncf %20 : vector<16x256xf32> to vector<16x256xbf16>
      %c0_16 = arith.constant 0 : index
      %c0_17 = arith.constant 0 : index
      %22 = vector.load %arg7[%c0_16, %c0_17] : memref<16x256xbf16, #tpu.memory_space<vmem>>, vector<16x256xbf16>
      tpu.vector_store %arg7[%c0_16, %c0_17], %21 {strides = array<i32>} : memref<16x256xbf16, #tpu.memory_space<vmem>>, vector<16x256xbf16>,
    } else {
    }
    return
  }
  func.func @transform_0(%arg0: i32, %arg1: i32, %arg2: i32) -> (i32, i32) {
    %c0_i32 = arith.constant 0 : i32
    return %arg0, %arg2 : i32, i32
  }
  func.func @transform_1(%arg0: i32, %arg1: i32, %arg2: i32) -> (i32, i32) {
    %c0_i32 = arith.constant 0 : i32
    return %arg2, %arg1 : i32, i32
  }
  func.func @transform_2(%arg0: i32, %arg1: i32, %arg2: i32) -> (i32, i32) {
    %c0_i32 = arith.constant 0 : i32
    %c0_i32_0 = arith.constant 0 : i32
    return %c0_i32, %arg1 : i32, i32
  }
  func.func @transform_3(%arg0: i32, %arg1: i32, %arg2: i32) -> (i32, i32) {
    %c0_i32 = arith.constant 0 : i32
    return %arg0, %arg1 : i32, i32
  }
  func.func @transform_4(%arg0: i32, %arg1: i32, %arg2: i32) -> (i32, i32) {
    %c0_i32 = arith.constant 0 : i32
    return %arg0, %arg1 : i32, i32
  }
}

module attributes {stable_mosaic.version = 11 : i64} {
  func.func @kernel(%arg0: i32, %arg1: i32, %arg2: i32, %arg3: memref<16x512xbf16, #tpu.memory_space<vmem>>, %arg4: memref<512x256xbf16, #tpu.memory_space<vmem>>, %arg5: memref<1x256xf32, #tpu.memory_space<vmem>>, %arg6: memref<16x256xbf16, #tpu.memory_space<vmem>>, %arg7: memref<16x256xf32, #tpu.memory_space<vmem>>) attributes {dimension_semantics = [#tpu.dimension_semantics<parallel>, #tpu.dimension_semantics<parallel>, #tpu.dimension_semantics<arbitrary>], iteration_bounds = array<i64: 1, 1, 5>, scalar_prefetch = 0 : i64, scratch_operands = 1 : i64, tpu.core_type = #tpu.core_type<tc>, window_params = [{transform_indices = @transform_0, window_bounds = array<i64: 16, 512>}, {transform_indices = @transform_1, window_bounds = array<i64: 512, 256>}, {transform_indices = @transform_2, window_bounds = array<i64: 1, 256>}, {transform_indices = @transform_3, window_bounds = array<i64: 16, 256>}]} {
    %c0_i32 = arith.constant 0 : i32
    %0 = arith.cmpi eq, %arg2, %c0_i32 : i32
    %1 = arith.extui %0 : i1 to i32
    %c0_i32_0 = arith.constant 0 : i32
    %2 = arith.cmpi ne, %1, %c0_i32_0 : i32
    scf.if %2 {
      %cst_9 = arith.constant 0.000000e+00 : f32
      %12 = vector.broadcast %cst_9 : f32 to vector<16x256xf32>
      %c0_10 = arith.constant 0 : index
      %c0_11 = arith.constant 0 : index
      %13 = vector.load %arg7[%c0_10, %c0_11] : memref<16x256xf32, #tpu.memory_space<vmem>>, vector<16x256xf32>
      tpu.vector_store %arg7[%c0_10, %c0_11], %12 {strides = array<i32>} : memref<16x256xf32, #tpu.memory_space<vmem>>, vector<16x256xf32>,
    } else {
    }
    %c0 = arith.constant 0 : index
    %c0_1 = arith.constant 0 : index
    %3 = vector.load %arg7[%c0, %c0_1] : memref<16x256xf32, #tpu.memory_space<vmem>>, vector<16x256xf32>
    %c0_2 = arith.constant 0 : index
    %c0_3 = arith.constant 0 : index
    %4 = vector.load %arg3[%c0_2, %c0_3] : memref<16x512xbf16, #tpu.memory_space<vmem>>, vector<16x512xbf16>
    %c0_4 = arith.constant 0 : index
    %c0_5 = arith.constant 0 : index
    %5 = vector.load %arg4[%c0_4, %c0_5] : memref<512x256xbf16, #tpu.memory_space<vmem>>, vector<512x256xbf16>
    %cst = arith.constant dense<0.000000e+00> : vector<16x256xf32>
    %6 = tpu.matmul %4, %5, %cst {dimension_numbers = #tpu.dot_dimension_numbers<[1], [0], [0], [1], [0, 0, 1, 1], [], []>} : vector<16x512xbf16>, vector<512x256xbf16>, vector<16x256xf32> -> vector<16x256xf32>
    %7 = arith.addf %3, %6 : vector<16x256xf32>
    %c0_6 = arith.constant 0 : index
    %c0_7 = arith.constant 0 : index
    %8 = vector.load %arg7[%c0_6, %c0_7] : memref<16x256xf32, #tpu.memory_space<vmem>>, vector<16x256xf32>
    tpu.vector_store %arg7[%c0_6, %c0_7], %7 {strides = array<i32>} : memref<16x256xf32, #tpu.memory_space<vmem>>, vector<16x256xf32>,
    %c4_i32 = arith.constant 4 : i32
    %9 = arith.cmpi eq, %arg2, %c4_i32 : i32
    %10 = arith.extui %9 : i1 to i32
    %c0_i32_8 = arith.constant 0 : i32
    %11 = arith.cmpi ne, %10, %c0_i32_8 : i32
    scf.if %11 {
      %c0_9 = arith.constant 0 : index
      %c0_10 = arith.constant 0 : index
      %12 = vector.load %arg7[%c0_9, %c0_10] : memref<16x256xf32, #tpu.memory_space<vmem>>, vector<16x256xf32>
      %c0_11 = arith.constant 0 : index
      %c0_12 = arith.constant 0 : index
      %13 = vector.load %arg5[%c0_11, %c0_12] : memref<1x256xf32, #tpu.memory_space<vmem>>, vector<1x256xf32>
      %14 = vector.broadcast %13 : vector<1x256xf32> to vector<16x256xf32>
      %15 = arith.addf %12, %14 : vector<16x256xf32>
      %cst_13 = arith.constant 0.000000e+00 : f32
      %16 = vector.broadcast %cst_13 : f32 to vector<16x256xf32>
      %17 = arith.maximumf %15, %16 : vector<16x256xf32>
      %18 = arith.truncf %17 : vector<16x256xf32> to vector<16x256xbf16>
      %c0_14 = arith.constant 0 : index
      %c0_15 = arith.constant 0 : index
      %19 = vector.load %arg6[%c0_14, %c0_15] : memref<16x256xbf16, #tpu.memory_space<vmem>>, vector<16x256xbf16>
      tpu.vector_store %arg6[%c0_14, %c0_15], %18 {strides = array<i32>} : memref<16x256xbf16, #tpu.memory_space<vmem>>, vector<16x256xbf16>,
    } else {
    }
    return
  }
  func.func @transform_0(%arg0: i32, %arg1: i32, %arg2: i32) -> (i32, i32) {
    %c0_i32 = arith.constant 0 : i32
    return %arg0, %arg2 : i32, i32
  }
  func.func @transform_1(%arg0: i32, %arg1: i32, %arg2: i32) -> (i32, i32) {
    %c0_i32 = arith.constant 0 : i32
    return %arg2, %arg1 : i32, i32
  }
  func.func @transform_2(%arg0: i32, %arg1: i32, %arg2: i32) -> (i32, i32) {
    %c0_i32 = arith.constant 0 : i32
    %c0_i32_0 = arith.constant 0 : i32
    return %c0_i32, %arg1 : i32, i32
  }
  func.func @transform_3(%arg0: i32, %arg1: i32, %arg2: i32) -> (i32, i32) {
    %c0_i32 = arith.constant 0 : i32
    return %arg0, %arg1 : i32, i32
  }
}

module attributes {stable_mosaic.version = 11 : i64} {
  func.func @kernel(%arg0: i32, %arg1: i32, %arg2: i32, %arg3: memref<16x512xbf16, #tpu.memory_space<vmem>>, %arg4: memref<512x256xbf16, #tpu.memory_space<vmem>>, %arg5: memref<1x256xf32, #tpu.memory_space<vmem>>, %arg6: memref<16x256xbf16, #tpu.memory_space<vmem>>, %arg7: memref<16x256xf32, #tpu.memory_space<vmem>>) attributes {dimension_semantics = [#tpu.dimension_semantics<parallel>, #tpu.dimension_semantics<parallel>, #tpu.dimension_semantics<arbitrary>], iteration_bounds = array<i64: 1, 2, 5>, scalar_prefetch = 0 : i64, scratch_operands = 1 : i64, tpu.core_type = #tpu.core_type<tc>, window_params = [{transform_indices = @transform_0, window_bounds = array<i64: 16, 512>}, {transform_indices = @transform_1, window_bounds = array<i64: 512, 256>}, {transform_indices = @transform_2, window_bounds = array<i64: 1, 256>}, {transform_indices = @transform_3, window_bounds = array<i64: 16, 256>}]} {
    %c0_i32 = arith.constant 0 : i32
    %0 = arith.cmpi eq, %arg2, %c0_i32 : i32
    %1 = arith.extui %0 : i1 to i32
    %c0_i32_0 = arith.constant 0 : i32
    %2 = arith.cmpi ne, %1, %c0_i32_0 : i32
    scf.if %2 {
      %cst_9 = arith.constant 0.000000e+00 : f32
      %12 = vector.broadcast %cst_9 : f32 to vector<16x256xf32>
      %c0_10 = arith.constant 0 : index
      %c0_11 = arith.constant 0 : index
      %13 = vector.load %arg7[%c0_10, %c0_11] : memref<16x256xf32, #tpu.memory_space<vmem>>, vector<16x256xf32>
      tpu.vector_store %arg7[%c0_10, %c0_11], %12 {strides = array<i32>} : memref<16x256xf32, #tpu.memory_space<vmem>>, vector<16x256xf32>,
    } else {
    }
    %c0 = arith.constant 0 : index
    %c0_1 = arith.constant 0 : index
    %3 = vector.load %arg7[%c0, %c0_1] : memref<16x256xf32, #tpu.memory_space<vmem>>, vector<16x256xf32>
    %c0_2 = arith.constant 0 : index
    %c0_3 = arith.constant 0 : index
    %4 = vector.load %arg3[%c0_2, %c0_3] : memref<16x512xbf16, #tpu.memory_space<vmem>>, vector<16x512xbf16>
    %c0_4 = arith.constant 0 : index
    %c0_5 = arith.constant 0 : index
    %5 = vector.load %arg4[%c0_4, %c0_5] : memref<512x256xbf16, #tpu.memory_space<vmem>>, vector<512x256xbf16>
    %cst = arith.constant dense<0.000000e+00> : vector<16x256xf32>
    %6 = tpu.matmul %4, %5, %cst {dimension_numbers = #tpu.dot_dimension_numbers<[1], [0], [0], [1], [0, 0, 1, 1], [], []>} : vector<16x512xbf16>, vector<512x256xbf16>, vector<16x256xf32> -> vector<16x256xf32>
    %7 = arith.addf %3, %6 : vector<16x256xf32>
    %c0_6 = arith.constant 0 : index
    %c0_7 = arith.constant 0 : index
    %8 = vector.load %arg7[%c0_6, %c0_7] : memref<16x256xf32, #tpu.memory_space<vmem>>, vector<16x256xf32>
    tpu.vector_store %arg7[%c0_6, %c0_7], %7 {strides = array<i32>} : memref<16x256xf32, #tpu.memory_space<vmem>>, vector<16x256xf32>,
    %c4_i32 = arith.constant 4 : i32
    %9 = arith.cmpi eq, %arg2, %c4_i32 : i32
    %10 = arith.extui %9 : i1 to i32
    %c0_i32_8 = arith.constant 0 : i32
    %11 = arith.cmpi ne, %10, %c0_i32_8 : i32
    scf.if %11 {
      %c0_9 = arith.constant 0 : index
      %c0_10 = arith.constant 0 : index
      %12 = vector.load %arg7[%c0_9, %c0_10] : memref<16x256xf32, #tpu.memory_space<vmem>>, vector<16x256xf32>
      %c0_11 = arith.constant 0 : index
      %c0_12 = arith.constant 0 : index
      %13 = vector.load %arg5[%c0_11, %c0_12] : memref<1x256xf32, #tpu.memory_space<vmem>>, vector<1x256xf32>
      %14 = vector.broadcast %13 : vector<1x256xf32> to vector<16x256xf32>
      %15 = arith.addf %12, %14 : vector<16x256xf32>
      %cst_13 = arith.constant 0.000000e+00 : f32
      %16 = vector.broadcast %cst_13 : f32 to vector<16x256xf32>
      %17 = arith.maximumf %15, %16 : vector<16x256xf32>
      %18 = arith.truncf %17 : vector<16x256xf32> to vector<16x256xbf16>
      %c0_14 = arith.constant 0 : index
      %c0_15 = arith.constant 0 : index
      %19 = vector.load %arg6[%c0_14, %c0_15] : memref<16x256xbf16, #tpu.memory_space<vmem>>, vector<16x256xbf16>
      tpu.vector_store %arg6[%c0_14, %c0_15], %18 {strides = array<i32>} : memref<16x256xbf16, #tpu.memory_space<vmem>>, vector<16x256xbf16>,
    } else {
    }
    return
  }
  func.func @transform_0(%arg0: i32, %arg1: i32, %arg2: i32) -> (i32, i32) {
    %c0_i32 = arith.constant 0 : i32
    return %arg0, %arg2 : i32, i32
  }
  func.func @transform_1(%arg0: i32, %arg1: i32, %arg2: i32) -> (i32, i32) {
    %c0_i32 = arith.constant 0 : i32
    return %arg2, %arg1 : i32, i32
  }
  func.func @transform_2(%arg0: i32, %arg1: i32, %arg2: i32) -> (i32, i32) {
    %c0_i32 = arith.constant 0 : i32
    %c0_i32_0 = arith.constant 0 : i32
    return %c0_i32, %arg1 : i32, i32
  }
  func.func @transform_3(%arg0: i32, %arg1: i32, %arg2: i32) -> (i32, i32) {
    %c0_i32 = arith.constant 0 : i32
    return %arg0, %arg1 : i32, i32
  }
}

module attributes {stable_mosaic.version = 11 : i64} {
  func.func @kernel(%arg0: i32, %arg1: i32, %arg2: i32, %arg3: memref<16x256xbf16, #tpu.memory_space<vmem>>, %arg4: memref<256x256xbf16, #tpu.memory_space<vmem>>, %arg5: memref<1x256xf32, #tpu.memory_space<vmem>>, %arg6: memref<16x256xbf16, #tpu.memory_space<vmem>>, %arg7: memref<16x256xf32, #tpu.memory_space<vmem>>) attributes {dimension_semantics = [#tpu.dimension_semantics<parallel>, #tpu.dimension_semantics<parallel>, #tpu.dimension_semantics<arbitrary>], iteration_bounds = array<i64: 1, 2, 1>, scalar_prefetch = 0 : i64, scratch_operands = 1 : i64, tpu.core_type = #tpu.core_type<tc>, window_params = [{transform_indices = @transform_0, window_bounds = array<i64: 16, 256>}, {transform_indices = @transform_1, window_bounds = array<i64: 256, 256>}, {transform_indices = @transform_2, window_bounds = array<i64: 1, 256>}, {transform_indices = @transform_3, window_bounds = array<i64: 16, 256>}]} {
    %c0_i32 = arith.constant 0 : i32
    %0 = arith.cmpi eq, %arg2, %c0_i32 : i32
    %1 = arith.extui %0 : i1 to i32
    %c0_i32_0 = arith.constant 0 : i32
    %2 = arith.cmpi ne, %1, %c0_i32_0 : i32
    scf.if %2 {
      %cst_10 = arith.constant 0.000000e+00 : f32
      %12 = vector.broadcast %cst_10 : f32 to vector<16x256xf32>
      %c0_11 = arith.constant 0 : index
      %c0_12 = arith.constant 0 : index
      %13 = vector.load %arg7[%c0_11, %c0_12] : memref<16x256xf32, #tpu.memory_space<vmem>>, vector<16x256xf32>
      tpu.vector_store %arg7[%c0_11, %c0_12], %12 {strides = array<i32>} : memref<16x256xf32, #tpu.memory_space<vmem>>, vector<16x256xf32>,
    } else {
    }
    %c0 = arith.constant 0 : index
    %c0_1 = arith.constant 0 : index
    %3 = vector.load %arg7[%c0, %c0_1] : memref<16x256xf32, #tpu.memory_space<vmem>>, vector<16x256xf32>
    %c0_2 = arith.constant 0 : index
    %c0_3 = arith.constant 0 : index
    %4 = vector.load %arg3[%c0_2, %c0_3] : memref<16x256xbf16, #tpu.memory_space<vmem>>, vector<16x256xbf16>
    %c0_4 = arith.constant 0 : index
    %c0_5 = arith.constant 0 : index
    %5 = vector.load %arg4[%c0_4, %c0_5] : memref<256x256xbf16, #tpu.memory_space<vmem>>, vector<256x256xbf16>
    %cst = arith.constant dense<0.000000e+00> : vector<16x256xf32>
    %6 = tpu.matmul %4, %5, %cst {dimension_numbers = #tpu.dot_dimension_numbers<[1], [0], [0], [1], [0, 0, 1, 1], [], []>} : vector<16x256xbf16>, vector<256x256xbf16>, vector<16x256xf32> -> vector<16x256xf32>
    %7 = arith.addf %3, %6 : vector<16x256xf32>
    %c0_6 = arith.constant 0 : index
    %c0_7 = arith.constant 0 : index
    %8 = vector.load %arg7[%c0_6, %c0_7] : memref<16x256xf32, #tpu.memory_space<vmem>>, vector<16x256xf32>
    tpu.vector_store %arg7[%c0_6, %c0_7], %7 {strides = array<i32>} : memref<16x256xf32, #tpu.memory_space<vmem>>, vector<16x256xf32>,
    %c0_i32_8 = arith.constant 0 : i32
    %9 = arith.cmpi eq, %arg2, %c0_i32_8 : i32
    %10 = arith.extui %9 : i1 to i32
    %c0_i32_9 = arith.constant 0 : i32
    %11 = arith.cmpi ne, %10, %c0_i32_9 : i32
    scf.if %11 {
      %c0_10 = arith.constant 0 : index
      %c0_11 = arith.constant 0 : index
      %12 = vector.load %arg7[%c0_10, %c0_11] : memref<16x256xf32, #tpu.memory_space<vmem>>, vector<16x256xf32>
      %c0_12 = arith.constant 0 : index
      %c0_13 = arith.constant 0 : index
      %13 = vector.load %arg5[%c0_12, %c0_13] : memref<1x256xf32, #tpu.memory_space<vmem>>, vector<1x256xf32>
      %14 = vector.broadcast %13 : vector<1x256xf32> to vector<16x256xf32>
      %15 = arith.addf %12, %14 : vector<16x256xf32>
      %16 = arith.truncf %15 : vector<16x256xf32> to vector<16x256xbf16>
      %c0_14 = arith.constant 0 : index
      %c0_15 = arith.constant 0 : index
      %17 = vector.load %arg6[%c0_14, %c0_15] : memref<16x256xbf16, #tpu.memory_space<vmem>>, vector<16x256xbf16>
      tpu.vector_store %arg6[%c0_14, %c0_15], %16 {strides = array<i32>} : memref<16x256xbf16, #tpu.memory_space<vmem>>, vector<16x256xbf16>,
    } else {
    }
    return
  }
  func.func @transform_0(%arg0: i32, %arg1: i32, %arg2: i32) -> (i32, i32) {
    %c0_i32 = arith.constant 0 : i32
    return %arg0, %arg2 : i32, i32
  }
  func.func @transform_1(%arg0: i32, %arg1: i32, %arg2: i32) -> (i32, i32) {
    %c0_i32 = arith.constant 0 : i32
    return %arg2, %arg1 : i32, i32
  }
  func.func @transform_2(%arg0: i32, %arg1: i32, %arg2: i32) -> (i32, i32) {
    %c0_i32 = arith.constant 0 : i32
    %c0_i32_0 = arith.constant 0 : i32
    return %c0_i32, %arg1 : i32, i32
  }
  func.func @transform_3(%arg0: i32, %arg1: i32, %arg2: i32) -> (i32, i32) {
    %c0_i32 = arith.constant 0 : i32
    return %arg0, %arg1 : i32, i32
  }
}

module attributes {stable_mosaic.version = 11 : i64} {
  func.func @kernel(%arg0: i32, %arg1: i32, %arg2: i32, %arg3: memref<16x512xbf16, #tpu.memory_space<vmem>>, %arg4: memref<512x256xbf16, #tpu.memory_space<vmem>>, %arg5: memref<1x256xf32, #tpu.memory_space<vmem>>, %arg6: memref<16x256xbf16, #tpu.memory_space<vmem>>, %arg7: memref<16x256xbf16, #tpu.memory_space<vmem>>, %arg8: memref<16x256xf32, #tpu.memory_space<vmem>>) attributes {dimension_semantics = [#tpu.dimension_semantics<parallel>, #tpu.dimension_semantics<parallel>, #tpu.dimension_semantics<arbitrary>], iteration_bounds = array<i64: 1, 2, 9>, scalar_prefetch = 0 : i64, scratch_operands = 1 : i64, tpu.core_type = #tpu.core_type<tc>, window_params = [{transform_indices = @transform_0, window_bounds = array<i64: 16, 512>}, {transform_indices = @transform_1, window_bounds = array<i64: 512, 256>}, {transform_indices = @transform_2, window_bounds = array<i64: 1, 256>}, {transform_indices = @transform_3, window_bounds = array<i64: 16, 256>}, {transform_indices = @transform_4, window_bounds = array<i64: 16, 256>}]} {
    %c0_i32 = arith.constant 0 : i32
    %0 = arith.cmpi eq, %arg2, %c0_i32 : i32
    %1 = arith.extui %0 : i1 to i32
    %c0_i32_0 = arith.constant 0 : i32
    %2 = arith.cmpi ne, %1, %c0_i32_0 : i32
    scf.if %2 {
      %cst_9 = arith.constant 0.000000e+00 : f32
      %12 = vector.broadcast %cst_9 : f32 to vector<16x256xf32>
      %c0_10 = arith.constant 0 : index
      %c0_11 = arith.constant 0 : index
      %13 = vector.load %arg8[%c0_10, %c0_11] : memref<16x256xf32, #tpu.memory_space<vmem>>, vector<16x256xf32>
      tpu.vector_store %arg8[%c0_10, %c0_11], %12 {strides = array<i32>} : memref<16x256xf32, #tpu.memory_space<vmem>>, vector<16x256xf32>,
    } else {
    }
    %c0 = arith.constant 0 : index
    %c0_1 = arith.constant 0 : index
    %3 = vector.load %arg8[%c0, %c0_1] : memref<16x256xf32, #tpu.memory_space<vmem>>, vector<16x256xf32>
    %c0_2 = arith.constant 0 : index
    %c0_3 = arith.constant 0 : index
    %4 = vector.load %arg3[%c0_2, %c0_3] : memref<16x512xbf16, #tpu.memory_space<vmem>>, vector<16x512xbf16>
    %c0_4 = arith.constant 0 : index
    %c0_5 = arith.constant 0 : index
    %5 = vector.load %arg4[%c0_4, %c0_5] : memref<512x256xbf16, #tpu.memory_space<vmem>>, vector<512x256xbf16>
    %cst = arith.constant dense<0.000000e+00> : vector<16x256xf32>
    %6 = tpu.matmul %4, %5, %cst {dimension_numbers = #tpu.dot_dimension_numbers<[1], [0], [0], [1], [0, 0, 1, 1], [], []>} : vector<16x512xbf16>, vector<512x256xbf16>, vector<16x256xf32> -> vector<16x256xf32>
    %7 = arith.addf %3, %6 : vector<16x256xf32>
    %c0_6 = arith.constant 0 : index
    %c0_7 = arith.constant 0 : index
    %8 = vector.load %arg8[%c0_6, %c0_7] : memref<16x256xf32, #tpu.memory_space<vmem>>, vector<16x256xf32>
    tpu.vector_store %arg8[%c0_6, %c0_7], %7 {strides = array<i32>} : memref<16x256xf32, #tpu.memory_space<vmem>>, vector<16x256xf32>,
    %c8_i32 = arith.constant 8 : i32
    %9 = arith.cmpi eq, %arg2, %c8_i32 : i32
    %10 = arith.extui %9 : i1 to i32
    %c0_i32_8 = arith.constant 0 : i32
    %11 = arith.cmpi ne, %10, %c0_i32_8 : i32
    scf.if %11 {
      %c0_9 = arith.constant 0 : index
      %c0_10 = arith.constant 0 : index
      %12 = vector.load %arg8[%c0_9, %c0_10] : memref<16x256xf32, #tpu.memory_space<vmem>>, vector<16x256xf32>
      %c0_11 = arith.constant 0 : index
      %c0_12 = arith.constant 0 : index
      %13 = vector.load %arg5[%c0_11, %c0_12] : memref<1x256xf32, #tpu.memory_space<vmem>>, vector<1x256xf32>
      %14 = vector.broadcast %13 : vector<1x256xf32> to vector<16x256xf32>
      %15 = arith.addf %12, %14 : vector<16x256xf32>
      %c0_13 = arith.constant 0 : index
      %c0_14 = arith.constant 0 : index
      %16 = vector.load %arg6[%c0_13, %c0_14] : memref<16x256xbf16, #tpu.memory_space<vmem>>, vector<16x256xbf16>
      %17 = arith.extf %16 : vector<16x256xbf16> to vector<16x256xf32>
      %18 = arith.addf %15, %17 : vector<16x256xf32>
      %cst_15 = arith.constant 0.000000e+00 : f32
      %19 = vector.broadcast %cst_15 : f32 to vector<16x256xf32>
      %20 = arith.maximumf %18, %19 : vector<16x256xf32>
      %21 = arith.truncf %20 : vector<16x256xf32> to vector<16x256xbf16>
      %c0_16 = arith.constant 0 : index
      %c0_17 = arith.constant 0 : index
      %22 = vector.load %arg7[%c0_16, %c0_17] : memref<16x256xbf16, #tpu.memory_space<vmem>>, vector<16x256xbf16>
      tpu.vector_store %arg7[%c0_16, %c0_17], %21 {strides = array<i32>} : memref<16x256xbf16, #tpu.memory_space<vmem>>, vector<16x256xbf16>,
    } else {
    }
    return
  }
  func.func @transform_0(%arg0: i32, %arg1: i32, %arg2: i32) -> (i32, i32) {
    %c0_i32 = arith.constant 0 : i32
    return %arg0, %arg2 : i32, i32
  }
  func.func @transform_1(%arg0: i32, %arg1: i32, %arg2: i32) -> (i32, i32) {
    %c0_i32 = arith.constant 0 : i32
    return %arg2, %arg1 : i32, i32
  }
  func.func @transform_2(%arg0: i32, %arg1: i32, %arg2: i32) -> (i32, i32) {
    %c0_i32 = arith.constant 0 : i32
    %c0_i32_0 = arith.constant 0 : i32
    return %c0_i32, %arg1 : i32, i32
  }
  func.func @transform_3(%arg0: i32, %arg1: i32, %arg2: i32) -> (i32, i32) {
    %c0_i32 = arith.constant 0 : i32
    return %arg0, %arg1 : i32, i32
  }
  func.func @transform_4(%arg0: i32, %arg1: i32, %arg2: i32) -> (i32, i32) {
    %c0_i32 = arith.constant 0 : i32
    return %arg0, %arg1 : i32, i32
  }
}

module attributes {stable_mosaic.version = 11 : i64} {
  func.func @kernel(%arg0: i32, %arg1: i32, %arg2: i32, %arg3: memref<16x512xbf16, #tpu.memory_space<vmem>>, %arg4: memref<512x256xbf16, #tpu.memory_space<vmem>>, %arg5: memref<1x256xf32, #tpu.memory_space<vmem>>, %arg6: memref<16x256xbf16, #tpu.memory_space<vmem>>, %arg7: memref<16x256xf32, #tpu.memory_space<vmem>>) attributes {dimension_semantics = [#tpu.dimension_semantics<parallel>, #tpu.dimension_semantics<parallel>, #tpu.dimension_semantics<arbitrary>], iteration_bounds = array<i64: 1, 2, 9>, scalar_prefetch = 0 : i64, scratch_operands = 1 : i64, tpu.core_type = #tpu.core_type<tc>, window_params = [{transform_indices = @transform_0, window_bounds = array<i64: 16, 512>}, {transform_indices = @transform_1, window_bounds = array<i64: 512, 256>}, {transform_indices = @transform_2, window_bounds = array<i64: 1, 256>}, {transform_indices = @transform_3, window_bounds = array<i64: 16, 256>}]} {
    %c0_i32 = arith.constant 0 : i32
    %0 = arith.cmpi eq, %arg2, %c0_i32 : i32
    %1 = arith.extui %0 : i1 to i32
    %c0_i32_0 = arith.constant 0 : i32
    %2 = arith.cmpi ne, %1, %c0_i32_0 : i32
    scf.if %2 {
      %cst_9 = arith.constant 0.000000e+00 : f32
      %12 = vector.broadcast %cst_9 : f32 to vector<16x256xf32>
      %c0_10 = arith.constant 0 : index
      %c0_11 = arith.constant 0 : index
      %13 = vector.load %arg7[%c0_10, %c0_11] : memref<16x256xf32, #tpu.memory_space<vmem>>, vector<16x256xf32>
      tpu.vector_store %arg7[%c0_10, %c0_11], %12 {strides = array<i32>} : memref<16x256xf32, #tpu.memory_space<vmem>>, vector<16x256xf32>,
    } else {
    }
    %c0 = arith.constant 0 : index
    %c0_1 = arith.constant 0 : index
    %3 = vector.load %arg7[%c0, %c0_1] : memref<16x256xf32, #tpu.memory_space<vmem>>, vector<16x256xf32>
    %c0_2 = arith.constant 0 : index
    %c0_3 = arith.constant 0 : index
    %4 = vector.load %arg3[%c0_2, %c0_3] : memref<16x512xbf16, #tpu.memory_space<vmem>>, vector<16x512xbf16>
    %c0_4 = arith.constant 0 : index
    %c0_5 = arith.constant 0 : index
    %5 = vector.load %arg4[%c0_4, %c0_5] : memref<512x256xbf16, #tpu.memory_space<vmem>>, vector<512x256xbf16>
    %cst = arith.constant dense<0.000000e+00> : vector<16x256xf32>
    %6 = tpu.matmul %4, %5, %cst {dimension_numbers = #tpu.dot_dimension_numbers<[1], [0], [0], [1], [0, 0, 1, 1], [], []>} : vector<16x512xbf16>, vector<512x256xbf16>, vector<16x256xf32> -> vector<16x256xf32>
    %7 = arith.addf %3, %6 : vector<16x256xf32>
    %c0_6 = arith.constant 0 : index
    %c0_7 = arith.constant 0 : index
    %8 = vector.load %arg7[%c0_6, %c0_7] : memref<16x256xf32, #tpu.memory_space<vmem>>, vector<16x256xf32>
    tpu.vector_store %arg7[%c0_6, %c0_7], %7 {strides = array<i32>} : memref<16x256xf32, #tpu.memory_space<vmem>>, vector<16x256xf32>,
    %c8_i32 = arith.constant 8 : i32
    %9 = arith.cmpi eq, %arg2, %c8_i32 : i32
    %10 = arith.extui %9 : i1 to i32
    %c0_i32_8 = arith.constant 0 : i32
    %11 = arith.cmpi ne, %10, %c0_i32_8 : i32
    scf.if %11 {
      %c0_9 = arith.constant 0 : index
      %c0_10 = arith.constant 0 : index
      %12 = vector.load %arg7[%c0_9, %c0_10] : memref<16x256xf32, #tpu.memory_space<vmem>>, vector<16x256xf32>
      %c0_11 = arith.constant 0 : index
      %c0_12 = arith.constant 0 : index
      %13 = vector.load %arg5[%c0_11, %c0_12] : memref<1x256xf32, #tpu.memory_space<vmem>>, vector<1x256xf32>
      %14 = vector.broadcast %13 : vector<1x256xf32> to vector<16x256xf32>
      %15 = arith.addf %12, %14 : vector<16x256xf32>
      %cst_13 = arith.constant 0.000000e+00 : f32
      %16 = vector.broadcast %cst_13 : f32 to vector<16x256xf32>
      %17 = arith.maximumf %15, %16 : vector<16x256xf32>
      %18 = arith.truncf %17 : vector<16x256xf32> to vector<16x256xbf16>
      %c0_14 = arith.constant 0 : index
      %c0_15 = arith.constant 0 : index
      %19 = vector.load %arg6[%c0_14, %c0_15] : memref<16x256xbf16, #tpu.memory_space<vmem>>, vector<16x256xbf16>
      tpu.vector_store %arg6[%c0_14, %c0_15], %18 {strides = array<i32>} : memref<16x256xbf16, #tpu.memory_space<vmem>>, vector<16x256xbf16>,
    } else {
    }
    return
  }
  func.func @transform_0(%arg0: i32, %arg1: i32, %arg2: i32) -> (i32, i32) {
    %c0_i32 = arith.constant 0 : i32
    return %arg0, %arg2 : i32, i32
  }
  func.func @transform_1(%arg0: i32, %arg1: i32, %arg2: i32) -> (i32, i32) {
    %c0_i32 = arith.constant 0 : i32
    return %arg2, %arg1 : i32, i32
  }
  func.func @transform_2(%arg0: i32, %arg1: i32, %arg2: i32) -> (i32, i32) {
    %c0_i32 = arith.constant 0 : i32
    %c0_i32_0 = arith.constant 0 : i32
    return %c0_i32, %arg1 : i32, i32
  }
  func.func @transform_3(%arg0: i32, %arg1: i32, %arg2: i32) -> (i32, i32) {
    %c0_i32 = arith.constant 0 : i32
    return %arg0, %arg1 : i32, i32
  }
}

module attributes {stable_mosaic.version = 11 : i64} {
  func.func @kernel(%arg0: i32, %arg1: memref<2x1x512xbf16, #tpu.memory_space<vmem>>, %arg2: memref<512x10xf32, #tpu.memory_space<vmem>>, %arg3: memref<1x10xf32, #tpu.memory_space<vmem>>, %arg4: memref<2x10xf32, #tpu.memory_space<vmem>>) attributes {dimension_semantics = [#tpu.dimension_semantics<arbitrary>], iteration_bounds = array<i64: 1>, scalar_prefetch = 0 : i64, scratch_operands = 0 : i64, tpu.core_type = #tpu.core_type<tc>, window_params = [{pipeline_mode = #tpu.pipeline_mode<synchronous>, transform_indices = @transform_0, window_bounds = array<i64: 2, 1, 512>}, {pipeline_mode = #tpu.pipeline_mode<synchronous>, transform_indices = @transform_1, window_bounds = array<i64: 512, 10>}, {pipeline_mode = #tpu.pipeline_mode<synchronous>, transform_indices = @transform_2, window_bounds = array<i64: 1, 10>}, {pipeline_mode = #tpu.pipeline_mode<synchronous>, transform_indices = @transform_3, window_bounds = array<i64: 2, 10>}]} {
    %c0 = arith.constant 0 : index
    %c0_0 = arith.constant 0 : index
    %c0_1 = arith.constant 0 : index
    %0 = vector.load %arg1[%c0, %c0_0, %c0_1] : memref<2x1x512xbf16, #tpu.memory_space<vmem>>, vector<2x1x512xbf16>
    %1 = arith.extf %0 : vector<2x1x512xbf16> to vector<2x1x512xf32>
    %cst = arith.constant dense<0.000000e+00> : vector<2x512xf32>
    %2 = vector.multi_reduction <add>, %1, %cst [1] : vector<2x1x512xf32> to vector<2x512xf32>
    %cst_2 = arith.constant 1.000000e+00 : f32
    %3 = vector.broadcast %cst_2 : f32 to vector<2x512xf32>
    %4 = arith.divf %2, %3 : vector<2x512xf32>
    %c0_3 = arith.constant 0 : index
    %c0_4 = arith.constant 0 : index
    %5 = vector.load %arg2[%c0_3, %c0_4] : memref<512x10xf32, #tpu.memory_space<vmem>>, vector<512x10xf32>
    %cst_5 = arith.constant dense<0.000000e+00> : vector<2x10xf32>
    %6 = tpu.matmul %4, %5, %cst_5 {dimension_numbers = #tpu.dot_dimension_numbers<[1], [0], [0], [1], [0, 0, 1, 1], [], []>} : vector<2x512xf32>, vector<512x10xf32>, vector<2x10xf32> -> vector<2x10xf32>
    %c0_6 = arith.constant 0 : index
    %c0_7 = arith.constant 0 : index
    %7 = vector.load %arg3[%c0_6, %c0_7] : memref<1x10xf32, #tpu.memory_space<vmem>>, vector<1x10xf32>
    %8 = vector.broadcast %7 : vector<1x10xf32> to vector<2x10xf32>
    %9 = arith.addf %6, %8 : vector<2x10xf32>
    %c0_8 = arith.constant 0 : index
    %c0_9 = arith.constant 0 : index
    %10 = vector.load %arg4[%c0_8, %c0_9] : memref<2x10xf32, #tpu.memory_space<vmem>>, vector<2x10xf32>
    tpu.vector_store %arg4[%c0_8, %c0_9], %9 {strides = array<i32>} : memref<2x10xf32, #tpu.memory_space<vmem>>, vector<2x10xf32>,
    return
  }
  func.func @transform_0(%arg0: i32) -> (i32, i32, i32) {
    %c0_i32 = arith.constant 0 : i32
    %c0_i32_0 = arith.constant 0 : i32
    %c0_i32_1 = arith.constant 0 : i32
    %c0_i32_2 = arith.constant 0 : i32
    return %c0_i32, %c0_i32_0, %c0_i32_1 : i32, i32, i32
  }
  func.func @transform_1(%arg0: i32) -> (i32, i32) {
    %c0_i32 = arith.constant 0 : i32
    %c0_i32_0 = arith.constant 0 : i32
    %c0_i32_1 = arith.constant 0 : i32
    return %c0_i32, %c0_i32_0 : i32, i32
  }
  func.func @transform_2(%arg0: i32) -> (i32, i32) {
    %c0_i32 = arith.constant 0 : i32
    %c0_i32_0 = arith.constant 0 : i32
    %c0_i32_1 = arith.constant 0 : i32
    return %c0_i32, %c0_i32_0 : i32, i32
  }
  func.func @transform_3(%arg0: i32) -> (i32, i32) {
    %c0_i32 = arith.constant 0 : i32
    %c0_i32_0 = arith.constant 0 : i32
    %c0_i32_1 = arith.constant 0 : i32
    return %c0_i32, %c0_i32_0 : i32, i32
  }
}

</mosaic_0001>

<bundles_post_ra>
// kernel: classifier_forward.21
= control target key start
LH: loop header
LB: loop body
LE: loop exit
PB: predicated region body
PF: predicated region fallthrough
CT: control target
= control target key end

     0   :  { %s939_s1 = inlined_call_operand.vmem [shape: bf16[256,128], index: 1, kind: input, shape index: {}]   ;;  %s940_s0 = inlined_call_operand.vmem [shape: bf16[128,256], index: 0, kind: input, shape index: {}]   ;;  %s941_s2 = inlined_call_operand.vmem [shape: f32[1,128], index: 2, kind: input, shape index: {}]   ;;  %s942_s3 = inlined_call_operand.vmem [shape: bf16[128,128], index: 3, kind: output, shape index: {}]  }
   0x1   :  { %v738_v0 = vld [vmem:[%s939_s1 + $0x40] sm:$0xff]   ;;  %v740_v2 = vld [vmem:[%s939_s1 + $0x48] sm:$0xff]   ;;  %v742_v4 = vld [vmem:[%s939_s1 + $0x50] sm:$0xff]  }
   0x2   :  { %v739_v1 = vld [vmem:[%s939_s1] sm:$0xff]   ;;  %658 = vmatprep.subr.bf16.mxu0 %v738_v0  ;;  %722 = vmatprep.subr.bf16.mxu1 %v738_v0  ;;  %v741_v3 = vld [vmem:[%s939_s1 + $0x8] sm:$0xff]   ;;  %v743_v5 = vld [vmem:[%s939_s1 + $0x10] sm:$0xff]  }
   0x3   :  { %659 = vmatpush3.bf16.msra.mxu0 %v739_v1  ;;  %730 = vmatpush3.bf16.msra.mxu1 %v739_v1  ;;  %v744_v6 = vld [vmem:[%s939_s1 + $0x58] sm:$0xff]   ;;  %v746_v8 = vld [vmem:[%s939_s1 + $0x60] sm:$0xff]   ;;  %v748_v10 = vld [vmem:[%s939_s1 + $0x68] sm:$0xff]  }
   0x4   :  { %660 = vmatprep.subr.bf16.mxu0 %v740_v2  ;;  %723 = vmatprep.subr.bf16.mxu1 %v740_v2  ;;  %v745_v7 = vld [vmem:[%s939_s1 + $0x18] sm:$0xff]   ;;  %v747_v9 = vld [vmem:[%s939_s1 + $0x20] sm:$0xff]   ;;  %v749_v13 = vld [vmem:[%s939_s1 + $0x28] sm:$0xff]  }
   0x5   :  { %v756_v11 = vld [vmem:[%s940_s0 + $0x4] ss:$8 sps:$4 sm:$0xff]   ;;  %v750_v14 = vld [vmem:[%s939_s1 + $0x70] sm:$0xff]   ;;  %v752_v16 = vld [vmem:[%s939_s1 + $0x78] sm:$0xff]  }
   0x6   :  { %v759_v12 = vld [vmem:[%s940_s0 + $0x44] ss:$8 sps:$4 sm:$0xff]   ;;  %307 = vmatprep.mubr.bf16.mxu0 %v756_v11  ;;  %v751_v15 = vld [vmem:[%s939_s1 + $0x30] sm:$0xff]   ;;  %v753_v17 = vld [vmem:[%s939_s1 + $0x38] sm:$0xff]  }
   0x7   :  { %661 = vmatpush3.bf16.msra.mxu0 %v741_v3  ;;  %731 = vmatpush3.bf16.msra.mxu1 %v741_v3  ;;  %v754_v18 = vld [vmem:[%s940_s0] ss:$8 sps:$4 sm:$0xff]   ;;  %v760_v20 = vld [vmem:[%s940_s0 + $0x14] ss:$8 sps:$4 sm:$0xff]   ;;  %v764_v22 = vld [vmem:[%s940_s0 + $0x10] ss:$8 sps:$4 sm:$0xff]  }
   0x8   :  { %662 = vmatprep.subr.bf16.mxu0 %v742_v4  ;;  %724 = vmatprep.subr.bf16.mxu1 %v742_v4  ;;  %v757_v19 = vld [vmem:[%s940_s0 + $0x40] ss:$8 sps:$4 sm:$0xff]   ;;  %v762_v21 = vld [vmem:[%s940_s0 + $0x54] ss:$8 sps:$4 sm:$0xff]   ;;  %v765_v23 = vld [vmem:[%s940_s0 + $0x50] ss:$8 sps:$4 sm:$0xff]  }
   0x9   :  { %339 = vmatprep.mubr.bf16.mxu1 %v759_v12  ;;  %v766_v24 = vld [vmem:[%s940_s0 + $0x24] ss:$8 sps:$4 sm:$0xff]   ;;  %v770_v26 = vld [vmem:[%s940_s0 + $0x20] ss:$8 sps:$4 sm:$0xff]   ;;  %v772_v28 = vld [vmem:[%s940_s0 + $0x34] ss:$8 sps:$4 sm:$0xff]  }
   0xa   :  { %v768_v25 = vld [vmem:[%s940_s0 + $0x64] ss:$8 sps:$4 sm:$0xff]   ;;  %v771_v27 = vld [vmem:[%s940_s0 + $0x60] ss:$8 sps:$4 sm:$0xff]   ;;  %v774_v29 = vld [vmem:[%s940_s0 + $0x74] ss:$8 sps:$4 sm:$0xff]  }
   0xb   :  { %663 = vmatpush3.bf16.msra.mxu0 %v743_v5  ;;  %732 = vmatpush3.bf16.msra.mxu1 %v743_v5  ;;  %v776_v30 = vld [vmem:[%s940_s0 + $0x30] ss:$8 sps:$4 sm:$0xff]   ;;  %v897_v35 = vld [vmem:[%s941_s2] ss:$0 sm:$0xff] }
   0xc   :  { %664 = vmatprep.subr.bf16.mxu0 %v744_v6  ;;  %725 = vmatprep.subr.bf16.mxu1 %v744_v6  ;;  %v777_v31 = vld [vmem:[%s940_s0 + $0x70] ss:$8 sps:$4 sm:$0xff]  }
   0xf   :  { %665 = vmatpush3.bf16.msra.mxu0 %v745_v7  ;;  %733 = vmatpush3.bf16.msra.mxu1 %v745_v7 }
  0x10   :  { %666 = vmatprep.subr.bf16.mxu0 %v746_v8  ;;  %726 = vmatprep.subr.bf16.mxu1 %v746_v8 }
  0x13   :  { %667 = vmatpush3.bf16.msra.mxu0 %v747_v9  ;;  %734 = vmatpush3.bf16.msra.mxu1 %v747_v9 }
  0x14   :  { %668 = vmatprep.subr.bf16.mxu0 %v748_v10  ;;  %727 = vmatprep.subr.bf16.mxu1 %v748_v10 }
  0x17   :  { %669 = vmatpush3.bf16.msra.mxu0 %v749_v13  ;;  %735 = vmatpush3.bf16.msra.mxu1 %v749_v13 }
  0x18   :  { %670 = vmatprep.subr.bf16.mxu0 %v750_v14  ;;  %728 = vmatprep.subr.bf16.mxu1 %v750_v14 }
  0x1b   :  { %671 = vmatpush3.bf16.msra.mxu0 %v751_v15  ;;  %736 = vmatpush3.bf16.msra.mxu1 %v751_v15 }
  0x1c   :  { %672 = vmatprep.subr.bf16.mxu0 %v752_v16  ;;  %729 = vmatprep.subr.bf16.mxu1 %v752_v16 }
  0x1f   :  { %673 = vmatpush3.bf16.msra.mxu0 %v753_v17  ;;  %737 = vmatpush3.bf16.msra.mxu1 %v753_v17 }
  0x22   :  { %308 = vmatmul.mubr.bf16.vlgmr.msra.gmra.mrb[0].mxu0 %v754_v18  ;;  %340 = vmatmul.mubr.bf16.vlgmr.msra.gmra.mrb[0].mxu1 %v757_v19 }
  0x23   :  { %315 = vmatprep.mubr.bf16.mxu0 %v760_v20  ;;  %347 = vmatprep.mubr.bf16.mxu1 %v762_v21 }
  0x2a   :  { %316 = vmatmul.mubr.bf16.gmra.mrb[4].mxu0 %v764_v22  ;;  %348 = vmatmul.mubr.bf16.gmra.mrb[4].mxu1 %v765_v23 }
  0x2b   :  { %323 = vmatprep.mubr.bf16.mxu0 %v766_v24  ;;  %355 = vmatprep.mubr.bf16.mxu1 %v768_v25 }
  0x32   :  { %324 = vmatmul.mubr.bf16.gmra.mrb[8].mxu0 %v770_v26  ;;  %356 = vmatmul.mubr.bf16.gmra.mrb[8].mxu1 %v771_v27 }
  0x33   :  { %331 = vmatprep.mubr.bf16.mxu0 %v772_v28  ;;  %363 = vmatprep.mubr.bf16.mxu1 %v774_v29 }
  0x3a   :  { %332 = vmatmul.mubr.bf16.gmra.mrb[12].mxu0 %v776_v30  ;;  %364 = vmatmul.mubr.bf16.gmra.mrb[12].mxu1 %v777_v31 }
  0xf5   :  { %v674_v32 = vpop.f32.mrb[0].mxu0  ;;  %v698_v33 = vpop.f32.mrb[0].mxu1 }
  0xf6   :  { %v675_v34 = vpop.f32.mrb[1].mxu0  ;;  %v699_v36 = vpop.f32.mrb[1].mxu1 }
  0xf7   :  { %v676_v37 = vadd.f32 %v675_v34, %v674_v32  ;;  %v700_v38 = vadd.f32 %v699_v36, %v698_v33  ;;  %v677_v39 = vpop.f32.mrb[2].mxu0  ;;  %v701_v40 = vpop.f32.mrb[2].mxu1 }
  0xf8   :  { %v678_v41 = vpop.f32.mrb[3].mxu0  ;;  %v702_v42 = vpop.f32.mrb[3].mxu1 }
  0xf9   :  { %v430_v43 = vadd.f32 %v676_v37, %v897_v35  ;;  %v438_v44 = vadd.f32 %v700_v38, %v897_v35  ;;  %v679_v45 = vadd.f32 %v678_v41, %v677_v39  ;;  %v703_v46 = vadd.f32 %v702_v42, %v701_v40 }
  0xfb   :  { %v431_v47 = vadd.f32 %v679_v45, %v897_v35  ;;  %v439_v48 = vadd.f32 %v703_v46, %v897_v35  ;;  %v446_v49 = vmax.f32 %v430_v43, 0.0  ;;  %v454_v50 = vmax.f32 %v438_v44, 0.0 }
  0xfd   :  { %v447_v51 = vmax.f32 %v431_v47, 0.0  ;;  %v455_v52 = vmax.f32 %v439_v48, 0.0  ;;  %v680_v53 = vpop.f32.mrb[4].mxu0  ;;  %v704_v54 = vpop.f32.mrb[4].mxu1 }
  0xfe   :  { %v681_v55 = vpop.f32.mrb[5].mxu0  ;;  %v705_v56 = vpop.f32.mrb[5].mxu1 }
  0xff   :  { %v614_v57 = vpack.c.bf16 %v447_v51, %v446_v49  ;;  %v634_v58 = vpack.c.bf16 %v455_v52, %v454_v50  ;;  %v682_v59 = vadd.f32 %v681_v55, %v680_v53  ;;  %v706_v60 = vadd.f32 %v705_v56, %v704_v54  ;;  %v683_v61 = vpop.f32.mrb[6].mxu0  ;;  %v707_v62 = vpop.f32.mrb[6].mxu1 }
 0x100   :  { %v684_v63 = vpop.f32.mrb[7].mxu0  ;;  %v708_v0 = vpop.f32.mrb[7].mxu1 }
 0x101   :  { %615 = vst [vmem:[%s942_s3] sm:$0xff] %v614_v57   ;;  %654 = vst [vmem:[%s942_s3 + $0x20] sm:$0xff] %v634_v58   ;;  %v432_v1 = vadd.f32 %v682_v59, %v897_v35  ;;  %v440_v2 = vadd.f32 %v706_v60, %v897_v35  ;;  %v685_v3 = vadd.f32 %v684_v63, %v683_v61 }
 0x102   :  { %v709_v4 = vadd.f32 %v708_v0, %v707_v62 }
 0x103   :  { %v433_v5 = vadd.f32 %v685_v3, %v897_v35  ;;  %v448_v7 = vmax.f32 %v432_v1, 0.0  ;;  %v456_v8 = vmax.f32 %v440_v2, 0.0 }
 0x104   :  { %v441_v6 = vadd.f32 %v709_v4, %v897_v35 }
 0x105   :  { %v449_v9 = vmax.f32 %v433_v5, 0.0  ;;  %v686_v11 = vpop.f32.mrb[8].mxu0  ;;  %v710_v12 = vpop.f32.mrb[8].mxu1 }
 0x106   :  { %v457_v10 = vmax.f32 %v441_v6, 0.0  ;;  %v687_v13 = vpop.f32.mrb[9].mxu0  ;;  %v711_v14 = vpop.f32.mrb[9].mxu1 }
 0x107   :  { %v619_v15 = vpack.c.bf16 %v449_v9, %v448_v7  ;;  %v688_v17 = vadd.f32 %v687_v13, %v686_v11  ;;  %v712_v18 = vadd.f32 %v711_v14, %v710_v12  ;;  %v689_v19 = vpop.f32.mrb[10].mxu0  ;;  %v713_v20 = vpop.f32.mrb[10].mxu1 }
 0x108   :  { %v639_v16 = vpack.c.bf16 %v457_v10, %v456_v8  ;;  %v690_v21 = vpop.f32.mrb[11].mxu0  ;;  %v714_v22 = vpop.f32.mrb[11].mxu1 }
 0x109   :  { %651 = vst [vmem:[%s942_s3 + $0x8] sm:$0xff] %v619_v15   ;;  %v434_v23 = vadd.f32 %v688_v17, %v897_v35  ;;  %v442_v24 = vadd.f32 %v712_v18, %v897_v35  ;;  %v691_v25 = vadd.f32 %v690_v21, %v689_v19  ;;  %v715_v26 = vadd.f32 %v714_v22, %v713_v20 }
 0x10a   :  { %655 = vst [vmem:[%s942_s3 + $0x28] sm:$0xff] %v639_v16  }
 0x10b   :  { %v435_v27 = vadd.f32 %v691_v25, %v897_v35  ;;  %v443_v28 = vadd.f32 %v715_v26, %v897_v35  ;;  %v450_v29 = vmax.f32 %v434_v23, 0.0  ;;  %v458_v30 = vmax.f32 %v442_v24, 0.0 }
 0x10d   :  { %v451_v31 = vmax.f32 %v435_v27, 0.0  ;;  %v459_v32 = vmax.f32 %v443_v28, 0.0  ;;  %v692_v33 = vpop.f32.mrb[12].mxu0  ;;  %v716_v34 = vpop.f32.mrb[12].mxu1 }
 0x10e   :  { %v693_v36 = vpop.f32.mrb[13].mxu0  ;;  %v717_v37 = vpop.f32.mrb[13].mxu1 }
 0x10f   :  { %v624_v38 = vpack.c.bf16 %v451_v31, %v450_v29  ;;  %v644_v39 = vpack.c.bf16 %v459_v32, %v458_v30  ;;  %v694_v40 = vadd.f32 %v693_v36, %v692_v33  ;;  %v718_v41 = vadd.f32 %v717_v37, %v716_v34  ;;  %v695_v42 = vpop.f32.mrb[14].mxu0  ;;  %v719_v43 = vpop.f32.mrb[14].mxu1 }
 0x110   :  { %v696_v44 = vpop.f32.mrb[15].mxu0  ;;  %v720_v45 = vpop.f32.mrb[15].mxu1 }
 0x111   :  { %652 = vst [vmem:[%s942_s3 + $0x10] sm:$0xff] %v624_v38   ;;  %656 = vst [vmem:[%s942_s3 + $0x30] sm:$0xff] %v644_v39   ;;  %v436_v46 = vadd.f32 %v694_v40, %v897_v35  ;;  %v444_v47 = vadd.f32 %v718_v41, %v897_v35  ;;  %v697_v48 = vadd.f32 %v696_v44, %v695_v42 }
 0x112   :  { %v721_v49 = vadd.f32 %v720_v45, %v719_v43 }
 0x113   :  { %v437_v50 = vadd.f32 %v697_v48, %v897_v35  ;;  %v452_v52 = vmax.f32 %v436_v46, 0.0  ;;  %v460_v53 = vmax.f32 %v444_v47, 0.0 }
 0x114   :  { %v445_v51 = vadd.f32 %v721_v49, %v897_v35 }
 0x115   :  { %v453_v54 = vmax.f32 %v437_v50, 0.0 }
 0x116   :  { %v461_v55 = vmax.f32 %v445_v51, 0.0 }
 0x117   :  { %v629_v56 = vpack.c.bf16 %v453_v54, %v452_v52 }
 0x118   :  { %v649_v57 = vpack.c.bf16 %v461_v55, %v460_v53 }
 0x119   :  { %653 = vst [vmem:[%s942_s3 + $0x18] sm:$0xff] %v629_v56  }
 0x11a   :  { %657 = vst [vmem:[%s942_s3 + $0x38] sm:$0xff] %v649_v57  }

// kernel: classifier_forward.23
= control target key start
LH: loop header
LB: loop body
LE: loop exit
PB: predicated region body
PF: predicated region fallthrough
CT: control target
= control target key end

     0   :  { %s1939_s15 = smov 0   ;;  %s1941_s16 = smov 0   ;;  %s2211_s0 = inlined_call_operand.vmem [shape: bf16[128,1024], index: 0, kind: input, shape index: {}]   ;;  %s2212_s1 = inlined_call_operand.vmem [shape: bf16[1024,128], index: 1, kind: input, shape index: {}]   ;;  %s2213_s2 = inlined_call_operand.vmem [shape: f32[1,128], index: 2, kind: input, shape index: {}]   ;;  %s2214_s3 = inlined_call_operand.vmem [shape: bf16[128,128], index: 3, kind: input, shape index: {}]   ;;  %s2215_s4 = inlined_call_operand.vmem [shape: bf16[128,128], index: 4, kind: output, shape index: {}]  }
   0x1   :  { %s1943_s17 = smov 0   ;;  %s1945_s18 = smov 0  }
   0x2   :  { %s1947_s19 = smov 0  }
   0x3 LB: > { %s26_s20 = sadd.s32 1, %s1907_s18  ;;  %p49_p1 = scmp.ne.s32.totalorder %s1899_s16, %s1895_s15  ;;  %s1911_s19 = sphi %s1947_s19, %s14_s19   ;;  %s1907_s18 = sphi %s1945_s18, %s2219_s18   ;;  %s1903_s17 = sphi %s1943_s17, %s2218_s17   ;;  %s1899_s16 = sphi %s1941_s16, %s2217_s16   ;;  %s1895_s15 = sphi %s1939_s15, %s2216_s15  }
   0x4   : > { %p27_p0 = scmp.ge.s32.totalorder %s26_s20, 2  ;;  %p50_p2 = scmp.eq.s32.totalorder %s1911_s19, 0 }
   0x5   : > { %s42_s22 = sadd.s32 1, %s1899_s16  ;;  %p1426_p5 = scmp.ge.s32.totalorder %s1911_s19, 2 }
   0x6   : > { %s2221_s20 = smov (%p27_p0, %s26_s20), 0  ;;  %p51_p3 = por %p50_p2, %p49_p1 }
   0x7   : > { %s38_s21 = ssub.s32 %s1907_s18, %s2221_s20  ;;  %203 = sbr.rel (%p1426_p5) target bundleno = 34 (0x22), region = 24 }
   0x8   : > { %p40_p4 = scmp.eq.s32.totalorder %s38_s21, 0 }
   0xa   : > { %s1974_s23 = scalar_select %p40_p4, %s1899_s16, %s42_s22  }
   0xe   : > { %206 = sbr.rel (!%p51_p3) target bundleno = 34 (0x22), region = 28  ;;  %s208_s24 = sand.u32 (%p51_p3), 1, %s1899_s16  }
   0xf   : > { %s1521_s25 = sshll.u32 (%p51_p3), %s1907_s18, 4  ;;  %s1427_s26 = sshll.u32 (%p51_p3), %s208_s24, 8 }
  0x10   : > { %s1982_s29 = scalar_lea.vmem (%p51_p3), %s2211_s0, %s1521_s25  ;;  %s1987_s30 = scalar_lea.vmem (%p51_p3), [#allocation3], %s1427_s26 }
  0x11   : > { %v229_v0 = vld [vmem:[%s1982_s29] sm:$0xff] (%p51_p3)  ;;  %v231_v1 = vld [vmem:[%s1982_s29 + $0x8] sm:$0xff] (%p51_p3) }
  0x12   : > { %v233_v2 = vld [vmem:[%s1982_s29 + $0x20] sm:$0xff] (%p51_p3)  ;;  %230 = vst [vmem:[%s1987_s30] sm:$0xff] (%p51_p3), %v229_v0  ;;  %232 = vst [vmem:[%s1987_s30 + $0x8] sm:$0xff] (%p51_p3), %v231_v1  ;;  %v235_v3 = vld [vmem:[%s1982_s29 + $0x28] sm:$0xff] (%p51_p3) }
  0x13   : > { %234 = vst [vmem:[%s1987_s30 + $0x10] sm:$0xff] (%p51_p3), %v233_v2  ;;  %v237_v4 = vld [vmem:[%s1982_s29 + $0x40] sm:$0xff] (%p51_p3)  ;;  %v239_v5 = vld [vmem:[%s1982_s29 + $0x48] sm:$0xff] (%p51_p3)  ;;  %236 = vst [vmem:[%s1987_s30 + $0x18] sm:$0xff] (%p51_p3), %v235_v3 }
  0x14   : > { %238 = vst [vmem:[%s1987_s30 + $0x20] sm:$0xff] (%p51_p3), %v237_v4  ;;  %240 = vst [vmem:[%s1987_s30 + $0x28] sm:$0xff] (%p51_p3), %v239_v5  ;;  %v241_v6 = vld [vmem:[%s1982_s29 + $0x60] sm:$0xff] (%p51_p3)  ;;  %v243_v7 = vld [vmem:[%s1982_s29 + $0x68] sm:$0xff] (%p51_p3) }
  0x15   : > { %v245_v8 = vld [vmem:[%s1982_s29 + $0x80] sm:$0xff]  ;;  %242 = vst [vmem:[%s1987_s30 + $0x30] sm:$0xff] %v241_v6  ;;  %244 = vst [vmem:[%s1987_s30 + $0x38] sm:$0xff] %v243_v7  ;;  %v247_v9 = vld [vmem:[%s1982_s29 + $0x88] sm:$0xff] }
  0x16   : > { %246 = vst [vmem:[%s1987_s30 + $0x40] sm:$0xff] %v245_v8  ;;  %v249_v10 = vld [vmem:[%s1982_s29 + $0xa0] sm:$0xff]  ;;  %v251_v11 = vld [vmem:[%s1982_s29 + $0xa8] sm:$0xff]  ;;  %248 = vst [vmem:[%s1987_s30 + $0x48] sm:$0xff] %v247_v9 }
  0x17   : > { %250 = vst [vmem:[%s1987_s30 + $0x50] sm:$0xff] %v249_v10  ;;  %252 = vst [vmem:[%s1987_s30 + $0x58] sm:$0xff] %v251_v11  ;;  %v253_v12 = vld [vmem:[%s1982_s29 + $0xc0] sm:$0xff]  ;;  %v255_v13 = vld [vmem:[%s1982_s29 + $0xc8] sm:$0xff] }
  0x18   : > { %v257_v14 = vld [vmem:[%s1982_s29 + $0xe0] sm:$0xff]  ;;  %254 = vst [vmem:[%s1987_s30 + $0x60] sm:$0xff] %v253_v12  ;;  %256 = vst [vmem:[%s1987_s30 + $0x68] sm:$0xff] %v255_v13  ;;  %v259_v15 = vld [vmem:[%s1982_s29 + $0xe8] sm:$0xff] }
  0x19   : > { %258 = vst [vmem:[%s1987_s30 + $0x70] sm:$0xff] %v257_v14  ;;  %v261_v16 = vld [vmem:[%s1982_s29 + $0x100] sm:$0xff]  ;;  %v263_v17 = vld [vmem:[%s1982_s29 + $0x108] sm:$0xff]  ;;  %260 = vst [vmem:[%s1987_s30 + $0x78] sm:$0xff] %v259_v15 }
  0x1a   : > { %262 = vst [vmem:[%s1987_s30 + $0x80] sm:$0xff] %v261_v16  ;;  %264 = vst [vmem:[%s1987_s30 + $0x88] sm:$0xff] %v263_v17  ;;  %v265_v18 = vld [vmem:[%s1982_s29 + $0x120] sm:$0xff]  ;;  %v267_v19 = vld [vmem:[%s1982_s29 + $0x128] sm:$0xff] }
  0x1b   : > { %v269_v20 = vld [vmem:[%s1982_s29 + $0x140] sm:$0xff]  ;;  %266 = vst [vmem:[%s1987_s30 + $0x90] sm:$0xff] %v265_v18  ;;  %268 = vst [vmem:[%s1987_s30 + $0x98] sm:$0xff] %v267_v19  ;;  %v271_v21 = vld [vmem:[%s1982_s29 + $0x148] sm:$0xff] }
  0x1c   : > { %270 = vst [vmem:[%s1987_s30 + $0xa0] sm:$0xff] %v269_v20  ;;  %v273_v22 = vld [vmem:[%s1982_s29 + $0x160] sm:$0xff]  ;;  %v275_v23 = vld [vmem:[%s1982_s29 + $0x168] sm:$0xff]  ;;  %272 = vst [vmem:[%s1987_s30 + $0xa8] sm:$0xff] %v271_v21 }
  0x1d   : > { %274 = vst [vmem:[%s1987_s30 + $0xb0] sm:$0xff] %v273_v22  ;;  %276 = vst [vmem:[%s1987_s30 + $0xb8] sm:$0xff] %v275_v23  ;;  %v277_v24 = vld [vmem:[%s1982_s29 + $0x180] sm:$0xff]  ;;  %v279_v25 = vld [vmem:[%s1982_s29 + $0x188] sm:$0xff] }
  0x1e   : > { %v281_v26 = vld [vmem:[%s1982_s29 + $0x1a0] sm:$0xff]  ;;  %278 = vst [vmem:[%s1987_s30 + $0xc0] sm:$0xff] %v277_v24  ;;  %280 = vst [vmem:[%s1987_s30 + $0xc8] sm:$0xff] %v279_v25  ;;  %v283_v27 = vld [vmem:[%s1982_s29 + $0x1a8] sm:$0xff] }
  0x1f   : > { %282 = vst [vmem:[%s1987_s30 + $0xd0] sm:$0xff] %v281_v26  ;;  %v285_v28 = vld [vmem:[%s1982_s29 + $0x1c0] sm:$0xff]  ;;  %v287_v29 = vld [vmem:[%s1982_s29 + $0x1c8] sm:$0xff]  ;;  %284 = vst [vmem:[%s1987_s30 + $0xd8] sm:$0xff] %v283_v27 }
  0x20   : > { %286 = vst [vmem:[%s1987_s30 + $0xe0] sm:$0xff] %v285_v28  ;;  %288 = vst [vmem:[%s1987_s30 + $0xe8] sm:$0xff] %v287_v29  ;;  %v289_v30 = vld [vmem:[%s1982_s29 + $0x1e0] sm:$0xff]  ;;  %v291_v31 = vld [vmem:[%s1982_s29 + $0x1e8] sm:$0xff] }
  0x21   : > { %290 = vst [vmem:[%s1987_s30 + $0xf0] sm:$0xff] %v289_v30  ;;  %292 = vst [vmem:[%s1987_s30 + $0xf8] sm:$0xff] %v291_v31 }
  0x22 PF: > { %p1430_p6 = scmp.ge.s32.totalorder %s1911_s19, 1  ;;  %p309_p7 = scmp.lt.s32.totalorder %s1911_s19, 3 }
  0x24   : > { %p310_p8 = pnand %p1430_p6, %p309_p7 }
  0x25   : > { %s316_s5 = sand.u32 (!%p310_p8), 1, %s1895_s15   ;;  %s1432_s6 = sshll.u32 (!%p310_p8), %s1903_s17, 6 }
  0x26   : > { %313 = sbr.rel (%p310_p8) target bundleno = 384 (0x180), region = 55  ;;  %s1431_s7 = sshll.u32 (!%p310_p8), %s316_s5, 8 }
  0x27   : > { %p366_p9 = scmp.lt.s32.totalorder (!%p310_p8), %s1432_s6, 127  ;;  %s2059_s12 = scalar_lea.vmem (!%p310_p8), [#allocation3], %s1431_s7 }
  0x28   : > { %p1434_p10 = scmp.ne.s32.totalorder (!%p310_p8), %s1903_s17, 0 }
  0x2d   : > { %s2223_s6 = smov (!%p366_p9, %s1432_s6), 127  ;;  %399 = sbr.rel (%p1434_p10) target bundleno = 55 (0x37), region = 63 }
  0x2e   : > { %s1433_s8 = sshll.u32 %s2223_s6, 2  ;;  %v1913_v32 = vmov (!%p1434_p10), 0.0  }
  0x2f   : > { %s2057_s11 = scalar_lea.vmem %s2212_s1, %s1433_s8  ;;  %400 = vst [vmem:[#allocation2] sm:$0xff] (!%p1434_p10), %v1913_v32  ;;  %401 = vst [vmem:[#allocation2 + $0x8] sm:$0xff] (!%p1434_p10), %v1913_v32 }
  0x30   : > { %402 = vst [vmem:[#allocation2 + $0x10] sm:$0xff] (!%p1434_p10), %v1913_v32  ;;  %403 = vst [vmem:[#allocation2 + $0x18] sm:$0xff] (!%p1434_p10), %v1913_v32 }
  0x31   : > { %404 = vst [vmem:[#allocation2 + $0x20] sm:$0xff] (!%p1434_p10), %v1913_v32  ;;  %405 = vst [vmem:[#allocation2 + $0x28] sm:$0xff] (!%p1434_p10), %v1913_v32 }
  0x32   : > { %406 = vst [vmem:[#allocation2 + $0x30] sm:$0xff] (!%p1434_p10), %v1913_v32  ;;  %407 = vst [vmem:[#allocation2 + $0x38] sm:$0xff] (!%p1434_p10), %v1913_v32 }
  0x33   : > { %408 = vst [vmem:[#allocation2 + $0x40] sm:$0xff] (!%p1434_p10), %v1913_v32  ;;  %409 = vst [vmem:[#allocation2 + $0x48] sm:$0xff] (!%p1434_p10), %v1913_v32 }
  0x34   : > { %410 = vst [vmem:[#allocation2 + $0x50] sm:$0xff] %v1913_v32  ;;  %411 = vst [vmem:[#allocation2 + $0x58] sm:$0xff] %v1913_v32 }
  0x35   : > { %412 = vst [vmem:[#allocation2 + $0x60] sm:$0xff] %v1913_v32  ;;  %413 = vst [vmem:[#allocation2 + $0x68] sm:$0xff] %v1913_v32 }
  0x36   : > { %414 = vst [vmem:[#allocation2 + $0x70] sm:$0xff] %v1913_v32  ;;  %415 = vst [vmem:[#allocation2 + $0x78] sm:$0xff] %v1913_v32 }
  0x37 PF: > { %v1793_v33 = vld [vmem:[%s2057_s11 + $0x40] sm:$0xff]   ;;  %v1797_v37 = vld [vmem:[%s2057_s11 + $0x48] sm:$0xff]   ;;  %v1801_v41 = vld [vmem:[%s2057_s11 + $0x50] sm:$0xff]   ;;  %p1499_p11 = scmp.ne.s32.totalorder %s1903_s17, 1 }
  0x38   : > { %v1794_v34 = vld [vmem:[%s2057_s11 + $0xc0] sm:$0xff]   ;;  %1624 = vmatprep.subr.bf16.mxu0 %v1793_v33  ;;  %v1798_v38 = vld [vmem:[%s2057_s11 + $0xc8] sm:$0xff]   ;;  %v1802_v42 = vld [vmem:[%s2057_s11 + $0xd0] sm:$0xff]  }
  0x39   : > { %v1795_v35 = vld [vmem:[%s2057_s11] sm:$0xff]   ;;  %1688 = vmatprep.subr.bf16.mxu1 %v1794_v34  ;;  %v1799_v39 = vld [vmem:[%s2057_s11 + $0x8] sm:$0xff]   ;;  %v1803_v43 = vld [vmem:[%s2057_s11 + $0x10] sm:$0xff]  }
  0x3a   : > { %v1796_v36 = vld [vmem:[%s2057_s11 + $0x80] sm:$0xff]   ;;  %1625 = vmatpush3.bf16.msra.mxu0 %v1795_v35  ;;  %v1800_v40 = vld [vmem:[%s2057_s11 + $0x88] sm:$0xff]   ;;  %v1804_v44 = vld [vmem:[%s2057_s11 + $0x90] sm:$0xff]  }
  0x3b   : > { %1689 = vmatpush3.bf16.msra.mxu1 %v1796_v36  ;;  %1626 = vmatprep.subr.bf16.mxu0 %v1797_v37  ;;  %v1805_v45 = vld [vmem:[%s2057_s11 + $0x58] sm:$0xff]   ;;  %v1809_v49 = vld [vmem:[%s2057_s11 + $0x60] sm:$0xff]   ;;  %v1813_v53 = vld [vmem:[%s2057_s11 + $0x68] sm:$0xff]  }
  0x3c   : > { %1690 = vmatprep.subr.bf16.mxu1 %v1798_v38  ;;  %v1806_v46 = vld [vmem:[%s2057_s11 + $0xd8] sm:$0xff]   ;;  %v1810_v50 = vld [vmem:[%s2057_s11 + $0xe0] sm:$0xff]   ;;  %v1814_v54 = vld [vmem:[%s2057_s11 + $0xe8] sm:$0xff]  }
  0x3d   : > { %v1807_v47 = vld [vmem:[%s2057_s11 + $0x18] sm:$0xff]   ;;  %v1811_v51 = vld [vmem:[%s2057_s11 + $0x20] sm:$0xff]   ;;  %v1815_v55 = vld [vmem:[%s2057_s11 + $0x28] sm:$0xff]  }
  0x3e   : > { %1627 = vmatpush3.bf16.msra.mxu0 %v1799_v39  ;;  %v1808_v48 = vld [vmem:[%s2057_s11 + $0x98] sm:$0xff]   ;;  %v1812_v52 = vld [vmem:[%s2057_s11 + $0xa0] sm:$0xff]   ;;  %v1816_v56 = vld [vmem:[%s2057_s11 + $0xa8] sm:$0xff]  }
  0x3f   : > { %1691 = vmatpush3.bf16.msra.mxu1 %v1800_v40  ;;  %1628 = vmatprep.subr.bf16.mxu0 %v1801_v41  ;;  %v1817_v57 = vld [vmem:[%s2057_s11 + $0x70] sm:$0xff]   ;;  %v1821_v61 = vld [vmem:[%s2057_s11 + $0x78] sm:$0xff]  }
  0x40   : > { %1692 = vmatprep.subr.bf16.mxu1 %v1802_v42  ;;  %v1818_v58 = vld [vmem:[%s2057_s11 + $0xf0] sm:$0xff]   ;;  %v1822_v62 = vld [vmem:[%s2057_s11 + $0xf8] sm:$0xff]   ;;  %v416_v42 = vld [vmem:[#allocation2] sm:$0xff] }
  0x41   : > { %v1819_v59 = vld [vmem:[%s2057_s11 + $0x30] sm:$0xff]   ;;  %v1823_v63 = vld [vmem:[%s2057_s11 + $0x38] sm:$0xff]  }
  0x42   : > { %1629 = vmatpush3.bf16.msra.mxu0 %v1803_v43  ;;  %v1820_v60 = vld [vmem:[%s2057_s11 + $0xb0] sm:$0xff]   ;;  %v1824_v0 = vld [vmem:[%s2057_s11 + $0xb8] sm:$0xff]  }
  0x43   : > { %1693 = vmatpush3.bf16.msra.mxu1 %v1804_v44  ;;  %1630 = vmatprep.subr.bf16.mxu0 %v1805_v45  ;;  %v1825_v1 = vld [vmem:[%s2059_s12] ss:$16 sps:$4 sm:$0xff]   ;;  %v1827_v2 = vld [vmem:[%s2059_s12 + $0x4] ss:$16 sps:$4 sm:$0xff]   ;;  %v1828_v3 = vld [vmem:[%s2059_s12 + $0x8] ss:$16 sps:$4 sm:$0xff]  }
  0x44   : > { %1694 = vmatprep.subr.bf16.mxu1 %v1806_v46  ;;  %v1830_v4 = vld [vmem:[%s2059_s12 + $0xc] ss:$16 sps:$4 sm:$0xff]   ;;  %912 = vmatprep.mubr.bf16.mxu0 %v1827_v2  ;;  %v1831_v5 = vld [vmem:[%s2059_s12 + $0x24] ss:$16 sps:$4 sm:$0xff]   ;;  %v1835_v7 = vld [vmem:[%s2059_s12 + $0x20] ss:$16 sps:$4 sm:$0xff]  }
  0x45   : > { %1009 = vmatprep.mubr.bf16.mxu1 %v1830_v4  ;;  %v1833_v6 = vld [vmem:[%s2059_s12 + $0x2c] ss:$16 sps:$4 sm:$0xff]   ;;  %v1836_v8 = vld [vmem:[%s2059_s12 + $0x28] ss:$16 sps:$4 sm:$0xff]   ;;  %v1837_v9 = vld [vmem:[%s2059_s12 + $0x44] ss:$16 sps:$4 sm:$0xff]  }
  0x46   : > { %1631 = vmatpush3.bf16.msra.mxu0 %v1807_v47  ;;  %v1839_v10 = vld [vmem:[%s2059_s12 + $0x4c] ss:$16 sps:$4 sm:$0xff]   ;;  %v1841_v11 = vld [vmem:[%s2059_s12 + $0x40] ss:$16 sps:$4 sm:$0xff]   ;;  %v1842_v12 = vld [vmem:[%s2059_s12 + $0x48] ss:$16 sps:$4 sm:$0xff]  }
  0x47   : > { %1695 = vmatpush3.bf16.msra.mxu1 %v1808_v48  ;;  %1632 = vmatprep.subr.bf16.mxu0 %v1809_v49  ;;  %v1843_v13 = vld [vmem:[%s2059_s12 + $0x64] ss:$16 sps:$4 sm:$0xff]   ;;  %v1845_v14 = vld [vmem:[%s2059_s12 + $0x6c] ss:$16 sps:$4 sm:$0xff]   ;;  %v1847_v15 = vld [vmem:[%s2059_s12 + $0x60] ss:$16 sps:$4 sm:$0xff]  }
  0x48   : > { %1696 = vmatprep.subr.bf16.mxu1 %v1810_v50  ;;  %v1848_v16 = vld [vmem:[%s2059_s12 + $0x68] ss:$16 sps:$4 sm:$0xff]   ;;  %v1849_v17 = vld [vmem:[%s2059_s12 + $0x84] ss:$16 sps:$4 sm:$0xff]   ;;  %v1851_v18 = vld [vmem:[%s2059_s12 + $0x8c] ss:$16 sps:$4 sm:$0xff]  }
  0x49   : > { %v1853_v19 = vld [vmem:[%s2059_s12 + $0x80] ss:$16 sps:$4 sm:$0xff]   ;;  %v1854_v20 = vld [vmem:[%s2059_s12 + $0x88] ss:$16 sps:$4 sm:$0xff]   ;;  %v1855_v21 = vld [vmem:[%s2059_s12 + $0xa4] ss:$16 sps:$4 sm:$0xff]  }
  0x4a   : > { %1633 = vmatpush3.bf16.msra.mxu0 %v1811_v51  ;;  %v1857_v22 = vld [vmem:[%s2059_s12 + $0xac] ss:$16 sps:$4 sm:$0xff]   ;;  %v1859_v23 = vld [vmem:[%s2059_s12 + $0xa0] ss:$16 sps:$4 sm:$0xff]   ;;  %v1860_v24 = vld [vmem:[%s2059_s12 + $0xa8] ss:$16 sps:$4 sm:$0xff]  }
  0x4b   : > { %1697 = vmatpush3.bf16.msra.mxu1 %v1812_v52  ;;  %1634 = vmatprep.subr.bf16.mxu0 %v1813_v53  ;;  %v1861_v25 = vld [vmem:[%s2059_s12 + $0xc4] ss:$16 sps:$4 sm:$0xff]   ;;  %v1863_v26 = vld [vmem:[%s2059_s12 + $0xcc] ss:$16 sps:$4 sm:$0xff]   ;;  %v1865_v27 = vld [vmem:[%s2059_s12 + $0xc0] ss:$16 sps:$4 sm:$0xff]  }
  0x4c   : > { %1698 = vmatprep.subr.bf16.mxu1 %v1814_v54  ;;  %v1866_v28 = vld [vmem:[%s2059_s12 + $0xc8] ss:$16 sps:$4 sm:$0xff]   ;;  %v1867_v29 = vld [vmem:[%s2059_s12 + $0xe4] ss:$16 sps:$4 sm:$0xff]   ;;  %v1869_v30 = vld [vmem:[%s2059_s12 + $0xec] ss:$16 sps:$4 sm:$0xff]  }
  0x4d   : > { %v1871_v31 = vld [vmem:[%s2059_s12 + $0xe0] ss:$16 sps:$4 sm:$0xff]   ;;  %v1872_v32 = vld [vmem:[%s2059_s12 + $0xe8] ss:$16 sps:$4 sm:$0xff]  }
  0x4e   : > { %1635 = vmatpush3.bf16.msra.mxu0 %v1815_v55  ;;  %v417_v47 = vld [vmem:[#allocation2 + $0x8] sm:$0xff] }
  0x4f   : > { %1699 = vmatpush3.bf16.msra.mxu1 %v1816_v56  ;;  %1636 = vmatprep.subr.bf16.mxu0 %v1817_v57 }
  0x50   : > { %1700 = vmatprep.subr.bf16.mxu1 %v1818_v58 }
  0x52   : > { %1637 = vmatpush3.bf16.msra.mxu0 %v1819_v59 }
  0x53   : > { %1701 = vmatpush3.bf16.msra.mxu1 %v1820_v60  ;;  %1638 = vmatprep.subr.bf16.mxu0 %v1821_v61  ;;  %v418_v60 = vld [vmem:[#allocation2 + $0x10] sm:$0xff] }
  0x54   : > { %1702 = vmatprep.subr.bf16.mxu1 %v1822_v62 }
  0x56   : > { %1639 = vmatpush3.bf16.msra.mxu0 %v1823_v63 }
  0x57   : > { %1703 = vmatpush3.bf16.msra.mxu1 %v1824_v0 }
  0x59   : > { %913 = vmatmul.mubr.bf16.vlgmr.msra.gmra.mrb[0].mxu0 %v1825_v1  ;;  %v419_v1 = vld [vmem:[#allocation2 + $0x18] sm:$0xff] }
  0x5a   : > { %1010 = vmatmul.mubr.bf16.vlgmr.msra.gmra.mrb[0].mxu1 %v1828_v3  ;;  %920 = vmatprep.mubr.bf16.mxu0 %v1831_v5 }
  0x5b   : > { %1017 = vmatprep.mubr.bf16.mxu1 %v1833_v6 }
  0x61   : > { %921 = vmatmul.mubr.bf16.gmra.mrb[4].mxu0 %v1835_v7 }
  0x62   : > { %1018 = vmatmul.mubr.bf16.gmra.mrb[4].mxu1 %v1836_v8  ;;  %928 = vmatprep.mubr.bf16.mxu0 %v1837_v9 }
  0x63   : > { %1025 = vmatprep.mubr.bf16.mxu1 %v1839_v10 }
  0x69   : > { %929 = vmatmul.mubr.bf16.gmra.mrb[8].mxu0 %v1841_v11 }
  0x6a   : > { %1026 = vmatmul.mubr.bf16.gmra.mrb[8].mxu1 %v1842_v12  ;;  %936 = vmatprep.mubr.bf16.mxu0 %v1843_v13 }
  0x6b   : > { %1033 = vmatprep.mubr.bf16.mxu1 %v1845_v14  ;;  %v420_v14 = vld [vmem:[#allocation2 + $0x20] sm:$0xff] }
  0x71   : > { %937 = vmatmul.mubr.bf16.gmra.mrb[12].mxu0 %v1847_v15 }
  0x72   : > { %1034 = vmatmul.mubr.bf16.gmra.mrb[12].mxu1 %v1848_v16  ;;  %944 = vmatprep.mubr.bf16.mxu0 %v1849_v17 }
  0x73   : > { %1041 = vmatprep.mubr.bf16.mxu1 %v1851_v18 }
  0x79   : > { %945 = vmatmul.mubr.bf16.gmra.mrb[16].mxu0 %v1853_v19  ;;  %v421_v19 = vld [vmem:[#allocation2 + $0x28] sm:$0xff] }
  0x7a   : > { %1042 = vmatmul.mubr.bf16.gmra.mrb[16].mxu1 %v1854_v20  ;;  %952 = vmatprep.mubr.bf16.mxu0 %v1855_v21 }
  0x7b   : > { %1049 = vmatprep.mubr.bf16.mxu1 %v1857_v22 }
  0x81   : > { %953 = vmatmul.mubr.bf16.gmra.mrb[20].mxu0 %v1859_v23 }
  0x82   : > { %1050 = vmatmul.mubr.bf16.gmra.mrb[20].mxu1 %v1860_v24  ;;  %960 = vmatprep.mubr.bf16.mxu0 %v1861_v25 }
  0x83   : > { %1057 = vmatprep.mubr.bf16.mxu1 %v1863_v26 }
  0x89   : > { %961 = vmatmul.mubr.bf16.gmra.mrb[24].mxu0 %v1865_v27 }
  0x8a   : > { %1058 = vmatmul.mubr.bf16.gmra.mrb[24].mxu1 %v1866_v28  ;;  %968 = vmatprep.mubr.bf16.mxu0 %v1867_v29 }
  0x8b   : > { %1065 = vmatprep.mubr.bf16.mxu1 %v1869_v30 }
  0x91   : > { %969 = vmatmul.mubr.bf16.gmra.mrb[28].mxu0 %v1871_v31 }
  0x92   : > { %1066 = vmatmul.mubr.bf16.gmra.mrb[28].mxu1 %v1872_v32  ;;  %v422_v32 = vld [vmem:[#allocation2 + $0x30] sm:$0xff] }
 0x12c   : > { %v1640_v33 = vpop.f32.mrb[0].mxu0 }
 0x12d   : > { %v1704_v34 = vpop.f32.mrb[0].mxu1  ;;  %v1641_v35 = vpop.f32.mrb[1].mxu0 }
 0x12e   : > { %v1642_v36 = vadd.f32 %v1641_v35, %v1640_v33  ;;  %v1705_v37 = vpop.f32.mrb[1].mxu1  ;;  %v1643_v38 = vpop.f32.mrb[2].mxu0 }
 0x12f   : > { %v1706_v39 = vadd.f32 %v1705_v37, %v1704_v34  ;;  %v1707_v40 = vpop.f32.mrb[2].mxu1  ;;  %v1644_v41 = vpop.f32.mrb[3].mxu0  ;;  %v423_v37 = vld [vmem:[#allocation2 + $0x38] sm:$0xff] }
 0x130   : > { %v1645_v43 = vadd.f32 %v1644_v41, %v1643_v38  ;;  %v1708_v44 = vpop.f32.mrb[3].mxu1 }
 0x131   : > { %v1012_v45 = vadd.f32 %v1706_v39, %v1642_v36  ;;  %v1709_v46 = vadd.f32 %v1708_v44, %v1707_v40 }
 0x133   : > { %v1074_v48 = vadd.f32 %v1012_v45, %v416_v42  ;;  %v1015_v49 = vadd.f32 %v1709_v46, %v1645_v43 }
 0x134   : > { %v1646_v50 = vpop.f32.mrb[4].mxu0 }
 0x135   : > { %1090 = vst [vmem:[#allocation2] sm:$0xff] %v1074_v48  ;;  %v1075_v51 = vadd.f32 %v1015_v49, %v417_v47  ;;  %v1710_v52 = vpop.f32.mrb[4].mxu1  ;;  %v1647_v53 = vpop.f32.mrb[5].mxu0 }
 0x136   : > { %v1648_v54 = vadd.f32 %v1647_v53, %v1646_v50  ;;  %v1711_v55 = vpop.f32.mrb[5].mxu1  ;;  %v1649_v56 = vpop.f32.mrb[6].mxu0  ;;  %v424_v50 = vld [vmem:[#allocation2 + $0x40] sm:$0xff] }
 0x137   : > { %1091 = vst [vmem:[#allocation2 + $0x8] sm:$0xff] %v1075_v51  ;;  %v1712_v57 = vadd.f32 %v1711_v55, %v1710_v52  ;;  %v1713_v58 = vpop.f32.mrb[6].mxu1  ;;  %v1650_v59 = vpop.f32.mrb[7].mxu0  ;;  %v425_v55 = vld [vmem:[#allocation2 + $0x48] sm:$0xff] }
 0x138   : > { %v1651_v61 = vadd.f32 %v1650_v59, %v1649_v56  ;;  %v1714_v62 = vpop.f32.mrb[7].mxu1 }
 0x139   : > { %v1020_v63 = vadd.f32 %v1712_v57, %v1648_v54  ;;  %v1715_v0 = vadd.f32 %v1714_v62, %v1713_v58 }
 0x13b   : > { %v1076_v2 = vadd.f32 %v1020_v63, %v418_v60  ;;  %v1023_v3 = vadd.f32 %v1715_v0, %v1651_v61 }
 0x13c   : > { %v1652_v4 = vpop.f32.mrb[8].mxu0 }
 0x13d   : > { %1092 = vst [vmem:[#allocation2 + $0x10] sm:$0xff] %v1076_v2  ;;  %v1077_v5 = vadd.f32 %v1023_v3, %v419_v1  ;;  %v1716_v6 = vpop.f32.mrb[8].mxu1  ;;  %v1653_v7 = vpop.f32.mrb[9].mxu0 }
 0x13e   : > { %v1654_v8 = vadd.f32 %v1653_v7, %v1652_v4  ;;  %v1717_v9 = vpop.f32.mrb[9].mxu1  ;;  %v1655_v10 = vpop.f32.mrb[10].mxu0  ;;  %v426_v4 = vld [vmem:[#allocation2 + $0x50] sm:$0xff] }
 0x13f   : > { %1093 = vst [vmem:[#allocation2 + $0x18] sm:$0xff] %v1077_v5  ;;  %v1718_v11 = vadd.f32 %v1717_v9, %v1716_v6  ;;  %v1719_v12 = vpop.f32.mrb[10].mxu1  ;;  %v1656_v13 = vpop.f32.mrb[11].mxu0  ;;  %v427_v9 = vld [vmem:[#allocation2 + $0x58] sm:$0xff] }
 0x140   : > { %v1657_v15 = vadd.f32 %v1656_v13, %v1655_v10  ;;  %v1720_v16 = vpop.f32.mrb[11].mxu1 }
 0x141   : > { %v1028_v17 = vadd.f32 %v1718_v11, %v1654_v8  ;;  %v1721_v18 = vadd.f32 %v1720_v16, %v1719_v12 }
 0x143   : > { %v1078_v20 = vadd.f32 %v1028_v17, %v420_v14  ;;  %v1031_v21 = vadd.f32 %v1721_v18, %v1657_v15 }
 0x144   : > { %v1658_v22 = vpop.f32.mrb[12].mxu0 }
 0x145   : > { %1094 = vst [vmem:[#allocation2 + $0x20] sm:$0xff] %v1078_v20  ;;  %v1079_v23 = vadd.f32 %v1031_v21, %v421_v19  ;;  %v1722_v24 = vpop.f32.mrb[12].mxu1  ;;  %v1659_v25 = vpop.f32.mrb[13].mxu0 }
 0x146   : > { %v1660_v26 = vadd.f32 %v1659_v25, %v1658_v22  ;;  %v1723_v27 = vpop.f32.mrb[13].mxu1  ;;  %v1661_v28 = vpop.f32.mrb[14].mxu0  ;;  %v428_v22 = vld [vmem:[#allocation2 + $0x60] sm:$0xff] }
 0x147   : > { %1095 = vst [vmem:[#allocation2 + $0x28] sm:$0xff] %v1079_v23  ;;  %v1724_v29 = vadd.f32 %v1723_v27, %v1722_v24  ;;  %v1725_v30 = vpop.f32.mrb[14].mxu1  ;;  %v1662_v31 = vpop.f32.mrb[15].mxu0  ;;  %v429_v27 = vld [vmem:[#allocation2 + $0x68] sm:$0xff] }
 0x148   : > { %v1663_v33 = vadd.f32 %v1662_v31, %v1661_v28  ;;  %v1726_v34 = vpop.f32.mrb[15].mxu1 }
 0x149   : > { %v1036_v35 = vadd.f32 %v1724_v29, %v1660_v26  ;;  %v1727_v36 = vadd.f32 %v1726_v34, %v1725_v30 }
 0x14b   : > { %v1080_v38 = vadd.f32 %v1036_v35, %v422_v32  ;;  %v1039_v39 = vadd.f32 %v1727_v36, %v1663_v33 }
 0x14c   : > { %v1664_v40 = vpop.f32.mrb[16].mxu0 }
 0x14d   : > { %1096 = vst [vmem:[#allocation2 + $0x30] sm:$0xff] %v1080_v38  ;;  %v1081_v41 = vadd.f32 %v1039_v39, %v423_v37  ;;  %v1728_v42 = vpop.f32.mrb[16].mxu1  ;;  %v1665_v43 = vpop.f32.mrb[17].mxu0 }
 0x14e   : > { %v1666_v44 = vadd.f32 %v1665_v43, %v1664_v40  ;;  %v1729_v45 = vpop.f32.mrb[17].mxu1  ;;  %v1667_v46 = vpop.f32.mrb[18].mxu0  ;;  %v430_v40 = vld [vmem:[#allocation2 + $0x70] sm:$0xff] }
 0x14f   : > { %1097 = vst [vmem:[#allocation2 + $0x38] sm:$0xff] %v1081_v41  ;;  %v1730_v47 = vadd.f32 %v1729_v45, %v1728_v42  ;;  %v1731_v48 = vpop.f32.mrb[18].mxu1  ;;  %v1668_v49 = vpop.f32.mrb[19].mxu0  ;;  %v431_v45 = vld [vmem:[#allocation2 + $0x78] sm:$0xff] }
 0x150   : > { %v1669_v51 = vadd.f32 %v1668_v49, %v1667_v46  ;;  %v1732_v52 = vpop.f32.mrb[19].mxu1  ;;  %v1110_v49 = vld [vmem:[#allocation2] sm:$0xff] (!%p1499_p11) }
 0x151   : > { %v1044_v53 = vadd.f32 %v1730_v47, %v1666_v44  ;;  %v1733_v54 = vadd.f32 %v1732_v52, %v1731_v48 }
 0x153   : > { %v1082_v56 = vadd.f32 %v1044_v53, %v424_v50  ;;  %v1047_v57 = vadd.f32 %v1733_v54, %v1669_v51  ;;  %v1111_v50 = vld [vmem:[#allocation2 + $0x8] sm:$0xff] (!%p1499_p11)  ;;  %v2130_v51 = vld [vmem:[%s2213_s2] ss:$0 sm:$0xff] (!%p1499_p11) }
 0x154   : > { %v1670_v58 = vpop.f32.mrb[20].mxu0  ;;  %v1133_v52 = vadd.f32 (!%p1499_p11), %v2130_v51, %v1110_v49  ;;  %v1134_v53 = vadd.f32 (!%p1499_p11), %v2130_v51, %v1111_v50  ;;  %v1539_v54 = vld [vmem:[%s2214_s3] sm:$0xff] (!%p1499_p11)  }
 0x155   : > { %1098 = vst [vmem:[#allocation2 + $0x40] sm:$0xff] %v1082_v56  ;;  %v1083_v59 = vadd.f32 %v1047_v57, %v425_v55  ;;  %v1734_v60 = vpop.f32.mrb[20].mxu1  ;;  %v1671_v61 = vpop.f32.mrb[21].mxu0  ;;  %v1112_v55 = vld [vmem:[#allocation2 + $0x10] sm:$0xff] (!%p1499_p11)  ;;  %v1113_v56 = vld [vmem:[#allocation2 + $0x18] sm:$0xff] (!%p1499_p11)  ;;  %v1540_v57 = vunpack.c.l.bf16 (!%p1499_p11), %v1539_v54 }
 0x156   : > { %v1672_v62 = vadd.f32 %v1671_v61, %v1670_v58  ;;  %v1735_v63 = vpop.f32.mrb[21].mxu1  ;;  %v1673_v0 = vpop.f32.mrb[22].mxu0  ;;  %v1541_v58 = vunpack.c.h.bf16 (!%p1499_p11), %v1539_v54  ;;  %v1610_v61 = vld [vmem:[%s2214_s3 + $0x8] sm:$0xff] (!%p1499_p11)  }
 0x157   : > { %1099 = vst [vmem:[#allocation2 + $0x48] sm:$0xff] %v1083_v59  ;;  %v1736_v1 = vadd.f32 %v1735_v63, %v1734_v60  ;;  %v1737_v2 = vpop.f32.mrb[22].mxu1  ;;  %v1674_v3 = vpop.f32.mrb[23].mxu0  ;;  %v1135_v59 = vadd.f32 (!%p1499_p11), %v2130_v51, %v1112_v55  ;;  %v1136_v60 = vadd.f32 (!%p1499_p11), %v2130_v51, %v1113_v56  ;;  %v1115_v63 = vld [vmem:[#allocation2 + $0x28] sm:$0xff] (!%p1499_p11) }
 0x158   : > { %v1675_v5 = vadd.f32 %v1674_v3, %v1673_v0  ;;  %v1738_v6 = vpop.f32.mrb[23].mxu1  ;;  %v1544_v0 = vunpack.c.l.bf16 (!%p1499_p11), %v1610_v61  ;;  %v1138_v3 = vadd.f32 (!%p1499_p11), %v2130_v51, %v1115_v63 }
 0x159   : > { %v1052_v7 = vadd.f32 %v1736_v1, %v1672_v62  ;;  %v1739_v8 = vadd.f32 %v1738_v6, %v1737_v2  ;;  %v1114_v62 = vld [vmem:[#allocation2 + $0x20] sm:$0xff] (!%p1499_p11)  ;;  %v1545_v1 = vunpack.c.h.bf16 (!%p1499_p11), %v1610_v61  ;;  %v1117_v6 = vld [vmem:[#allocation2 + $0x38] sm:$0xff] (!%p1499_p11) }
 0x15a   : > { %v1137_v2 = vadd.f32 (!%p1499_p11), %v2130_v51, %v1114_v62 }
 0x15b   : > { %v1084_v10 = vadd.f32 %v1052_v7, %v426_v4  ;;  %v1055_v11 = vadd.f32 %v1739_v8, %v1675_v5  ;;  %v1611_v4 = vld [vmem:[%s2214_s3 + $0x10] sm:$0xff] (!%p1499_p11)   ;;  %v1181_v7 = vadd.f32 (!%p1499_p11), %v1540_v57, %v1133_v52  ;;  %v1182_v8 = vadd.f32 (!%p1499_p11), %v1541_v58, %v1134_v53 }
 0x15c   : > { %v1676_v12 = vpop.f32.mrb[24].mxu0  ;;  %v1116_v5 = vld [vmem:[#allocation2 + $0x30] sm:$0xff] (!%p1499_p11) }
 0x15d   : > { %1100 = vst [vmem:[#allocation2 + $0x50] sm:$0xff] %v1084_v10  ;;  %v1085_v13 = vadd.f32 %v1055_v11, %v427_v9  ;;  %v1740_v14 = vpop.f32.mrb[24].mxu1  ;;  %v1677_v15 = vpop.f32.mrb[25].mxu0  ;;  %v1548_v9 = vunpack.c.l.bf16 (!%p1499_p11), %v1611_v4  ;;  %v1549_v10 = vunpack.c.h.bf16 (!%p1499_p11), %v1611_v4  ;;  %v1612_v11 = vld [vmem:[%s2214_s3 + $0x18] sm:$0xff] (!%p1499_p11)  }
 0x15e   : > { %v1678_v16 = vadd.f32 %v1677_v15, %v1676_v12  ;;  %v1741_v17 = vpop.f32.mrb[25].mxu1  ;;  %v1679_v18 = vpop.f32.mrb[26].mxu0  ;;  %v1183_v12 = vadd.f32 (!%p1499_p11), %v1544_v0, %v1135_v59  ;;  %v1140_v15 = vadd.f32 (!%p1499_p11), %v2130_v51, %v1117_v6 }
 0x15f   : > { %1101 = vst [vmem:[#allocation2 + $0x58] sm:$0xff] %v1085_v13  ;;  %v1742_v19 = vadd.f32 %v1741_v17, %v1740_v14  ;;  %v1743_v20 = vpop.f32.mrb[26].mxu1  ;;  %v1680_v21 = vpop.f32.mrb[27].mxu0  ;;  %v1184_v13 = vadd.f32 (!%p1499_p11), %v1545_v1, %v1136_v60  ;;  %v1139_v14 = vadd.f32 (!%p1499_p11), %v2130_v51, %v1116_v5  ;;  %v1197_v17 = vmax.f32 (!%p1499_p11), %v1181_v7, 0.0  ;;  %v1616_v60 = vld [vmem:[%s2214_s3 + $0x38] sm:$0xff] (!%p1499_p11)  }
 0x160   : > { %v1681_v23 = vadd.f32 %v1680_v21, %v1679_v18  ;;  %v1744_v24 = vpop.f32.mrb[27].mxu1  ;;  %v1198_v18 = vmax.f32 (!%p1499_p11), %v1182_v8, 0.0  ;;  %v1119_v21 = vld [vmem:[#allocation2 + $0x48] sm:$0xff] (!%p1499_p11)  ;;  %v1568_v8 = vunpack.c.l.bf16 (!%p1499_p11), %v1616_v60 }
 0x161   : > { %v1060_v25 = vadd.f32 %v1742_v19, %v1678_v16  ;;  %v1745_v26 = vadd.f32 %v1744_v24, %v1743_v20  ;;  %v1118_v16 = vld [vmem:[#allocation2 + $0x40] sm:$0xff] (!%p1499_p11)  ;;  %v1185_v19 = vadd.f32 (!%p1499_p11), %v1548_v9, %v1137_v2  ;;  %v1186_v20 = vadd.f32 (!%p1499_p11), %v1549_v10, %v1138_v3 }
 0x162   : > { %v1552_v24 = vunpack.c.l.bf16 (!%p1499_p11), %v1612_v11  ;;  %v1569_v10 = vunpack.c.h.bf16 (!%p1499_p11), %v1616_v60 }
 0x163   : > { %v1086_v28 = vadd.f32 %v1060_v25, %v428_v22  ;;  %v1063_v29 = vadd.f32 %v1745_v26, %v1681_v23  ;;  %v1199_v22 = vmax.f32 (!%p1499_p11), %v1183_v12, 0.0  ;;  %v1200_v23 = vmax.f32 (!%p1499_p11), %v1184_v13, 0.0  ;;  %v1613_v26 = vld [vmem:[%s2214_s3 + $0x20] sm:$0xff] (!%p1499_p11)  }
 0x164   : > { %v1682_v30 = vpop.f32.mrb[28].mxu0  ;;  %v1553_v25 = vunpack.c.h.bf16 (!%p1499_p11), %v1612_v11 }
 0x165   : > { %1102 = vst [vmem:[#allocation2 + $0x60] sm:$0xff] %v1086_v28  ;;  %v1087_v31 = vadd.f32 %v1063_v29, %v429_v27  ;;  %v1746_v32 = vpop.f32.mrb[28].mxu1  ;;  %v1683_v33 = vpop.f32.mrb[29].mxu0  ;;  %v1120_v27 = vld [vmem:[#allocation2 + $0x50] sm:$0xff] (!%p1499_p11)  ;;  %v1573_v28 = vpack.c.bf16 (!%p1499_p11), %v1198_v18, %v1197_v17  ;;  %v1201_v29 = vmax.f32 (!%p1499_p11), %v1185_v19, 0.0 }
 0x166   : > { %v1684_v34 = vadd.f32 %v1683_v33, %v1682_v30  ;;  %v1747_v35 = vpop.f32.mrb[29].mxu1  ;;  %v1685_v36 = vpop.f32.mrb[30].mxu0  ;;  %v1202_v30 = vmax.f32 (!%p1499_p11), %v1186_v20, 0.0  ;;  %v1614_v33 = vld [vmem:[%s2214_s3 + $0x28] sm:$0xff] (!%p1499_p11)  }
 0x167   : > { %1103 = vst [vmem:[#allocation2 + $0x68] sm:$0xff] %v1087_v31  ;;  %v1748_v37 = vadd.f32 %v1747_v35, %v1746_v32  ;;  %v1749_v38 = vpop.f32.mrb[30].mxu1  ;;  %v1686_v39 = vpop.f32.mrb[31].mxu0  ;;  %v1141_v31 = vadd.f32 (!%p1499_p11), %v2130_v51, %v1118_v16  ;;  %v1121_v32 = vld [vmem:[#allocation2 + $0x58] sm:$0xff] (!%p1499_p11)  ;;  %v1187_v35 = vadd.f32 (!%p1499_p11), %v1552_v24, %v1139_v14  ;;  %1574 = vst [vmem:[%s2215_s4] sm:$0xff] (!%p1499_p11), %v1573_v28   ;;  %v1561_v52 = vunpack.c.h.bf16 (!%p1499_p11), %v1614_v33 }
 0x168   : > { %v1687_v41 = vadd.f32 %v1686_v39, %v1685_v36  ;;  %v1750_v42 = vpop.f32.mrb[31].mxu1  ;;  %v1188_v36 = vadd.f32 (!%p1499_p11), %v1553_v25, %v1140_v15  ;;  %v1583_v39 = vpack.c.bf16 (!%p1499_p11), %v1202_v30, %v1201_v29 }
 0x169   : > { %v1068_v43 = vadd.f32 %v1748_v37, %v1684_v34  ;;  %v1751_v44 = vadd.f32 %v1750_v42, %v1749_v38  ;;  %1109 = sbr.rel (%p1499_p11) target bundleno = 384 (0x180), region = 67  ;;  %v1578_v34 = vpack.c.bf16 (!%p1499_p11), %v1200_v23, %v1199_v22  ;;  %v1142_v37 = vadd.f32 (!%p1499_p11), %v2130_v51, %v1119_v21 }
 0x16a   : > { %v1143_v42 = vadd.f32 (!%p1499_p11), %v2130_v51, %v1120_v27  ;;  %1618 = vst [vmem:[%s2215_s4 + $0x10] sm:$0xff] (!%p1499_p11), %v1583_v39  }
 0x16b   : > { %v1088_v46 = vadd.f32 %v1068_v43, %v430_v40  ;;  %v1071_v47 = vadd.f32 %v1751_v44, %v1687_v41  ;;  %v1556_v40 = vunpack.c.l.bf16 (!%p1499_p11), %v1613_v26  ;;  %v1557_v41 = vunpack.c.h.bf16 (!%p1499_p11), %v1613_v26  ;;  %v1615_v44 = vld [vmem:[%s2214_s3 + $0x30] sm:$0xff] (!%p1499_p11)   ;;  %1617 = vst [vmem:[%s2215_s4 + $0x8] sm:$0xff] (!%p1499_p11), %v1578_v34  }
 0x16c   : > { %v1122_v38 = vld [vmem:[#allocation2 + $0x60] sm:$0xff] (!%p1499_p11)  ;;  %v1564_v59 = vunpack.c.l.bf16 (!%p1499_p11), %v1615_v44  ;;  %v1565_v0 = vunpack.c.h.bf16 (!%p1499_p11), %v1615_v44 }
 0x16d   : > { %1104 = vst [vmem:[#allocation2 + $0x70] sm:$0xff] %v1088_v46  ;;  %v1089_v48 = vadd.f32 %v1071_v47, %v431_v45  ;;  %v1203_v45 = vmax.f32 (!%p1499_p11), %v1187_v35, 0.0  ;;  %v1204_v46 = vmax.f32 (!%p1499_p11), %v1188_v36, 0.0  ;;  %v1144_v47 = vadd.f32 (!%p1499_p11), %v2130_v51, %v1121_v32 }
 0x16e   : > { %v1123_v43 = vld [vmem:[#allocation2 + $0x68] sm:$0xff] (!%p1499_p11)  ;;  %v1189_v49 = vadd.f32 (!%p1499_p11), %v1556_v40, %v1141_v31  ;;  %v1190_v50 = vadd.f32 (!%p1499_p11), %v1557_v41, %v1142_v37  ;;  %v1145_v53 = vadd.f32 (!%p1499_p11), %v2130_v51, %v1122_v38 }
 0x16f   : > { %1105 = vst [vmem:[#allocation2 + $0x78] sm:$0xff] %v1089_v48  ;;  %v1560_v48 = vunpack.c.l.bf16 (!%p1499_p11), %v1614_v33  ;;  %v1588_v56 = vpack.c.bf16 (!%p1499_p11), %v1204_v46, %v1203_v45  ;;  %v1146_v58 = vadd.f32 (!%p1499_p11), %v2130_v51, %v1123_v43  ;;  %v1192_v63 = vadd.f32 (!%p1499_p11), %v1561_v52, %v1144_v47 }
 0x170   : > { %v1205_v61 = vmax.f32 %v1189_v49, 0.0  ;;  %v1206_v62 = vmax.f32 %v1190_v50, 0.0  ;;  %v1193_v2 = vadd.f32 %v1564_v59, %v1145_v53 }
 0x171   : > { %v1191_v57 = vadd.f32 %v1560_v48, %v1143_v42  ;;  %1619 = vst [vmem:[%s2215_s4 + $0x18] sm:$0xff] %v1588_v56   ;;  %v1208_v6 = vmax.f32 %v1192_v63, 0.0  ;;  %v1194_v7 = vadd.f32 %v1565_v0, %v1146_v58 }
 0x172   : > { %v1593_v5 = vpack.c.bf16 %v1206_v62, %v1205_v61  ;;  %v1209_v9 = vmax.f32 %v1193_v2, 0.0 }
 0x173   : > { %v1207_v1 = vmax.f32 %v1191_v57, 0.0  ;;  %v1210_v12 = vmax.f32 %v1194_v7, 0.0 }
 0x174   : > { %v1124_v54 = vld [vmem:[#allocation2 + $0x70] sm:$0xff]  ;;  %1620 = vst [vmem:[%s2215_s4 + $0x20] sm:$0xff] %v1593_v5  }
 0x175   : > { %v1147_v3 = vadd.f32 %v2130_v51, %v1124_v54  ;;  %v1598_v11 = vpack.c.bf16 %v1208_v6, %v1207_v1  ;;  %v1603_v15 = vpack.c.bf16 %v1210_v12, %v1209_v9 }
 0x176   : > { %v1125_v55 = vld [vmem:[#allocation2 + $0x78] sm:$0xff] }
 0x177   : > { %v1148_v4 = vadd.f32 %v2130_v51, %v1125_v55  ;;  %v1195_v13 = vadd.f32 %v1568_v8, %v1147_v3  ;;  %1621 = vst [vmem:[%s2215_s4 + $0x28] sm:$0xff] %v1598_v11   ;;  %1622 = vst [vmem:[%s2215_s4 + $0x30] sm:$0xff] %v1603_v15  }
 0x179   : > { %v1196_v14 = vadd.f32 %v1569_v10, %v1148_v4  ;;  %v1211_v51 = vmax.f32 %v1195_v13, 0.0 }
 0x17b   : > { %v1212_v16 = vmax.f32 %v1196_v14, 0.0 }
 0x17d   : > { %v1608_v17 = vpack.c.bf16 %v1212_v16, %v1211_v51 }
 0x17f   : > { %1623 = vst [vmem:[%s2215_s4 + $0x38] sm:$0xff] %v1608_v17  }
 0x180 PF: > { %s14_s19 = sadd.s32 1, %s1911_s19   ;;  %s2216_s15 = smov %s1899_s16 }
 0x181   : > { %p11_p12 = scmp.ge.s32.totalorder %s14_s19, 4   ;;  %s2217_s16 = smov %s1974_s23 }
 0x182   : > { %s2218_s17 = smov %s1907_s18  ;;  %s2219_s18 = smov %s2221_s20 }
 0x183   :  { %13 = sbr.rel (!%p11_p12) target bundleno = 3 (0x3), region = 111 }

// kernel: classifier_forward.22
= control target key start
LH: loop header
LB: loop body
LE: loop exit
PB: predicated region body
PF: predicated region fallthrough
CT: control target
= control target key end

     0   :  { %s1768_s12 = smov 0   ;;  %s1770_s13 = smov 0   ;;  %s1998_s0 = inlined_call_operand.vmem [shape: bf16[128,1024], index: 0, kind: input, shape index: {}]   ;;  %s1999_s1 = inlined_call_operand.vmem [shape: bf16[1024,128], index: 1, kind: input, shape index: {}]   ;;  %s2000_s2 = inlined_call_operand.vmem [shape: f32[1,128], index: 2, kind: input, shape index: {}]   ;;  %s2001_s3 = inlined_call_operand.vmem [shape: bf16[128,128], index: 3, kind: output, shape index: {}]  }
   0x1   :  { %s1772_s14 = smov 0   ;;  %s1774_s15 = smov 0  }
   0x2   :  { %s1776_s16 = smov 0  }
   0x3 LB: > { %s25_s17 = sadd.s32 1, %s1741_s15  ;;  %p48_p1 = scmp.ne.s32.totalorder %s1733_s13, %s1729_s12  ;;  %s1745_s16 = sphi %s1776_s16, %s13_s16   ;;  %s1741_s15 = sphi %s1774_s15, %s2005_s15   ;;  %s1737_s14 = sphi %s1772_s14, %s2004_s14   ;;  %s1733_s13 = sphi %s1770_s13, %s2003_s13   ;;  %s1729_s12 = sphi %s1768_s12, %s2002_s12  }
   0x4   : > { %p26_p0 = scmp.ge.s32.totalorder %s25_s17, 2  ;;  %p49_p2 = scmp.eq.s32.totalorder %s1745_s16, 0 }
   0x5   : > { %s41_s19 = sadd.s32 1, %s1733_s13  ;;  %p1299_p5 = scmp.ge.s32.totalorder %s1745_s16, 2 }
   0x6   : > { %s2007_s17 = smov (%p26_p0, %s25_s17), 0  ;;  %p50_p3 = por %p49_p2, %p48_p1 }
   0x7   : > { %s37_s18 = ssub.s32 %s1741_s15, %s2007_s17  ;;  %162 = sbr.rel (%p1299_p5) target bundleno = 34 (0x22), region = 20 }
   0x8   : > { %p39_p4 = scmp.eq.s32.totalorder %s37_s18, 0 }
   0xa   : > { %s1803_s20 = scalar_select %p39_p4, %s1733_s13, %s41_s19  }
   0xe   : > { %165 = sbr.rel (!%p50_p3) target bundleno = 34 (0x22), region = 24  ;;  %s167_s21 = sand.u32 (%p50_p3), 1, %s1733_s13  }
   0xf   : > { %s1394_s22 = sshll.u32 (%p50_p3), %s1741_s15, 4  ;;  %s1300_s23 = sshll.u32 (%p50_p3), %s167_s21, 8 }
  0x10   : > { %s1811_s26 = scalar_lea.vmem (%p50_p3), %s1998_s0, %s1394_s22  ;;  %s1816_s27 = scalar_lea.vmem (%p50_p3), [#allocation3], %s1300_s23 }
  0x11   : > { %v188_v0 = vld [vmem:[%s1811_s26] sm:$0xff] (%p50_p3)  ;;  %v190_v1 = vld [vmem:[%s1811_s26 + $0x8] sm:$0xff] (%p50_p3) }
  0x12   : > { %v192_v2 = vld [vmem:[%s1811_s26 + $0x20] sm:$0xff] (%p50_p3)  ;;  %189 = vst [vmem:[%s1816_s27] sm:$0xff] (%p50_p3), %v188_v0  ;;  %191 = vst [vmem:[%s1816_s27 + $0x8] sm:$0xff] (%p50_p3), %v190_v1  ;;  %v194_v3 = vld [vmem:[%s1811_s26 + $0x28] sm:$0xff] (%p50_p3) }
  0x13   : > { %193 = vst [vmem:[%s1816_s27 + $0x10] sm:$0xff] (%p50_p3), %v192_v2  ;;  %v196_v4 = vld [vmem:[%s1811_s26 + $0x40] sm:$0xff] (%p50_p3)  ;;  %v198_v5 = vld [vmem:[%s1811_s26 + $0x48] sm:$0xff] (%p50_p3)  ;;  %195 = vst [vmem:[%s1816_s27 + $0x18] sm:$0xff] (%p50_p3), %v194_v3 }
  0x14   : > { %197 = vst [vmem:[%s1816_s27 + $0x20] sm:$0xff] (%p50_p3), %v196_v4  ;;  %199 = vst [vmem:[%s1816_s27 + $0x28] sm:$0xff] (%p50_p3), %v198_v5  ;;  %v200_v6 = vld [vmem:[%s1811_s26 + $0x60] sm:$0xff] (%p50_p3)  ;;  %v202_v7 = vld [vmem:[%s1811_s26 + $0x68] sm:$0xff] (%p50_p3) }
  0x15   : > { %v204_v8 = vld [vmem:[%s1811_s26 + $0x80] sm:$0xff]  ;;  %201 = vst [vmem:[%s1816_s27 + $0x30] sm:$0xff] %v200_v6  ;;  %203 = vst [vmem:[%s1816_s27 + $0x38] sm:$0xff] %v202_v7  ;;  %v206_v9 = vld [vmem:[%s1811_s26 + $0x88] sm:$0xff] }
  0x16   : > { %205 = vst [vmem:[%s1816_s27 + $0x40] sm:$0xff] %v204_v8  ;;  %v208_v10 = vld [vmem:[%s1811_s26 + $0xa0] sm:$0xff]  ;;  %v210_v11 = vld [vmem:[%s1811_s26 + $0xa8] sm:$0xff]  ;;  %207 = vst [vmem:[%s1816_s27 + $0x48] sm:$0xff] %v206_v9 }
  0x17   : > { %209 = vst [vmem:[%s1816_s27 + $0x50] sm:$0xff] %v208_v10  ;;  %211 = vst [vmem:[%s1816_s27 + $0x58] sm:$0xff] %v210_v11  ;;  %v212_v12 = vld [vmem:[%s1811_s26 + $0xc0] sm:$0xff]  ;;  %v214_v13 = vld [vmem:[%s1811_s26 + $0xc8] sm:$0xff] }
  0x18   : > { %v216_v14 = vld [vmem:[%s1811_s26 + $0xe0] sm:$0xff]  ;;  %213 = vst [vmem:[%s1816_s27 + $0x60] sm:$0xff] %v212_v12  ;;  %215 = vst [vmem:[%s1816_s27 + $0x68] sm:$0xff] %v214_v13  ;;  %v218_v15 = vld [vmem:[%s1811_s26 + $0xe8] sm:$0xff] }
  0x19   : > { %217 = vst [vmem:[%s1816_s27 + $0x70] sm:$0xff] %v216_v14  ;;  %v220_v16 = vld [vmem:[%s1811_s26 + $0x100] sm:$0xff]  ;;  %v222_v17 = vld [vmem:[%s1811_s26 + $0x108] sm:$0xff]  ;;  %219 = vst [vmem:[%s1816_s27 + $0x78] sm:$0xff] %v218_v15 }
  0x1a   : > { %221 = vst [vmem:[%s1816_s27 + $0x80] sm:$0xff] %v220_v16  ;;  %223 = vst [vmem:[%s1816_s27 + $0x88] sm:$0xff] %v222_v17  ;;  %v224_v18 = vld [vmem:[%s1811_s26 + $0x120] sm:$0xff]  ;;  %v226_v19 = vld [vmem:[%s1811_s26 + $0x128] sm:$0xff] }
  0x1b   : > { %v228_v20 = vld [vmem:[%s1811_s26 + $0x140] sm:$0xff]  ;;  %225 = vst [vmem:[%s1816_s27 + $0x90] sm:$0xff] %v224_v18  ;;  %227 = vst [vmem:[%s1816_s27 + $0x98] sm:$0xff] %v226_v19  ;;  %v230_v21 = vld [vmem:[%s1811_s26 + $0x148] sm:$0xff] }
  0x1c   : > { %229 = vst [vmem:[%s1816_s27 + $0xa0] sm:$0xff] %v228_v20  ;;  %v232_v22 = vld [vmem:[%s1811_s26 + $0x160] sm:$0xff]  ;;  %v234_v23 = vld [vmem:[%s1811_s26 + $0x168] sm:$0xff]  ;;  %231 = vst [vmem:[%s1816_s27 + $0xa8] sm:$0xff] %v230_v21 }
  0x1d   : > { %233 = vst [vmem:[%s1816_s27 + $0xb0] sm:$0xff] %v232_v22  ;;  %235 = vst [vmem:[%s1816_s27 + $0xb8] sm:$0xff] %v234_v23  ;;  %v236_v24 = vld [vmem:[%s1811_s26 + $0x180] sm:$0xff]  ;;  %v238_v25 = vld [vmem:[%s1811_s26 + $0x188] sm:$0xff] }
  0x1e   : > { %v240_v26 = vld [vmem:[%s1811_s26 + $0x1a0] sm:$0xff]  ;;  %237 = vst [vmem:[%s1816_s27 + $0xc0] sm:$0xff] %v236_v24  ;;  %239 = vst [vmem:[%s1816_s27 + $0xc8] sm:$0xff] %v238_v25  ;;  %v242_v27 = vld [vmem:[%s1811_s26 + $0x1a8] sm:$0xff] }
  0x1f   : > { %241 = vst [vmem:[%s1816_s27 + $0xd0] sm:$0xff] %v240_v26  ;;  %v244_v28 = vld [vmem:[%s1811_s26 + $0x1c0] sm:$0xff]  ;;  %v246_v29 = vld [vmem:[%s1811_s26 + $0x1c8] sm:$0xff]  ;;  %243 = vst [vmem:[%s1816_s27 + $0xd8] sm:$0xff] %v242_v27 }
  0x20   : > { %245 = vst [vmem:[%s1816_s27 + $0xe0] sm:$0xff] %v244_v28  ;;  %247 = vst [vmem:[%s1816_s27 + $0xe8] sm:$0xff] %v246_v29  ;;  %v248_v30 = vld [vmem:[%s1811_s26 + $0x1e0] sm:$0xff]  ;;  %v250_v31 = vld [vmem:[%s1811_s26 + $0x1e8] sm:$0xff] }
  0x21   : > { %249 = vst [vmem:[%s1816_s27 + $0xf0] sm:$0xff] %v248_v30  ;;  %251 = vst [vmem:[%s1816_s27 + $0xf8] sm:$0xff] %v250_v31 }
  0x22 PF: > { %p1303_p6 = scmp.ge.s32.totalorder %s1745_s16, 1  ;;  %p268_p7 = scmp.lt.s32.totalorder %s1745_s16, 3 }
  0x24   : > { %p269_p8 = pnand %p1303_p6, %p268_p7 }
  0x25   : > { %s275_s28 = sand.u32 (!%p269_p8), 1, %s1729_s12   ;;  %s1305_s29 = sshll.u32 (!%p269_p8), %s1737_s14, 6 }
  0x26   : > { %272 = sbr.rel (%p269_p8) target bundleno = 382 (0x17e), region = 51  ;;  %s1304_s30 = sshll.u32 (!%p269_p8), %s275_s28, 8 }
  0x27   : > { %p315_p9 = scmp.lt.s32.totalorder (!%p269_p8), %s1305_s29, 127  ;;  %s1888_s8 = scalar_lea.vmem (!%p269_p8), [#allocation3], %s1304_s30 }
  0x28   : > { %p1307_p10 = scmp.ne.s32.totalorder (!%p269_p8), %s1737_s14, 0 }
  0x2d   : > { %s2009_s29 = smov (!%p315_p9, %s1305_s29), 127  ;;  %339 = sbr.rel (%p1307_p10) target bundleno = 55 (0x37), region = 59 }
  0x2e   : > { %s1306_s4 = sshll.u32 %s2009_s29, 2  ;;  %v1747_v32 = vmov (!%p1307_p10), 0.0  }
  0x2f   : > { %s1886_s7 = scalar_lea.vmem %s1999_s1, %s1306_s4  ;;  %340 = vst [vmem:[#allocation2] sm:$0xff] (!%p1307_p10), %v1747_v32  ;;  %341 = vst [vmem:[#allocation2 + $0x8] sm:$0xff] (!%p1307_p10), %v1747_v32 }
  0x30   : > { %342 = vst [vmem:[#allocation2 + $0x10] sm:$0xff] (!%p1307_p10), %v1747_v32  ;;  %343 = vst [vmem:[#allocation2 + $0x18] sm:$0xff] (!%p1307_p10), %v1747_v32 }
  0x31   : > { %344 = vst [vmem:[#allocation2 + $0x20] sm:$0xff] (!%p1307_p10), %v1747_v32  ;;  %345 = vst [vmem:[#allocation2 + $0x28] sm:$0xff] (!%p1307_p10), %v1747_v32 }
  0x32   : > { %346 = vst [vmem:[#allocation2 + $0x30] sm:$0xff] (!%p1307_p10), %v1747_v32  ;;  %347 = vst [vmem:[#allocation2 + $0x38] sm:$0xff] (!%p1307_p10), %v1747_v32 }
  0x33   : > { %348 = vst [vmem:[#allocation2 + $0x40] sm:$0xff] (!%p1307_p10), %v1747_v32  ;;  %349 = vst [vmem:[#allocation2 + $0x48] sm:$0xff] (!%p1307_p10), %v1747_v32 }
  0x34   : > { %350 = vst [vmem:[#allocation2 + $0x50] sm:$0xff] %v1747_v32  ;;  %351 = vst [vmem:[#allocation2 + $0x58] sm:$0xff] %v1747_v32 }
  0x35   : > { %352 = vst [vmem:[#allocation2 + $0x60] sm:$0xff] %v1747_v32  ;;  %353 = vst [vmem:[#allocation2 + $0x68] sm:$0xff] %v1747_v32 }
  0x36   : > { %354 = vst [vmem:[#allocation2 + $0x70] sm:$0xff] %v1747_v32  ;;  %355 = vst [vmem:[#allocation2 + $0x78] sm:$0xff] %v1747_v32 }
  0x37 PF: > { %v1627_v33 = vld [vmem:[%s1886_s7 + $0x40] sm:$0xff]   ;;  %v1631_v37 = vld [vmem:[%s1886_s7 + $0x48] sm:$0xff]   ;;  %v1635_v41 = vld [vmem:[%s1886_s7 + $0x50] sm:$0xff]   ;;  %p1372_p11 = scmp.ne.s32.totalorder %s1737_s14, 1 }
  0x38   : > { %v1628_v34 = vld [vmem:[%s1886_s7 + $0xc0] sm:$0xff]   ;;  %1458 = vmatprep.subr.bf16.mxu0 %v1627_v33  ;;  %v1632_v38 = vld [vmem:[%s1886_s7 + $0xc8] sm:$0xff]   ;;  %v1636_v42 = vld [vmem:[%s1886_s7 + $0xd0] sm:$0xff]  }
  0x39   : > { %v1629_v35 = vld [vmem:[%s1886_s7] sm:$0xff]   ;;  %1522 = vmatprep.subr.bf16.mxu1 %v1628_v34  ;;  %v1633_v39 = vld [vmem:[%s1886_s7 + $0x8] sm:$0xff]   ;;  %v1637_v43 = vld [vmem:[%s1886_s7 + $0x10] sm:$0xff]  }
  0x3a   : > { %v1630_v36 = vld [vmem:[%s1886_s7 + $0x80] sm:$0xff]   ;;  %1459 = vmatpush3.bf16.msra.mxu0 %v1629_v35  ;;  %v1634_v40 = vld [vmem:[%s1886_s7 + $0x88] sm:$0xff]   ;;  %v1638_v44 = vld [vmem:[%s1886_s7 + $0x90] sm:$0xff]  }
  0x3b   : > { %1523 = vmatpush3.bf16.msra.mxu1 %v1630_v36  ;;  %1460 = vmatprep.subr.bf16.mxu0 %v1631_v37  ;;  %v1639_v45 = vld [vmem:[%s1886_s7 + $0x58] sm:$0xff]   ;;  %v1643_v49 = vld [vmem:[%s1886_s7 + $0x60] sm:$0xff]   ;;  %v1647_v53 = vld [vmem:[%s1886_s7 + $0x68] sm:$0xff]  }
  0x3c   : > { %1524 = vmatprep.subr.bf16.mxu1 %v1632_v38  ;;  %v1640_v46 = vld [vmem:[%s1886_s7 + $0xd8] sm:$0xff]   ;;  %v1644_v50 = vld [vmem:[%s1886_s7 + $0xe0] sm:$0xff]   ;;  %v1648_v54 = vld [vmem:[%s1886_s7 + $0xe8] sm:$0xff]  }
  0x3d   : > { %v1641_v47 = vld [vmem:[%s1886_s7 + $0x18] sm:$0xff]   ;;  %v1645_v51 = vld [vmem:[%s1886_s7 + $0x20] sm:$0xff]   ;;  %v1649_v55 = vld [vmem:[%s1886_s7 + $0x28] sm:$0xff]  }
  0x3e   : > { %1461 = vmatpush3.bf16.msra.mxu0 %v1633_v39  ;;  %v1642_v48 = vld [vmem:[%s1886_s7 + $0x98] sm:$0xff]   ;;  %v1646_v52 = vld [vmem:[%s1886_s7 + $0xa0] sm:$0xff]   ;;  %v1650_v56 = vld [vmem:[%s1886_s7 + $0xa8] sm:$0xff]  }
  0x3f   : > { %1525 = vmatpush3.bf16.msra.mxu1 %v1634_v40  ;;  %1462 = vmatprep.subr.bf16.mxu0 %v1635_v41  ;;  %v1651_v57 = vld [vmem:[%s1886_s7 + $0x70] sm:$0xff]   ;;  %v1655_v61 = vld [vmem:[%s1886_s7 + $0x78] sm:$0xff]  }
  0x40   : > { %1526 = vmatprep.subr.bf16.mxu1 %v1636_v42  ;;  %v1652_v58 = vld [vmem:[%s1886_s7 + $0xf0] sm:$0xff]   ;;  %v1656_v62 = vld [vmem:[%s1886_s7 + $0xf8] sm:$0xff]   ;;  %v356_v42 = vld [vmem:[#allocation2] sm:$0xff] }
  0x41   : > { %v1653_v59 = vld [vmem:[%s1886_s7 + $0x30] sm:$0xff]   ;;  %v1657_v63 = vld [vmem:[%s1886_s7 + $0x38] sm:$0xff]  }
  0x42   : > { %1463 = vmatpush3.bf16.msra.mxu0 %v1637_v43  ;;  %v1654_v60 = vld [vmem:[%s1886_s7 + $0xb0] sm:$0xff]   ;;  %v1658_v0 = vld [vmem:[%s1886_s7 + $0xb8] sm:$0xff]  }
  0x43   : > { %1527 = vmatpush3.bf16.msra.mxu1 %v1638_v44  ;;  %1464 = vmatprep.subr.bf16.mxu0 %v1639_v45  ;;  %v1659_v1 = vld [vmem:[%s1888_s8] ss:$16 sps:$4 sm:$0xff]   ;;  %v1661_v2 = vld [vmem:[%s1888_s8 + $0x4] ss:$16 sps:$4 sm:$0xff]   ;;  %v1662_v3 = vld [vmem:[%s1888_s8 + $0x8] ss:$16 sps:$4 sm:$0xff]  }
  0x44   : > { %1528 = vmatprep.subr.bf16.mxu1 %v1640_v46  ;;  %v1664_v4 = vld [vmem:[%s1888_s8 + $0xc] ss:$16 sps:$4 sm:$0xff]   ;;  %852 = vmatprep.mubr.bf16.mxu0 %v1661_v2  ;;  %v1665_v5 = vld [vmem:[%s1888_s8 + $0x24] ss:$16 sps:$4 sm:$0xff]   ;;  %v1669_v7 = vld [vmem:[%s1888_s8 + $0x20] ss:$16 sps:$4 sm:$0xff]  }
  0x45   : > { %949 = vmatprep.mubr.bf16.mxu1 %v1664_v4  ;;  %v1667_v6 = vld [vmem:[%s1888_s8 + $0x2c] ss:$16 sps:$4 sm:$0xff]   ;;  %v1670_v8 = vld [vmem:[%s1888_s8 + $0x28] ss:$16 sps:$4 sm:$0xff]   ;;  %v1671_v9 = vld [vmem:[%s1888_s8 + $0x44] ss:$16 sps:$4 sm:$0xff]  }
  0x46   : > { %1465 = vmatpush3.bf16.msra.mxu0 %v1641_v47  ;;  %v1673_v10 = vld [vmem:[%s1888_s8 + $0x4c] ss:$16 sps:$4 sm:$0xff]   ;;  %v1675_v11 = vld [vmem:[%s1888_s8 + $0x40] ss:$16 sps:$4 sm:$0xff]   ;;  %v1676_v12 = vld [vmem:[%s1888_s8 + $0x48] ss:$16 sps:$4 sm:$0xff]  }
  0x47   : > { %1529 = vmatpush3.bf16.msra.mxu1 %v1642_v48  ;;  %1466 = vmatprep.subr.bf16.mxu0 %v1643_v49  ;;  %v1677_v13 = vld [vmem:[%s1888_s8 + $0x64] ss:$16 sps:$4 sm:$0xff]   ;;  %v1679_v14 = vld [vmem:[%s1888_s8 + $0x6c] ss:$16 sps:$4 sm:$0xff]   ;;  %v1681_v15 = vld [vmem:[%s1888_s8 + $0x60] ss:$16 sps:$4 sm:$0xff]  }
  0x48   : > { %1530 = vmatprep.subr.bf16.mxu1 %v1644_v50  ;;  %v1682_v16 = vld [vmem:[%s1888_s8 + $0x68] ss:$16 sps:$4 sm:$0xff]   ;;  %v1683_v17 = vld [vmem:[%s1888_s8 + $0x84] ss:$16 sps:$4 sm:$0xff]   ;;  %v1685_v18 = vld [vmem:[%s1888_s8 + $0x8c] ss:$16 sps:$4 sm:$0xff]  }
  0x49   : > { %v1687_v19 = vld [vmem:[%s1888_s8 + $0x80] ss:$16 sps:$4 sm:$0xff]   ;;  %v1688_v20 = vld [vmem:[%s1888_s8 + $0x88] ss:$16 sps:$4 sm:$0xff]   ;;  %v1689_v21 = vld [vmem:[%s1888_s8 + $0xa4] ss:$16 sps:$4 sm:$0xff]  }
  0x4a   : > { %1467 = vmatpush3.bf16.msra.mxu0 %v1645_v51  ;;  %v1691_v22 = vld [vmem:[%s1888_s8 + $0xac] ss:$16 sps:$4 sm:$0xff]   ;;  %v1693_v23 = vld [vmem:[%s1888_s8 + $0xa0] ss:$16 sps:$4 sm:$0xff]   ;;  %v1694_v24 = vld [vmem:[%s1888_s8 + $0xa8] ss:$16 sps:$4 sm:$0xff]  }
  0x4b   : > { %1531 = vmatpush3.bf16.msra.mxu1 %v1646_v52  ;;  %1468 = vmatprep.subr.bf16.mxu0 %v1647_v53  ;;  %v1695_v25 = vld [vmem:[%s1888_s8 + $0xc4] ss:$16 sps:$4 sm:$0xff]   ;;  %v1697_v26 = vld [vmem:[%s1888_s8 + $0xcc] ss:$16 sps:$4 sm:$0xff]   ;;  %v1699_v27 = vld [vmem:[%s1888_s8 + $0xc0] ss:$16 sps:$4 sm:$0xff]  }
  0x4c   : > { %1532 = vmatprep.subr.bf16.mxu1 %v1648_v54  ;;  %v1700_v28 = vld [vmem:[%s1888_s8 + $0xc8] ss:$16 sps:$4 sm:$0xff]   ;;  %v1701_v29 = vld [vmem:[%s1888_s8 + $0xe4] ss:$16 sps:$4 sm:$0xff]   ;;  %v1703_v30 = vld [vmem:[%s1888_s8 + $0xec] ss:$16 sps:$4 sm:$0xff]  }
  0x4d   : > { %v1705_v31 = vld [vmem:[%s1888_s8 + $0xe0] ss:$16 sps:$4 sm:$0xff]   ;;  %v1706_v32 = vld [vmem:[%s1888_s8 + $0xe8] ss:$16 sps:$4 sm:$0xff]  }
  0x4e   : > { %1469 = vmatpush3.bf16.msra.mxu0 %v1649_v55  ;;  %v357_v47 = vld [vmem:[#allocation2 + $0x8] sm:$0xff] }
  0x4f   : > { %1533 = vmatpush3.bf16.msra.mxu1 %v1650_v56  ;;  %1470 = vmatprep.subr.bf16.mxu0 %v1651_v57 }
  0x50   : > { %1534 = vmatprep.subr.bf16.mxu1 %v1652_v58 }
  0x52   : > { %1471 = vmatpush3.bf16.msra.mxu0 %v1653_v59 }
  0x53   : > { %1535 = vmatpush3.bf16.msra.mxu1 %v1654_v60  ;;  %1472 = vmatprep.subr.bf16.mxu0 %v1655_v61  ;;  %v358_v60 = vld [vmem:[#allocation2 + $0x10] sm:$0xff] }
  0x54   : > { %1536 = vmatprep.subr.bf16.mxu1 %v1656_v62 }
  0x56   : > { %1473 = vmatpush3.bf16.msra.mxu0 %v1657_v63 }
  0x57   : > { %1537 = vmatpush3.bf16.msra.mxu1 %v1658_v0 }
  0x59   : > { %853 = vmatmul.mubr.bf16.vlgmr.msra.gmra.mrb[0].mxu0 %v1659_v1  ;;  %v359_v1 = vld [vmem:[#allocation2 + $0x18] sm:$0xff] }
  0x5a   : > { %950 = vmatmul.mubr.bf16.vlgmr.msra.gmra.mrb[0].mxu1 %v1662_v3  ;;  %860 = vmatprep.mubr.bf16.mxu0 %v1665_v5 }
  0x5b   : > { %957 = vmatprep.mubr.bf16.mxu1 %v1667_v6 }
  0x61   : > { %861 = vmatmul.mubr.bf16.gmra.mrb[4].mxu0 %v1669_v7 }
  0x62   : > { %958 = vmatmul.mubr.bf16.gmra.mrb[4].mxu1 %v1670_v8  ;;  %868 = vmatprep.mubr.bf16.mxu0 %v1671_v9 }
  0x63   : > { %965 = vmatprep.mubr.bf16.mxu1 %v1673_v10 }
  0x69   : > { %869 = vmatmul.mubr.bf16.gmra.mrb[8].mxu0 %v1675_v11 }
  0x6a   : > { %966 = vmatmul.mubr.bf16.gmra.mrb[8].mxu1 %v1676_v12  ;;  %876 = vmatprep.mubr.bf16.mxu0 %v1677_v13 }
  0x6b   : > { %973 = vmatprep.mubr.bf16.mxu1 %v1679_v14  ;;  %v360_v14 = vld [vmem:[#allocation2 + $0x20] sm:$0xff] }
  0x71   : > { %877 = vmatmul.mubr.bf16.gmra.mrb[12].mxu0 %v1681_v15 }
  0x72   : > { %974 = vmatmul.mubr.bf16.gmra.mrb[12].mxu1 %v1682_v16  ;;  %884 = vmatprep.mubr.bf16.mxu0 %v1683_v17 }
  0x73   : > { %981 = vmatprep.mubr.bf16.mxu1 %v1685_v18 }
  0x79   : > { %885 = vmatmul.mubr.bf16.gmra.mrb[16].mxu0 %v1687_v19  ;;  %v361_v19 = vld [vmem:[#allocation2 + $0x28] sm:$0xff] }
  0x7a   : > { %982 = vmatmul.mubr.bf16.gmra.mrb[16].mxu1 %v1688_v20  ;;  %892 = vmatprep.mubr.bf16.mxu0 %v1689_v21 }
  0x7b   : > { %989 = vmatprep.mubr.bf16.mxu1 %v1691_v22 }
  0x81   : > { %893 = vmatmul.mubr.bf16.gmra.mrb[20].mxu0 %v1693_v23 }
  0x82   : > { %990 = vmatmul.mubr.bf16.gmra.mrb[20].mxu1 %v1694_v24  ;;  %900 = vmatprep.mubr.bf16.mxu0 %v1695_v25 }
  0x83   : > { %997 = vmatprep.mubr.bf16.mxu1 %v1697_v26 }
  0x89   : > { %901 = vmatmul.mubr.bf16.gmra.mrb[24].mxu0 %v1699_v27 }
  0x8a   : > { %998 = vmatmul.mubr.bf16.gmra.mrb[24].mxu1 %v1700_v28  ;;  %908 = vmatprep.mubr.bf16.mxu0 %v1701_v29 }
  0x8b   : > { %1005 = vmatprep.mubr.bf16.mxu1 %v1703_v30 }
  0x91   : > { %909 = vmatmul.mubr.bf16.gmra.mrb[28].mxu0 %v1705_v31 }
  0x92   : > { %1006 = vmatmul.mubr.bf16.gmra.mrb[28].mxu1 %v1706_v32  ;;  %v362_v32 = vld [vmem:[#allocation2 + $0x30] sm:$0xff] }
 0x12c   : > { %v1474_v33 = vpop.f32.mrb[0].mxu0 }
 0x12d   : > { %v1538_v34 = vpop.f32.mrb[0].mxu1  ;;  %v1475_v35 = vpop.f32.mrb[1].mxu0 }
 0x12e   : > { %v1476_v36 = vadd.f32 %v1475_v35, %v1474_v33  ;;  %v1539_v37 = vpop.f32.mrb[1].mxu1  ;;  %v1477_v38 = vpop.f32.mrb[2].mxu0 }
 0x12f   : > { %v1540_v39 = vadd.f32 %v1539_v37, %v1538_v34  ;;  %v1541_v40 = vpop.f32.mrb[2].mxu1  ;;  %v1478_v41 = vpop.f32.mrb[3].mxu0  ;;  %v363_v37 = vld [vmem:[#allocation2 + $0x38] sm:$0xff] }
 0x130   : > { %v1479_v43 = vadd.f32 %v1478_v41, %v1477_v38  ;;  %v1542_v44 = vpop.f32.mrb[3].mxu1 }
 0x131   : > { %v952_v45 = vadd.f32 %v1540_v39, %v1476_v36  ;;  %v1543_v46 = vadd.f32 %v1542_v44, %v1541_v40 }
 0x133   : > { %v1014_v48 = vadd.f32 %v952_v45, %v356_v42  ;;  %v955_v49 = vadd.f32 %v1543_v46, %v1479_v43 }
 0x134   : > { %v1480_v50 = vpop.f32.mrb[4].mxu0 }
 0x135   : > { %1030 = vst [vmem:[#allocation2] sm:$0xff] %v1014_v48  ;;  %v1015_v51 = vadd.f32 %v955_v49, %v357_v47  ;;  %v1544_v52 = vpop.f32.mrb[4].mxu1  ;;  %v1481_v53 = vpop.f32.mrb[5].mxu0 }
 0x136   : > { %v1482_v54 = vadd.f32 %v1481_v53, %v1480_v50  ;;  %v1545_v55 = vpop.f32.mrb[5].mxu1  ;;  %v1483_v56 = vpop.f32.mrb[6].mxu0  ;;  %v364_v50 = vld [vmem:[#allocation2 + $0x40] sm:$0xff] }
 0x137   : > { %1031 = vst [vmem:[#allocation2 + $0x8] sm:$0xff] %v1015_v51  ;;  %v1546_v57 = vadd.f32 %v1545_v55, %v1544_v52  ;;  %v1547_v58 = vpop.f32.mrb[6].mxu1  ;;  %v1484_v59 = vpop.f32.mrb[7].mxu0  ;;  %v365_v55 = vld [vmem:[#allocation2 + $0x48] sm:$0xff] }
 0x138   : > { %v1485_v61 = vadd.f32 %v1484_v59, %v1483_v56  ;;  %v1548_v62 = vpop.f32.mrb[7].mxu1 }
 0x139   : > { %v960_v63 = vadd.f32 %v1546_v57, %v1482_v54  ;;  %v1549_v0 = vadd.f32 %v1548_v62, %v1547_v58 }
 0x13b   : > { %v1016_v2 = vadd.f32 %v960_v63, %v358_v60  ;;  %v963_v3 = vadd.f32 %v1549_v0, %v1485_v61 }
 0x13c   : > { %v1486_v4 = vpop.f32.mrb[8].mxu0 }
 0x13d   : > { %1032 = vst [vmem:[#allocation2 + $0x10] sm:$0xff] %v1016_v2  ;;  %v1017_v5 = vadd.f32 %v963_v3, %v359_v1  ;;  %v1550_v6 = vpop.f32.mrb[8].mxu1  ;;  %v1487_v7 = vpop.f32.mrb[9].mxu0 }
 0x13e   : > { %v1488_v8 = vadd.f32 %v1487_v7, %v1486_v4  ;;  %v1551_v9 = vpop.f32.mrb[9].mxu1  ;;  %v1489_v10 = vpop.f32.mrb[10].mxu0  ;;  %v366_v4 = vld [vmem:[#allocation2 + $0x50] sm:$0xff] }
 0x13f   : > { %1033 = vst [vmem:[#allocation2 + $0x18] sm:$0xff] %v1017_v5  ;;  %v1552_v11 = vadd.f32 %v1551_v9, %v1550_v6  ;;  %v1553_v12 = vpop.f32.mrb[10].mxu1  ;;  %v1490_v13 = vpop.f32.mrb[11].mxu0  ;;  %v367_v9 = vld [vmem:[#allocation2 + $0x58] sm:$0xff] }
 0x140   : > { %v1491_v15 = vadd.f32 %v1490_v13, %v1489_v10  ;;  %v1554_v16 = vpop.f32.mrb[11].mxu1 }
 0x141   : > { %v968_v17 = vadd.f32 %v1552_v11, %v1488_v8  ;;  %v1555_v18 = vadd.f32 %v1554_v16, %v1553_v12 }
 0x143   : > { %v1018_v20 = vadd.f32 %v968_v17, %v360_v14  ;;  %v971_v21 = vadd.f32 %v1555_v18, %v1491_v15 }
 0x144   : > { %v1492_v22 = vpop.f32.mrb[12].mxu0 }
 0x145   : > { %1034 = vst [vmem:[#allocation2 + $0x20] sm:$0xff] %v1018_v20  ;;  %v1019_v23 = vadd.f32 %v971_v21, %v361_v19  ;;  %v1556_v24 = vpop.f32.mrb[12].mxu1  ;;  %v1493_v25 = vpop.f32.mrb[13].mxu0 }
 0x146   : > { %v1494_v26 = vadd.f32 %v1493_v25, %v1492_v22  ;;  %v1557_v27 = vpop.f32.mrb[13].mxu1  ;;  %v1495_v28 = vpop.f32.mrb[14].mxu0  ;;  %v368_v22 = vld [vmem:[#allocation2 + $0x60] sm:$0xff] }
 0x147   : > { %1035 = vst [vmem:[#allocation2 + $0x28] sm:$0xff] %v1019_v23  ;;  %v1558_v29 = vadd.f32 %v1557_v27, %v1556_v24  ;;  %v1559_v30 = vpop.f32.mrb[14].mxu1  ;;  %v1496_v31 = vpop.f32.mrb[15].mxu0  ;;  %v369_v27 = vld [vmem:[#allocation2 + $0x68] sm:$0xff] }
 0x148   : > { %v1497_v33 = vadd.f32 %v1496_v31, %v1495_v28  ;;  %v1560_v34 = vpop.f32.mrb[15].mxu1 }
 0x149   : > { %v976_v35 = vadd.f32 %v1558_v29, %v1494_v26  ;;  %v1561_v36 = vadd.f32 %v1560_v34, %v1559_v30 }
 0x14b   : > { %v1020_v38 = vadd.f32 %v976_v35, %v362_v32  ;;  %v979_v39 = vadd.f32 %v1561_v36, %v1497_v33 }
 0x14c   : > { %v1498_v40 = vpop.f32.mrb[16].mxu0 }
 0x14d   : > { %1036 = vst [vmem:[#allocation2 + $0x30] sm:$0xff] %v1020_v38  ;;  %v1021_v41 = vadd.f32 %v979_v39, %v363_v37  ;;  %v1562_v42 = vpop.f32.mrb[16].mxu1  ;;  %v1499_v43 = vpop.f32.mrb[17].mxu0 }
 0x14e   : > { %v1500_v44 = vadd.f32 %v1499_v43, %v1498_v40  ;;  %v1563_v45 = vpop.f32.mrb[17].mxu1  ;;  %v1501_v46 = vpop.f32.mrb[18].mxu0  ;;  %v370_v40 = vld [vmem:[#allocation2 + $0x70] sm:$0xff] }
 0x14f   : > { %1037 = vst [vmem:[#allocation2 + $0x38] sm:$0xff] %v1021_v41  ;;  %v1564_v47 = vadd.f32 %v1563_v45, %v1562_v42  ;;  %v1565_v48 = vpop.f32.mrb[18].mxu1  ;;  %v1502_v49 = vpop.f32.mrb[19].mxu0  ;;  %v371_v45 = vld [vmem:[#allocation2 + $0x78] sm:$0xff] }
 0x150   : > { %v1503_v51 = vadd.f32 %v1502_v49, %v1501_v46  ;;  %v1566_v52 = vpop.f32.mrb[19].mxu1  ;;  %v1050_v49 = vld [vmem:[#allocation2] sm:$0xff] (!%p1372_p11) }
 0x151   : > { %v984_v53 = vadd.f32 %v1564_v47, %v1500_v44  ;;  %v1567_v54 = vadd.f32 %v1566_v52, %v1565_v48 }
 0x153   : > { %v1022_v56 = vadd.f32 %v984_v53, %v364_v50  ;;  %v987_v57 = vadd.f32 %v1567_v54, %v1503_v51  ;;  %v1051_v50 = vld [vmem:[#allocation2 + $0x8] sm:$0xff] (!%p1372_p11)  ;;  %v1373_v51 = vld [vmem:[%s2000_s2] ss:$0 sm:$0xff] (!%p1372_p11)  ;;  %v1052_v54 = vld [vmem:[#allocation2 + $0x10] sm:$0xff] (!%p1372_p11) }
 0x154   : > { %v1504_v58 = vpop.f32.mrb[20].mxu0  ;;  %v1073_v52 = vadd.f32 (!%p1372_p11), %v1373_v51, %v1050_v49  ;;  %v1074_v53 = vadd.f32 (!%p1372_p11), %v1373_v51, %v1051_v50 }
 0x155   : > { %1038 = vst [vmem:[#allocation2 + $0x40] sm:$0xff] %v1022_v56  ;;  %v1023_v59 = vadd.f32 %v987_v57, %v365_v55  ;;  %v1568_v60 = vpop.f32.mrb[20].mxu1  ;;  %v1505_v61 = vpop.f32.mrb[21].mxu0  ;;  %v1053_v55 = vld [vmem:[#allocation2 + $0x18] sm:$0xff] (!%p1372_p11)  ;;  %v1054_v56 = vld [vmem:[#allocation2 + $0x20] sm:$0xff] (!%p1372_p11)  ;;  %v1075_v57 = vadd.f32 (!%p1372_p11), %v1373_v51, %v1052_v54 }
 0x156   : > { %v1506_v62 = vadd.f32 %v1505_v61, %v1504_v58  ;;  %v1569_v63 = vpop.f32.mrb[21].mxu1  ;;  %v1507_v0 = vpop.f32.mrb[22].mxu0  ;;  %v1076_v58 = vadd.f32 (!%p1372_p11), %v1373_v51, %v1053_v55  ;;  %v1056_v61 = vld [vmem:[#allocation2 + $0x30] sm:$0xff] (!%p1372_p11) }
 0x157   : > { %1039 = vst [vmem:[#allocation2 + $0x48] sm:$0xff] %v1023_v59  ;;  %v1570_v1 = vadd.f32 %v1569_v63, %v1568_v60  ;;  %v1571_v2 = vpop.f32.mrb[22].mxu1  ;;  %v1508_v3 = vpop.f32.mrb[23].mxu0  ;;  %v1055_v59 = vld [vmem:[#allocation2 + $0x28] sm:$0xff] (!%p1372_p11)  ;;  %v1077_v60 = vadd.f32 (!%p1372_p11), %v1373_v51, %v1054_v56  ;;  %v1089_v63 = vmax.f32 (!%p1372_p11), %v1073_v52, 0.0 }
 0x158   : > { %v1509_v5 = vadd.f32 %v1508_v3, %v1507_v0  ;;  %v1572_v6 = vpop.f32.mrb[23].mxu1  ;;  %v1090_v0 = vmax.f32 (!%p1372_p11), %v1074_v53, 0.0 }
 0x159   : > { %v992_v7 = vadd.f32 %v1570_v1, %v1506_v62  ;;  %v1573_v8 = vadd.f32 %v1572_v6, %v1571_v2  ;;  %v1057_v62 = vld [vmem:[#allocation2 + $0x38] sm:$0xff] (!%p1372_p11)  ;;  %v1078_v1 = vadd.f32 (!%p1372_p11), %v1373_v51, %v1055_v59  ;;  %v1079_v2 = vadd.f32 (!%p1372_p11), %v1373_v51, %v1056_v61 }
 0x15a   : > { %v1091_v6 = vmax.f32 (!%p1372_p11), %v1075_v57, 0.0 }
 0x15b   : > { %v1024_v10 = vadd.f32 %v992_v7, %v366_v4  ;;  %v995_v11 = vadd.f32 %v1573_v8, %v1509_v5  ;;  %v1092_v7 = vmax.f32 (!%p1372_p11), %v1076_v58, 0.0  ;;  %v1093_v8 = vmax.f32 (!%p1372_p11), %v1077_v60, 0.0 }
 0x15c   : > { %v1510_v12 = vpop.f32.mrb[24].mxu0  ;;  %v1058_v3 = vld [vmem:[#allocation2 + $0x40] sm:$0xff] (!%p1372_p11) }
 0x15d   : > { %1040 = vst [vmem:[#allocation2 + $0x50] sm:$0xff] %v1024_v10  ;;  %v1025_v13 = vadd.f32 %v995_v11, %v367_v9  ;;  %v1574_v14 = vpop.f32.mrb[24].mxu1  ;;  %v1511_v15 = vpop.f32.mrb[25].mxu0  ;;  %v1080_v9 = vadd.f32 (!%p1372_p11), %v1373_v51, %v1057_v62 }
 0x15e   : > { %v1512_v16 = vadd.f32 %v1511_v15, %v1510_v12  ;;  %v1575_v17 = vpop.f32.mrb[25].mxu1  ;;  %v1513_v18 = vpop.f32.mrb[26].mxu0  ;;  %v1059_v4 = vld [vmem:[#allocation2 + $0x48] sm:$0xff] (!%p1372_p11)  ;;  %v1414_v12 = vpack.c.bf16 (!%p1372_p11), %v1090_v0, %v1089_v63  ;;  %v1081_v15 = vadd.f32 (!%p1372_p11), %v1373_v51, %v1058_v3 }
 0x15f   : > { %1041 = vst [vmem:[#allocation2 + $0x58] sm:$0xff] %v1025_v13  ;;  %v1576_v19 = vadd.f32 %v1575_v17, %v1574_v14  ;;  %v1577_v20 = vpop.f32.mrb[26].mxu1  ;;  %v1514_v21 = vpop.f32.mrb[27].mxu0  ;;  %v1094_v13 = vmax.f32 (!%p1372_p11), %v1078_v1, 0.0  ;;  %v1095_v14 = vmax.f32 (!%p1372_p11), %v1079_v2, 0.0  ;;  %v1419_v17 = vpack.c.bf16 (!%p1372_p11), %v1092_v7, %v1091_v6 }
 0x160   : > { %v1515_v23 = vadd.f32 %v1514_v21, %v1513_v18  ;;  %v1578_v24 = vpop.f32.mrb[27].mxu1  ;;  %v1096_v18 = vmax.f32 (!%p1372_p11), %v1080_v9, 0.0  ;;  %1415 = vst [vmem:[%s2001_s3] sm:$0xff] (!%p1372_p11), %v1414_v12  }
 0x161   : > { %v1000_v25 = vadd.f32 %v1576_v19, %v1512_v16  ;;  %v1579_v26 = vadd.f32 %v1578_v24, %v1577_v20  ;;  %v1082_v19 = vadd.f32 (!%p1372_p11), %v1373_v51, %v1059_v4  ;;  %v1097_v24 = vmax.f32 (!%p1372_p11), %v1081_v15, 0.0  ;;  %1451 = vst [vmem:[%s2001_s3 + $0x8] sm:$0xff] (!%p1372_p11), %v1419_v17  }
 0x163   : > { %v1026_v28 = vadd.f32 %v1000_v25, %v368_v22  ;;  %v1003_v29 = vadd.f32 %v1579_v26, %v1515_v23  ;;  %v1424_v23 = vpack.c.bf16 (!%p1372_p11), %v1094_v13, %v1093_v8 }
 0x164   : > { %v1516_v30 = vpop.f32.mrb[28].mxu0  ;;  %v1060_v5 = vld [vmem:[#allocation2 + $0x50] sm:$0xff] (!%p1372_p11) }
 0x165   : > { %1042 = vst [vmem:[#allocation2 + $0x60] sm:$0xff] %v1026_v28  ;;  %v1027_v31 = vadd.f32 %v1003_v29, %v369_v27  ;;  %v1580_v32 = vpop.f32.mrb[28].mxu1  ;;  %v1517_v33 = vpop.f32.mrb[29].mxu0  ;;  %v1083_v20 = vadd.f32 (!%p1372_p11), %v1373_v51, %v1060_v5  ;;  %v1429_v27 = vpack.c.bf16 (!%p1372_p11), %v1096_v18, %v1095_v14  ;;  %v1098_v28 = vmax.f32 (!%p1372_p11), %v1082_v19, 0.0  ;;  %1452 = vst [vmem:[%s2001_s3 + $0x10] sm:$0xff] (!%p1372_p11), %v1424_v23  }
 0x166   : > { %v1518_v34 = vadd.f32 %v1517_v33, %v1516_v30  ;;  %v1581_v35 = vpop.f32.mrb[29].mxu1  ;;  %v1519_v36 = vpop.f32.mrb[30].mxu0  ;;  %v1061_v10 = vld [vmem:[#allocation2 + $0x58] sm:$0xff] (!%p1372_p11) }
 0x167   : > { %1043 = vst [vmem:[#allocation2 + $0x68] sm:$0xff] %v1027_v31  ;;  %v1582_v37 = vadd.f32 %v1581_v35, %v1580_v32  ;;  %v1583_v38 = vpop.f32.mrb[30].mxu1  ;;  %v1520_v39 = vpop.f32.mrb[31].mxu0  ;;  %v1084_v25 = vadd.f32 (!%p1372_p11), %v1373_v51, %v1061_v10  ;;  %v1099_v29 = vmax.f32 (!%p1372_p11), %v1083_v20, 0.0  ;;  %1453 = vst [vmem:[%s2001_s3 + $0x18] sm:$0xff] (!%p1372_p11), %v1429_v27   ;;  %v1434_v35 = vpack.c.bf16 (!%p1372_p11), %v1098_v28, %v1097_v24 }
 0x168   : > { %v1521_v41 = vadd.f32 %v1520_v39, %v1519_v36  ;;  %v1584_v42 = vpop.f32.mrb[31].mxu1 }
 0x169   : > { %v1008_v43 = vadd.f32 %v1582_v37, %v1518_v34  ;;  %v1585_v44 = vadd.f32 %v1584_v42, %v1583_v38  ;;  %1049 = sbr.rel (%p1372_p11) target bundleno = 382 (0x17e), region = 63  ;;  %v1100_v31 = vmax.f32 (!%p1372_p11), %v1084_v25, 0.0  ;;  %1454 = vst [vmem:[%s2001_s3 + $0x20] sm:$0xff] (!%p1372_p11), %v1434_v35  }
 0x16b   : > { %v1028_v46 = vadd.f32 %v1008_v43, %v370_v40  ;;  %v1011_v47 = vadd.f32 %v1585_v44, %v1521_v41  ;;  %v1439_v37 = vpack.c.bf16 (!%p1372_p11), %v1100_v31, %v1099_v29 }
 0x16c   : > { %v1062_v11 = vld [vmem:[#allocation2 + $0x60] sm:$0xff] (!%p1372_p11) }
 0x16d   : > { %1044 = vst [vmem:[#allocation2 + $0x70] sm:$0xff] %v1028_v46  ;;  %v1029_v48 = vadd.f32 %v1011_v47, %v371_v45  ;;  %v1085_v26 = vadd.f32 (!%p1372_p11), %v1373_v51, %v1062_v11  ;;  %1455 = vst [vmem:[%s2001_s3 + $0x28] sm:$0xff] (!%p1372_p11), %v1439_v37  }
 0x16e   : > { %v1063_v16 = vld [vmem:[#allocation2 + $0x68] sm:$0xff] (!%p1372_p11) }
 0x16f   : > { %1045 = vst [vmem:[#allocation2 + $0x78] sm:$0xff] %v1029_v48  ;;  %v1086_v30 = vadd.f32 (!%p1372_p11), %v1373_v51, %v1063_v16  ;;  %v1101_v32 = vmax.f32 (!%p1372_p11), %v1085_v26, 0.0 }
 0x171   : > { %v1102_v36 = vmax.f32 %v1086_v30, 0.0 }
 0x173   : > { %v1444_v40 = vpack.c.bf16 %v1102_v36, %v1101_v32 }
 0x174   : > { %v1064_v21 = vld [vmem:[#allocation2 + $0x70] sm:$0xff] }
 0x175   : > { %v1087_v33 = vadd.f32 %v1373_v51, %v1064_v21  ;;  %1456 = vst [vmem:[%s2001_s3 + $0x30] sm:$0xff] %v1444_v40  }
 0x176   : > { %v1065_v22 = vld [vmem:[#allocation2 + $0x78] sm:$0xff] }
 0x177   : > { %v1088_v34 = vadd.f32 %v1373_v51, %v1065_v22  ;;  %v1103_v38 = vmax.f32 %v1087_v33, 0.0 }
 0x179   : > { %v1104_v39 = vmax.f32 %v1088_v34, 0.0 }
 0x17b   : > { %v1449_v41 = vpack.c.bf16 %v1104_v39, %v1103_v38 }
 0x17d   : > { %1457 = vst [vmem:[%s2001_s3 + $0x38] sm:$0xff] %v1449_v41  }
 0x17e PF: > { %s13_s16 = sadd.s32 1, %s1745_s16   ;;  %s2002_s12 = smov %s1733_s13 }
 0x17f   : > { %p10_p12 = scmp.ge.s32.totalorder %s13_s16, 4   ;;  %s2003_s13 = smov %s1803_s20 }
 0x180   : > { %s2004_s14 = smov %s1741_s15  ;;  %s2005_s15 = smov %s2007_s17 }
 0x181   :  { %12 = sbr.rel (!%p10_p12) target bundleno = 3 (0x3), region = 104 }

// kernel: classifier_forward.26
= control target key start
LH: loop header
LB: loop body
LE: loop exit
PB: predicated region body
PF: predicated region fallthrough
CT: control target
= control target key end

     0   :  { %s1144_s12 = smov 0   ;;  %s1146_s13 = smov 0   ;;  %s1264_s0 = inlined_call_operand.vmem [shape: bf16[32,1024], index: 0, kind: input, shape index: {}]   ;;  %s1265_s1 = inlined_call_operand.vmem [shape: bf16[1024,128], index: 1, kind: input, shape index: {}]   ;;  %s1266_s2 = inlined_call_operand.vmem [shape: f32[1,128], index: 2, kind: input, shape index: {}]   ;;  %s1267_s3 = inlined_call_operand.vmem [shape: bf16[32,128], index: 3, kind: output, shape index: {}]  }
   0x1   :  { %s1148_s14 = smov 0   ;;  %s1150_s15 = smov 0  }
   0x2   :  { %s1152_s16 = smov 0  }
   0x3 LB: > { %s25_s17 = sadd.s32 1, %s1117_s15  ;;  %p48_p1 = scmp.ne.s32.totalorder %s1109_s13, %s1105_s12  ;;  %s1121_s16 = sphi %s1152_s16, %s13_s16   ;;  %s1117_s15 = sphi %s1150_s15, %s1271_s15   ;;  %s1113_s14 = sphi %s1148_s14, %s1270_s14   ;;  %s1109_s13 = sphi %s1146_s13, %s1269_s13   ;;  %s1105_s12 = sphi %s1144_s12, %s1268_s12  }
   0x4   : > { %p26_p0 = scmp.ge.s32.totalorder %s25_s17, 2  ;;  %p49_p2 = scmp.eq.s32.totalorder %s1121_s16, 0 }
   0x5   : > { %s41_s19 = sadd.s32 1, %s1109_s13  ;;  %p867_p5 = scmp.ge.s32.totalorder %s1121_s16, 2 }
   0x6   : > { %s1273_s17 = smov (%p26_p0, %s25_s17), 0  ;;  %p50_p3 = por %p49_p2, %p48_p1 }
   0x7   : > { %s37_s18 = ssub.s32 %s1117_s15, %s1273_s17  ;;  %162 = sbr.rel (%p867_p5) target bundleno = 22 (0x16), region = 20 }
   0x8   : > { %p39_p4 = scmp.eq.s32.totalorder %s37_s18, 0 }
   0xa   : > { %s1179_s20 = scalar_select %p39_p4, %s1109_s13, %s41_s19  }
   0xe   : > { %165 = sbr.rel (!%p50_p3) target bundleno = 22 (0x16), region = 24  ;;  %s167_s21 = sand.u32 (%p50_p3), 1, %s1109_s13  }
   0xf   : > { %s926_s22 = sshll.u32 (%p50_p3), %s1117_s15, 4  ;;  %s868_s23 = sshll.u32 (%p50_p3), %s167_s21, 6 }
  0x10   : > { %s175_s26 = scalar_lea.vmem (%p50_p3), %s1264_s0, %s926_s22  ;;  %s169_s27 = scalar_lea.vmem (%p50_p3), [#allocation3], %s868_s23 }
  0x11   : > { %v188_v0 = vld [vmem:[%s175_s26] sm:$0xff] (%p50_p3)  ;;  %v190_v1 = vld [vmem:[%s175_s26 + $0x8] sm:$0xff] (%p50_p3) }
  0x12   : > { %v192_v2 = vld [vmem:[%s175_s26 + $0x20] sm:$0xff] (%p50_p3)  ;;  %189 = vst [vmem:[%s169_s27] sm:$0xff] (%p50_p3), %v188_v0  ;;  %191 = vst [vmem:[%s169_s27 + $0x8] sm:$0xff] (%p50_p3), %v190_v1  ;;  %v194_v3 = vld [vmem:[%s175_s26 + $0x28] sm:$0xff] (%p50_p3) }
  0x13   : > { %193 = vst [vmem:[%s169_s27 + $0x10] sm:$0xff] (%p50_p3), %v192_v2  ;;  %v196_v4 = vld [vmem:[%s175_s26 + $0x40] sm:$0xff] (%p50_p3)  ;;  %v198_v5 = vld [vmem:[%s175_s26 + $0x48] sm:$0xff] (%p50_p3)  ;;  %195 = vst [vmem:[%s169_s27 + $0x18] sm:$0xff] (%p50_p3), %v194_v3 }
  0x14   : > { %197 = vst [vmem:[%s169_s27 + $0x20] sm:$0xff] (%p50_p3), %v196_v4  ;;  %199 = vst [vmem:[%s169_s27 + $0x28] sm:$0xff] (%p50_p3), %v198_v5  ;;  %v200_v6 = vld [vmem:[%s175_s26 + $0x60] sm:$0xff] (%p50_p3)  ;;  %v202_v7 = vld [vmem:[%s175_s26 + $0x68] sm:$0xff] (%p50_p3) }
  0x15   : > { %201 = vst [vmem:[%s169_s27 + $0x30] sm:$0xff] %v200_v6  ;;  %203 = vst [vmem:[%s169_s27 + $0x38] sm:$0xff] %v202_v7 }
  0x16 PF: > { %p871_p6 = scmp.ge.s32.totalorder %s1121_s16, 1  ;;  %p220_p7 = scmp.lt.s32.totalorder %s1121_s16, 3 }
  0x18   : > { %p221_p8 = pnand %p871_p6, %p220_p7 }
  0x19   : > { %s227_s28 = sand.u32 (!%p221_p8), 1, %s1105_s12   ;;  %s873_s29 = sshll.u32 (!%p221_p8), %s1113_s14, 6 }
  0x1a   : > { %224 = sbr.rel (%p221_p8) target bundleno = 319 (0x13f), region = 51  ;;  %s872_s30 = sshll.u32 (!%p221_p8), %s227_s28, 6 }
  0x1b   : > { %p267_p9 = scmp.lt.s32.totalorder (!%p221_p8), %s873_s29, 127  ;;  %s1196_s8 = scalar_lea.vmem (!%p221_p8), [#allocation3], %s872_s30 }
  0x1c   : > { %p875_p10 = scmp.ne.s32.totalorder (!%p221_p8), %s1113_s14, 0 }
  0x21   : > { %s1275_s29 = smov (!%p267_p9, %s873_s29), 127  ;;  %291 = sbr.rel (%p875_p10) target bundleno = 40 (0x28), region = 59 }
  0x22   : > { %s874_s4 = sshll.u32 %s1275_s29, 2  ;;  %v1123_v8 = vmov (!%p875_p10), 0.0  }
  0x23   : > { %s1194_s7 = scalar_lea.vmem %s1265_s1, %s874_s4  ;;  %292 = vst [vmem:[#allocation2] sm:$0xff] (!%p875_p10), %v1123_v8  ;;  %293 = vst [vmem:[#allocation2 + $0x8] sm:$0xff] (!%p875_p10), %v1123_v8 }
  0x24   : > { %294 = vst [vmem:[#allocation2 + $0x10] sm:$0xff] (!%p875_p10), %v1123_v8  ;;  %295 = vst [vmem:[#allocation2 + $0x18] sm:$0xff] (!%p875_p10), %v1123_v8 }
  0x28 PF: > { %v1039_v9 = vld [vmem:[%s1194_s7 + $0x40] sm:$0xff]   ;;  %v1043_v13 = vld [vmem:[%s1194_s7 + $0x48] sm:$0xff]   ;;  %v1047_v17 = vld [vmem:[%s1194_s7 + $0x50] sm:$0xff]   ;;  %p916_p11 = scmp.ne.s32.totalorder %s1113_s14, 1 }
  0x29   : > { %v1040_v10 = vld [vmem:[%s1194_s7 + $0xc0] sm:$0xff]   ;;  %942 = vmatprep.subr.bf16.mxu0 %v1039_v9  ;;  %v1044_v14 = vld [vmem:[%s1194_s7 + $0xc8] sm:$0xff]   ;;  %v1048_v18 = vld [vmem:[%s1194_s7 + $0xd0] sm:$0xff]  }
  0x2a   : > { %v1041_v11 = vld [vmem:[%s1194_s7] sm:$0xff]   ;;  %970 = vmatprep.subr.bf16.mxu1 %v1040_v10  ;;  %v1045_v15 = vld [vmem:[%s1194_s7 + $0x8] sm:$0xff]   ;;  %v1049_v19 = vld [vmem:[%s1194_s7 + $0x10] sm:$0xff]  }
  0x2b   : > { %v1042_v12 = vld [vmem:[%s1194_s7 + $0x80] sm:$0xff]   ;;  %943 = vmatpush3.bf16.msra.mxu0 %v1041_v11  ;;  %v1046_v16 = vld [vmem:[%s1194_s7 + $0x88] sm:$0xff]   ;;  %v1050_v20 = vld [vmem:[%s1194_s7 + $0x90] sm:$0xff]  }
  0x2c   : > { %971 = vmatpush3.bf16.msra.mxu1 %v1042_v12  ;;  %944 = vmatprep.subr.bf16.mxu0 %v1043_v13  ;;  %v1051_v21 = vld [vmem:[%s1194_s7 + $0x58] sm:$0xff]   ;;  %v1055_v25 = vld [vmem:[%s1194_s7 + $0x60] sm:$0xff]   ;;  %v1059_v29 = vld [vmem:[%s1194_s7 + $0x68] sm:$0xff]  }
  0x2d   : > { %972 = vmatprep.subr.bf16.mxu1 %v1044_v14  ;;  %v1052_v22 = vld [vmem:[%s1194_s7 + $0xd8] sm:$0xff]   ;;  %v1056_v26 = vld [vmem:[%s1194_s7 + $0xe0] sm:$0xff]   ;;  %v1060_v30 = vld [vmem:[%s1194_s7 + $0xe8] sm:$0xff]  }
  0x2e   : > { %v1053_v23 = vld [vmem:[%s1194_s7 + $0x18] sm:$0xff]   ;;  %v1057_v27 = vld [vmem:[%s1194_s7 + $0x20] sm:$0xff]   ;;  %v1061_v31 = vld [vmem:[%s1194_s7 + $0x28] sm:$0xff]  }
  0x2f   : > { %945 = vmatpush3.bf16.msra.mxu0 %v1045_v15  ;;  %v1054_v24 = vld [vmem:[%s1194_s7 + $0x98] sm:$0xff]   ;;  %v1058_v28 = vld [vmem:[%s1194_s7 + $0xa0] sm:$0xff]   ;;  %v1062_v32 = vld [vmem:[%s1194_s7 + $0xa8] sm:$0xff]  }
  0x30   : > { %973 = vmatpush3.bf16.msra.mxu1 %v1046_v16  ;;  %946 = vmatprep.subr.bf16.mxu0 %v1047_v17  ;;  %v1063_v33 = vld [vmem:[%s1194_s7 + $0x70] sm:$0xff]   ;;  %v1067_v37 = vld [vmem:[%s1194_s7 + $0x78] sm:$0xff]   ;;  %v296_v58 = vld [vmem:[#allocation2] sm:$0xff] }
  0x31   : > { %974 = vmatprep.subr.bf16.mxu1 %v1048_v18  ;;  %v1064_v34 = vld [vmem:[%s1194_s7 + $0xf0] sm:$0xff]   ;;  %v1068_v38 = vld [vmem:[%s1194_s7 + $0xf8] sm:$0xff]   ;;  %v297_v63 = vld [vmem:[#allocation2 + $0x8] sm:$0xff] }
  0x32   : > { %v1065_v35 = vld [vmem:[%s1194_s7 + $0x30] sm:$0xff]   ;;  %v1069_v39 = vld [vmem:[%s1194_s7 + $0x38] sm:$0xff]  }
  0x33   : > { %947 = vmatpush3.bf16.msra.mxu0 %v1049_v19  ;;  %v1066_v36 = vld [vmem:[%s1194_s7 + $0xb0] sm:$0xff]   ;;  %v1070_v40 = vld [vmem:[%s1194_s7 + $0xb8] sm:$0xff]  }
  0x34   : > { %975 = vmatpush3.bf16.msra.mxu1 %v1050_v20  ;;  %948 = vmatprep.subr.bf16.mxu0 %v1051_v21  ;;  %v1071_v41 = vld [vmem:[%s1196_s8] ss:$16 sps:$4 sm:$0xff]   ;;  %v1073_v42 = vld [vmem:[%s1196_s8 + $0x4] ss:$16 sps:$4 sm:$0xff]   ;;  %v1074_v43 = vld [vmem:[%s1196_s8 + $0x8] ss:$16 sps:$4 sm:$0xff]  }
  0x35   : > { %976 = vmatprep.subr.bf16.mxu1 %v1052_v22  ;;  %v1076_v44 = vld [vmem:[%s1196_s8 + $0xc] ss:$16 sps:$4 sm:$0xff]   ;;  %636 = vmatprep.mubr.bf16.mxu0 %v1073_v42  ;;  %v1077_v45 = vld [vmem:[%s1196_s8 + $0x24] ss:$16 sps:$4 sm:$0xff]   ;;  %v1081_v47 = vld [vmem:[%s1196_s8 + $0x20] ss:$16 sps:$4 sm:$0xff]  }
  0x36   : > { %685 = vmatprep.mubr.bf16.mxu1 %v1076_v44  ;;  %v1079_v46 = vld [vmem:[%s1196_s8 + $0x2c] ss:$16 sps:$4 sm:$0xff]   ;;  %v1082_v48 = vld [vmem:[%s1196_s8 + $0x28] ss:$16 sps:$4 sm:$0xff]   ;;  %v298_v12 = vld [vmem:[#allocation2 + $0x10] sm:$0xff] }
  0x37   : > { %949 = vmatpush3.bf16.msra.mxu0 %v1053_v23  ;;  %v299_v17 = vld [vmem:[#allocation2 + $0x18] sm:$0xff]  ;;  %v917_v23 = vld [vmem:[%s1266_s2] ss:$0 sm:$0xff] (!%p916_p11) }
  0x38   : > { %977 = vmatpush3.bf16.msra.mxu1 %v1054_v24  ;;  %950 = vmatprep.subr.bf16.mxu0 %v1055_v25 }
  0x39   : > { %978 = vmatprep.subr.bf16.mxu1 %v1056_v26 }
  0x3b   : > { %951 = vmatpush3.bf16.msra.mxu0 %v1057_v27 }
  0x3c   : > { %979 = vmatpush3.bf16.msra.mxu1 %v1058_v28  ;;  %952 = vmatprep.subr.bf16.mxu0 %v1059_v29 }
  0x3d   : > { %980 = vmatprep.subr.bf16.mxu1 %v1060_v30 }
  0x3f   : > { %953 = vmatpush3.bf16.msra.mxu0 %v1061_v31 }
  0x40   : > { %981 = vmatpush3.bf16.msra.mxu1 %v1062_v32  ;;  %954 = vmatprep.subr.bf16.mxu0 %v1063_v33 }
  0x41   : > { %982 = vmatprep.subr.bf16.mxu1 %v1064_v34 }
  0x43   : > { %955 = vmatpush3.bf16.msra.mxu0 %v1065_v35 }
  0x44   : > { %983 = vmatpush3.bf16.msra.mxu1 %v1066_v36  ;;  %956 = vmatprep.subr.bf16.mxu0 %v1067_v37 }
  0x45   : > { %984 = vmatprep.subr.bf16.mxu1 %v1068_v38 }
  0x47   : > { %957 = vmatpush3.bf16.msra.mxu0 %v1069_v39 }
  0x48   : > { %985 = vmatpush3.bf16.msra.mxu1 %v1070_v40 }
  0x4a   : > { %637 = vmatmul.mubr.bf16.vlgmr.msra.gmra.mrb[0].mxu0 %v1071_v41 }
  0x4b   : > { %686 = vmatmul.mubr.bf16.vlgmr.msra.gmra.mrb[0].mxu1 %v1074_v43  ;;  %644 = vmatprep.mubr.bf16.mxu0 %v1077_v45 }
  0x4c   : > { %693 = vmatprep.mubr.bf16.mxu1 %v1079_v46 }
  0x52   : > { %645 = vmatmul.mubr.bf16.gmra.mrb[4].mxu0 %v1081_v47 }
  0x53   : > { %694 = vmatmul.mubr.bf16.gmra.mrb[4].mxu1 %v1082_v48 }
 0x11d   : > { %v958_v49 = vpop.f32.mrb[0].mxu0 }
 0x11e   : > { %v986_v50 = vpop.f32.mrb[0].mxu1  ;;  %v959_v51 = vpop.f32.mrb[1].mxu0 }
 0x11f   : > { %v960_v52 = vadd.f32 %v959_v51, %v958_v49  ;;  %v987_v53 = vpop.f32.mrb[1].mxu1  ;;  %v961_v54 = vpop.f32.mrb[2].mxu0 }
 0x120   : > { %v988_v55 = vadd.f32 %v987_v53, %v986_v50  ;;  %v989_v56 = vpop.f32.mrb[2].mxu1  ;;  %v962_v57 = vpop.f32.mrb[3].mxu0 }
 0x121   : > { %v963_v59 = vadd.f32 %v962_v57, %v961_v54  ;;  %v990_v60 = vpop.f32.mrb[3].mxu1 }
 0x122   : > { %v688_v61 = vadd.f32 %v988_v55, %v960_v52  ;;  %v991_v62 = vadd.f32 %v990_v60, %v989_v56 }
 0x124   : > { %v702_v0 = vadd.f32 %v688_v61, %v296_v58  ;;  %v691_v1 = vadd.f32 %v991_v62, %v963_v59 }
 0x125   : > { %v964_v2 = vpop.f32.mrb[4].mxu0 }
 0x126   : > { %706 = vst [vmem:[#allocation2] sm:$0xff] %v702_v0  ;;  %v703_v3 = vadd.f32 %v691_v1, %v297_v63  ;;  %v992_v4 = vpop.f32.mrb[4].mxu1  ;;  %v965_v5 = vpop.f32.mrb[5].mxu0 }
 0x127   : > { %v966_v6 = vadd.f32 %v965_v5, %v964_v2  ;;  %v993_v7 = vpop.f32.mrb[5].mxu1  ;;  %v967_v8 = vpop.f32.mrb[6].mxu0 }
 0x128   : > { %707 = vst [vmem:[#allocation2 + $0x8] sm:$0xff] %v703_v3  ;;  %v994_v9 = vadd.f32 %v993_v7, %v992_v4  ;;  %v995_v10 = vpop.f32.mrb[6].mxu1  ;;  %v968_v11 = vpop.f32.mrb[7].mxu0 }
 0x129   : > { %v969_v13 = vadd.f32 %v968_v11, %v967_v8  ;;  %v996_v14 = vpop.f32.mrb[7].mxu1 }
 0x12a   : > { %v696_v15 = vadd.f32 %v994_v9, %v966_v6  ;;  %v997_v16 = vadd.f32 %v996_v14, %v995_v10  ;;  %713 = sbr.rel (%p916_p11) target bundleno = 319 (0x13f), region = 63 }
 0x12c   : > { %v704_v18 = vadd.f32 %v696_v15, %v298_v12  ;;  %v699_v19 = vadd.f32 %v997_v16, %v969_v13 }
 0x12d   : > { %v714_v21 = vld [vmem:[#allocation2] sm:$0xff] (!%p916_p11) }
 0x12e   : > { %708 = vst [vmem:[#allocation2 + $0x10] sm:$0xff] %v704_v18  ;;  %v705_v20 = vadd.f32 %v699_v19, %v299_v17  ;;  %v725_v24 = vadd.f32 (!%p916_p11), %v917_v23, %v714_v21 }
 0x12f   : > { %v715_v22 = vld [vmem:[#allocation2 + $0x8] sm:$0xff] (!%p916_p11) }
 0x130   : > { %709 = vst [vmem:[#allocation2 + $0x18] sm:$0xff] %v705_v20  ;;  %v726_v25 = vadd.f32 (!%p916_p11), %v917_v23, %v715_v22  ;;  %v729_v30 = vmax.f32 (!%p916_p11), %v725_v24, 0.0 }
 0x132   : > { %v730_v31 = vmax.f32 %v726_v25, 0.0 }
 0x134   : > { %v934_v34 = vpack.c.bf16 %v730_v31, %v729_v30 }
 0x135   : > { %v716_v26 = vld [vmem:[#allocation2 + $0x10] sm:$0xff] }
 0x136   : > { %v727_v28 = vadd.f32 %v917_v23, %v716_v26  ;;  %935 = vst [vmem:[%s1267_s3] sm:$0xff] %v934_v34  }
 0x137   : > { %v717_v27 = vld [vmem:[#allocation2 + $0x18] sm:$0xff] }
 0x138   : > { %v728_v29 = vadd.f32 %v917_v23, %v717_v27  ;;  %v731_v32 = vmax.f32 %v727_v28, 0.0 }
 0x13a   : > { %v732_v33 = vmax.f32 %v728_v29, 0.0 }
 0x13c   : > { %v939_v35 = vpack.c.bf16 %v732_v33, %v731_v32 }
 0x13e   : > { %941 = vst [vmem:[%s1267_s3 + $0x8] sm:$0xff] %v939_v35  }
 0x13f PF: > { %s13_s16 = sadd.s32 1, %s1121_s16   ;;  %s1268_s12 = smov %s1109_s13 }
 0x140   : > { %p10_p12 = scmp.ge.s32.totalorder %s13_s16, 4   ;;  %s1269_s13 = smov %s1179_s20 }
 0x141   : > { %s1270_s14 = smov %s1117_s15  ;;  %s1271_s15 = smov %s1273_s17 }
 0x142   :  { %12 = sbr.rel (!%p10_p12) target bundleno = 3 (0x3), region = 104 }

// kernel: classifier_forward.27
= control target key start
LH: loop header
LB: loop body
LE: loop exit
PB: predicated region body
PF: predicated region fallthrough
CT: control target
= control target key end

     0   :  { %s335_s1 = inlined_call_operand.vmem [shape: bf16[128,128], index: 1, kind: input, shape index: {}]   ;;  %s336_s0 = inlined_call_operand.vmem [shape: bf16[32,128], index: 0, kind: input, shape index: {}]   ;;  %s337_s2 = inlined_call_operand.vmem [shape: f32[1,128], index: 2, kind: input, shape index: {}]   ;;  %s338_s3 = inlined_call_operand.vmem [shape: bf16[32,128], index: 3, kind: output, shape index: {}]  }
   0x1   :  { %v266_v0 = vld [vmem:[%s335_s1] sm:$0xff]   ;;  %v267_v1 = vld [vmem:[%s335_s1 + $0x8] sm:$0xff]   ;;  %v268_v2 = vld [vmem:[%s335_s1 + $0x10] sm:$0xff]  }
   0x2   :  { %246 = vmatprep.subr.bf16.mxu0 %v266_v0  ;;  %v269_v3 = vld [vmem:[%s335_s1 + $0x18] sm:$0xff]   ;;  %v274_v4 = vld [vmem:[%s336_s0] sm:$0xff]   ;;  %v271_v6 = vld [vmem:[%s335_s1 + $0x28] sm:$0xff]  }
   0x3   :  { %247 = vmatpush3.bf16.msra.mxu0 %v266_v0  ;;  %262 = vmatprep.mubr.bf16.mxu0 %v274_v4  ;;  %v270_v5 = vld [vmem:[%s335_s1 + $0x20] sm:$0xff]   ;;  %v272_v7 = vld [vmem:[%s335_s1 + $0x30] sm:$0xff]   ;;  %v273_v8 = vld [vmem:[%s335_s1 + $0x38] sm:$0xff]  }
   0x4   :  { %248 = vmatprep.subr.bf16.mxu0 %v267_v1  ;;  %v275_v9 = vld [vmem:[%s336_s0 + $0x8] sm:$0xff]   ;;  %v216_v11 = vld [vmem:[%s337_s2] ss:$0 sm:$0xff] }
   0x7   :  { %249 = vmatpush3.bf16.msra.mxu0 %v267_v1 }
   0x8   :  { %250 = vmatprep.subr.bf16.mxu0 %v268_v2 }
   0xb   :  { %251 = vmatpush3.bf16.msra.mxu0 %v268_v2 }
   0xc   :  { %252 = vmatprep.subr.bf16.mxu0 %v269_v3 }
   0xf   :  { %253 = vmatpush3.bf16.msra.mxu0 %v269_v3 }
  0x10   :  { %254 = vmatprep.subr.bf16.mxu0 %v270_v5 }
  0x13   :  { %255 = vmatpush3.bf16.msra.mxu0 %v270_v5 }
  0x14   :  { %256 = vmatprep.subr.bf16.mxu0 %v271_v6 }
  0x17   :  { %257 = vmatpush3.bf16.msra.mxu0 %v271_v6 }
  0x18   :  { %258 = vmatprep.subr.bf16.mxu0 %v272_v7 }
  0x1b   :  { %259 = vmatpush3.bf16.msra.mxu0 %v272_v7 }
  0x1c   :  { %260 = vmatprep.subr.bf16.mxu0 %v273_v8 }
  0x1f   :  { %261 = vmatpush3.bf16.msra.mxu0 %v273_v8 }
  0x22   :  { %263 = vmatmul.mubr.bf16.vlgmr.msra.gmra.mrb[0].mxu0 %v275_v9 }
  0xf5   :  { %v264_v10 = vpop.f32.mrb[0].mxu0 }
  0xf6   :  { %v141_v12 = vpop.f32.mrb[1].mxu0  ;;  %v180_v14 = vadd.f32 %v264_v10, %v216_v11 }
  0xf7   :  { %v265_v13 = vpop.f32.mrb[2].mxu0  ;;  %v178_v17 = vadd.f32 %v216_v11, %v141_v12 }
  0xf8   :  { %v181_v15 = vadd.f32 %v265_v13, %v216_v11  ;;  %v144_v16 = vpop.f32.mrb[3].mxu0 }
  0xf9   :  { %v179_v18 = vadd.f32 %v216_v11, %v144_v16 }
  0xfa   :  { %v233_v19 = vpack.c.bf16 %v181_v15, %v180_v14 }
  0xfb   :  { %v228_v20 = vpack.c.bf16 %v179_v18, %v178_v17 }
  0xfc   :  { %235 = vst [vmem:[%s338_s3 + $0x8] sm:$0xff] %v233_v19  }
  0xfd   :  { %229 = vst [vmem:[%s338_s3] sm:$0xff] %v228_v20  }

// kernel: classifier_forward.28
= control target key start
LH: loop header
LB: loop body
LE: loop exit
PB: predicated region body
PF: predicated region fallthrough
CT: control target
= control target key end

     0   :  { %s1249_s15 = smov 0   ;;  %s1251_s16 = smov 0   ;;  %s1375_s0 = inlined_call_operand.vmem [shape: bf16[32,1536], index: 0, kind: input, shape index: {}]   ;;  %s1376_s1 = inlined_call_operand.vmem [shape: bf16[1536,128], index: 1, kind: input, shape index: {}]   ;;  %s1377_s2 = inlined_call_operand.vmem [shape: f32[1,128], index: 2, kind: input, shape index: {}]   ;;  %s1378_s3 = inlined_call_operand.vmem [shape: bf16[32,128], index: 3, kind: input, shape index: {}]   ;;  %s1379_s4 = inlined_call_operand.vmem [shape: bf16[32,128], index: 4, kind: output, shape index: {}]  }
   0x1   :  { %s1253_s17 = smov 0   ;;  %s1255_s18 = smov 0  }
   0x2   :  { %s1257_s19 = smov 0  }
   0x3 LB: > { %s26_s20 = sadd.s32 1, %s1217_s18  ;;  %p49_p1 = scmp.ne.s32.totalorder %s1209_s16, %s1205_s15  ;;  %s1221_s19 = sphi %s1257_s19, %s14_s19   ;;  %s1217_s18 = sphi %s1255_s18, %s1383_s18   ;;  %s1213_s17 = sphi %s1253_s17, %s1382_s17   ;;  %s1209_s16 = sphi %s1251_s16, %s1381_s16   ;;  %s1205_s15 = sphi %s1249_s15, %s1380_s15  }
   0x4   : > { %p27_p0 = scmp.ge.s32.totalorder %s26_s20, 3  ;;  %p50_p2 = scmp.eq.s32.totalorder %s1221_s19, 0 }
   0x5   : > { %s42_s22 = sadd.s32 1, %s1209_s16  ;;  %p958_p5 = scmp.ge.s32.totalorder %s1221_s19, 3 }
   0x6   : > { %s1385_s20 = smov (%p27_p0, %s26_s20), 0  ;;  %p51_p3 = por %p50_p2, %p49_p1 }
   0x7   : > { %s38_s21 = ssub.s32 %s1217_s18, %s1385_s20  ;;  %203 = sbr.rel (%p958_p5) target bundleno = 22 (0x16), region = 24 }
   0x8   : > { %p40_p4 = scmp.eq.s32.totalorder %s38_s21, 0 }
   0xa   : > { %s1284_s23 = scalar_select %p40_p4, %s1209_s16, %s42_s22  }
   0xe   : > { %206 = sbr.rel (!%p51_p3) target bundleno = 22 (0x16), region = 28  ;;  %s208_s24 = sand.u32 (%p51_p3), 1, %s1209_s16  }
   0xf   : > { %s1017_s25 = sshll.u32 (%p51_p3), %s1217_s18, 4  ;;  %s959_s26 = sshll.u32 (%p51_p3), %s208_s24, 6 }
  0x10   : > { %s216_s29 = scalar_lea.vmem (%p51_p3), %s1375_s0, %s1017_s25  ;;  %s210_s30 = scalar_lea.vmem (%p51_p3), [#allocation3], %s959_s26 }
  0x11   : > { %v229_v0 = vld [vmem:[%s216_s29] sm:$0xff] (%p51_p3)  ;;  %v231_v1 = vld [vmem:[%s216_s29 + $0x8] sm:$0xff] (%p51_p3)  ;;  %v233_v2 = vld [vmem:[%s216_s29 + $0x30] sm:$0xff] (%p51_p3) }
  0x12   : > { %230 = vst [vmem:[%s210_s30] sm:$0xff] (%p51_p3), %v229_v0  ;;  %232 = vst [vmem:[%s210_s30 + $0x8] sm:$0xff] (%p51_p3), %v231_v1  ;;  %v235_v3 = vld [vmem:[%s216_s29 + $0x38] sm:$0xff] (%p51_p3)  ;;  %v237_v4 = vld [vmem:[%s216_s29 + $0x60] sm:$0xff] (%p51_p3) }
  0x13   : > { %234 = vst [vmem:[%s210_s30 + $0x10] sm:$0xff] (%p51_p3), %v233_v2  ;;  %v239_v5 = vld [vmem:[%s216_s29 + $0x68] sm:$0xff] (%p51_p3)  ;;  %236 = vst [vmem:[%s210_s30 + $0x18] sm:$0xff] (%p51_p3), %v235_v3  ;;  %v241_v6 = vld [vmem:[%s216_s29 + $0x90] sm:$0xff] (%p51_p3) }
  0x14   : > { %238 = vst [vmem:[%s210_s30 + $0x20] sm:$0xff] (%p51_p3), %v237_v4  ;;  %240 = vst [vmem:[%s210_s30 + $0x28] sm:$0xff] (%p51_p3), %v239_v5  ;;  %v243_v7 = vld [vmem:[%s216_s29 + $0x98] sm:$0xff] (%p51_p3) }
  0x15   : > { %242 = vst [vmem:[%s210_s30 + $0x30] sm:$0xff] %v241_v6  ;;  %244 = vst [vmem:[%s210_s30 + $0x38] sm:$0xff] %v243_v7 }
  0x16 PF: > { %p962_p6 = scmp.ge.s32.totalorder %s1221_s19, 1  ;;  %p261_p7 = scmp.lt.s32.totalorder %s1221_s19, 4 }
  0x18   : > { %p262_p8 = pnand %p962_p6, %p261_p7 }
  0x19   : > { %s268_s5 = sand.u32 (!%p262_p8), 1, %s1205_s15   ;;  %s964_s6 = sshll.u32 (!%p262_p8), %s1213_s17, 6 }
  0x1a   : > { %265 = sbr.rel (%p262_p8) target bundleno = 321 (0x141), region = 55  ;;  %s963_s7 = sshll.u32 (!%p262_p8), %s268_s5, 6 }
  0x1b   : > { %p318_p9 = scmp.lt.s32.totalorder (!%p262_p8), %s964_s6, 191  ;;  %s1301_s12 = scalar_lea.vmem (!%p262_p8), [#allocation3], %s963_s7 }
  0x1c   : > { %p966_p10 = scmp.ne.s32.totalorder (!%p262_p8), %s1213_s17, 0 }
  0x21   : > { %s1387_s6 = smov (!%p318_p9, %s964_s6), 191  ;;  %351 = sbr.rel (%p966_p10) target bundleno = 40 (0x28), region = 63 }
  0x22   : > { %s965_s8 = sshll.u32 %s1387_s6, 2  ;;  %v1223_v8 = vmov (!%p966_p10), 0.0  }
  0x23   : > { %s1299_s11 = scalar_lea.vmem %s1376_s1, %s965_s8  ;;  %352 = vst [vmem:[#allocation2] sm:$0xff] (!%p966_p10), %v1223_v8  ;;  %353 = vst [vmem:[#allocation2 + $0x8] sm:$0xff] (!%p966_p10), %v1223_v8 }
  0x24   : > { %354 = vst [vmem:[#allocation2 + $0x10] sm:$0xff] (!%p966_p10), %v1223_v8  ;;  %355 = vst [vmem:[#allocation2 + $0x18] sm:$0xff] (!%p966_p10), %v1223_v8 }
  0x28 PF: > { %v1139_v9 = vld [vmem:[%s1299_s11 + $0x40] sm:$0xff]   ;;  %v1143_v13 = vld [vmem:[%s1299_s11 + $0x48] sm:$0xff]   ;;  %v1147_v17 = vld [vmem:[%s1299_s11 + $0x50] sm:$0xff]   ;;  %p1007_p11 = scmp.ne.s32.totalorder %s1213_s17, 2 }
  0x29   : > { %v1140_v10 = vld [vmem:[%s1299_s11 + $0xc0] sm:$0xff]   ;;  %1042 = vmatprep.subr.bf16.mxu0 %v1139_v9  ;;  %v1144_v14 = vld [vmem:[%s1299_s11 + $0xc8] sm:$0xff]   ;;  %v1148_v18 = vld [vmem:[%s1299_s11 + $0xd0] sm:$0xff]  }
  0x2a   : > { %v1141_v11 = vld [vmem:[%s1299_s11] sm:$0xff]   ;;  %1070 = vmatprep.subr.bf16.mxu1 %v1140_v10  ;;  %v1145_v15 = vld [vmem:[%s1299_s11 + $0x8] sm:$0xff]   ;;  %v1149_v19 = vld [vmem:[%s1299_s11 + $0x10] sm:$0xff]  }
  0x2b   : > { %v1142_v12 = vld [vmem:[%s1299_s11 + $0x80] sm:$0xff]   ;;  %1043 = vmatpush3.bf16.msra.mxu0 %v1141_v11  ;;  %v1146_v16 = vld [vmem:[%s1299_s11 + $0x88] sm:$0xff]   ;;  %v1150_v20 = vld [vmem:[%s1299_s11 + $0x90] sm:$0xff]  }
  0x2c   : > { %1071 = vmatpush3.bf16.msra.mxu1 %v1142_v12  ;;  %1044 = vmatprep.subr.bf16.mxu0 %v1143_v13  ;;  %v1151_v21 = vld [vmem:[%s1299_s11 + $0x58] sm:$0xff]   ;;  %v1155_v25 = vld [vmem:[%s1299_s11 + $0x60] sm:$0xff]   ;;  %v1159_v29 = vld [vmem:[%s1299_s11 + $0x68] sm:$0xff]  }
  0x2d   : > { %1072 = vmatprep.subr.bf16.mxu1 %v1144_v14  ;;  %v1152_v22 = vld [vmem:[%s1299_s11 + $0xd8] sm:$0xff]   ;;  %v1156_v26 = vld [vmem:[%s1299_s11 + $0xe0] sm:$0xff]   ;;  %v1160_v30 = vld [vmem:[%s1299_s11 + $0xe8] sm:$0xff]  }
  0x2e   : > { %v1153_v23 = vld [vmem:[%s1299_s11 + $0x18] sm:$0xff]   ;;  %v1157_v27 = vld [vmem:[%s1299_s11 + $0x20] sm:$0xff]   ;;  %v1161_v31 = vld [vmem:[%s1299_s11 + $0x28] sm:$0xff]  }
  0x2f   : > { %1045 = vmatpush3.bf16.msra.mxu0 %v1145_v15  ;;  %v1154_v24 = vld [vmem:[%s1299_s11 + $0x98] sm:$0xff]   ;;  %v1158_v28 = vld [vmem:[%s1299_s11 + $0xa0] sm:$0xff]   ;;  %v1162_v32 = vld [vmem:[%s1299_s11 + $0xa8] sm:$0xff]  }
  0x30   : > { %1073 = vmatpush3.bf16.msra.mxu1 %v1146_v16  ;;  %1046 = vmatprep.subr.bf16.mxu0 %v1147_v17  ;;  %v1163_v33 = vld [vmem:[%s1299_s11 + $0x70] sm:$0xff]   ;;  %v1167_v37 = vld [vmem:[%s1299_s11 + $0x78] sm:$0xff]   ;;  %v356_v58 = vld [vmem:[#allocation2] sm:$0xff] }
  0x31   : > { %1074 = vmatprep.subr.bf16.mxu1 %v1148_v18  ;;  %v1164_v34 = vld [vmem:[%s1299_s11 + $0xf0] sm:$0xff]   ;;  %v1168_v38 = vld [vmem:[%s1299_s11 + $0xf8] sm:$0xff]   ;;  %v357_v63 = vld [vmem:[#allocation2 + $0x8] sm:$0xff] }
  0x32   : > { %v1165_v35 = vld [vmem:[%s1299_s11 + $0x30] sm:$0xff]   ;;  %v1169_v39 = vld [vmem:[%s1299_s11 + $0x38] sm:$0xff]  }
  0x33   : > { %1047 = vmatpush3.bf16.msra.mxu0 %v1149_v19  ;;  %v1166_v36 = vld [vmem:[%s1299_s11 + $0xb0] sm:$0xff]   ;;  %v1170_v40 = vld [vmem:[%s1299_s11 + $0xb8] sm:$0xff]  }
  0x34   : > { %1075 = vmatpush3.bf16.msra.mxu1 %v1150_v20  ;;  %1048 = vmatprep.subr.bf16.mxu0 %v1151_v21  ;;  %v1171_v41 = vld [vmem:[%s1301_s12] ss:$16 sps:$4 sm:$0xff]   ;;  %v1173_v42 = vld [vmem:[%s1301_s12 + $0x4] ss:$16 sps:$4 sm:$0xff]   ;;  %v1174_v43 = vld [vmem:[%s1301_s12 + $0x8] ss:$16 sps:$4 sm:$0xff]  }
  0x35   : > { %1076 = vmatprep.subr.bf16.mxu1 %v1152_v22  ;;  %v1176_v44 = vld [vmem:[%s1301_s12 + $0xc] ss:$16 sps:$4 sm:$0xff]   ;;  %696 = vmatprep.mubr.bf16.mxu0 %v1173_v42  ;;  %v1177_v45 = vld [vmem:[%s1301_s12 + $0x24] ss:$16 sps:$4 sm:$0xff]   ;;  %v1181_v47 = vld [vmem:[%s1301_s12 + $0x20] ss:$16 sps:$4 sm:$0xff]  }
  0x36   : > { %745 = vmatprep.mubr.bf16.mxu1 %v1176_v44  ;;  %v1179_v46 = vld [vmem:[%s1301_s12 + $0x2c] ss:$16 sps:$4 sm:$0xff]   ;;  %v1182_v48 = vld [vmem:[%s1301_s12 + $0x28] ss:$16 sps:$4 sm:$0xff]   ;;  %v358_v12 = vld [vmem:[#allocation2 + $0x10] sm:$0xff] }
  0x37   : > { %1049 = vmatpush3.bf16.msra.mxu0 %v1153_v23  ;;  %v359_v17 = vld [vmem:[#allocation2 + $0x18] sm:$0xff]  ;;  %v1008_v23 = vld [vmem:[%s1377_s2] ss:$0 sm:$0xff] (!%p1007_p11) }
  0x38   : > { %1077 = vmatpush3.bf16.msra.mxu1 %v1154_v24  ;;  %1050 = vmatprep.subr.bf16.mxu0 %v1155_v25 }
  0x39   : > { %1078 = vmatprep.subr.bf16.mxu1 %v1156_v26  ;;  %v1023_v26 = vld [vmem:[%s1378_s3] sm:$0xff] (!%p1007_p11)  }
  0x3b   : > { %1051 = vmatpush3.bf16.msra.mxu0 %v1157_v27 }
  0x3c   : > { %1079 = vmatpush3.bf16.msra.mxu1 %v1158_v28  ;;  %1052 = vmatprep.subr.bf16.mxu0 %v1159_v29  ;;  %v1024_v29 = vunpack.c.l.bf16 (!%p1007_p11), %v1023_v26 }
  0x3d   : > { %1080 = vmatprep.subr.bf16.mxu1 %v1160_v30  ;;  %v1025_v30 = vunpack.c.h.bf16 (!%p1007_p11), %v1023_v26 }
  0x3f   : > { %1053 = vmatpush3.bf16.msra.mxu0 %v1161_v31 }
  0x40   : > { %1081 = vmatpush3.bf16.msra.mxu1 %v1162_v32  ;;  %1054 = vmatprep.subr.bf16.mxu0 %v1163_v33  ;;  %v1040_v33 = vld [vmem:[%s1378_s3 + $0x8] sm:$0xff] (!%p1007_p11)  }
  0x41   : > { %1082 = vmatprep.subr.bf16.mxu1 %v1164_v34  ;;  %v1028_v34 = vunpack.c.l.bf16 (!%p1007_p11), %v1040_v33 }
  0x43   : > { %1055 = vmatpush3.bf16.msra.mxu0 %v1165_v35  ;;  %v1029_v35 = vunpack.c.h.bf16 (!%p1007_p11), %v1040_v33 }
  0x44   : > { %1083 = vmatpush3.bf16.msra.mxu1 %v1166_v36  ;;  %1056 = vmatprep.subr.bf16.mxu0 %v1167_v37 }
  0x45   : > { %1084 = vmatprep.subr.bf16.mxu1 %v1168_v38 }
  0x47   : > { %1057 = vmatpush3.bf16.msra.mxu0 %v1169_v39 }
  0x48   : > { %1085 = vmatpush3.bf16.msra.mxu1 %v1170_v40 }
  0x4a   : > { %697 = vmatmul.mubr.bf16.vlgmr.msra.gmra.mrb[0].mxu0 %v1171_v41 }
  0x4b   : > { %746 = vmatmul.mubr.bf16.vlgmr.msra.gmra.mrb[0].mxu1 %v1174_v43  ;;  %704 = vmatprep.mubr.bf16.mxu0 %v1177_v45 }
  0x4c   : > { %753 = vmatprep.mubr.bf16.mxu1 %v1179_v46 }
  0x52   : > { %705 = vmatmul.mubr.bf16.gmra.mrb[4].mxu0 %v1181_v47 }
  0x53   : > { %754 = vmatmul.mubr.bf16.gmra.mrb[4].mxu1 %v1182_v48 }
 0x11d   : > { %v1058_v49 = vpop.f32.mrb[0].mxu0 }
 0x11e   : > { %v1086_v50 = vpop.f32.mrb[0].mxu1  ;;  %v1059_v51 = vpop.f32.mrb[1].mxu0 }
 0x11f   : > { %v1060_v52 = vadd.f32 %v1059_v51, %v1058_v49  ;;  %v1087_v53 = vpop.f32.mrb[1].mxu1  ;;  %v1061_v54 = vpop.f32.mrb[2].mxu0 }
 0x120   : > { %v1088_v55 = vadd.f32 %v1087_v53, %v1086_v50  ;;  %v1089_v56 = vpop.f32.mrb[2].mxu1  ;;  %v1062_v57 = vpop.f32.mrb[3].mxu0 }
 0x121   : > { %v1063_v59 = vadd.f32 %v1062_v57, %v1061_v54  ;;  %v1090_v60 = vpop.f32.mrb[3].mxu1 }
 0x122   : > { %v748_v61 = vadd.f32 %v1088_v55, %v1060_v52  ;;  %v1091_v62 = vadd.f32 %v1090_v60, %v1089_v56 }
 0x124   : > { %v762_v0 = vadd.f32 %v748_v61, %v356_v58  ;;  %v751_v1 = vadd.f32 %v1091_v62, %v1063_v59 }
 0x125   : > { %v1064_v2 = vpop.f32.mrb[4].mxu0 }
 0x126   : > { %766 = vst [vmem:[#allocation2] sm:$0xff] %v762_v0  ;;  %v763_v3 = vadd.f32 %v751_v1, %v357_v63  ;;  %v1092_v4 = vpop.f32.mrb[4].mxu1  ;;  %v1065_v5 = vpop.f32.mrb[5].mxu0 }
 0x127   : > { %v1066_v6 = vadd.f32 %v1065_v5, %v1064_v2  ;;  %v1093_v7 = vpop.f32.mrb[5].mxu1  ;;  %v1067_v8 = vpop.f32.mrb[6].mxu0 }
 0x128   : > { %767 = vst [vmem:[#allocation2 + $0x8] sm:$0xff] %v763_v3  ;;  %v1094_v9 = vadd.f32 %v1093_v7, %v1092_v4  ;;  %v1095_v10 = vpop.f32.mrb[6].mxu1  ;;  %v1068_v11 = vpop.f32.mrb[7].mxu0 }
 0x129   : > { %v1069_v13 = vadd.f32 %v1068_v11, %v1067_v8  ;;  %v1096_v14 = vpop.f32.mrb[7].mxu1 }
 0x12a   : > { %v756_v15 = vadd.f32 %v1094_v9, %v1066_v6  ;;  %v1097_v16 = vadd.f32 %v1096_v14, %v1095_v10  ;;  %773 = sbr.rel (%p1007_p11) target bundleno = 321 (0x141), region = 67 }
 0x12c   : > { %v764_v18 = vadd.f32 %v756_v15, %v358_v12  ;;  %v759_v19 = vadd.f32 %v1097_v16, %v1069_v13 }
 0x12d   : > { %v774_v21 = vld [vmem:[#allocation2] sm:$0xff] (!%p1007_p11) }
 0x12e   : > { %768 = vst [vmem:[#allocation2 + $0x10] sm:$0xff] %v764_v18  ;;  %v765_v20 = vadd.f32 %v759_v19, %v359_v17  ;;  %v785_v24 = vadd.f32 (!%p1007_p11), %v1008_v23, %v774_v21 }
 0x12f   : > { %v775_v22 = vld [vmem:[#allocation2 + $0x8] sm:$0xff] (!%p1007_p11) }
 0x130   : > { %769 = vst [vmem:[#allocation2 + $0x18] sm:$0xff] %v765_v20  ;;  %v786_v25 = vadd.f32 (!%p1007_p11), %v1008_v23, %v775_v22  ;;  %v797_v36 = vadd.f32 (!%p1007_p11), %v1024_v29, %v785_v24 }
 0x132   : > { %v798_v37 = vadd.f32 %v1025_v30, %v786_v25  ;;  %v801_v40 = vmax.f32 %v797_v36, 0.0 }
 0x134   : > { %v802_v41 = vmax.f32 %v798_v37, 0.0 }
 0x135   : > { %v776_v27 = vld [vmem:[#allocation2 + $0x10] sm:$0xff] }
 0x136   : > { %v787_v31 = vadd.f32 %v1008_v23, %v776_v27  ;;  %v1033_v44 = vpack.c.bf16 %v802_v41, %v801_v40 }
 0x137   : > { %v777_v28 = vld [vmem:[#allocation2 + $0x18] sm:$0xff] }
 0x138   : > { %v788_v32 = vadd.f32 %v1008_v23, %v777_v28  ;;  %v799_v38 = vadd.f32 %v1028_v34, %v787_v31  ;;  %1034 = vst [vmem:[%s1379_s4] sm:$0xff] %v1033_v44  }
 0x13a   : > { %v800_v39 = vadd.f32 %v1029_v35, %v788_v32  ;;  %v803_v42 = vmax.f32 %v799_v38, 0.0 }
 0x13c   : > { %v804_v43 = vmax.f32 %v800_v39, 0.0 }
 0x13e   : > { %v1038_v45 = vpack.c.bf16 %v804_v43, %v803_v42 }
 0x140   : > { %1041 = vst [vmem:[%s1379_s4 + $0x8] sm:$0xff] %v1038_v45  }
 0x141 PF: > { %s14_s19 = sadd.s32 1, %s1221_s19   ;;  %s1380_s15 = smov %s1209_s16 }
 0x142   : > { %p11_p12 = scmp.ge.s32.totalorder %s14_s19, 5   ;;  %s1381_s16 = smov %s1284_s23 }
 0x143   : > { %s1382_s17 = smov %s1217_s18  ;;  %s1383_s18 = smov %s1385_s20 }
 0x144   :  { %13 = sbr.rel (!%p11_p12) target bundleno = 3 (0x3), region = 111 }

// kernel: classifier_forward.29
= control target key start
LH: loop header
LB: loop body
LE: loop exit
PB: predicated region body
PF: predicated region fallthrough
CT: control target
= control target key end

     0   :  { %s1144_s12 = smov 0   ;;  %s1146_s13 = smov 0   ;;  %s1264_s0 = inlined_call_operand.vmem [shape: bf16[32,1536], index: 0, kind: input, shape index: {}]   ;;  %s1265_s1 = inlined_call_operand.vmem [shape: bf16[1536,128], index: 1, kind: input, shape index: {}]   ;;  %s1266_s2 = inlined_call_operand.vmem [shape: f32[1,128], index: 2, kind: input, shape index: {}]   ;;  %s1267_s3 = inlined_call_operand.vmem [shape: bf16[32,128], index: 3, kind: output, shape index: {}]  }
   0x1   :  { %s1148_s14 = smov 0   ;;  %s1150_s15 = smov 0  }
   0x2   :  { %s1152_s16 = smov 0  }
   0x3 LB: > { %s25_s17 = sadd.s32 1, %s1117_s15  ;;  %p48_p1 = scmp.ne.s32.totalorder %s1109_s13, %s1105_s12  ;;  %s1121_s16 = sphi %s1152_s16, %s13_s16   ;;  %s1117_s15 = sphi %s1150_s15, %s1271_s15   ;;  %s1113_s14 = sphi %s1148_s14, %s1270_s14   ;;  %s1109_s13 = sphi %s1146_s13, %s1269_s13   ;;  %s1105_s12 = sphi %s1144_s12, %s1268_s12  }
   0x4   : > { %p26_p0 = scmp.ge.s32.totalorder %s25_s17, 3  ;;  %p49_p2 = scmp.eq.s32.totalorder %s1121_s16, 0 }
   0x5   : > { %s41_s19 = sadd.s32 1, %s1109_s13  ;;  %p867_p5 = scmp.ge.s32.totalorder %s1121_s16, 3 }
   0x6   : > { %s1273_s17 = smov (%p26_p0, %s25_s17), 0  ;;  %p50_p3 = por %p49_p2, %p48_p1 }
   0x7   : > { %s37_s18 = ssub.s32 %s1117_s15, %s1273_s17  ;;  %162 = sbr.rel (%p867_p5) target bundleno = 22 (0x16), region = 20 }
   0x8   : > { %p39_p4 = scmp.eq.s32.totalorder %s37_s18, 0 }
   0xa   : > { %s1179_s20 = scalar_select %p39_p4, %s1109_s13, %s41_s19  }
   0xe   : > { %165 = sbr.rel (!%p50_p3) target bundleno = 22 (0x16), region = 24  ;;  %s167_s21 = sand.u32 (%p50_p3), 1, %s1109_s13  }
   0xf   : > { %s926_s22 = sshll.u32 (%p50_p3), %s1117_s15, 4  ;;  %s868_s23 = sshll.u32 (%p50_p3), %s167_s21, 6 }
  0x10   : > { %s175_s26 = scalar_lea.vmem (%p50_p3), %s1264_s0, %s926_s22  ;;  %s169_s27 = scalar_lea.vmem (%p50_p3), [#allocation3], %s868_s23 }
  0x11   : > { %v188_v0 = vld [vmem:[%s175_s26] sm:$0xff] (%p50_p3)  ;;  %v190_v1 = vld [vmem:[%s175_s26 + $0x8] sm:$0xff] (%p50_p3)  ;;  %v192_v2 = vld [vmem:[%s175_s26 + $0x30] sm:$0xff] (%p50_p3) }
  0x12   : > { %189 = vst [vmem:[%s169_s27] sm:$0xff] (%p50_p3), %v188_v0  ;;  %191 = vst [vmem:[%s169_s27 + $0x8] sm:$0xff] (%p50_p3), %v190_v1  ;;  %v194_v3 = vld [vmem:[%s175_s26 + $0x38] sm:$0xff] (%p50_p3)  ;;  %v196_v4 = vld [vmem:[%s175_s26 + $0x60] sm:$0xff] (%p50_p3) }
  0x13   : > { %193 = vst [vmem:[%s169_s27 + $0x10] sm:$0xff] (%p50_p3), %v192_v2  ;;  %v198_v5 = vld [vmem:[%s175_s26 + $0x68] sm:$0xff] (%p50_p3)  ;;  %195 = vst [vmem:[%s169_s27 + $0x18] sm:$0xff] (%p50_p3), %v194_v3  ;;  %v200_v6 = vld [vmem:[%s175_s26 + $0x90] sm:$0xff] (%p50_p3) }
  0x14   : > { %197 = vst [vmem:[%s169_s27 + $0x20] sm:$0xff] (%p50_p3), %v196_v4  ;;  %199 = vst [vmem:[%s169_s27 + $0x28] sm:$0xff] (%p50_p3), %v198_v5  ;;  %v202_v7 = vld [vmem:[%s175_s26 + $0x98] sm:$0xff] (%p50_p3) }
  0x15   : > { %201 = vst [vmem:[%s169_s27 + $0x30] sm:$0xff] %v200_v6  ;;  %203 = vst [vmem:[%s169_s27 + $0x38] sm:$0xff] %v202_v7 }
  0x16 PF: > { %p871_p6 = scmp.ge.s32.totalorder %s1121_s16, 1  ;;  %p220_p7 = scmp.lt.s32.totalorder %s1121_s16, 4 }
  0x18   : > { %p221_p8 = pnand %p871_p6, %p220_p7 }
  0x19   : > { %s227_s28 = sand.u32 (!%p221_p8), 1, %s1105_s12   ;;  %s873_s29 = sshll.u32 (!%p221_p8), %s1113_s14, 6 }
  0x1a   : > { %224 = sbr.rel (%p221_p8) target bundleno = 319 (0x13f), region = 51  ;;  %s872_s30 = sshll.u32 (!%p221_p8), %s227_s28, 6 }
  0x1b   : > { %p267_p9 = scmp.lt.s32.totalorder (!%p221_p8), %s873_s29, 191  ;;  %s1196_s8 = scalar_lea.vmem (!%p221_p8), [#allocation3], %s872_s30 }
  0x1c   : > { %p875_p10 = scmp.ne.s32.totalorder (!%p221_p8), %s1113_s14, 0 }
  0x21   : > { %s1275_s29 = smov (!%p267_p9, %s873_s29), 191  ;;  %291 = sbr.rel (%p875_p10) target bundleno = 40 (0x28), region = 59 }
  0x22   : > { %s874_s4 = sshll.u32 %s1275_s29, 2  ;;  %v1123_v8 = vmov (!%p875_p10), 0.0  }
  0x23   : > { %s1194_s7 = scalar_lea.vmem %s1265_s1, %s874_s4  ;;  %292 = vst [vmem:[#allocation2] sm:$0xff] (!%p875_p10), %v1123_v8  ;;  %293 = vst [vmem:[#allocation2 + $0x8] sm:$0xff] (!%p875_p10), %v1123_v8 }
  0x24   : > { %294 = vst [vmem:[#allocation2 + $0x10] sm:$0xff] (!%p875_p10), %v1123_v8  ;;  %295 = vst [vmem:[#allocation2 + $0x18] sm:$0xff] (!%p875_p10), %v1123_v8 }
  0x28 PF: > { %v1039_v9 = vld [vmem:[%s1194_s7 + $0x40] sm:$0xff]   ;;  %v1043_v13 = vld [vmem:[%s1194_s7 + $0x48] sm:$0xff]   ;;  %v1047_v17 = vld [vmem:[%s1194_s7 + $0x50] sm:$0xff]   ;;  %p916_p11 = scmp.ne.s32.totalorder %s1113_s14, 2 }
  0x29   : > { %v1040_v10 = vld [vmem:[%s1194_s7 + $0xc0] sm:$0xff]   ;;  %942 = vmatprep.subr.bf16.mxu0 %v1039_v9  ;;  %v1044_v14 = vld [vmem:[%s1194_s7 + $0xc8] sm:$0xff]   ;;  %v1048_v18 = vld [vmem:[%s1194_s7 + $0xd0] sm:$0xff]  }
  0x2a   : > { %v1041_v11 = vld [vmem:[%s1194_s7] sm:$0xff]   ;;  %970 = vmatprep.subr.bf16.mxu1 %v1040_v10  ;;  %v1045_v15 = vld [vmem:[%s1194_s7 + $0x8] sm:$0xff]   ;;  %v1049_v19 = vld [vmem:[%s1194_s7 + $0x10] sm:$0xff]  }
  0x2b   : > { %v1042_v12 = vld [vmem:[%s1194_s7 + $0x80] sm:$0xff]   ;;  %943 = vmatpush3.bf16.msra.mxu0 %v1041_v11  ;;  %v1046_v16 = vld [vmem:[%s1194_s7 + $0x88] sm:$0xff]   ;;  %v1050_v20 = vld [vmem:[%s1194_s7 + $0x90] sm:$0xff]  }
  0x2c   : > { %971 = vmatpush3.bf16.msra.mxu1 %v1042_v12  ;;  %944 = vmatprep.subr.bf16.mxu0 %v1043_v13  ;;  %v1051_v21 = vld [vmem:[%s1194_s7 + $0x58] sm:$0xff]   ;;  %v1055_v25 = vld [vmem:[%s1194_s7 + $0x60] sm:$0xff]   ;;  %v1059_v29 = vld [vmem:[%s1194_s7 + $0x68] sm:$0xff]  }
  0x2d   : > { %972 = vmatprep.subr.bf16.mxu1 %v1044_v14  ;;  %v1052_v22 = vld [vmem:[%s1194_s7 + $0xd8] sm:$0xff]   ;;  %v1056_v26 = vld [vmem:[%s1194_s7 + $0xe0] sm:$0xff]   ;;  %v1060_v30 = vld [vmem:[%s1194_s7 + $0xe8] sm:$0xff]  }
  0x2e   : > { %v1053_v23 = vld [vmem:[%s1194_s7 + $0x18] sm:$0xff]   ;;  %v1057_v27 = vld [vmem:[%s1194_s7 + $0x20] sm:$0xff]   ;;  %v1061_v31 = vld [vmem:[%s1194_s7 + $0x28] sm:$0xff]  }
  0x2f   : > { %945 = vmatpush3.bf16.msra.mxu0 %v1045_v15  ;;  %v1054_v24 = vld [vmem:[%s1194_s7 + $0x98] sm:$0xff]   ;;  %v1058_v28 = vld [vmem:[%s1194_s7 + $0xa0] sm:$0xff]   ;;  %v1062_v32 = vld [vmem:[%s1194_s7 + $0xa8] sm:$0xff]  }
  0x30   : > { %973 = vmatpush3.bf16.msra.mxu1 %v1046_v16  ;;  %946 = vmatprep.subr.bf16.mxu0 %v1047_v17  ;;  %v1063_v33 = vld [vmem:[%s1194_s7 + $0x70] sm:$0xff]   ;;  %v1067_v37 = vld [vmem:[%s1194_s7 + $0x78] sm:$0xff]   ;;  %v296_v58 = vld [vmem:[#allocation2] sm:$0xff] }
  0x31   : > { %974 = vmatprep.subr.bf16.mxu1 %v1048_v18  ;;  %v1064_v34 = vld [vmem:[%s1194_s7 + $0xf0] sm:$0xff]   ;;  %v1068_v38 = vld [vmem:[%s1194_s7 + $0xf8] sm:$0xff]   ;;  %v297_v63 = vld [vmem:[#allocation2 + $0x8] sm:$0xff] }
  0x32   : > { %v1065_v35 = vld [vmem:[%s1194_s7 + $0x30] sm:$0xff]   ;;  %v1069_v39 = vld [vmem:[%s1194_s7 + $0x38] sm:$0xff]  }
  0x33   : > { %947 = vmatpush3.bf16.msra.mxu0 %v1049_v19  ;;  %v1066_v36 = vld [vmem:[%s1194_s7 + $0xb0] sm:$0xff]   ;;  %v1070_v40 = vld [vmem:[%s1194_s7 + $0xb8] sm:$0xff]  }
  0x34   : > { %975 = vmatpush3.bf16.msra.mxu1 %v1050_v20  ;;  %948 = vmatprep.subr.bf16.mxu0 %v1051_v21  ;;  %v1071_v41 = vld [vmem:[%s1196_s8] ss:$16 sps:$4 sm:$0xff]   ;;  %v1073_v42 = vld [vmem:[%s1196_s8 + $0x4] ss:$16 sps:$4 sm:$0xff]   ;;  %v1074_v43 = vld [vmem:[%s1196_s8 + $0x8] ss:$16 sps:$4 sm:$0xff]  }
  0x35   : > { %976 = vmatprep.subr.bf16.mxu1 %v1052_v22  ;;  %v1076_v44 = vld [vmem:[%s1196_s8 + $0xc] ss:$16 sps:$4 sm:$0xff]   ;;  %636 = vmatprep.mubr.bf16.mxu0 %v1073_v42  ;;  %v1077_v45 = vld [vmem:[%s1196_s8 + $0x24] ss:$16 sps:$4 sm:$0xff]   ;;  %v1081_v47 = vld [vmem:[%s1196_s8 + $0x20] ss:$16 sps:$4 sm:$0xff]  }
  0x36   : > { %685 = vmatprep.mubr.bf16.mxu1 %v1076_v44  ;;  %v1079_v46 = vld [vmem:[%s1196_s8 + $0x2c] ss:$16 sps:$4 sm:$0xff]   ;;  %v1082_v48 = vld [vmem:[%s1196_s8 + $0x28] ss:$16 sps:$4 sm:$0xff]   ;;  %v298_v12 = vld [vmem:[#allocation2 + $0x10] sm:$0xff] }
  0x37   : > { %949 = vmatpush3.bf16.msra.mxu0 %v1053_v23  ;;  %v299_v17 = vld [vmem:[#allocation2 + $0x18] sm:$0xff]  ;;  %v917_v23 = vld [vmem:[%s1266_s2] ss:$0 sm:$0xff] (!%p916_p11) }
  0x38   : > { %977 = vmatpush3.bf16.msra.mxu1 %v1054_v24  ;;  %950 = vmatprep.subr.bf16.mxu0 %v1055_v25 }
  0x39   : > { %978 = vmatprep.subr.bf16.mxu1 %v1056_v26 }
  0x3b   : > { %951 = vmatpush3.bf16.msra.mxu0 %v1057_v27 }
  0x3c   : > { %979 = vmatpush3.bf16.msra.mxu1 %v1058_v28  ;;  %952 = vmatprep.subr.bf16.mxu0 %v1059_v29 }
  0x3d   : > { %980 = vmatprep.subr.bf16.mxu1 %v1060_v30 }
  0x3f   : > { %953 = vmatpush3.bf16.msra.mxu0 %v1061_v31 }
  0x40   : > { %981 = vmatpush3.bf16.msra.mxu1 %v1062_v32  ;;  %954 = vmatprep.subr.bf16.mxu0 %v1063_v33 }
  0x41   : > { %982 = vmatprep.subr.bf16.mxu1 %v1064_v34 }
  0x43   : > { %955 = vmatpush3.bf16.msra.mxu0 %v1065_v35 }
  0x44   : > { %983 = vmatpush3.bf16.msra.mxu1 %v1066_v36  ;;  %956 = vmatprep.subr.bf16.mxu0 %v1067_v37 }
  0x45   : > { %984 = vmatprep.subr.bf16.mxu1 %v1068_v38 }
  0x47   : > { %957 = vmatpush3.bf16.msra.mxu0 %v1069_v39 }
  0x48   : > { %985 = vmatpush3.bf16.msra.mxu1 %v1070_v40 }
  0x4a   : > { %637 = vmatmul.mubr.bf16.vlgmr.msra.gmra.mrb[0].mxu0 %v1071_v41 }
  0x4b   : > { %686 = vmatmul.mubr.bf16.vlgmr.msra.gmra.mrb[0].mxu1 %v1074_v43  ;;  %644 = vmatprep.mubr.bf16.mxu0 %v1077_v45 }
  0x4c   : > { %693 = vmatprep.mubr.bf16.mxu1 %v1079_v46 }
  0x52   : > { %645 = vmatmul.mubr.bf16.gmra.mrb[4].mxu0 %v1081_v47 }
  0x53   : > { %694 = vmatmul.mubr.bf16.gmra.mrb[4].mxu1 %v1082_v48 }
 0x11d   : > { %v958_v49 = vpop.f32.mrb[0].mxu0 }
 0x11e   : > { %v986_v50 = vpop.f32.mrb[0].mxu1  ;;  %v959_v51 = vpop.f32.mrb[1].mxu0 }
 0x11f   : > { %v960_v52 = vadd.f32 %v959_v51, %v958_v49  ;;  %v987_v53 = vpop.f32.mrb[1].mxu1  ;;  %v961_v54 = vpop.f32.mrb[2].mxu0 }
 0x120   : > { %v988_v55 = vadd.f32 %v987_v53, %v986_v50  ;;  %v989_v56 = vpop.f32.mrb[2].mxu1  ;;  %v962_v57 = vpop.f32.mrb[3].mxu0 }
 0x121   : > { %v963_v59 = vadd.f32 %v962_v57, %v961_v54  ;;  %v990_v60 = vpop.f32.mrb[3].mxu1 }
 0x122   : > { %v688_v61 = vadd.f32 %v988_v55, %v960_v52  ;;  %v991_v62 = vadd.f32 %v990_v60, %v989_v56 }
 0x124   : > { %v702_v0 = vadd.f32 %v688_v61, %v296_v58  ;;  %v691_v1 = vadd.f32 %v991_v62, %v963_v59 }
 0x125   : > { %v964_v2 = vpop.f32.mrb[4].mxu0 }
 0x126   : > { %706 = vst [vmem:[#allocation2] sm:$0xff] %v702_v0  ;;  %v703_v3 = vadd.f32 %v691_v1, %v297_v63  ;;  %v992_v4 = vpop.f32.mrb[4].mxu1  ;;  %v965_v5 = vpop.f32.mrb[5].mxu0 }
 0x127   : > { %v966_v6 = vadd.f32 %v965_v5, %v964_v2  ;;  %v993_v7 = vpop.f32.mrb[5].mxu1  ;;  %v967_v8 = vpop.f32.mrb[6].mxu0 }
 0x128   : > { %707 = vst [vmem:[#allocation2 + $0x8] sm:$0xff] %v703_v3  ;;  %v994_v9 = vadd.f32 %v993_v7, %v992_v4  ;;  %v995_v10 = vpop.f32.mrb[6].mxu1  ;;  %v968_v11 = vpop.f32.mrb[7].mxu0 }
 0x129   : > { %v969_v13 = vadd.f32 %v968_v11, %v967_v8  ;;  %v996_v14 = vpop.f32.mrb[7].mxu1 }
 0x12a   : > { %v696_v15 = vadd.f32 %v994_v9, %v966_v6  ;;  %v997_v16 = vadd.f32 %v996_v14, %v995_v10  ;;  %713 = sbr.rel (%p916_p11) target bundleno = 319 (0x13f), region = 63 }
 0x12c   : > { %v704_v18 = vadd.f32 %v696_v15, %v298_v12  ;;  %v699_v19 = vadd.f32 %v997_v16, %v969_v13 }
 0x12d   : > { %v714_v21 = vld [vmem:[#allocation2] sm:$0xff] (!%p916_p11) }
 0x12e   : > { %708 = vst [vmem:[#allocation2 + $0x10] sm:$0xff] %v704_v18  ;;  %v705_v20 = vadd.f32 %v699_v19, %v299_v17  ;;  %v725_v24 = vadd.f32 (!%p916_p11), %v917_v23, %v714_v21 }
 0x12f   : > { %v715_v22 = vld [vmem:[#allocation2 + $0x8] sm:$0xff] (!%p916_p11) }
 0x130   : > { %709 = vst [vmem:[#allocation2 + $0x18] sm:$0xff] %v705_v20  ;;  %v726_v25 = vadd.f32 (!%p916_p11), %v917_v23, %v715_v22  ;;  %v729_v30 = vmax.f32 (!%p916_p11), %v725_v24, 0.0 }
 0x132   : > { %v730_v31 = vmax.f32 %v726_v25, 0.0 }
 0x134   : > { %v934_v34 = vpack.c.bf16 %v730_v31, %v729_v30 }
 0x135   : > { %v716_v26 = vld [vmem:[#allocation2 + $0x10] sm:$0xff] }
 0x136   : > { %v727_v28 = vadd.f32 %v917_v23, %v716_v26  ;;  %935 = vst [vmem:[%s1267_s3] sm:$0xff] %v934_v34  }
 0x137   : > { %v717_v27 = vld [vmem:[#allocation2 + $0x18] sm:$0xff] }
 0x138   : > { %v728_v29 = vadd.f32 %v917_v23, %v717_v27  ;;  %v731_v32 = vmax.f32 %v727_v28, 0.0 }
 0x13a   : > { %v732_v33 = vmax.f32 %v728_v29, 0.0 }
 0x13c   : > { %v939_v35 = vpack.c.bf16 %v732_v33, %v731_v32 }
 0x13e   : > { %941 = vst [vmem:[%s1267_s3 + $0x8] sm:$0xff] %v939_v35  }
 0x13f PF: > { %s13_s16 = sadd.s32 1, %s1121_s16   ;;  %s1268_s12 = smov %s1109_s13 }
 0x140   : > { %p10_p12 = scmp.ge.s32.totalorder %s13_s16, 5   ;;  %s1269_s13 = smov %s1179_s20 }
 0x141   : > { %s1270_s14 = smov %s1117_s15  ;;  %s1271_s15 = smov %s1273_s17 }
 0x142   :  { %12 = sbr.rel (!%p10_p12) target bundleno = 3 (0x3), region = 104 }

// kernel: classifier_forward.31
= control target key start
LH: loop header
LB: loop body
LE: loop exit
PB: predicated region body
PF: predicated region fallthrough
CT: control target
= control target key end

     0   :  { %s1276_s12 = smov 0   ;;  %s1278_s13 = smov 0   ;;  %s1424_s0 = inlined_call_operand.vmem [shape: bf16[16,1536], index: 0, kind: input, shape index: {}]   ;;  %s1425_s1 = inlined_call_operand.vmem [shape: bf16[1536,256], index: 1, kind: input, shape index: {}]   ;;  %s1426_s2 = inlined_call_operand.vmem [shape: f32[1,256], index: 2, kind: input, shape index: {}]   ;;  %s1427_s3 = inlined_call_operand.vmem [shape: bf16[16,256], index: 3, kind: output, shape index: {}]  }
   0x1   :  { %s1280_s14 = smov 0   ;;  %s1282_s15 = smov 0  }
   0x2   :  { %s1284_s16 = smov 0  }
   0x3 LB: > { %s25_s17 = sadd.s32 1, %s1249_s15  ;;  %p48_p1 = scmp.ne.s32.totalorder %s1241_s13, %s1237_s12  ;;  %s1253_s16 = sphi %s1284_s16, %s13_s16   ;;  %s1249_s15 = sphi %s1282_s15, %s1431_s15   ;;  %s1245_s14 = sphi %s1280_s14, %s1430_s14   ;;  %s1241_s13 = sphi %s1278_s13, %s1429_s13   ;;  %s1237_s12 = sphi %s1276_s12, %s1428_s12  }
   0x4   : > { %p26_p0 = scmp.ge.s32.totalorder %s25_s17, 3  ;;  %p49_p2 = scmp.eq.s32.totalorder %s1253_s16, 0 }
   0x5   : > { %s41_s19 = sadd.s32 1, %s1241_s13  ;;  %p979_p5 = scmp.ge.s32.totalorder %s1253_s16, 3 }
   0x6   : > { %s1433_s17 = smov (%p26_p0, %s25_s17), 0  ;;  %p50_p3 = por %p49_p2, %p48_p1 }
   0x7   : > { %s37_s18 = ssub.s32 %s1249_s15, %s1433_s17  ;;  %164 = sbr.rel (%p979_p5) target bundleno = 21 (0x15), region = 20 }
   0x8   : > { %p39_p4 = scmp.eq.s32.totalorder %s37_s18, 0 }
   0xa   : > { %s1311_s20 = scalar_select %p39_p4, %s1241_s13, %s41_s19  }
   0xe   : > { %167 = sbr.rel (!%p50_p3) target bundleno = 21 (0x15), region = 24  ;;  %s169_s21 = sand.u32 (%p50_p3), 1, %s1241_s13  }
   0xf   : > { %s1064_s22 = sshll.u32 (%p50_p3), %s1249_s15, 4  ;;  %s980_s23 = sshll.u32 (%p50_p3), %s169_s21, 5 }
  0x10   : > { %s177_s26 = scalar_lea.vmem (%p50_p3), %s1424_s0, %s1064_s22  ;;  %s171_s27 = scalar_lea.vmem (%p50_p3), [#allocation3], %s980_s23 }
  0x11   : > { %v190_v0 = vld [vmem:[%s177_s26] sm:$0xff] (%p50_p3)  ;;  %v192_v1 = vld [vmem:[%s177_s26 + $0x8] sm:$0xff] (%p50_p3)  ;;  %v194_v2 = vld [vmem:[%s177_s26 + $0x30] sm:$0xff] (%p50_p3) }
  0x12   : > { %191 = vst [vmem:[%s171_s27] sm:$0xff] (%p50_p3), %v190_v0  ;;  %193 = vst [vmem:[%s171_s27 + $0x8] sm:$0xff] (%p50_p3), %v192_v1  ;;  %v196_v3 = vld [vmem:[%s177_s26 + $0x38] sm:$0xff] (%p50_p3) }
  0x13   : > { %195 = vst [vmem:[%s171_s27 + $0x10] sm:$0xff] (%p50_p3), %v194_v2  ;;  %197 = vst [vmem:[%s171_s27 + $0x18] sm:$0xff] (%p50_p3), %v196_v3 }
  0x15 PF: > { %p983_p6 = scmp.ge.s32.totalorder %s1253_s16, 1  ;;  %p217_p7 = scmp.lt.s32.totalorder %s1253_s16, 4 }
  0x17   : > { %p218_p8 = pnand %p983_p6, %p217_p7 }
  0x18   : > { %s224_s28 = sand.u32 (!%p218_p8), 1, %s1237_s12   ;;  %s985_s29 = sshll.u32 (!%p218_p8), %s1245_s14, 6 }
  0x19   : > { %221 = sbr.rel (%p218_p8) target bundleno = 339 (0x153), region = 51  ;;  %s984_s30 = sshll.u32 (!%p218_p8), %s224_s28, 5 }
  0x1a   : > { %p270_p9 = scmp.lt.s32.totalorder (!%p218_p8), %s985_s29, 191  ;;  %s1328_s8 = scalar_lea.vmem (!%p218_p8), [#allocation3], %s984_s30 }
  0x1b   : > { %p988_p10 = scmp.ne.s32.totalorder (!%p218_p8), %s1245_s14, 0 }
  0x20   : > { %s1435_s29 = smov (!%p270_p9, %s985_s29), 191  ;;  %300 = sbr.rel (%p988_p10) target bundleno = 39 (0x27), region = 59 }
  0x21   : > { %s1065_s4 = sshll.u32 %s1435_s29, 3  ;;  %v1255_v4 = vmov (!%p988_p10), 0.0  }
  0x22   : > { %s1326_s7 = scalar_lea.vmem %s1425_s1, %s1065_s4  ;;  %301 = vst [vmem:[#allocation2] sm:$0xff] (!%p988_p10), %v1255_v4  ;;  %302 = vst [vmem:[#allocation2 + $0x8] sm:$0xff] (!%p988_p10), %v1255_v4 }
  0x23   : > { %303 = vst [vmem:[#allocation2 + $0x10] sm:$0xff] (!%p988_p10), %v1255_v4  ;;  %304 = vst [vmem:[#allocation2 + $0x18] sm:$0xff] (!%p988_p10), %v1255_v4 }
  0x27 PF: > { %v1113_v5 = vld [vmem:[%s1326_s7 + $0x4] ss:$8 sps:$4 sm:$0xff]   ;;  %v1117_v7 = vld [vmem:[%s1326_s7] ss:$8 sps:$4 sm:$0xff]   ;;  %v1119_v9 = vld [vmem:[%s1326_s7 + $0x14] ss:$8 sps:$4 sm:$0xff]  }
  0x28   : > { %v1115_v6 = vld [vmem:[%s1326_s7 + $0x104] ss:$8 sps:$4 sm:$0xff]   ;;  %717 = vmatprep.subr.bf16.mxu1 %v1113_v5  ;;  %v1118_v8 = vld [vmem:[%s1326_s7 + $0x100] ss:$8 sps:$4 sm:$0xff]   ;;  %v1121_v10 = vld [vmem:[%s1326_s7 + $0x114] ss:$8 sps:$4 sm:$0xff]  }
  0x29   : > { %760 = vmatprep.subr.bf16.mxu0 %v1115_v6  ;;  %718 = vmatpush1.bf16.msra.mxu1 %v1117_v7  ;;  %v1123_v11 = vld [vmem:[%s1326_s7 + $0x10] ss:$8 sps:$4 sm:$0xff]   ;;  %v1125_v13 = vld [vmem:[%s1326_s7 + $0x24] ss:$8 sps:$4 sm:$0xff]   ;;  %v1129_v15 = vld [vmem:[%s1326_s7 + $0x20] ss:$8 sps:$4 sm:$0xff]  }
  0x2a   : > { %761 = vmatpush1.bf16.msra.mxu0 %v1118_v8  ;;  %719 = vmatprep.subr.bf16.mxu1 %v1119_v9  ;;  %v1124_v12 = vld [vmem:[%s1326_s7 + $0x110] ss:$8 sps:$4 sm:$0xff]   ;;  %v1127_v14 = vld [vmem:[%s1326_s7 + $0x124] ss:$8 sps:$4 sm:$0xff]   ;;  %v1130_v16 = vld [vmem:[%s1326_s7 + $0x120] ss:$8 sps:$4 sm:$0xff]  }
  0x2b   : > { %762 = vmatprep.subr.bf16.mxu0 %v1121_v10  ;;  %v1131_v17 = vld [vmem:[%s1326_s7 + $0x34] ss:$8 sps:$4 sm:$0xff]   ;;  %v1135_v19 = vld [vmem:[%s1326_s7 + $0x30] ss:$8 sps:$4 sm:$0xff]   ;;  %v1137_v21 = vld [vmem:[%s1326_s7 + $0x44] ss:$8 sps:$4 sm:$0xff]  }
  0x2c   : > { %v1133_v18 = vld [vmem:[%s1326_s7 + $0x134] ss:$8 sps:$4 sm:$0xff]   ;;  %v1136_v20 = vld [vmem:[%s1326_s7 + $0x130] ss:$8 sps:$4 sm:$0xff]   ;;  %v1139_v22 = vld [vmem:[%s1326_s7 + $0x144] ss:$8 sps:$4 sm:$0xff]  }
  0x2d   : > { %720 = vmatpush1.bf16.msra.mxu1 %v1123_v11  ;;  %v1141_v23 = vld [vmem:[%s1326_s7 + $0x40] ss:$8 sps:$4 sm:$0xff]   ;;  %v1143_v25 = vld [vmem:[%s1326_s7 + $0x54] ss:$8 sps:$4 sm:$0xff]   ;;  %v1147_v27 = vld [vmem:[%s1326_s7 + $0x50] ss:$8 sps:$4 sm:$0xff]  }
  0x2e   : > { %763 = vmatpush1.bf16.msra.mxu0 %v1124_v12  ;;  %721 = vmatprep.subr.bf16.mxu1 %v1125_v13  ;;  %v1142_v24 = vld [vmem:[%s1326_s7 + $0x140] ss:$8 sps:$4 sm:$0xff]   ;;  %v1145_v26 = vld [vmem:[%s1326_s7 + $0x154] ss:$8 sps:$4 sm:$0xff]   ;;  %v1148_v28 = vld [vmem:[%s1326_s7 + $0x150] ss:$8 sps:$4 sm:$0xff]  }
  0x2f   : > { %764 = vmatprep.subr.bf16.mxu0 %v1127_v14  ;;  %v1149_v29 = vld [vmem:[%s1326_s7 + $0x64] ss:$8 sps:$4 sm:$0xff]   ;;  %v1153_v31 = vld [vmem:[%s1326_s7 + $0x60] ss:$8 sps:$4 sm:$0xff]   ;;  %v1155_v33 = vld [vmem:[%s1326_s7 + $0x74] ss:$8 sps:$4 sm:$0xff]  }
  0x30   : > { %v1151_v30 = vld [vmem:[%s1326_s7 + $0x164] ss:$8 sps:$4 sm:$0xff]   ;;  %v1154_v32 = vld [vmem:[%s1326_s7 + $0x160] ss:$8 sps:$4 sm:$0xff]   ;;  %v1157_v34 = vld [vmem:[%s1326_s7 + $0x174] ss:$8 sps:$4 sm:$0xff]  }
  0x31   : > { %722 = vmatpush1.bf16.msra.mxu1 %v1129_v15  ;;  %v1159_v35 = vld [vmem:[%s1326_s7 + $0x70] ss:$8 sps:$4 sm:$0xff]   ;;  %v1161_v37 = vld [vmem:[%s1326_s7 + $0x84] ss:$8 sps:$4 sm:$0xff]   ;;  %v1165_v39 = vld [vmem:[%s1326_s7 + $0x80] ss:$8 sps:$4 sm:$0xff]  }
  0x32   : > { %765 = vmatpush1.bf16.msra.mxu0 %v1130_v16  ;;  %723 = vmatprep.subr.bf16.mxu1 %v1131_v17  ;;  %v1160_v36 = vld [vmem:[%s1326_s7 + $0x170] ss:$8 sps:$4 sm:$0xff]   ;;  %v1163_v38 = vld [vmem:[%s1326_s7 + $0x184] ss:$8 sps:$4 sm:$0xff]   ;;  %v1166_v40 = vld [vmem:[%s1326_s7 + $0x180] ss:$8 sps:$4 sm:$0xff]  }
  0x33   : > { %766 = vmatprep.subr.bf16.mxu0 %v1133_v18  ;;  %v1167_v41 = vld [vmem:[%s1326_s7 + $0x94] ss:$8 sps:$4 sm:$0xff]   ;;  %v1171_v43 = vld [vmem:[%s1326_s7 + $0x90] ss:$8 sps:$4 sm:$0xff]   ;;  %v1173_v45 = vld [vmem:[%s1326_s7 + $0xa4] ss:$8 sps:$4 sm:$0xff]  }
  0x34   : > { %v1169_v42 = vld [vmem:[%s1326_s7 + $0x194] ss:$8 sps:$4 sm:$0xff]   ;;  %v1172_v44 = vld [vmem:[%s1326_s7 + $0x190] ss:$8 sps:$4 sm:$0xff]   ;;  %v1175_v46 = vld [vmem:[%s1326_s7 + $0x1a4] ss:$8 sps:$4 sm:$0xff]  }
  0x35   : > { %724 = vmatpush1.bf16.msra.mxu1 %v1135_v19  ;;  %v1177_v47 = vld [vmem:[%s1326_s7 + $0xa0] ss:$8 sps:$4 sm:$0xff]   ;;  %v1179_v49 = vld [vmem:[%s1326_s7 + $0xb4] ss:$8 sps:$4 sm:$0xff]   ;;  %v1183_v51 = vld [vmem:[%s1326_s7 + $0xb0] ss:$8 sps:$4 sm:$0xff]  }
  0x36   : > { %767 = vmatpush1.bf16.msra.mxu0 %v1136_v20  ;;  %725 = vmatprep.subr.bf16.mxu1 %v1137_v21  ;;  %v1178_v48 = vld [vmem:[%s1326_s7 + $0x1a0] ss:$8 sps:$4 sm:$0xff]   ;;  %v1181_v50 = vld [vmem:[%s1326_s7 + $0x1b4] ss:$8 sps:$4 sm:$0xff]   ;;  %v1184_v53 = vld [vmem:[%s1326_s7 + $0x1b0] ss:$8 sps:$4 sm:$0xff]  }
  0x37   : > { %768 = vmatprep.subr.bf16.mxu0 %v1139_v22  ;;  %v1211_v52 = vld [vmem:[%s1328_s8 + $0x4] ss:$16 sps:$4 sm:$0xff]   ;;  %v1214_v56 = vld [vmem:[%s1328_s8 + $0xc] ss:$16 sps:$4 sm:$0xff]   ;;  %v1189_v57 = vld [vmem:[%s1326_s7 + $0xc0] ss:$8 sps:$4 sm:$0xff]  }
  0x38   : > { %v1185_v54 = vld [vmem:[%s1326_s7 + $0xc4] ss:$8 sps:$4 sm:$0xff]   ;;  %749 = vmatprep.mubr.bf16.mxu1 %v1211_v52  ;;  %792 = vmatprep.mubr.bf16.mxu0 %v1214_v56  ;;  %v1190_v58 = vld [vmem:[%s1326_s7 + $0x1c0] ss:$8 sps:$4 sm:$0xff]   ;;  %v1191_v59 = vld [vmem:[%s1326_s7 + $0xd4] ss:$8 sps:$4 sm:$0xff]  }
  0x39   : > { %726 = vmatpush1.bf16.msra.mxu1 %v1141_v23  ;;  %v1187_v55 = vld [vmem:[%s1326_s7 + $0x1c4] ss:$8 sps:$4 sm:$0xff]   ;;  %v1193_v60 = vld [vmem:[%s1326_s7 + $0x1d4] ss:$8 sps:$4 sm:$0xff]   ;;  %v1195_v61 = vld [vmem:[%s1326_s7 + $0xd0] ss:$8 sps:$4 sm:$0xff]  }
  0x3a   : > { %769 = vmatpush1.bf16.msra.mxu0 %v1142_v24  ;;  %727 = vmatprep.subr.bf16.mxu1 %v1143_v25  ;;  %v1196_v62 = vld [vmem:[%s1326_s7 + $0x1d0] ss:$8 sps:$4 sm:$0xff]   ;;  %v1197_v63 = vld [vmem:[%s1326_s7 + $0xe4] ss:$8 sps:$4 sm:$0xff]   ;;  %v1201_v1 = vld [vmem:[%s1326_s7 + $0xe0] ss:$8 sps:$4 sm:$0xff]  }
  0x3b   : > { %770 = vmatprep.subr.bf16.mxu0 %v1145_v26  ;;  %v1199_v0 = vld [vmem:[%s1326_s7 + $0x1e4] ss:$8 sps:$4 sm:$0xff]   ;;  %v1202_v2 = vld [vmem:[%s1326_s7 + $0x1e0] ss:$8 sps:$4 sm:$0xff]   ;;  %v1203_v3 = vld [vmem:[%s1326_s7 + $0xf4] ss:$8 sps:$4 sm:$0xff]  }
  0x3c   : > { %v1205_v4 = vld [vmem:[%s1326_s7 + $0x1f4] ss:$8 sps:$4 sm:$0xff]   ;;  %v1207_v5 = vld [vmem:[%s1326_s7 + $0xf0] ss:$8 sps:$4 sm:$0xff]   ;;  %v305_v10 = vld [vmem:[#allocation2] sm:$0xff]  ;;  %p1057_p11 = scmp.ne.s32.totalorder %s1245_s14, 2 }
  0x3d   : > { %728 = vmatpush1.bf16.msra.mxu1 %v1147_v27  ;;  %v1208_v6 = vld [vmem:[%s1326_s7 + $0x1f0] ss:$8 sps:$4 sm:$0xff]   ;;  %v306_v14 = vld [vmem:[#allocation2 + $0x8] sm:$0xff] }
  0x3e   : > { %771 = vmatpush1.bf16.msra.mxu0 %v1148_v28  ;;  %729 = vmatprep.subr.bf16.mxu1 %v1149_v29  ;;  %v1209_v7 = vld [vmem:[%s1328_s8] ss:$16 sps:$4 sm:$0xff]   ;;  %v1212_v8 = vld [vmem:[%s1328_s8 + $0x8] ss:$16 sps:$4 sm:$0xff]   ;;  %v821_v29 = vlaneseq (!%p1057_p11) }
  0x3f   : > { %772 = vmatprep.subr.bf16.mxu0 %v1151_v30  ;;  %v307_v18 = vld [vmem:[#allocation2 + $0x10] sm:$0xff]  ;;  %v308_v23 = vld [vmem:[#allocation2 + $0x18] sm:$0xff] }
  0x40   : > { %v822_v30 = vshrl.u32 (!%p1057_p11), %v821_v29, 7 }
  0x41   : > { %730 = vmatpush1.bf16.msra.mxu1 %v1153_v31  ;;  %v819_v31 = vld [vmem:[%s1426_s2] sm:$0x3] (!%p1057_p11) }
  0x42   : > { %773 = vmatpush1.bf16.msra.mxu0 %v1154_v32  ;;  %731 = vmatprep.subr.bf16.mxu1 %v1155_v33  ;;  %v823_v33 = vsub.s32 (!%p1057_p11), 0, %v822_v30 }
  0x43   : > { %774 = vmatprep.subr.bf16.mxu0 %v1157_v34  ;;  %v827_v34 = vsub.s32 (!%p1057_p11), 1, %v822_v30 }
  0x45   : > { %732 = vmatpush1.bf16.msra.mxu1 %v1159_v35 }
  0x46   : > { %775 = vmatpush1.bf16.msra.mxu0 %v1160_v36  ;;  %733 = vmatprep.subr.bf16.mxu1 %v1161_v37 }
  0x47   : > { %776 = vmatprep.subr.bf16.mxu0 %v1163_v38  ;;  %v824_v38 = vrot.slane (!%p1057_p11), %v819_v31, %v823_v33 }
  0x49   : > { %734 = vmatpush1.bf16.msra.mxu1 %v1165_v39  ;;  %v828_v39 = vrot.slane (!%p1057_p11), %v819_v31, %v827_v34 }
  0x4a   : > { %777 = vmatpush1.bf16.msra.mxu0 %v1166_v40  ;;  %735 = vmatprep.subr.bf16.mxu1 %v1167_v41 }
  0x4b   : > { %778 = vmatprep.subr.bf16.mxu0 %v1169_v42 }
  0x4d   : > { %736 = vmatpush1.bf16.msra.mxu1 %v1171_v43 }
  0x4e   : > { %779 = vmatpush1.bf16.msra.mxu0 %v1172_v44  ;;  %737 = vmatprep.subr.bf16.mxu1 %v1173_v45 }
  0x4f   : > { %780 = vmatprep.subr.bf16.mxu0 %v1175_v46 }
  0x51   : > { %738 = vmatpush1.bf16.msra.mxu1 %v1177_v47 }
  0x52   : > { %781 = vmatpush1.bf16.msra.mxu0 %v1178_v48  ;;  %739 = vmatprep.subr.bf16.mxu1 %v1179_v49 }
  0x53   : > { %782 = vmatprep.subr.bf16.mxu0 %v1181_v50 }
  0x55   : > { %740 = vmatpush1.bf16.msra.mxu1 %v1183_v51 }
  0x56   : > { %783 = vmatpush1.bf16.msra.mxu0 %v1184_v53  ;;  %741 = vmatprep.subr.bf16.mxu1 %v1185_v54 }
  0x57   : > { %784 = vmatprep.subr.bf16.mxu0 %v1187_v55 }
  0x59   : > { %742 = vmatpush1.bf16.msra.mxu1 %v1189_v57 }
  0x5a   : > { %785 = vmatpush1.bf16.msra.mxu0 %v1190_v58  ;;  %743 = vmatprep.subr.bf16.mxu1 %v1191_v59 }
  0x5b   : > { %786 = vmatprep.subr.bf16.mxu0 %v1193_v60 }
  0x5d   : > { %744 = vmatpush1.bf16.msra.mxu1 %v1195_v61 }
  0x5e   : > { %787 = vmatpush1.bf16.msra.mxu0 %v1196_v62  ;;  %745 = vmatprep.subr.bf16.mxu1 %v1197_v63 }
  0x5f   : > { %788 = vmatprep.subr.bf16.mxu0 %v1199_v0 }
  0x61   : > { %746 = vmatpush1.bf16.msra.mxu1 %v1201_v1 }
  0x62   : > { %789 = vmatpush1.bf16.msra.mxu0 %v1202_v2  ;;  %747 = vmatprep.subr.bf16.mxu1 %v1203_v3 }
  0x63   : > { %790 = vmatprep.subr.bf16.mxu0 %v1205_v4 }
  0x65   : > { %748 = vmatpush1.bf16.msra.mxu1 %v1207_v5 }
  0x66   : > { %791 = vmatpush1.bf16.msra.mxu0 %v1208_v6 }
  0x68   : > { %750 = vmatmul.mubr.bf16.vlgmr.msra.gmra.mrb[0].mxu1 %v1209_v7 }
  0x69   : > { %793 = vmatmul.mubr.bf16.vlgmr.msra.gmra.mrb[0].mxu0 %v1212_v8 }
 0x13b   : > { %v751_v9 = vpop.f32.mrb[0].mxu1 }
 0x13c   : > { %v794_v11 = vpop.f32.mrb[0].mxu0  ;;  %v753_v13 = vpop.f32.mrb[1].mxu1 }
 0x13d   : > { %v795_v12 = vadd.f32 %v794_v11, %v751_v9  ;;  %v796_v15 = vpop.f32.mrb[1].mxu0  ;;  %v755_v17 = vpop.f32.mrb[2].mxu1 }
 0x13e   : > { %v797_v16 = vadd.f32 %v796_v15, %v753_v13  ;;  %v798_v19 = vpop.f32.mrb[2].mxu0  ;;  %v757_v22 = vpop.f32.mrb[3].mxu1  ;;  %814 = sbr.rel (%p1057_p11) target bundleno = 339 (0x153), region = 63 }
 0x13f   : > { %v803_v20 = vadd.f32 %v795_v12, %v305_v10  ;;  %v799_v21 = vadd.f32 %v798_v19, %v755_v17  ;;  %v800_v24 = vpop.f32.mrb[3].mxu0 }
 0x140   : > { %v804_v25 = vadd.f32 %v797_v16, %v306_v14  ;;  %v801_v26 = vadd.f32 %v800_v24, %v757_v22 }
 0x141   : > { %807 = vst [vmem:[#allocation2] sm:$0xff] %v803_v20  ;;  %v805_v27 = vadd.f32 %v799_v21, %v307_v18 }
 0x142   : > { %808 = vst [vmem:[#allocation2 + $0x8] sm:$0xff] %v804_v25  ;;  %v806_v28 = vadd.f32 %v801_v26, %v308_v23 }
 0x143   : > { %809 = vst [vmem:[#allocation2 + $0x10] sm:$0xff] %v805_v27 }
 0x144   : > { %810 = vst [vmem:[#allocation2 + $0x18] sm:$0xff] %v806_v28 }
 0x148   : > { %v815_v32 = vld [vmem:[#allocation2] sm:$0xff] }
 0x149   : > { %v816_v35 = vld [vmem:[#allocation2 + $0x8] sm:$0xff]  ;;  %v831_v40 = vadd.f32 %v824_v38, %v815_v32 }
 0x14a   : > { %v817_v36 = vld [vmem:[#allocation2 + $0x10] sm:$0xff]  ;;  %v832_v41 = vadd.f32 %v828_v39, %v816_v35 }
 0x14b   : > { %v818_v37 = vld [vmem:[#allocation2 + $0x18] sm:$0xff]  ;;  %v833_v42 = vadd.f32 %v824_v38, %v817_v36  ;;  %v835_v44 = vmax.f32 %v831_v40, 0.0 }
 0x14c   : > { %v834_v43 = vadd.f32 %v828_v39, %v818_v37  ;;  %v836_v45 = vmax.f32 %v832_v41, 0.0 }
 0x14d   : > { %v837_v46 = vmax.f32 %v833_v42, 0.0 }
 0x14e   : > { %v838_v47 = vmax.f32 %v834_v43, 0.0  ;;  %v1066_v48 = vpack.c.bf16 %v836_v45, %v835_v44 }
 0x150   : > { %v1067_v49 = vpack.c.bf16 %v838_v47, %v837_v46  ;;  %851 = vst [vmem:[%s1427_s3] sm:$0xff] %v1066_v48 }
 0x152   : > { %852 = vst [vmem:[%s1427_s3 + $0x8] sm:$0xff] %v1067_v49 }
 0x153 PF: > { %s13_s16 = sadd.s32 1, %s1253_s16   ;;  %s1428_s12 = smov %s1241_s13 }
 0x154   : > { %p10_p12 = scmp.ge.s32.totalorder %s13_s16, 5   ;;  %s1429_s13 = smov %s1311_s20 }
 0x155   : > { %s1430_s14 = smov %s1249_s15  ;;  %s1431_s15 = smov %s1433_s17 }
 0x156   :  { %12 = sbr.rel (!%p10_p12) target bundleno = 3 (0x3), region = 104 }

// kernel: classifier_forward.32
= control target key start
LH: loop header
LB: loop body
LE: loop exit
PB: predicated region body
PF: predicated region fallthrough
CT: control target
= control target key end

     0   :  { %v270_v1 = vmov 0   ;;  %v191_v18 = vlaneseq  ;;  %s351_s1 = inlined_call_operand.vmem [shape: bf16[128,256], index: 1, kind: input, shape index: {}]   ;;  %s352_s0 = inlined_call_operand.vmem [shape: bf16[16,128], index: 0, kind: input, shape index: {}]   ;;  %s353_s2 = inlined_call_operand.vmem [shape: f32[1,256], index: 2, kind: input, shape index: {}]   ;;  %s354_s3 = inlined_call_operand.vmem [shape: bf16[16,256], index: 3, kind: output, shape index: {}]  }
   0x1   :  { %v245_v0 = vld [vmem:[%s351_s1 + $0x4] ss:$8 sps:$4 sm:$0xff]   ;;  %163 = vmatprep.mubr.bf16.mxu0 %v270_v1  ;;  %v247_v2 = vld [vmem:[%s351_s1] ss:$8 sps:$4 sm:$0xff]   ;;  %v248_v3 = vld [vmem:[%s351_s1 + $0x14] ss:$8 sps:$4 sm:$0xff]  }
   0x2   :  { %131 = vmatprep.subr.bf16.mxu0 %v245_v0  ;;  %v250_v4 = vld [vmem:[%s351_s1 + $0x10] ss:$8 sps:$4 sm:$0xff]   ;;  %v251_v5 = vld [vmem:[%s351_s1 + $0x24] ss:$8 sps:$4 sm:$0xff]   ;;  %v253_v6 = vld [vmem:[%s351_s1 + $0x20] ss:$8 sps:$4 sm:$0xff]  }
   0x3   :  { %132 = vmatpush1.bf16.msra.mxu0 %v247_v2  ;;  %v254_v7 = vld [vmem:[%s351_s1 + $0x34] ss:$8 sps:$4 sm:$0xff]   ;;  %v256_v8 = vld [vmem:[%s351_s1 + $0x30] ss:$8 sps:$4 sm:$0xff]   ;;  %v257_v9 = vld [vmem:[%s351_s1 + $0x44] ss:$8 sps:$4 sm:$0xff]  }
   0x4   :  { %133 = vmatprep.subr.bf16.mxu0 %v248_v3  ;;  %v259_v10 = vld [vmem:[%s351_s1 + $0x40] ss:$8 sps:$4 sm:$0xff]   ;;  %v260_v11 = vld [vmem:[%s351_s1 + $0x54] ss:$8 sps:$4 sm:$0xff]   ;;  %v262_v12 = vld [vmem:[%s351_s1 + $0x50] ss:$8 sps:$4 sm:$0xff]  }
   0x5   :  { %v263_v13 = vld [vmem:[%s351_s1 + $0x64] ss:$8 sps:$4 sm:$0xff]   ;;  %v265_v14 = vld [vmem:[%s351_s1 + $0x60] ss:$8 sps:$4 sm:$0xff]   ;;  %v266_v15 = vld [vmem:[%s351_s1 + $0x74] ss:$8 sps:$4 sm:$0xff]  }
   0x6   :  { %v268_v16 = vld [vmem:[%s351_s1 + $0x70] ss:$8 sps:$4 sm:$0xff]   ;;  %v269_v17 = vld [vmem:[%s352_s0] sm:$0xff]   ;;  %v192_v19 = vshrl.u32 %v191_v18, 7 }
   0x7   :  { %134 = vmatpush1.bf16.msra.mxu0 %v250_v4  ;;  %v189_v21 = vld [vmem:[%s353_s2] sm:$0x3] }
   0x8   :  { %135 = vmatprep.subr.bf16.mxu0 %v251_v5  ;;  %v193_v20 = vsub.s32 0, %v192_v19  ;;  %v197_v22 = vsub.s32 1, %v192_v19 }
   0xa   :  { %v194_v23 = vrot.slane %v189_v21, %v193_v20  ;;  %v198_v24 = vrot.slane %v189_v21, %v197_v22 }
   0xb   :  { %136 = vmatpush1.bf16.msra.mxu0 %v253_v6 }
   0xc   :  { %137 = vmatprep.subr.bf16.mxu0 %v254_v7 }
   0xf   :  { %138 = vmatpush1.bf16.msra.mxu0 %v256_v8 }
  0x10   :  { %139 = vmatprep.subr.bf16.mxu0 %v257_v9 }
  0x13   :  { %140 = vmatpush1.bf16.msra.mxu0 %v259_v10 }
  0x14   :  { %141 = vmatprep.subr.bf16.mxu0 %v260_v11 }
  0x17   :  { %142 = vmatpush1.bf16.msra.mxu0 %v262_v12 }
  0x18   :  { %143 = vmatprep.subr.bf16.mxu0 %v263_v13 }
  0x1b   :  { %144 = vmatpush1.bf16.msra.mxu0 %v265_v14 }
  0x1c   :  { %145 = vmatprep.subr.bf16.mxu0 %v266_v15 }
  0x1f   :  { %146 = vmatpush1.bf16.msra.mxu0 %v268_v16 }
  0x22   :  { %164 = vmatmul.mubr.bf16.vlgmr.msra.gmra.mrb[0].mxu0 %v269_v17 }
  0xf5   :  { %v165_v25 = vpop.f32.mrb[0].mxu0 }
  0xf6   :  { %v201_v26 = vadd.f32 %v194_v23, %v165_v25  ;;  %v167_v27 = vpop.f32.mrb[1].mxu0 }
  0xf7   :  { %v202_v28 = vadd.f32 %v198_v24, %v167_v27  ;;  %v169_v29 = vpop.f32.mrb[2].mxu0 }
  0xf8   :  { %v203_v30 = vadd.f32 %v194_v23, %v169_v29  ;;  %v171_v31 = vpop.f32.mrb[3].mxu0 }
  0xf9   :  { %v242_v32 = vpack.c.bf16 %v202_v28, %v201_v26  ;;  %v204_v33 = vadd.f32 %v198_v24, %v171_v31 }
  0xfb   :  { %217 = vst [vmem:[%s354_s3] sm:$0xff] %v242_v32  ;;  %v243_v34 = vpack.c.bf16 %v204_v33, %v203_v30 }
  0xfd   :  { %218 = vst [vmem:[%s354_s3 + $0x8] sm:$0xff] %v243_v34 }

// kernel: classifier_forward.33
= control target key start
LH: loop header
LB: loop body
LE: loop exit
PB: predicated region body
PF: predicated region fallthrough
CT: control target
= control target key end

     0   :  { %s1381_s15 = smov 0   ;;  %s1383_s16 = smov 0   ;;  %s1535_s0 = inlined_call_operand.vmem [shape: bf16[16,2560], index: 0, kind: input, shape index: {}]   ;;  %s1536_s1 = inlined_call_operand.vmem [shape: bf16[2560,256], index: 1, kind: input, shape index: {}]   ;;  %s1537_s2 = inlined_call_operand.vmem [shape: f32[1,256], index: 2, kind: input, shape index: {}]   ;;  %s1538_s3 = inlined_call_operand.vmem [shape: bf16[16,256], index: 3, kind: input, shape index: {}]   ;;  %s1539_s4 = inlined_call_operand.vmem [shape: bf16[16,256], index: 4, kind: output, shape index: {}]  }
   0x1   :  { %s1385_s17 = smov 0   ;;  %s1387_s18 = smov 0  }
   0x2   :  { %s1389_s19 = smov 0  }
   0x3 LB: > { %s26_s20 = sadd.s32 1, %s1349_s18  ;;  %p49_p1 = scmp.ne.s32.totalorder %s1341_s16, %s1337_s15  ;;  %s1353_s19 = sphi %s1389_s19, %s14_s19   ;;  %s1349_s18 = sphi %s1387_s18, %s1543_s18   ;;  %s1345_s17 = sphi %s1385_s17, %s1542_s17   ;;  %s1341_s16 = sphi %s1383_s16, %s1541_s16   ;;  %s1337_s15 = sphi %s1381_s15, %s1540_s15  }
   0x4   : > { %p27_p0 = scmp.ge.s32.totalorder %s26_s20, 5  ;;  %p50_p2 = scmp.eq.s32.totalorder %s1353_s19, 0 }
   0x5   : > { %s42_s22 = sadd.s32 1, %s1341_s16  ;;  %p1079_p5 = scmp.ge.s32.totalorder %s1353_s19, 5 }
   0x6   : > { %s1545_s20 = smov (%p27_p0, %s26_s20), 0  ;;  %p51_p3 = por %p50_p2, %p49_p1 }
   0x7   : > { %s38_s21 = ssub.s32 %s1349_s18, %s1545_s20  ;;  %208 = sbr.rel (%p1079_p5) target bundleno = 21 (0x15), region = 24 }
   0x8   : > { %p40_p4 = scmp.eq.s32.totalorder %s38_s21, 0 }
   0xa   : > { %s1416_s23 = scalar_select %p40_p4, %s1341_s16, %s42_s22  }
   0xe   : > { %211 = sbr.rel (!%p51_p3) target bundleno = 21 (0x15), region = 28  ;;  %s213_s24 = sand.u32 (%p51_p3), 1, %s1341_s16  }
   0xf   : > { %s1164_s25 = sshll.u32 (%p51_p3), %s1349_s18, 4  ;;  %s1080_s26 = sshll.u32 (%p51_p3), %s213_s24, 5 }
  0x10   : > { %s221_s29 = scalar_lea.vmem (%p51_p3), %s1535_s0, %s1164_s25  ;;  %s215_s30 = scalar_lea.vmem (%p51_p3), [#allocation3], %s1080_s26 }
  0x11   : > { %v234_v0 = vld [vmem:[%s221_s29] sm:$0xff] (%p51_p3)  ;;  %v236_v1 = vld [vmem:[%s221_s29 + $0x8] sm:$0xff] (%p51_p3)  ;;  %v238_v2 = vld [vmem:[%s221_s29 + $0x50] sm:$0xff] (%p51_p3) }
  0x12   : > { %235 = vst [vmem:[%s215_s30] sm:$0xff] (%p51_p3), %v234_v0  ;;  %237 = vst [vmem:[%s215_s30 + $0x8] sm:$0xff] (%p51_p3), %v236_v1  ;;  %v240_v3 = vld [vmem:[%s221_s29 + $0x58] sm:$0xff] (%p51_p3) }
  0x13   : > { %239 = vst [vmem:[%s215_s30 + $0x10] sm:$0xff] (%p51_p3), %v238_v2  ;;  %241 = vst [vmem:[%s215_s30 + $0x18] sm:$0xff] (%p51_p3), %v240_v3 }
  0x15 PF: > { %p1083_p6 = scmp.ge.s32.totalorder %s1353_s19, 1  ;;  %p261_p7 = scmp.lt.s32.totalorder %s1353_s19, 6 }
  0x17   : > { %p262_p8 = pnand %p1083_p6, %p261_p7 }
  0x18   : > { %s268_s5 = sand.u32 (!%p262_p8), 1, %s1337_s15   ;;  %s1085_s6 = sshll.u32 (!%p262_p8), %s1345_s17, 6 }
  0x19   : > { %265 = sbr.rel (%p262_p8) target bundleno = 341 (0x155), region = 55  ;;  %s1084_s7 = sshll.u32 (!%p262_p8), %s268_s5, 5 }
  0x1a   : > { %p326_p9 = scmp.lt.s32.totalorder (!%p262_p8), %s1085_s6, 319  ;;  %s1433_s12 = scalar_lea.vmem (!%p262_p8), [#allocation3], %s1084_s7 }
  0x1b   : > { %p1088_p10 = scmp.ne.s32.totalorder (!%p262_p8), %s1345_s17, 0 }
  0x20   : > { %s1547_s6 = smov (!%p326_p9, %s1085_s6), 319  ;;  %368 = sbr.rel (%p1088_p10) target bundleno = 39 (0x27), region = 63 }
  0x21   : > { %s1165_s8 = sshll.u32 %s1547_s6, 3  ;;  %v1355_v4 = vmov (!%p1088_p10), 0.0  }
  0x22   : > { %s1431_s11 = scalar_lea.vmem %s1536_s1, %s1165_s8  ;;  %369 = vst [vmem:[#allocation2] sm:$0xff] (!%p1088_p10), %v1355_v4  ;;  %370 = vst [vmem:[#allocation2 + $0x8] sm:$0xff] (!%p1088_p10), %v1355_v4 }
  0x23   : > { %371 = vst [vmem:[#allocation2 + $0x10] sm:$0xff] (!%p1088_p10), %v1355_v4  ;;  %372 = vst [vmem:[#allocation2 + $0x18] sm:$0xff] (!%p1088_p10), %v1355_v4 }
  0x27 PF: > { %v1213_v5 = vld [vmem:[%s1431_s11 + $0x4] ss:$8 sps:$4 sm:$0xff]   ;;  %v1217_v7 = vld [vmem:[%s1431_s11] ss:$8 sps:$4 sm:$0xff]   ;;  %v1219_v9 = vld [vmem:[%s1431_s11 + $0x14] ss:$8 sps:$4 sm:$0xff]  }
  0x28   : > { %v1215_v6 = vld [vmem:[%s1431_s11 + $0x104] ss:$8 sps:$4 sm:$0xff]   ;;  %785 = vmatprep.subr.bf16.mxu1 %v1213_v5  ;;  %v1218_v8 = vld [vmem:[%s1431_s11 + $0x100] ss:$8 sps:$4 sm:$0xff]   ;;  %v1221_v10 = vld [vmem:[%s1431_s11 + $0x114] ss:$8 sps:$4 sm:$0xff]  }
  0x29   : > { %828 = vmatprep.subr.bf16.mxu0 %v1215_v6  ;;  %786 = vmatpush1.bf16.msra.mxu1 %v1217_v7  ;;  %v1223_v11 = vld [vmem:[%s1431_s11 + $0x10] ss:$8 sps:$4 sm:$0xff]   ;;  %v1225_v13 = vld [vmem:[%s1431_s11 + $0x24] ss:$8 sps:$4 sm:$0xff]   ;;  %v1229_v15 = vld [vmem:[%s1431_s11 + $0x20] ss:$8 sps:$4 sm:$0xff]  }
  0x2a   : > { %829 = vmatpush1.bf16.msra.mxu0 %v1218_v8  ;;  %787 = vmatprep.subr.bf16.mxu1 %v1219_v9  ;;  %v1224_v12 = vld [vmem:[%s1431_s11 + $0x110] ss:$8 sps:$4 sm:$0xff]   ;;  %v1227_v14 = vld [vmem:[%s1431_s11 + $0x124] ss:$8 sps:$4 sm:$0xff]   ;;  %v1230_v16 = vld [vmem:[%s1431_s11 + $0x120] ss:$8 sps:$4 sm:$0xff]  }
  0x2b   : > { %830 = vmatprep.subr.bf16.mxu0 %v1221_v10  ;;  %v1231_v17 = vld [vmem:[%s1431_s11 + $0x34] ss:$8 sps:$4 sm:$0xff]   ;;  %v1235_v19 = vld [vmem:[%s1431_s11 + $0x30] ss:$8 sps:$4 sm:$0xff]   ;;  %v1237_v21 = vld [vmem:[%s1431_s11 + $0x44] ss:$8 sps:$4 sm:$0xff]  }
  0x2c   : > { %v1233_v18 = vld [vmem:[%s1431_s11 + $0x134] ss:$8 sps:$4 sm:$0xff]   ;;  %v1236_v20 = vld [vmem:[%s1431_s11 + $0x130] ss:$8 sps:$4 sm:$0xff]   ;;  %v1239_v22 = vld [vmem:[%s1431_s11 + $0x144] ss:$8 sps:$4 sm:$0xff]  }
  0x2d   : > { %788 = vmatpush1.bf16.msra.mxu1 %v1223_v11  ;;  %v1241_v23 = vld [vmem:[%s1431_s11 + $0x40] ss:$8 sps:$4 sm:$0xff]   ;;  %v1243_v25 = vld [vmem:[%s1431_s11 + $0x54] ss:$8 sps:$4 sm:$0xff]   ;;  %v1247_v27 = vld [vmem:[%s1431_s11 + $0x50] ss:$8 sps:$4 sm:$0xff]  }
  0x2e   : > { %831 = vmatpush1.bf16.msra.mxu0 %v1224_v12  ;;  %789 = vmatprep.subr.bf16.mxu1 %v1225_v13  ;;  %v1242_v24 = vld [vmem:[%s1431_s11 + $0x140] ss:$8 sps:$4 sm:$0xff]   ;;  %v1245_v26 = vld [vmem:[%s1431_s11 + $0x154] ss:$8 sps:$4 sm:$0xff]   ;;  %v1248_v28 = vld [vmem:[%s1431_s11 + $0x150] ss:$8 sps:$4 sm:$0xff]  }
  0x2f   : > { %832 = vmatprep.subr.bf16.mxu0 %v1227_v14  ;;  %v1249_v29 = vld [vmem:[%s1431_s11 + $0x64] ss:$8 sps:$4 sm:$0xff]   ;;  %v1253_v31 = vld [vmem:[%s1431_s11 + $0x60] ss:$8 sps:$4 sm:$0xff]   ;;  %v1255_v33 = vld [vmem:[%s1431_s11 + $0x74] ss:$8 sps:$4 sm:$0xff]  }
  0x30   : > { %v1251_v30 = vld [vmem:[%s1431_s11 + $0x164] ss:$8 sps:$4 sm:$0xff]   ;;  %v1254_v32 = vld [vmem:[%s1431_s11 + $0x160] ss:$8 sps:$4 sm:$0xff]   ;;  %v1257_v34 = vld [vmem:[%s1431_s11 + $0x174] ss:$8 sps:$4 sm:$0xff]  }
  0x31   : > { %790 = vmatpush1.bf16.msra.mxu1 %v1229_v15  ;;  %v1259_v35 = vld [vmem:[%s1431_s11 + $0x70] ss:$8 sps:$4 sm:$0xff]   ;;  %v1261_v37 = vld [vmem:[%s1431_s11 + $0x84] ss:$8 sps:$4 sm:$0xff]   ;;  %v1265_v39 = vld [vmem:[%s1431_s11 + $0x80] ss:$8 sps:$4 sm:$0xff]  }
  0x32   : > { %833 = vmatpush1.bf16.msra.mxu0 %v1230_v16  ;;  %791 = vmatprep.subr.bf16.mxu1 %v1231_v17  ;;  %v1260_v36 = vld [vmem:[%s1431_s11 + $0x170] ss:$8 sps:$4 sm:$0xff]   ;;  %v1263_v38 = vld [vmem:[%s1431_s11 + $0x184] ss:$8 sps:$4 sm:$0xff]   ;;  %v1266_v40 = vld [vmem:[%s1431_s11 + $0x180] ss:$8 sps:$4 sm:$0xff]  }
  0x33   : > { %834 = vmatprep.subr.bf16.mxu0 %v1233_v18  ;;  %v1267_v41 = vld [vmem:[%s1431_s11 + $0x94] ss:$8 sps:$4 sm:$0xff]   ;;  %v1271_v43 = vld [vmem:[%s1431_s11 + $0x90] ss:$8 sps:$4 sm:$0xff]   ;;  %v1273_v45 = vld [vmem:[%s1431_s11 + $0xa4] ss:$8 sps:$4 sm:$0xff]  }
  0x34   : > { %v1269_v42 = vld [vmem:[%s1431_s11 + $0x194] ss:$8 sps:$4 sm:$0xff]   ;;  %v1272_v44 = vld [vmem:[%s1431_s11 + $0x190] ss:$8 sps:$4 sm:$0xff]   ;;  %v1275_v46 = vld [vmem:[%s1431_s11 + $0x1a4] ss:$8 sps:$4 sm:$0xff]  }
  0x35   : > { %792 = vmatpush1.bf16.msra.mxu1 %v1235_v19  ;;  %v1277_v47 = vld [vmem:[%s1431_s11 + $0xa0] ss:$8 sps:$4 sm:$0xff]   ;;  %v1279_v49 = vld [vmem:[%s1431_s11 + $0xb4] ss:$8 sps:$4 sm:$0xff]   ;;  %v1283_v51 = vld [vmem:[%s1431_s11 + $0xb0] ss:$8 sps:$4 sm:$0xff]  }
  0x36   : > { %835 = vmatpush1.bf16.msra.mxu0 %v1236_v20  ;;  %793 = vmatprep.subr.bf16.mxu1 %v1237_v21  ;;  %v1278_v48 = vld [vmem:[%s1431_s11 + $0x1a0] ss:$8 sps:$4 sm:$0xff]   ;;  %v1281_v50 = vld [vmem:[%s1431_s11 + $0x1b4] ss:$8 sps:$4 sm:$0xff]   ;;  %v1284_v53 = vld [vmem:[%s1431_s11 + $0x1b0] ss:$8 sps:$4 sm:$0xff]  }
  0x37   : > { %836 = vmatprep.subr.bf16.mxu0 %v1239_v22  ;;  %v1311_v52 = vld [vmem:[%s1433_s12 + $0x4] ss:$16 sps:$4 sm:$0xff]   ;;  %v1314_v56 = vld [vmem:[%s1433_s12 + $0xc] ss:$16 sps:$4 sm:$0xff]   ;;  %v1289_v57 = vld [vmem:[%s1431_s11 + $0xc0] ss:$8 sps:$4 sm:$0xff]  }
  0x38   : > { %v1285_v54 = vld [vmem:[%s1431_s11 + $0xc4] ss:$8 sps:$4 sm:$0xff]   ;;  %817 = vmatprep.mubr.bf16.mxu1 %v1311_v52  ;;  %860 = vmatprep.mubr.bf16.mxu0 %v1314_v56  ;;  %v1290_v58 = vld [vmem:[%s1431_s11 + $0x1c0] ss:$8 sps:$4 sm:$0xff]   ;;  %v1291_v59 = vld [vmem:[%s1431_s11 + $0xd4] ss:$8 sps:$4 sm:$0xff]  }
  0x39   : > { %794 = vmatpush1.bf16.msra.mxu1 %v1241_v23  ;;  %v1287_v55 = vld [vmem:[%s1431_s11 + $0x1c4] ss:$8 sps:$4 sm:$0xff]   ;;  %v1293_v60 = vld [vmem:[%s1431_s11 + $0x1d4] ss:$8 sps:$4 sm:$0xff]   ;;  %v1295_v61 = vld [vmem:[%s1431_s11 + $0xd0] ss:$8 sps:$4 sm:$0xff]  }
  0x3a   : > { %837 = vmatpush1.bf16.msra.mxu0 %v1242_v24  ;;  %795 = vmatprep.subr.bf16.mxu1 %v1243_v25  ;;  %v1296_v62 = vld [vmem:[%s1431_s11 + $0x1d0] ss:$8 sps:$4 sm:$0xff]   ;;  %v1297_v63 = vld [vmem:[%s1431_s11 + $0xe4] ss:$8 sps:$4 sm:$0xff]   ;;  %v1301_v1 = vld [vmem:[%s1431_s11 + $0xe0] ss:$8 sps:$4 sm:$0xff]  }
  0x3b   : > { %838 = vmatprep.subr.bf16.mxu0 %v1245_v26  ;;  %v1299_v0 = vld [vmem:[%s1431_s11 + $0x1e4] ss:$8 sps:$4 sm:$0xff]   ;;  %v1302_v2 = vld [vmem:[%s1431_s11 + $0x1e0] ss:$8 sps:$4 sm:$0xff]   ;;  %v1303_v3 = vld [vmem:[%s1431_s11 + $0xf4] ss:$8 sps:$4 sm:$0xff]  }
  0x3c   : > { %v1305_v4 = vld [vmem:[%s1431_s11 + $0x1f4] ss:$8 sps:$4 sm:$0xff]   ;;  %v1307_v5 = vld [vmem:[%s1431_s11 + $0xf0] ss:$8 sps:$4 sm:$0xff]   ;;  %v373_v10 = vld [vmem:[#allocation2] sm:$0xff]  ;;  %p1157_p11 = scmp.ne.s32.totalorder %s1345_s17, 4 }
  0x3d   : > { %796 = vmatpush1.bf16.msra.mxu1 %v1247_v27  ;;  %v1308_v6 = vld [vmem:[%s1431_s11 + $0x1f0] ss:$8 sps:$4 sm:$0xff]   ;;  %v374_v14 = vld [vmem:[#allocation2 + $0x8] sm:$0xff] }
  0x3e   : > { %839 = vmatpush1.bf16.msra.mxu0 %v1248_v28  ;;  %797 = vmatprep.subr.bf16.mxu1 %v1249_v29  ;;  %v1309_v7 = vld [vmem:[%s1433_s12] ss:$16 sps:$4 sm:$0xff]   ;;  %v1312_v8 = vld [vmem:[%s1433_s12 + $0x8] ss:$16 sps:$4 sm:$0xff]   ;;  %v889_v29 = vlaneseq (!%p1157_p11) }
  0x3f   : > { %840 = vmatprep.subr.bf16.mxu0 %v1251_v30  ;;  %v375_v18 = vld [vmem:[#allocation2 + $0x10] sm:$0xff]  ;;  %v376_v23 = vld [vmem:[#allocation2 + $0x18] sm:$0xff] }
  0x40   : > { %v890_v30 = vshrl.u32 (!%p1157_p11), %v889_v29, 7 }
  0x41   : > { %798 = vmatpush1.bf16.msra.mxu1 %v1253_v31  ;;  %v903_v31 = vld [vmem:[%s1538_s3] sm:$0xff] (!%p1157_p11) }
  0x42   : > { %841 = vmatpush1.bf16.msra.mxu0 %v1254_v32  ;;  %799 = vmatprep.subr.bf16.mxu1 %v1255_v33  ;;  %v887_v32 = vld [vmem:[%s1537_s2] sm:$0x3] (!%p1157_p11)  ;;  %v904_v33 = vld [vmem:[%s1538_s3 + $0x8] sm:$0xff] (!%p1157_p11) }
  0x43   : > { %842 = vmatprep.subr.bf16.mxu0 %v1257_v34 }
  0x45   : > { %800 = vmatpush1.bf16.msra.mxu1 %v1259_v35  ;;  %v891_v35 = vsub.s32 (!%p1157_p11), 0, %v890_v30 }
  0x46   : > { %843 = vmatpush1.bf16.msra.mxu0 %v1260_v36  ;;  %801 = vmatprep.subr.bf16.mxu1 %v1261_v37  ;;  %v895_v36 = vsub.s32 (!%p1157_p11), 1, %v890_v30 }
  0x47   : > { %844 = vmatprep.subr.bf16.mxu0 %v1263_v38  ;;  %v905_v38 = vunpack.c.l.bf16 (!%p1157_p11), %v903_v31 }
  0x49   : > { %802 = vmatpush1.bf16.msra.mxu1 %v1265_v39  ;;  %v906_v39 = vunpack.c.h.bf16 (!%p1157_p11), %v903_v31 }
  0x4a   : > { %845 = vmatpush1.bf16.msra.mxu0 %v1266_v40  ;;  %803 = vmatprep.subr.bf16.mxu1 %v1267_v41 }
  0x4b   : > { %846 = vmatprep.subr.bf16.mxu0 %v1269_v42  ;;  %v892_v42 = vrot.slane (!%p1157_p11), %v887_v32, %v891_v35 }
  0x4d   : > { %804 = vmatpush1.bf16.msra.mxu1 %v1271_v43  ;;  %v896_v43 = vrot.slane (!%p1157_p11), %v887_v32, %v895_v36 }
  0x4e   : > { %847 = vmatpush1.bf16.msra.mxu0 %v1272_v44  ;;  %805 = vmatprep.subr.bf16.mxu1 %v1273_v45  ;;  %v907_v44 = vunpack.c.l.bf16 (!%p1157_p11), %v904_v33  ;;  %v908_v45 = vunpack.c.h.bf16 (!%p1157_p11), %v904_v33 }
  0x4f   : > { %848 = vmatprep.subr.bf16.mxu0 %v1275_v46 }
  0x51   : > { %806 = vmatpush1.bf16.msra.mxu1 %v1277_v47 }
  0x52   : > { %849 = vmatpush1.bf16.msra.mxu0 %v1278_v48  ;;  %807 = vmatprep.subr.bf16.mxu1 %v1279_v49 }
  0x53   : > { %850 = vmatprep.subr.bf16.mxu0 %v1281_v50 }
  0x55   : > { %808 = vmatpush1.bf16.msra.mxu1 %v1283_v51 }
  0x56   : > { %851 = vmatpush1.bf16.msra.mxu0 %v1284_v53  ;;  %809 = vmatprep.subr.bf16.mxu1 %v1285_v54 }
  0x57   : > { %852 = vmatprep.subr.bf16.mxu0 %v1287_v55 }
  0x59   : > { %810 = vmatpush1.bf16.msra.mxu1 %v1289_v57 }
  0x5a   : > { %853 = vmatpush1.bf16.msra.mxu0 %v1290_v58  ;;  %811 = vmatprep.subr.bf16.mxu1 %v1291_v59 }
  0x5b   : > { %854 = vmatprep.subr.bf16.mxu0 %v1293_v60 }
  0x5d   : > { %812 = vmatpush1.bf16.msra.mxu1 %v1295_v61 }
  0x5e   : > { %855 = vmatpush1.bf16.msra.mxu0 %v1296_v62  ;;  %813 = vmatprep.subr.bf16.mxu1 %v1297_v63 }
  0x5f   : > { %856 = vmatprep.subr.bf16.mxu0 %v1299_v0 }
  0x61   : > { %814 = vmatpush1.bf16.msra.mxu1 %v1301_v1 }
  0x62   : > { %857 = vmatpush1.bf16.msra.mxu0 %v1302_v2  ;;  %815 = vmatprep.subr.bf16.mxu1 %v1303_v3 }
  0x63   : > { %858 = vmatprep.subr.bf16.mxu0 %v1305_v4 }
  0x65   : > { %816 = vmatpush1.bf16.msra.mxu1 %v1307_v5 }
  0x66   : > { %859 = vmatpush1.bf16.msra.mxu0 %v1308_v6 }
  0x68   : > { %818 = vmatmul.mubr.bf16.vlgmr.msra.gmra.mrb[0].mxu1 %v1309_v7 }
  0x69   : > { %861 = vmatmul.mubr.bf16.vlgmr.msra.gmra.mrb[0].mxu0 %v1312_v8 }
 0x13b   : > { %v819_v9 = vpop.f32.mrb[0].mxu1 }
 0x13c   : > { %v862_v11 = vpop.f32.mrb[0].mxu0  ;;  %v821_v13 = vpop.f32.mrb[1].mxu1 }
 0x13d   : > { %v863_v12 = vadd.f32 %v862_v11, %v819_v9  ;;  %v864_v15 = vpop.f32.mrb[1].mxu0  ;;  %v823_v17 = vpop.f32.mrb[2].mxu1 }
 0x13e   : > { %v865_v16 = vadd.f32 %v864_v15, %v821_v13  ;;  %v866_v19 = vpop.f32.mrb[2].mxu0  ;;  %v825_v22 = vpop.f32.mrb[3].mxu1  ;;  %882 = sbr.rel (%p1157_p11) target bundleno = 341 (0x155), region = 67 }
 0x13f   : > { %v871_v20 = vadd.f32 %v863_v12, %v373_v10  ;;  %v867_v21 = vadd.f32 %v866_v19, %v823_v17  ;;  %v868_v24 = vpop.f32.mrb[3].mxu0 }
 0x140   : > { %v872_v25 = vadd.f32 %v865_v16, %v374_v14  ;;  %v869_v26 = vadd.f32 %v868_v24, %v825_v22 }
 0x141   : > { %875 = vst [vmem:[#allocation2] sm:$0xff] %v871_v20  ;;  %v873_v27 = vadd.f32 %v867_v21, %v375_v18 }
 0x142   : > { %876 = vst [vmem:[#allocation2 + $0x8] sm:$0xff] %v872_v25  ;;  %v874_v28 = vadd.f32 %v869_v26, %v376_v23 }
 0x143   : > { %877 = vst [vmem:[#allocation2 + $0x10] sm:$0xff] %v873_v27 }
 0x144   : > { %878 = vst [vmem:[#allocation2 + $0x18] sm:$0xff] %v874_v28 }
 0x148   : > { %v883_v34 = vld [vmem:[#allocation2] sm:$0xff] }
 0x149   : > { %v884_v37 = vld [vmem:[#allocation2 + $0x8] sm:$0xff]  ;;  %v899_v46 = vadd.f32 %v892_v42, %v883_v34 }
 0x14a   : > { %v885_v40 = vld [vmem:[#allocation2 + $0x10] sm:$0xff]  ;;  %v900_v47 = vadd.f32 %v896_v43, %v884_v37 }
 0x14b   : > { %v886_v41 = vld [vmem:[#allocation2 + $0x18] sm:$0xff]  ;;  %v901_v48 = vadd.f32 %v892_v42, %v885_v40  ;;  %v909_v50 = vadd.f32 %v905_v38, %v899_v46 }
 0x14c   : > { %v902_v49 = vadd.f32 %v896_v43, %v886_v41  ;;  %v910_v51 = vadd.f32 %v906_v39, %v900_v47 }
 0x14d   : > { %v911_v52 = vadd.f32 %v907_v44, %v901_v48  ;;  %v913_v54 = vmax.f32 %v909_v50, 0.0 }
 0x14e   : > { %v912_v53 = vadd.f32 %v908_v45, %v902_v49  ;;  %v914_v55 = vmax.f32 %v910_v51, 0.0 }
 0x14f   : > { %v915_v56 = vmax.f32 %v911_v52, 0.0 }
 0x150   : > { %v916_v57 = vmax.f32 %v912_v53, 0.0  ;;  %v1166_v58 = vpack.c.bf16 %v914_v55, %v913_v54 }
 0x152   : > { %v1167_v59 = vpack.c.bf16 %v916_v57, %v915_v56  ;;  %929 = vst [vmem:[%s1539_s4] sm:$0xff] %v1166_v58 }
 0x154   : > { %930 = vst [vmem:[%s1539_s4 + $0x8] sm:$0xff] %v1167_v59 }
 0x155 PF: > { %s14_s19 = sadd.s32 1, %s1353_s19   ;;  %s1540_s15 = smov %s1341_s16 }
 0x156   : > { %p11_p12 = scmp.ge.s32.totalorder %s14_s19, 7   ;;  %s1541_s16 = smov %s1416_s23 }
 0x157   : > { %s1542_s17 = smov %s1349_s18  ;;  %s1543_s18 = smov %s1545_s20 }
 0x158   :  { %13 = sbr.rel (!%p11_p12) target bundleno = 3 (0x3), region = 111 }

// kernel: classifier_forward.34
= control target key start
LH: loop header
LB: loop body
LE: loop exit
PB: predicated region body
PF: predicated region fallthrough
CT: control target
= control target key end

     0   :  { %s1276_s12 = smov 0   ;;  %s1278_s13 = smov 0   ;;  %s1424_s0 = inlined_call_operand.vmem [shape: bf16[16,2560], index: 0, kind: input, shape index: {}]   ;;  %s1425_s1 = inlined_call_operand.vmem [shape: bf16[2560,256], index: 1, kind: input, shape index: {}]   ;;  %s1426_s2 = inlined_call_operand.vmem [shape: f32[1,256], index: 2, kind: input, shape index: {}]   ;;  %s1427_s3 = inlined_call_operand.vmem [shape: bf16[16,256], index: 3, kind: output, shape index: {}]  }
   0x1   :  { %s1280_s14 = smov 0   ;;  %s1282_s15 = smov 0  }
   0x2   :  { %s1284_s16 = smov 0  }
   0x3 LB: > { %s25_s17 = sadd.s32 1, %s1249_s15  ;;  %p48_p1 = scmp.ne.s32.totalorder %s1241_s13, %s1237_s12  ;;  %s1253_s16 = sphi %s1284_s16, %s13_s16   ;;  %s1249_s15 = sphi %s1282_s15, %s1431_s15   ;;  %s1245_s14 = sphi %s1280_s14, %s1430_s14   ;;  %s1241_s13 = sphi %s1278_s13, %s1429_s13   ;;  %s1237_s12 = sphi %s1276_s12, %s1428_s12  }
   0x4   : > { %p26_p0 = scmp.ge.s32.totalorder %s25_s17, 5  ;;  %p49_p2 = scmp.eq.s32.totalorder %s1253_s16, 0 }
   0x5   : > { %s41_s19 = sadd.s32 1, %s1241_s13  ;;  %p979_p5 = scmp.ge.s32.totalorder %s1253_s16, 5 }
   0x6   : > { %s1433_s17 = smov (%p26_p0, %s25_s17), 0  ;;  %p50_p3 = por %p49_p2, %p48_p1 }
   0x7   : > { %s37_s18 = ssub.s32 %s1249_s15, %s1433_s17  ;;  %164 = sbr.rel (%p979_p5) target bundleno = 21 (0x15), region = 20 }
   0x8   : > { %p39_p4 = scmp.eq.s32.totalorder %s37_s18, 0 }
   0xa   : > { %s1311_s20 = scalar_select %p39_p4, %s1241_s13, %s41_s19  }
   0xe   : > { %167 = sbr.rel (!%p50_p3) target bundleno = 21 (0x15), region = 24  ;;  %s169_s21 = sand.u32 (%p50_p3), 1, %s1241_s13  }
   0xf   : > { %s1064_s22 = sshll.u32 (%p50_p3), %s1249_s15, 4  ;;  %s980_s23 = sshll.u32 (%p50_p3), %s169_s21, 5 }
  0x10   : > { %s177_s26 = scalar_lea.vmem (%p50_p3), %s1424_s0, %s1064_s22  ;;  %s171_s27 = scalar_lea.vmem (%p50_p3), [#allocation3], %s980_s23 }
  0x11   : > { %v190_v0 = vld [vmem:[%s177_s26] sm:$0xff] (%p50_p3)  ;;  %v192_v1 = vld [vmem:[%s177_s26 + $0x8] sm:$0xff] (%p50_p3)  ;;  %v194_v2 = vld [vmem:[%s177_s26 + $0x50] sm:$0xff] (%p50_p3) }
  0x12   : > { %191 = vst [vmem:[%s171_s27] sm:$0xff] (%p50_p3), %v190_v0  ;;  %193 = vst [vmem:[%s171_s27 + $0x8] sm:$0xff] (%p50_p3), %v192_v1  ;;  %v196_v3 = vld [vmem:[%s177_s26 + $0x58] sm:$0xff] (%p50_p3) }
  0x13   : > { %195 = vst [vmem:[%s171_s27 + $0x10] sm:$0xff] (%p50_p3), %v194_v2  ;;  %197 = vst [vmem:[%s171_s27 + $0x18] sm:$0xff] (%p50_p3), %v196_v3 }
  0x15 PF: > { %p983_p6 = scmp.ge.s32.totalorder %s1253_s16, 1  ;;  %p217_p7 = scmp.lt.s32.totalorder %s1253_s16, 6 }
  0x17   : > { %p218_p8 = pnand %p983_p6, %p217_p7 }
  0x18   : > { %s224_s28 = sand.u32 (!%p218_p8), 1, %s1237_s12   ;;  %s985_s29 = sshll.u32 (!%p218_p8), %s1245_s14, 6 }
  0x19   : > { %221 = sbr.rel (%p218_p8) target bundleno = 339 (0x153), region = 51  ;;  %s984_s30 = sshll.u32 (!%p218_p8), %s224_s28, 5 }
  0x1a   : > { %p270_p9 = scmp.lt.s32.totalorder (!%p218_p8), %s985_s29, 319  ;;  %s1328_s8 = scalar_lea.vmem (!%p218_p8), [#allocation3], %s984_s30 }
  0x1b   : > { %p988_p10 = scmp.ne.s32.totalorder (!%p218_p8), %s1245_s14, 0 }
  0x20   : > { %s1435_s29 = smov (!%p270_p9, %s985_s29), 319  ;;  %300 = sbr.rel (%p988_p10) target bundleno = 39 (0x27), region = 59 }
  0x21   : > { %s1065_s4 = sshll.u32 %s1435_s29, 3  ;;  %v1255_v4 = vmov (!%p988_p10), 0.0  }
  0x22   : > { %s1326_s7 = scalar_lea.vmem %s1425_s1, %s1065_s4  ;;  %301 = vst [vmem:[#allocation2] sm:$0xff] (!%p988_p10), %v1255_v4  ;;  %302 = vst [vmem:[#allocation2 + $0x8] sm:$0xff] (!%p988_p10), %v1255_v4 }
  0x23   : > { %303 = vst [vmem:[#allocation2 + $0x10] sm:$0xff] (!%p988_p10), %v1255_v4  ;;  %304 = vst [vmem:[#allocation2 + $0x18] sm:$0xff] (!%p988_p10), %v1255_v4 }
  0x27 PF: > { %v1113_v5 = vld [vmem:[%s1326_s7 + $0x4] ss:$8 sps:$4 sm:$0xff]   ;;  %v1117_v7 = vld [vmem:[%s1326_s7] ss:$8 sps:$4 sm:$0xff]   ;;  %v1119_v9 = vld [vmem:[%s1326_s7 + $0x14] ss:$8 sps:$4 sm:$0xff]  }
  0x28   : > { %v1115_v6 = vld [vmem:[%s1326_s7 + $0x104] ss:$8 sps:$4 sm:$0xff]   ;;  %717 = vmatprep.subr.bf16.mxu1 %v1113_v5  ;;  %v1118_v8 = vld [vmem:[%s1326_s7 + $0x100] ss:$8 sps:$4 sm:$0xff]   ;;  %v1121_v10 = vld [vmem:[%s1326_s7 + $0x114] ss:$8 sps:$4 sm:$0xff]  }
  0x29   : > { %760 = vmatprep.subr.bf16.mxu0 %v1115_v6  ;;  %718 = vmatpush1.bf16.msra.mxu1 %v1117_v7  ;;  %v1123_v11 = vld [vmem:[%s1326_s7 + $0x10] ss:$8 sps:$4 sm:$0xff]   ;;  %v1125_v13 = vld [vmem:[%s1326_s7 + $0x24] ss:$8 sps:$4 sm:$0xff]   ;;  %v1129_v15 = vld [vmem:[%s1326_s7 + $0x20] ss:$8 sps:$4 sm:$0xff]  }
  0x2a   : > { %761 = vmatpush1.bf16.msra.mxu0 %v1118_v8  ;;  %719 = vmatprep.subr.bf16.mxu1 %v1119_v9  ;;  %v1124_v12 = vld [vmem:[%s1326_s7 + $0x110] ss:$8 sps:$4 sm:$0xff]   ;;  %v1127_v14 = vld [vmem:[%s1326_s7 + $0x124] ss:$8 sps:$4 sm:$0xff]   ;;  %v1130_v16 = vld [vmem:[%s1326_s7 + $0x120] ss:$8 sps:$4 sm:$0xff]  }
  0x2b   : > { %762 = vmatprep.subr.bf16.mxu0 %v1121_v10  ;;  %v1131_v17 = vld [vmem:[%s1326_s7 + $0x34] ss:$8 sps:$4 sm:$0xff]   ;;  %v1135_v19 = vld [vmem:[%s1326_s7 + $0x30] ss:$8 sps:$4 sm:$0xff]   ;;  %v1137_v21 = vld [vmem:[%s1326_s7 + $0x44] ss:$8 sps:$4 sm:$0xff]  }
  0x2c   : > { %v1133_v18 = vld [vmem:[%s1326_s7 + $0x134] ss:$8 sps:$4 sm:$0xff]   ;;  %v1136_v20 = vld [vmem:[%s1326_s7 + $0x130] ss:$8 sps:$4 sm:$0xff]   ;;  %v1139_v22 = vld [vmem:[%s1326_s7 + $0x144] ss:$8 sps:$4 sm:$0xff]  }
  0x2d   : > { %720 = vmatpush1.bf16.msra.mxu1 %v1123_v11  ;;  %v1141_v23 = vld [vmem:[%s1326_s7 + $0x40] ss:$8 sps:$4 sm:$0xff]   ;;  %v1143_v25 = vld [vmem:[%s1326_s7 + $0x54] ss:$8 sps:$4 sm:$0xff]   ;;  %v1147_v27 = vld [vmem:[%s1326_s7 + $0x50] ss:$8 sps:$4 sm:$0xff]  }
  0x2e   : > { %763 = vmatpush1.bf16.msra.mxu0 %v1124_v12  ;;  %721 = vmatprep.subr.bf16.mxu1 %v1125_v13  ;;  %v1142_v24 = vld [vmem:[%s1326_s7 + $0x140] ss:$8 sps:$4 sm:$0xff]   ;;  %v1145_v26 = vld [vmem:[%s1326_s7 + $0x154] ss:$8 sps:$4 sm:$0xff]   ;;  %v1148_v28 = vld [vmem:[%s1326_s7 + $0x150] ss:$8 sps:$4 sm:$0xff]  }
  0x2f   : > { %764 = vmatprep.subr.bf16.mxu0 %v1127_v14  ;;  %v1149_v29 = vld [vmem:[%s1326_s7 + $0x64] ss:$8 sps:$4 sm:$0xff]   ;;  %v1153_v31 = vld [vmem:[%s1326_s7 + $0x60] ss:$8 sps:$4 sm:$0xff]   ;;  %v1155_v33 = vld [vmem:[%s1326_s7 + $0x74] ss:$8 sps:$4 sm:$0xff]  }
  0x30   : > { %v1151_v30 = vld [vmem:[%s1326_s7 + $0x164] ss:$8 sps:$4 sm:$0xff]   ;;  %v1154_v32 = vld [vmem:[%s1326_s7 + $0x160] ss:$8 sps:$4 sm:$0xff]   ;;  %v1157_v34 = vld [vmem:[%s1326_s7 + $0x174] ss:$8 sps:$4 sm:$0xff]  }
  0x31   : > { %722 = vmatpush1.bf16.msra.mxu1 %v1129_v15  ;;  %v1159_v35 = vld [vmem:[%s1326_s7 + $0x70] ss:$8 sps:$4 sm:$0xff]   ;;  %v1161_v37 = vld [vmem:[%s1326_s7 + $0x84] ss:$8 sps:$4 sm:$0xff]   ;;  %v1165_v39 = vld [vmem:[%s1326_s7 + $0x80] ss:$8 sps:$4 sm:$0xff]  }
  0x32   : > { %765 = vmatpush1.bf16.msra.mxu0 %v1130_v16  ;;  %723 = vmatprep.subr.bf16.mxu1 %v1131_v17  ;;  %v1160_v36 = vld [vmem:[%s1326_s7 + $0x170] ss:$8 sps:$4 sm:$0xff]   ;;  %v1163_v38 = vld [vmem:[%s1326_s7 + $0x184] ss:$8 sps:$4 sm:$0xff]   ;;  %v1166_v40 = vld [vmem:[%s1326_s7 + $0x180] ss:$8 sps:$4 sm:$0xff]  }
  0x33   : > { %766 = vmatprep.subr.bf16.mxu0 %v1133_v18  ;;  %v1167_v41 = vld [vmem:[%s1326_s7 + $0x94] ss:$8 sps:$4 sm:$0xff]   ;;  %v1171_v43 = vld [vmem:[%s1326_s7 + $0x90] ss:$8 sps:$4 sm:$0xff]   ;;  %v1173_v45 = vld [vmem:[%s1326_s7 + $0xa4] ss:$8 sps:$4 sm:$0xff]  }
  0x34   : > { %v1169_v42 = vld [vmem:[%s1326_s7 + $0x194] ss:$8 sps:$4 sm:$0xff]   ;;  %v1172_v44 = vld [vmem:[%s1326_s7 + $0x190] ss:$8 sps:$4 sm:$0xff]   ;;  %v1175_v46 = vld [vmem:[%s1326_s7 + $0x1a4] ss:$8 sps:$4 sm:$0xff]  }
  0x35   : > { %724 = vmatpush1.bf16.msra.mxu1 %v1135_v19  ;;  %v1177_v47 = vld [vmem:[%s1326_s7 + $0xa0] ss:$8 sps:$4 sm:$0xff]   ;;  %v1179_v49 = vld [vmem:[%s1326_s7 + $0xb4] ss:$8 sps:$4 sm:$0xff]   ;;  %v1183_v51 = vld [vmem:[%s1326_s7 + $0xb0] ss:$8 sps:$4 sm:$0xff]  }
  0x36   : > { %767 = vmatpush1.bf16.msra.mxu0 %v1136_v20  ;;  %725 = vmatprep.subr.bf16.mxu1 %v1137_v21  ;;  %v1178_v48 = vld [vmem:[%s1326_s7 + $0x1a0] ss:$8 sps:$4 sm:$0xff]   ;;  %v1181_v50 = vld [vmem:[%s1326_s7 + $0x1b4] ss:$8 sps:$4 sm:$0xff]   ;;  %v1184_v53 = vld [vmem:[%s1326_s7 + $0x1b0] ss:$8 sps:$4 sm:$0xff]  }
  0x37   : > { %768 = vmatprep.subr.bf16.mxu0 %v1139_v22  ;;  %v1211_v52 = vld [vmem:[%s1328_s8 + $0x4] ss:$16 sps:$4 sm:$0xff]   ;;  %v1214_v56 = vld [vmem:[%s1328_s8 + $0xc] ss:$16 sps:$4 sm:$0xff]   ;;  %v1189_v57 = vld [vmem:[%s1326_s7 + $0xc0] ss:$8 sps:$4 sm:$0xff]  }
  0x38   : > { %v1185_v54 = vld [vmem:[%s1326_s7 + $0xc4] ss:$8 sps:$4 sm:$0xff]   ;;  %749 = vmatprep.mubr.bf16.mxu1 %v1211_v52  ;;  %792 = vmatprep.mubr.bf16.mxu0 %v1214_v56  ;;  %v1190_v58 = vld [vmem:[%s1326_s7 + $0x1c0] ss:$8 sps:$4 sm:$0xff]   ;;  %v1191_v59 = vld [vmem:[%s1326_s7 + $0xd4] ss:$8 sps:$4 sm:$0xff]  }
  0x39   : > { %726 = vmatpush1.bf16.msra.mxu1 %v1141_v23  ;;  %v1187_v55 = vld [vmem:[%s1326_s7 + $0x1c4] ss:$8 sps:$4 sm:$0xff]   ;;  %v1193_v60 = vld [vmem:[%s1326_s7 + $0x1d4] ss:$8 sps:$4 sm:$0xff]   ;;  %v1195_v61 = vld [vmem:[%s1326_s7 + $0xd0] ss:$8 sps:$4 sm:$0xff]  }
  0x3a   : > { %769 = vmatpush1.bf16.msra.mxu0 %v1142_v24  ;;  %727 = vmatprep.subr.bf16.mxu1 %v1143_v25  ;;  %v1196_v62 = vld [vmem:[%s1326_s7 + $0x1d0] ss:$8 sps:$4 sm:$0xff]   ;;  %v1197_v63 = vld [vmem:[%s1326_s7 + $0xe4] ss:$8 sps:$4 sm:$0xff]   ;;  %v1201_v1 = vld [vmem:[%s1326_s7 + $0xe0] ss:$8 sps:$4 sm:$0xff]  }
  0x3b   : > { %770 = vmatprep.subr.bf16.mxu0 %v1145_v26  ;;  %v1199_v0 = vld [vmem:[%s1326_s7 + $0x1e4] ss:$8 sps:$4 sm:$0xff]   ;;  %v1202_v2 = vld [vmem:[%s1326_s7 + $0x1e0] ss:$8 sps:$4 sm:$0xff]   ;;  %v1203_v3 = vld [vmem:[%s1326_s7 + $0xf4] ss:$8 sps:$4 sm:$0xff]  }
  0x3c   : > { %v1205_v4 = vld [vmem:[%s1326_s7 + $0x1f4] ss:$8 sps:$4 sm:$0xff]   ;;  %v1207_v5 = vld [vmem:[%s1326_s7 + $0xf0] ss:$8 sps:$4 sm:$0xff]   ;;  %v305_v10 = vld [vmem:[#allocation2] sm:$0xff]  ;;  %p1057_p11 = scmp.ne.s32.totalorder %s1245_s14, 4 }
  0x3d   : > { %728 = vmatpush1.bf16.msra.mxu1 %v1147_v27  ;;  %v1208_v6 = vld [vmem:[%s1326_s7 + $0x1f0] ss:$8 sps:$4 sm:$0xff]   ;;  %v306_v14 = vld [vmem:[#allocation2 + $0x8] sm:$0xff] }
  0x3e   : > { %771 = vmatpush1.bf16.msra.mxu0 %v1148_v28  ;;  %729 = vmatprep.subr.bf16.mxu1 %v1149_v29  ;;  %v1209_v7 = vld [vmem:[%s1328_s8] ss:$16 sps:$4 sm:$0xff]   ;;  %v1212_v8 = vld [vmem:[%s1328_s8 + $0x8] ss:$16 sps:$4 sm:$0xff]   ;;  %v821_v29 = vlaneseq (!%p1057_p11) }
  0x3f   : > { %772 = vmatprep.subr.bf16.mxu0 %v1151_v30  ;;  %v307_v18 = vld [vmem:[#allocation2 + $0x10] sm:$0xff]  ;;  %v308_v23 = vld [vmem:[#allocation2 + $0x18] sm:$0xff] }
  0x40   : > { %v822_v30 = vshrl.u32 (!%p1057_p11), %v821_v29, 7 }
  0x41   : > { %730 = vmatpush1.bf16.msra.mxu1 %v1153_v31  ;;  %v819_v31 = vld [vmem:[%s1426_s2] sm:$0x3] (!%p1057_p11) }
  0x42   : > { %773 = vmatpush1.bf16.msra.mxu0 %v1154_v32  ;;  %731 = vmatprep.subr.bf16.mxu1 %v1155_v33  ;;  %v823_v33 = vsub.s32 (!%p1057_p11), 0, %v822_v30 }
  0x43   : > { %774 = vmatprep.subr.bf16.mxu0 %v1157_v34  ;;  %v827_v34 = vsub.s32 (!%p1057_p11), 1, %v822_v30 }
  0x45   : > { %732 = vmatpush1.bf16.msra.mxu1 %v1159_v35 }
  0x46   : > { %775 = vmatpush1.bf16.msra.mxu0 %v1160_v36  ;;  %733 = vmatprep.subr.bf16.mxu1 %v1161_v37 }
  0x47   : > { %776 = vmatprep.subr.bf16.mxu0 %v1163_v38  ;;  %v824_v38 = vrot.slane (!%p1057_p11), %v819_v31, %v823_v33 }
  0x49   : > { %734 = vmatpush1.bf16.msra.mxu1 %v1165_v39  ;;  %v828_v39 = vrot.slane (!%p1057_p11), %v819_v31, %v827_v34 }
  0x4a   : > { %777 = vmatpush1.bf16.msra.mxu0 %v1166_v40  ;;  %735 = vmatprep.subr.bf16.mxu1 %v1167_v41 }
  0x4b   : > { %778 = vmatprep.subr.bf16.mxu0 %v1169_v42 }
  0x4d   : > { %736 = vmatpush1.bf16.msra.mxu1 %v1171_v43 }
  0x4e   : > { %779 = vmatpush1.bf16.msra.mxu0 %v1172_v44  ;;  %737 = vmatprep.subr.bf16.mxu1 %v1173_v45 }
  0x4f   : > { %780 = vmatprep.subr.bf16.mxu0 %v1175_v46 }
  0x51   : > { %738 = vmatpush1.bf16.msra.mxu1 %v1177_v47 }
  0x52   : > { %781 = vmatpush1.bf16.msra.mxu0 %v1178_v48  ;;  %739 = vmatprep.subr.bf16.mxu1 %v1179_v49 }
  0x53   : > { %782 = vmatprep.subr.bf16.mxu0 %v1181_v50 }
  0x55   : > { %740 = vmatpush1.bf16.msra.mxu1 %v1183_v51 }
  0x56   : > { %783 = vmatpush1.bf16.msra.mxu0 %v1184_v53  ;;  %741 = vmatprep.subr.bf16.mxu1 %v1185_v54 }
  0x57   : > { %784 = vmatprep.subr.bf16.mxu0 %v1187_v55 }
  0x59   : > { %742 = vmatpush1.bf16.msra.mxu1 %v1189_v57 }
  0x5a   : > { %785 = vmatpush1.bf16.msra.mxu0 %v1190_v58  ;;  %743 = vmatprep.subr.bf16.mxu1 %v1191_v59 }
  0x5b   : > { %786 = vmatprep.subr.bf16.mxu0 %v1193_v60 }
  0x5d   : > { %744 = vmatpush1.bf16.msra.mxu1 %v1195_v61 }
  0x5e   : > { %787 = vmatpush1.bf16.msra.mxu0 %v1196_v62  ;;  %745 = vmatprep.subr.bf16.mxu1 %v1197_v63 }
  0x5f   : > { %788 = vmatprep.subr.bf16.mxu0 %v1199_v0 }
  0x61   : > { %746 = vmatpush1.bf16.msra.mxu1 %v1201_v1 }
  0x62   : > { %789 = vmatpush1.bf16.msra.mxu0 %v1202_v2  ;;  %747 = vmatprep.subr.bf16.mxu1 %v1203_v3 }
  0x63   : > { %790 = vmatprep.subr.bf16.mxu0 %v1205_v4 }
  0x65   : > { %748 = vmatpush1.bf16.msra.mxu1 %v1207_v5 }
  0x66   : > { %791 = vmatpush1.bf16.msra.mxu0 %v1208_v6 }
  0x68   : > { %750 = vmatmul.mubr.bf16.vlgmr.msra.gmra.mrb[0].mxu1 %v1209_v7 }
  0x69   : > { %793 = vmatmul.mubr.bf16.vlgmr.msra.gmra.mrb[0].mxu0 %v1212_v8 }
 0x13b   : > { %v751_v9 = vpop.f32.mrb[0].mxu1 }
 0x13c   : > { %v794_v11 = vpop.f32.mrb[0].mxu0  ;;  %v753_v13 = vpop.f32.mrb[1].mxu1 }
 0x13d   : > { %v795_v12 = vadd.f32 %v794_v11, %v751_v9  ;;  %v796_v15 = vpop.f32.mrb[1].mxu0  ;;  %v755_v17 = vpop.f32.mrb[2].mxu1 }
 0x13e   : > { %v797_v16 = vadd.f32 %v796_v15, %v753_v13  ;;  %v798_v19 = vpop.f32.mrb[2].mxu0  ;;  %v757_v22 = vpop.f32.mrb[3].mxu1  ;;  %814 = sbr.rel (%p1057_p11) target bundleno = 339 (0x153), region = 63 }
 0x13f   : > { %v803_v20 = vadd.f32 %v795_v12, %v305_v10  ;;  %v799_v21 = vadd.f32 %v798_v19, %v755_v17  ;;  %v800_v24 = vpop.f32.mrb[3].mxu0 }
 0x140   : > { %v804_v25 = vadd.f32 %v797_v16, %v306_v14  ;;  %v801_v26 = vadd.f32 %v800_v24, %v757_v22 }
 0x141   : > { %807 = vst [vmem:[#allocation2] sm:$0xff] %v803_v20  ;;  %v805_v27 = vadd.f32 %v799_v21, %v307_v18 }
 0x142   : > { %808 = vst [vmem:[#allocation2 + $0x8] sm:$0xff] %v804_v25  ;;  %v806_v28 = vadd.f32 %v801_v26, %v308_v23 }
 0x143   : > { %809 = vst [vmem:[#allocation2 + $0x10] sm:$0xff] %v805_v27 }
 0x144   : > { %810 = vst [vmem:[#allocation2 + $0x18] sm:$0xff] %v806_v28 }
 0x148   : > { %v815_v32 = vld [vmem:[#allocation2] sm:$0xff] }
 0x149   : > { %v816_v35 = vld [vmem:[#allocation2 + $0x8] sm:$0xff]  ;;  %v831_v40 = vadd.f32 %v824_v38, %v815_v32 }
 0x14a   : > { %v817_v36 = vld [vmem:[#allocation2 + $0x10] sm:$0xff]  ;;  %v832_v41 = vadd.f32 %v828_v39, %v816_v35 }
 0x14b   : > { %v818_v37 = vld [vmem:[#allocation2 + $0x18] sm:$0xff]  ;;  %v833_v42 = vadd.f32 %v824_v38, %v817_v36  ;;  %v835_v44 = vmax.f32 %v831_v40, 0.0 }
 0x14c   : > { %v834_v43 = vadd.f32 %v828_v39, %v818_v37  ;;  %v836_v45 = vmax.f32 %v832_v41, 0.0 }
 0x14d   : > { %v837_v46 = vmax.f32 %v833_v42, 0.0 }
 0x14e   : > { %v838_v47 = vmax.f32 %v834_v43, 0.0  ;;  %v1066_v48 = vpack.c.bf16 %v836_v45, %v835_v44 }
 0x150   : > { %v1067_v49 = vpack.c.bf16 %v838_v47, %v837_v46  ;;  %851 = vst [vmem:[%s1427_s3] sm:$0xff] %v1066_v48 }
 0x152   : > { %852 = vst [vmem:[%s1427_s3 + $0x8] sm:$0xff] %v1067_v49 }
 0x153 PF: > { %s13_s16 = sadd.s32 1, %s1253_s16   ;;  %s1428_s12 = smov %s1241_s13 }
 0x154   : > { %p10_p12 = scmp.ge.s32.totalorder %s13_s16, 7   ;;  %s1429_s13 = smov %s1311_s20 }
 0x155   : > { %s1430_s14 = smov %s1249_s15  ;;  %s1431_s15 = smov %s1433_s17 }
 0x156   :  { %12 = sbr.rel (!%p10_p12) target bundleno = 3 (0x3), region = 104 }

// kernel: classifier_forward.36
= control target key start
LH: loop header
LB: loop body
LE: loop exit
PB: predicated region body
PF: predicated region fallthrough
CT: control target
= control target key end

     0   :  { %s2051_s0 = inlined_call_operand.vmem [shape: bf16[16,2560], index: 0, kind: input, shape index: {}]   ;;  %s2052_s1 = inlined_call_operand.vmem [shape: bf16[2560,512], index: 1, kind: input, shape index: {}]   ;;  %s2053_s2 = inlined_call_operand.vmem [shape: f32[1,512], index: 2, kind: input, shape index: {}]   ;;  %s2054_s3 = inlined_call_operand.vmem [shape: bf16[16,512], index: 3, kind: output, shape index: {}]  }
   0x1   :  { %2056 = sst [smem:[#allocation7_spill]] %s2051_s0 }
   0x2   :  { %2057 = sst [smem:[#allocation8_spill]] %s2052_s1 }
   0x3   :  { %s1669_s12 = smov 0   ;;  %s1671_s13 = smov 0  }
   0x4   :  { %s1673_s14 = smov 0   ;;  %s1675_s15 = smov 0  }
   0x5   :  { %s1677_s16 = smov 0   ;;  %s1679_s17 = smov 0  }
   0x6   :  { %s1681_s18 = smov 0   ;;  %s1683_s19 = smov 0  }
   0x7   :  { %s1685_s20 = smov 0   ;;  %s1687_s21 = smov 0  }
   0x8   :  { %s1689_s22 = smov 0  }
   0x9 LB: > { %s1266_s23 = sadd.s32 4294967295, %s1646_s22   ;;  %s25_s24 = sadd.s32 1, %s1638_s20  ;;  %s1646_s22 = sphi %s1689_s22, %s13_s22   ;;  %s1642_s21 = sphi %s1687_s21, %s2074_s21   ;;  %s1638_s20 = sphi %s1685_s20, %s2073_s20   ;;  %s1634_s19 = sphi %s1683_s19, %s2072_s19   ;;  %s1630_s18 = sphi %s1681_s18, %s2071_s18   ;;  %s1626_s17 = sphi %s1679_s17, %s2070_s17   ;;  %s1622_s16 = sphi %s1677_s16, %s2069_s16   ;;  %s1618_s15 = sphi %s1675_s15, %s2068_s15   ;;  %s1614_s14 = sphi %s1673_s14, %s2067_s14   ;;  %s1610_s13 = sphi %s1671_s13, %s2066_s13   ;;  %s1606_s12 = sphi %s1669_s12, %s2065_s12  }
   0xa   : > { %p26_p0 = scmp.ge.s32.totalorder %s25_s24, 5  ;;  %s28_s25 = sadd.s32 1, %s1642_s21 }
   0xb   : > { %s41_s26 = sadd.s32 1, %s1626_s17  ;;  %p48_p1 = scmp.ne.s32.totalorder %s1626_s17, %s1622_s16 }
   0xc   : > { %s2076_s24 = smov (%p26_p0, %s25_s24), 0  ;;  %s2078_s25 = smov (!%p26_p0, %s28_s25), %s1642_s21 }
   0xd   : > { %s37_s27 = ssub.s32 %s1638_s20, %s2076_s24  ;;  %p49_p2 = scmp.eq.s32.totalorder %s1646_s22, 0 }
   0xe   : > { %p30_p3 = scmp.ge.s32.totalorder %s2078_s25, 2  ;;  %p39_p4 = scmp.eq.s32.totalorder %s37_s27, 0 }
   0xf   : > { %p1736_p5 = por %p49_p2, %p48_p1  ;;  %s69_s29 = sadd.s32 1, %s1618_s15 }
  0x10   : > { %s2080_s25 = smov (%p30_p3, %s2078_s25), 0  ;;  %p76_p6 = scmp.ne.s32.totalorder %s1618_s15, %s1614_s14 }
  0x11   : > { %2059 = sst [smem:[#allocation6_spill]] %s2080_s25  ;;  %s65_s4 = ssub.s32 %s1642_s21, %s2080_s25 }
  0x12   : > { %s1744_s30 = scalar_select %p39_p4, %s1626_s17, %s41_s26  }
  0x13   : > { %s66_s5 = sor.u32 %s65_s4, %s37_s27  ;;  %p121_p7 = scmp.eq.s32.totalorder %s65_s4, 0 }
  0x14   : > { %p67_p8 = scmp.eq.s32.totalorder %s66_s5, 0  ;;  %p1750_p9 = por %p76_p6, %p49_p2 }
  0x15   : > { %s123_s7 = sadd.s32 1, %s1610_s13  ;;  %p133_p10 = scmp.ne.s32.totalorder %s1610_s13, %s1606_s12 }
  0x16   : > { %s1758_s8 = scalar_select %p67_p8, %s1618_s15, %s69_s29  }
  0x17   : > { %s1761_s9 = scalar_select %p121_p7, %s1610_s13, %s123_s7  }
  0x18   : > { %p134_p11 = scmp.eq.s32.totalorder %s1266_s23, 9  ;;  %p1269_p13 = scmp.ge.s32.totalorder %s1646_s22, 10 }
  0x1a   : > { %p1763_p12 = por %p134_p11, %p133_p10  ;;  %156 = sbr.rel (%p1269_p13) target bundleno = 87 (0x57), region = 16 }
  0x21   : > { %159 = sbr.rel (!%p1736_p5) target bundleno = 45 (0x2d), region = 20  ;;  %s161_s11 = sand.u32 (%p1736_p5), 1, %s1626_s17  }
  0x22   : > { %s1360_s26 = sshll.u32 (%p1736_p5), %s1638_s20, 4  ;;  %s1270_s27 = sshll.u32 (%p1736_p5), %s161_s11, 5 }
  0x23   : > { %s2062_s0 = sld [smem:[#allocation7_spill]] (%p1736_p5)  ;;  %s163_s23 = scalar_lea.vmem (%p1736_p5), [#allocation3], %s1270_s27 }
  0x29   : > { %s169_s5 = scalar_lea.vmem %s2062_s0, %s1360_s26 }
  0x2a   : > { %v182_v0 = vld [vmem:[%s169_s5] sm:$0xff]  ;;  %v184_v1 = vld [vmem:[%s169_s5 + $0x8] sm:$0xff]  ;;  %v186_v2 = vld [vmem:[%s169_s5 + $0x50] sm:$0xff] }
  0x2b   : > { %183 = vst [vmem:[%s163_s23] sm:$0xff] %v182_v0  ;;  %185 = vst [vmem:[%s163_s23 + $0x8] sm:$0xff] %v184_v1  ;;  %v188_v3 = vld [vmem:[%s169_s5 + $0x58] sm:$0xff] }
  0x2c   : > { %187 = vst [vmem:[%s163_s23 + $0x10] sm:$0xff] %v186_v2  ;;  %189 = vst [vmem:[%s163_s23 + $0x18] sm:$0xff] %v188_v3 }
  0x2d PF: > { %195 = sbr.rel (!%p1750_p9) target bundleno = 87 (0x57), region = 43  ;;  %s197_s28 = sand.u32 (%p1750_p9), 1, %s1618_s15  }
  0x2e   : > { %s1275_s7 = sshll.u32 (%p1750_p9), %s1642_s21, 1  ;;  %s1273_s11 = sshll.u32 (%p1750_p9), %s197_s28, 9 }
  0x2f   : > { %s1361_s26 = sshll.u32 (%p1750_p9), %s1638_s20, 8  ;;  %s2063_s1 = sld [smem:[#allocation8_spill]] (%p1750_p9) }
  0x30   : > { %s203_s29 = sadd.s32 (%p1750_p9), %s1361_s26, %s1275_s7  ;;  %s1788_s6 = scalar_lea.vmem (%p1750_p9), [#allocation4], %s1273_s11 }
  0x31   : > { %s1277_s4 = sshll.u32 (%p1750_p9), %s203_s29, 2 }
  0x35   : > { %s1783_s25 = scalar_lea.vmem %s2063_s1, %s1277_s4 }
  0x36   : > { %v359_v4 = vld [vmem:[%s1783_s25] sm:$0xff]  ;;  %v361_v5 = vld [vmem:[%s1783_s25 + $0x10] sm:$0xff] }
  0x37   : > { %v363_v6 = vld [vmem:[%s1783_s25 + $0x20] sm:$0xff]  ;;  %360 = vst [vmem:[%s1788_s6] sm:$0xff] %v359_v4  ;;  %362 = vst [vmem:[%s1788_s6 + $0x8] sm:$0xff] %v361_v5  ;;  %v365_v7 = vld [vmem:[%s1783_s25 + $0x30] sm:$0xff] }
  0x38   : > { %364 = vst [vmem:[%s1788_s6 + $0x10] sm:$0xff] %v363_v6  ;;  %v367_v8 = vld [vmem:[%s1783_s25 + $0x40] sm:$0xff]  ;;  %v369_v9 = vld [vmem:[%s1783_s25 + $0x50] sm:$0xff]  ;;  %366 = vst [vmem:[%s1788_s6 + $0x18] sm:$0xff] %v365_v7 }
  0x39   : > { %368 = vst [vmem:[%s1788_s6 + $0x20] sm:$0xff] %v367_v8  ;;  %370 = vst [vmem:[%s1788_s6 + $0x28] sm:$0xff] %v369_v9  ;;  %v371_v10 = vld [vmem:[%s1783_s25 + $0x60] sm:$0xff]  ;;  %v373_v11 = vld [vmem:[%s1783_s25 + $0x70] sm:$0xff] }
  0x3a   : > { %v375_v12 = vld [vmem:[%s1783_s25 + $0x80] sm:$0xff]  ;;  %372 = vst [vmem:[%s1788_s6 + $0x30] sm:$0xff] %v371_v10  ;;  %374 = vst [vmem:[%s1788_s6 + $0x38] sm:$0xff] %v373_v11  ;;  %v377_v13 = vld [vmem:[%s1783_s25 + $0x90] sm:$0xff] }
  0x3b   : > { %376 = vst [vmem:[%s1788_s6 + $0x40] sm:$0xff] %v375_v12  ;;  %v379_v14 = vld [vmem:[%s1783_s25 + $0xa0] sm:$0xff]  ;;  %v381_v15 = vld [vmem:[%s1783_s25 + $0xb0] sm:$0xff]  ;;  %378 = vst [vmem:[%s1788_s6 + $0x48] sm:$0xff] %v377_v13 }
  0x3c   : > { %380 = vst [vmem:[%s1788_s6 + $0x50] sm:$0xff] %v379_v14  ;;  %382 = vst [vmem:[%s1788_s6 + $0x58] sm:$0xff] %v381_v15  ;;  %v383_v16 = vld [vmem:[%s1783_s25 + $0xc0] sm:$0xff]  ;;  %v385_v17 = vld [vmem:[%s1783_s25 + $0xd0] sm:$0xff] }
  0x3d   : > { %v387_v18 = vld [vmem:[%s1783_s25 + $0xe0] sm:$0xff]  ;;  %384 = vst [vmem:[%s1788_s6 + $0x60] sm:$0xff] %v383_v16  ;;  %386 = vst [vmem:[%s1788_s6 + $0x68] sm:$0xff] %v385_v17  ;;  %v389_v19 = vld [vmem:[%s1783_s25 + $0xf0] sm:$0xff] }
  0x3e   : > { %388 = vst [vmem:[%s1788_s6 + $0x70] sm:$0xff] %v387_v18  ;;  %v391_v20 = vld [vmem:[%s1783_s25 + $0x100] sm:$0xff]  ;;  %v393_v21 = vld [vmem:[%s1783_s25 + $0x110] sm:$0xff]  ;;  %390 = vst [vmem:[%s1788_s6 + $0x78] sm:$0xff] %v389_v19 }
  0x3f   : > { %392 = vst [vmem:[%s1788_s6 + $0x80] sm:$0xff] %v391_v20  ;;  %394 = vst [vmem:[%s1788_s6 + $0x88] sm:$0xff] %v393_v21  ;;  %v395_v22 = vld [vmem:[%s1783_s25 + $0x120] sm:$0xff]  ;;  %v397_v23 = vld [vmem:[%s1783_s25 + $0x130] sm:$0xff] }
  0x40   : > { %v399_v24 = vld [vmem:[%s1783_s25 + $0x140] sm:$0xff]  ;;  %396 = vst [vmem:[%s1788_s6 + $0x90] sm:$0xff] %v395_v22  ;;  %398 = vst [vmem:[%s1788_s6 + $0x98] sm:$0xff] %v397_v23  ;;  %v401_v25 = vld [vmem:[%s1783_s25 + $0x150] sm:$0xff] }
  0x41   : > { %400 = vst [vmem:[%s1788_s6 + $0xa0] sm:$0xff] %v399_v24  ;;  %v403_v26 = vld [vmem:[%s1783_s25 + $0x160] sm:$0xff]  ;;  %v405_v27 = vld [vmem:[%s1783_s25 + $0x170] sm:$0xff]  ;;  %402 = vst [vmem:[%s1788_s6 + $0xa8] sm:$0xff] %v401_v25 }
  0x42   : > { %404 = vst [vmem:[%s1788_s6 + $0xb0] sm:$0xff] %v403_v26  ;;  %406 = vst [vmem:[%s1788_s6 + $0xb8] sm:$0xff] %v405_v27  ;;  %v407_v28 = vld [vmem:[%s1783_s25 + $0x180] sm:$0xff]  ;;  %v409_v29 = vld [vmem:[%s1783_s25 + $0x190] sm:$0xff] }
  0x43   : > { %v411_v30 = vld [vmem:[%s1783_s25 + $0x1a0] sm:$0xff]  ;;  %408 = vst [vmem:[%s1788_s6 + $0xc0] sm:$0xff] %v407_v28  ;;  %410 = vst [vmem:[%s1788_s6 + $0xc8] sm:$0xff] %v409_v29  ;;  %v413_v31 = vld [vmem:[%s1783_s25 + $0x1b0] sm:$0xff] }
  0x44   : > { %412 = vst [vmem:[%s1788_s6 + $0xd0] sm:$0xff] %v411_v30  ;;  %v415_v32 = vld [vmem:[%s1783_s25 + $0x1c0] sm:$0xff]  ;;  %v417_v33 = vld [vmem:[%s1783_s25 + $0x1d0] sm:$0xff]  ;;  %414 = vst [vmem:[%s1788_s6 + $0xd8] sm:$0xff] %v413_v31 }
  0x45   : > { %416 = vst [vmem:[%s1788_s6 + $0xe0] sm:$0xff] %v415_v32  ;;  %418 = vst [vmem:[%s1788_s6 + $0xe8] sm:$0xff] %v417_v33  ;;  %v419_v34 = vld [vmem:[%s1783_s25 + $0x1e0] sm:$0xff]  ;;  %v421_v35 = vld [vmem:[%s1783_s25 + $0x1f0] sm:$0xff] }
  0x46   : > { %v423_v36 = vld [vmem:[%s1783_s25 + $0x200] sm:$0xff]  ;;  %420 = vst [vmem:[%s1788_s6 + $0xf0] sm:$0xff] %v419_v34  ;;  %422 = vst [vmem:[%s1788_s6 + $0xf8] sm:$0xff] %v421_v35  ;;  %v425_v37 = vld [vmem:[%s1783_s25 + $0x210] sm:$0xff] }
  0x47   : > { %424 = vst [vmem:[%s1788_s6 + $0x100] sm:$0xff] %v423_v36  ;;  %v427_v38 = vld [vmem:[%s1783_s25 + $0x220] sm:$0xff]  ;;  %v429_v39 = vld [vmem:[%s1783_s25 + $0x230] sm:$0xff]  ;;  %426 = vst [vmem:[%s1788_s6 + $0x108] sm:$0xff] %v425_v37 }
  0x48   : > { %428 = vst [vmem:[%s1788_s6 + $0x110] sm:$0xff] %v427_v38  ;;  %430 = vst [vmem:[%s1788_s6 + $0x118] sm:$0xff] %v429_v39  ;;  %v431_v40 = vld [vmem:[%s1783_s25 + $0x240] sm:$0xff]  ;;  %v433_v41 = vld [vmem:[%s1783_s25 + $0x250] sm:$0xff] }
  0x49   : > { %v435_v42 = vld [vmem:[%s1783_s25 + $0x260] sm:$0xff]  ;;  %432 = vst [vmem:[%s1788_s6 + $0x120] sm:$0xff] %v431_v40  ;;  %434 = vst [vmem:[%s1788_s6 + $0x128] sm:$0xff] %v433_v41  ;;  %v437_v43 = vld [vmem:[%s1783_s25 + $0x270] sm:$0xff] }
  0x4a   : > { %436 = vst [vmem:[%s1788_s6 + $0x130] sm:$0xff] %v435_v42  ;;  %v439_v44 = vld [vmem:[%s1783_s25 + $0x280] sm:$0xff]  ;;  %v441_v45 = vld [vmem:[%s1783_s25 + $0x290] sm:$0xff]  ;;  %438 = vst [vmem:[%s1788_s6 + $0x138] sm:$0xff] %v437_v43 }
  0x4b   : > { %440 = vst [vmem:[%s1788_s6 + $0x140] sm:$0xff] %v439_v44  ;;  %442 = vst [vmem:[%s1788_s6 + $0x148] sm:$0xff] %v441_v45  ;;  %v443_v46 = vld [vmem:[%s1783_s25 + $0x2a0] sm:$0xff]  ;;  %v445_v47 = vld [vmem:[%s1783_s25 + $0x2b0] sm:$0xff] }
  0x4c   : > { %v447_v48 = vld [vmem:[%s1783_s25 + $0x2c0] sm:$0xff]  ;;  %444 = vst [vmem:[%s1788_s6 + $0x150] sm:$0xff] %v443_v46  ;;  %446 = vst [vmem:[%s1788_s6 + $0x158] sm:$0xff] %v445_v47  ;;  %v449_v49 = vld [vmem:[%s1783_s25 + $0x2d0] sm:$0xff] }
  0x4d   : > { %448 = vst [vmem:[%s1788_s6 + $0x160] sm:$0xff] %v447_v48  ;;  %v451_v50 = vld [vmem:[%s1783_s25 + $0x2e0] sm:$0xff]  ;;  %v453_v51 = vld [vmem:[%s1783_s25 + $0x2f0] sm:$0xff]  ;;  %450 = vst [vmem:[%s1788_s6 + $0x168] sm:$0xff] %v449_v49 }
  0x4e   : > { %452 = vst [vmem:[%s1788_s6 + $0x170] sm:$0xff] %v451_v50  ;;  %454 = vst [vmem:[%s1788_s6 + $0x178] sm:$0xff] %v453_v51  ;;  %v455_v52 = vld [vmem:[%s1783_s25 + $0x300] sm:$0xff]  ;;  %v457_v53 = vld [vmem:[%s1783_s25 + $0x310] sm:$0xff] }
  0x4f   : > { %v459_v54 = vld [vmem:[%s1783_s25 + $0x320] sm:$0xff]  ;;  %456 = vst [vmem:[%s1788_s6 + $0x180] sm:$0xff] %v455_v52  ;;  %458 = vst [vmem:[%s1788_s6 + $0x188] sm:$0xff] %v457_v53  ;;  %v461_v55 = vld [vmem:[%s1783_s25 + $0x330] sm:$0xff] }
  0x50   : > { %460 = vst [vmem:[%s1788_s6 + $0x190] sm:$0xff] %v459_v54  ;;  %v463_v56 = vld [vmem:[%s1783_s25 + $0x340] sm:$0xff]  ;;  %v465_v57 = vld [vmem:[%s1783_s25 + $0x350] sm:$0xff]  ;;  %462 = vst [vmem:[%s1788_s6 + $0x198] sm:$0xff] %v461_v55 }
  0x51   : > { %464 = vst [vmem:[%s1788_s6 + $0x1a0] sm:$0xff] %v463_v56  ;;  %466 = vst [vmem:[%s1788_s6 + $0x1a8] sm:$0xff] %v465_v57  ;;  %v467_v58 = vld [vmem:[%s1783_s25 + $0x360] sm:$0xff]  ;;  %v469_v59 = vld [vmem:[%s1783_s25 + $0x370] sm:$0xff] }
  0x52   : > { %v471_v60 = vld [vmem:[%s1783_s25 + $0x380] sm:$0xff]  ;;  %468 = vst [vmem:[%s1788_s6 + $0x1b0] sm:$0xff] %v467_v58  ;;  %470 = vst [vmem:[%s1788_s6 + $0x1b8] sm:$0xff] %v469_v59  ;;  %v473_v61 = vld [vmem:[%s1783_s25 + $0x390] sm:$0xff] }
  0x53   : > { %472 = vst [vmem:[%s1788_s6 + $0x1c0] sm:$0xff] %v471_v60  ;;  %v475_v62 = vld [vmem:[%s1783_s25 + $0x3a0] sm:$0xff]  ;;  %v477_v63 = vld [vmem:[%s1783_s25 + $0x3b0] sm:$0xff]  ;;  %474 = vst [vmem:[%s1788_s6 + $0x1c8] sm:$0xff] %v473_v61 }
  0x54   : > { %476 = vst [vmem:[%s1788_s6 + $0x1d0] sm:$0xff] %v475_v62  ;;  %478 = vst [vmem:[%s1788_s6 + $0x1d8] sm:$0xff] %v477_v63  ;;  %v479_v0 = vld [vmem:[%s1783_s25 + $0x3c0] sm:$0xff]  ;;  %v481_v1 = vld [vmem:[%s1783_s25 + $0x3d0] sm:$0xff] }
  0x55   : > { %v483_v2 = vld [vmem:[%s1783_s25 + $0x3e0] sm:$0xff]  ;;  %480 = vst [vmem:[%s1788_s6 + $0x1e0] sm:$0xff] %v479_v0  ;;  %482 = vst [vmem:[%s1788_s6 + $0x1e8] sm:$0xff] %v481_v1  ;;  %v485_v3 = vld [vmem:[%s1783_s25 + $0x3f0] sm:$0xff] }
  0x56   : > { %484 = vst [vmem:[%s1788_s6 + $0x1f0] sm:$0xff] %v483_v2  ;;  %486 = vst [vmem:[%s1788_s6 + $0x1f8] sm:$0xff] %v485_v3 }
  0x57 PF: > { %p1278_p0 = scmp.ge.s32.totalorder %s1646_s22, 1  ;;  %p499_p1 = scmp.lt.s32.totalorder %s1646_s22, 11 }
  0x59   : > { %p500_p2 = pnand %p1278_p0, %p499_p1 }
  0x5a   : > { %s506_s0 = sand.u32 (!%p500_p2), 1, %s1622_s16   ;;  %s513_s5 = sand.u32 (!%p500_p2), 1, %s1614_s14  }
  0x5b   : > { %503 = sbr.rel (%p500_p2) target bundleno = 413 (0x19d), region = 85  ;;  %s1279_s23 = sshll.u32 (!%p500_p2), %s506_s0, 5 }
  0x5c   : > { %s1280_s28 = sshll.u32 (!%p500_p2), %s513_s5, 9  ;;  %s540_s7 = sand.u32 (!%p500_p2), 1, %s1606_s12  }
  0x5d   : > { %s1282_s11 = sshll.u32 (!%p500_p2), %s1634_s19, 1  ;;  %s1281_s25 = sshll.u32 (!%p500_p2), %s540_s7, 4 }
  0x5e   : > { %p548_p3 = scmp.lt.s32.totalorder (!%p500_p2), %s1282_s11, 3  ;;  %s1927_s27 = scalar_lea.vmem (!%p500_p2), [#allocation3], %s1279_s23 }
  0x5f   : > { %s1929_s6 = scalar_lea.vmem (!%p500_p2), [#allocation4], %s1280_s28  ;;  %s1931_s1 = scalar_lea.vmem (!%p500_p2), [#allocation5], %s1281_s25 }
  0x60   : > { %p1283_p4 = scmp.ne.s32.totalorder (!%p500_p2), %s1630_s18, 0 }
  0x62   : > { %s2082_s11 = smov (!%p548_p3, %s1282_s11), 3  ;;  %557 = sbr.rel (%p1283_p4) target bundleno = 105 (0x69), region = 97 }
  0x63   : > { %s550_s4 = scalar_lea.vmem %s2053_s2, %s2082_s11  ;;  %v1648_v4 = vmov (!%p1283_p4), 0.0  }
  0x64   : > { %558 = vst [vmem:[#allocation2] sm:$0xff] (!%p1283_p4), %v1648_v4  ;;  %559 = vst [vmem:[#allocation2 + $0x8] sm:$0xff] (!%p1283_p4), %v1648_v4 }
  0x65   : > { %560 = vst [vmem:[#allocation2 + $0x10] sm:$0xff] (!%p1283_p4), %v1648_v4  ;;  %561 = vst [vmem:[#allocation2 + $0x18] sm:$0xff] (!%p1283_p4), %v1648_v4 }
  0x69 PF: > { %v1458_v5 = vld [vmem:[%s1929_s6 + $0x4] ss:$8 sps:$4 sm:$0xff]   ;;  %v1462_v7 = vld [vmem:[%s1929_s6] ss:$8 sps:$4 sm:$0xff]   ;;  %v1464_v9 = vld [vmem:[%s1929_s6 + $0x14] ss:$8 sps:$4 sm:$0xff]  }
  0x6a   : > { %v1460_v6 = vld [vmem:[%s1929_s6 + $0x104] ss:$8 sps:$4 sm:$0xff]   ;;  %974 = vmatprep.subr.bf16.mxu1 %v1458_v5  ;;  %v1463_v8 = vld [vmem:[%s1929_s6 + $0x100] ss:$8 sps:$4 sm:$0xff]   ;;  %v1466_v10 = vld [vmem:[%s1929_s6 + $0x114] ss:$8 sps:$4 sm:$0xff]  }
  0x6b   : > { %1017 = vmatprep.subr.bf16.mxu0 %v1460_v6  ;;  %975 = vmatpush1.bf16.msra.mxu1 %v1462_v7  ;;  %v1468_v11 = vld [vmem:[%s1929_s6 + $0x10] ss:$8 sps:$4 sm:$0xff]   ;;  %v1470_v13 = vld [vmem:[%s1929_s6 + $0x24] ss:$8 sps:$4 sm:$0xff]   ;;  %v1474_v15 = vld [vmem:[%s1929_s6 + $0x20] ss:$8 sps:$4 sm:$0xff]  }
  0x6c   : > { %1018 = vmatpush1.bf16.msra.mxu0 %v1463_v8  ;;  %976 = vmatprep.subr.bf16.mxu1 %v1464_v9  ;;  %v1469_v12 = vld [vmem:[%s1929_s6 + $0x110] ss:$8 sps:$4 sm:$0xff]   ;;  %v1472_v14 = vld [vmem:[%s1929_s6 + $0x124] ss:$8 sps:$4 sm:$0xff]   ;;  %v1475_v16 = vld [vmem:[%s1929_s6 + $0x120] ss:$8 sps:$4 sm:$0xff]  }
  0x6d   : > { %1019 = vmatprep.subr.bf16.mxu0 %v1466_v10  ;;  %v1476_v17 = vld [vmem:[%s1929_s6 + $0x34] ss:$8 sps:$4 sm:$0xff]   ;;  %v1480_v19 = vld [vmem:[%s1929_s6 + $0x30] ss:$8 sps:$4 sm:$0xff]   ;;  %v1482_v21 = vld [vmem:[%s1929_s6 + $0x44] ss:$8 sps:$4 sm:$0xff]  }
  0x6e   : > { %v1478_v18 = vld [vmem:[%s1929_s6 + $0x134] ss:$8 sps:$4 sm:$0xff]   ;;  %v1481_v20 = vld [vmem:[%s1929_s6 + $0x130] ss:$8 sps:$4 sm:$0xff]   ;;  %v1484_v22 = vld [vmem:[%s1929_s6 + $0x144] ss:$8 sps:$4 sm:$0xff]  }
  0x6f   : > { %977 = vmatpush1.bf16.msra.mxu1 %v1468_v11  ;;  %v1486_v23 = vld [vmem:[%s1929_s6 + $0x40] ss:$8 sps:$4 sm:$0xff]   ;;  %v1488_v25 = vld [vmem:[%s1929_s6 + $0x54] ss:$8 sps:$4 sm:$0xff]   ;;  %v1492_v27 = vld [vmem:[%s1929_s6 + $0x50] ss:$8 sps:$4 sm:$0xff]  }
  0x70   : > { %1020 = vmatpush1.bf16.msra.mxu0 %v1469_v12  ;;  %978 = vmatprep.subr.bf16.mxu1 %v1470_v13  ;;  %v1487_v24 = vld [vmem:[%s1929_s6 + $0x140] ss:$8 sps:$4 sm:$0xff]   ;;  %v1490_v26 = vld [vmem:[%s1929_s6 + $0x154] ss:$8 sps:$4 sm:$0xff]   ;;  %v1493_v28 = vld [vmem:[%s1929_s6 + $0x150] ss:$8 sps:$4 sm:$0xff]  }
  0x71   : > { %1021 = vmatprep.subr.bf16.mxu0 %v1472_v14  ;;  %v1494_v29 = vld [vmem:[%s1929_s6 + $0x64] ss:$8 sps:$4 sm:$0xff]   ;;  %v1498_v31 = vld [vmem:[%s1929_s6 + $0x60] ss:$8 sps:$4 sm:$0xff]   ;;  %v1500_v33 = vld [vmem:[%s1929_s6 + $0x74] ss:$8 sps:$4 sm:$0xff]  }
  0x72   : > { %v1496_v30 = vld [vmem:[%s1929_s6 + $0x164] ss:$8 sps:$4 sm:$0xff]   ;;  %v1499_v32 = vld [vmem:[%s1929_s6 + $0x160] ss:$8 sps:$4 sm:$0xff]   ;;  %v1502_v34 = vld [vmem:[%s1929_s6 + $0x174] ss:$8 sps:$4 sm:$0xff]  }
  0x73   : > { %979 = vmatpush1.bf16.msra.mxu1 %v1474_v15  ;;  %v1504_v35 = vld [vmem:[%s1929_s6 + $0x70] ss:$8 sps:$4 sm:$0xff]   ;;  %v1506_v37 = vld [vmem:[%s1929_s6 + $0x84] ss:$8 sps:$4 sm:$0xff]   ;;  %v1510_v39 = vld [vmem:[%s1929_s6 + $0x80] ss:$8 sps:$4 sm:$0xff]  }
  0x74   : > { %1022 = vmatpush1.bf16.msra.mxu0 %v1475_v16  ;;  %980 = vmatprep.subr.bf16.mxu1 %v1476_v17  ;;  %v1505_v36 = vld [vmem:[%s1929_s6 + $0x170] ss:$8 sps:$4 sm:$0xff]   ;;  %v1508_v38 = vld [vmem:[%s1929_s6 + $0x184] ss:$8 sps:$4 sm:$0xff]   ;;  %v1511_v40 = vld [vmem:[%s1929_s6 + $0x180] ss:$8 sps:$4 sm:$0xff]  }
  0x75   : > { %1023 = vmatprep.subr.bf16.mxu0 %v1478_v18  ;;  %v1512_v41 = vld [vmem:[%s1929_s6 + $0x94] ss:$8 sps:$4 sm:$0xff]   ;;  %v1516_v43 = vld [vmem:[%s1929_s6 + $0x90] ss:$8 sps:$4 sm:$0xff]   ;;  %v1518_v45 = vld [vmem:[%s1929_s6 + $0xa4] ss:$8 sps:$4 sm:$0xff]  }
  0x76   : > { %v1514_v42 = vld [vmem:[%s1929_s6 + $0x194] ss:$8 sps:$4 sm:$0xff]   ;;  %v1517_v44 = vld [vmem:[%s1929_s6 + $0x190] ss:$8 sps:$4 sm:$0xff]   ;;  %v1520_v46 = vld [vmem:[%s1929_s6 + $0x1a4] ss:$8 sps:$4 sm:$0xff]  }
  0x77   : > { %981 = vmatpush1.bf16.msra.mxu1 %v1480_v19  ;;  %v1522_v47 = vld [vmem:[%s1929_s6 + $0xa0] ss:$8 sps:$4 sm:$0xff]   ;;  %v1524_v49 = vld [vmem:[%s1929_s6 + $0xb4] ss:$8 sps:$4 sm:$0xff]   ;;  %v1528_v51 = vld [vmem:[%s1929_s6 + $0xb0] ss:$8 sps:$4 sm:$0xff]  }
  0x78   : > { %1024 = vmatpush1.bf16.msra.mxu0 %v1481_v20  ;;  %982 = vmatprep.subr.bf16.mxu1 %v1482_v21  ;;  %v1523_v48 = vld [vmem:[%s1929_s6 + $0x1a0] ss:$8 sps:$4 sm:$0xff]   ;;  %v1526_v50 = vld [vmem:[%s1929_s6 + $0x1b4] ss:$8 sps:$4 sm:$0xff]   ;;  %v1529_v53 = vld [vmem:[%s1929_s6 + $0x1b0] ss:$8 sps:$4 sm:$0xff]  }
  0x79   : > { %1025 = vmatprep.subr.bf16.mxu0 %v1484_v22  ;;  %v1556_v52 = vld [vmem:[%s1927_s27 + $0x4] ss:$16 sps:$4 sm:$0xff]   ;;  %v1559_v56 = vld [vmem:[%s1927_s27 + $0xc] ss:$16 sps:$4 sm:$0xff]   ;;  %v1534_v57 = vld [vmem:[%s1929_s6 + $0xc0] ss:$8 sps:$4 sm:$0xff]  }
  0x7a   : > { %v1530_v54 = vld [vmem:[%s1929_s6 + $0xc4] ss:$8 sps:$4 sm:$0xff]   ;;  %1006 = vmatprep.mubr.bf16.mxu1 %v1556_v52  ;;  %1049 = vmatprep.mubr.bf16.mxu0 %v1559_v56  ;;  %v1535_v58 = vld [vmem:[%s1929_s6 + $0x1c0] ss:$8 sps:$4 sm:$0xff]   ;;  %v1536_v59 = vld [vmem:[%s1929_s6 + $0xd4] ss:$8 sps:$4 sm:$0xff]  }
  0x7b   : > { %983 = vmatpush1.bf16.msra.mxu1 %v1486_v23  ;;  %v1532_v55 = vld [vmem:[%s1929_s6 + $0x1c4] ss:$8 sps:$4 sm:$0xff]   ;;  %v1538_v60 = vld [vmem:[%s1929_s6 + $0x1d4] ss:$8 sps:$4 sm:$0xff]   ;;  %v1540_v61 = vld [vmem:[%s1929_s6 + $0xd0] ss:$8 sps:$4 sm:$0xff]  }
  0x7c   : > { %1026 = vmatpush1.bf16.msra.mxu0 %v1487_v24  ;;  %984 = vmatprep.subr.bf16.mxu1 %v1488_v25  ;;  %v1541_v62 = vld [vmem:[%s1929_s6 + $0x1d0] ss:$8 sps:$4 sm:$0xff]   ;;  %v1542_v63 = vld [vmem:[%s1929_s6 + $0xe4] ss:$8 sps:$4 sm:$0xff]   ;;  %v1546_v1 = vld [vmem:[%s1929_s6 + $0xe0] ss:$8 sps:$4 sm:$0xff]  }
  0x7d   : > { %1027 = vmatprep.subr.bf16.mxu0 %v1490_v26  ;;  %v1544_v0 = vld [vmem:[%s1929_s6 + $0x1e4] ss:$8 sps:$4 sm:$0xff]   ;;  %v1547_v2 = vld [vmem:[%s1929_s6 + $0x1e0] ss:$8 sps:$4 sm:$0xff]   ;;  %v1548_v3 = vld [vmem:[%s1929_s6 + $0xf4] ss:$8 sps:$4 sm:$0xff]  }
  0x7e   : > { %v1550_v4 = vld [vmem:[%s1929_s6 + $0x1f4] ss:$8 sps:$4 sm:$0xff]   ;;  %v1552_v5 = vld [vmem:[%s1929_s6 + $0xf0] ss:$8 sps:$4 sm:$0xff]   ;;  %v562_v10 = vld [vmem:[#allocation2] sm:$0xff]  ;;  %p1352_p5 = scmp.ne.s32.totalorder %s1630_s18, 4 }
  0x7f   : > { %985 = vmatpush1.bf16.msra.mxu1 %v1492_v27  ;;  %v1553_v6 = vld [vmem:[%s1929_s6 + $0x1f0] ss:$8 sps:$4 sm:$0xff]   ;;  %v563_v14 = vld [vmem:[#allocation2 + $0x8] sm:$0xff] }
  0x80   : > { %1028 = vmatpush1.bf16.msra.mxu0 %v1493_v28  ;;  %986 = vmatprep.subr.bf16.mxu1 %v1494_v29  ;;  %v1554_v7 = vld [vmem:[%s1927_s27] ss:$16 sps:$4 sm:$0xff]   ;;  %v1557_v8 = vld [vmem:[%s1927_s27 + $0x8] ss:$16 sps:$4 sm:$0xff]   ;;  %v1078_v29 = vlaneseq (!%p1352_p5) }
  0x81   : > { %1029 = vmatprep.subr.bf16.mxu0 %v1496_v30  ;;  %v564_v18 = vld [vmem:[#allocation2 + $0x10] sm:$0xff]  ;;  %v565_v23 = vld [vmem:[#allocation2 + $0x18] sm:$0xff] }
  0x82   : > { %v1079_v30 = vshrl.u32 (!%p1352_p5), %v1078_v29, 7 }
  0x83   : > { %987 = vmatpush1.bf16.msra.mxu1 %v1498_v31  ;;  %v1076_v31 = vld [vmem:[%s550_s4] sm:$0x3] (!%p1352_p5) }
  0x84   : > { %1030 = vmatpush1.bf16.msra.mxu0 %v1499_v32  ;;  %988 = vmatprep.subr.bf16.mxu1 %v1500_v33  ;;  %v1080_v33 = vsub.s32 (!%p1352_p5), 0, %v1079_v30 }
  0x85   : > { %1031 = vmatprep.subr.bf16.mxu0 %v1502_v34  ;;  %v1084_v34 = vsub.s32 (!%p1352_p5), 1, %v1079_v30 }
  0x87   : > { %989 = vmatpush1.bf16.msra.mxu1 %v1504_v35 }
  0x88   : > { %1032 = vmatpush1.bf16.msra.mxu0 %v1505_v36  ;;  %990 = vmatprep.subr.bf16.mxu1 %v1506_v37 }
  0x89   : > { %1033 = vmatprep.subr.bf16.mxu0 %v1508_v38  ;;  %v1081_v38 = vrot.slane (!%p1352_p5), %v1076_v31, %v1080_v33 }
  0x8b   : > { %991 = vmatpush1.bf16.msra.mxu1 %v1510_v39  ;;  %v1085_v39 = vrot.slane (!%p1352_p5), %v1076_v31, %v1084_v34 }
  0x8c   : > { %1034 = vmatpush1.bf16.msra.mxu0 %v1511_v40  ;;  %992 = vmatprep.subr.bf16.mxu1 %v1512_v41 }
  0x8d   : > { %1035 = vmatprep.subr.bf16.mxu0 %v1514_v42 }
  0x8f   : > { %993 = vmatpush1.bf16.msra.mxu1 %v1516_v43 }
  0x90   : > { %1036 = vmatpush1.bf16.msra.mxu0 %v1517_v44  ;;  %994 = vmatprep.subr.bf16.mxu1 %v1518_v45 }
  0x91   : > { %1037 = vmatprep.subr.bf16.mxu0 %v1520_v46 }
  0x93   : > { %995 = vmatpush1.bf16.msra.mxu1 %v1522_v47 }
  0x94   : > { %1038 = vmatpush1.bf16.msra.mxu0 %v1523_v48  ;;  %996 = vmatprep.subr.bf16.mxu1 %v1524_v49 }
  0x95   : > { %1039 = vmatprep.subr.bf16.mxu0 %v1526_v50 }
  0x97   : > { %997 = vmatpush1.bf16.msra.mxu1 %v1528_v51 }
  0x98   : > { %1040 = vmatpush1.bf16.msra.mxu0 %v1529_v53  ;;  %998 = vmatprep.subr.bf16.mxu1 %v1530_v54 }
  0x99   : > { %1041 = vmatprep.subr.bf16.mxu0 %v1532_v55 }
  0x9b   : > { %999 = vmatpush1.bf16.msra.mxu1 %v1534_v57 }
  0x9c   : > { %1042 = vmatpush1.bf16.msra.mxu0 %v1535_v58  ;;  %1000 = vmatprep.subr.bf16.mxu1 %v1536_v59 }
  0x9d   : > { %1043 = vmatprep.subr.bf16.mxu0 %v1538_v60 }
  0x9f   : > { %1001 = vmatpush1.bf16.msra.mxu1 %v1540_v61 }
  0xa0   : > { %1044 = vmatpush1.bf16.msra.mxu0 %v1541_v62  ;;  %1002 = vmatprep.subr.bf16.mxu1 %v1542_v63 }
  0xa1   : > { %1045 = vmatprep.subr.bf16.mxu0 %v1544_v0 }
  0xa3   : > { %1003 = vmatpush1.bf16.msra.mxu1 %v1546_v1 }
  0xa4   : > { %1046 = vmatpush1.bf16.msra.mxu0 %v1547_v2  ;;  %1004 = vmatprep.subr.bf16.mxu1 %v1548_v3 }
  0xa5   : > { %1047 = vmatprep.subr.bf16.mxu0 %v1550_v4 }
  0xa7   : > { %1005 = vmatpush1.bf16.msra.mxu1 %v1552_v5 }
  0xa8   : > { %1048 = vmatpush1.bf16.msra.mxu0 %v1553_v6 }
  0xaa   : > { %1007 = vmatmul.mubr.bf16.vlgmr.msra.gmra.mrb[0].mxu1 %v1554_v7 }
  0xab   : > { %1050 = vmatmul.mubr.bf16.vlgmr.msra.gmra.mrb[0].mxu0 %v1557_v8 }
 0x17d   : > { %v1008_v9 = vpop.f32.mrb[0].mxu1 }
 0x17e   : > { %v1051_v11 = vpop.f32.mrb[0].mxu0  ;;  %v1010_v13 = vpop.f32.mrb[1].mxu1 }
 0x17f   : > { %v1052_v12 = vadd.f32 %v1051_v11, %v1008_v9  ;;  %v1053_v15 = vpop.f32.mrb[1].mxu0  ;;  %v1012_v17 = vpop.f32.mrb[2].mxu1 }
 0x180   : > { %v1054_v16 = vadd.f32 %v1053_v15, %v1010_v13  ;;  %v1055_v19 = vpop.f32.mrb[2].mxu0  ;;  %v1014_v22 = vpop.f32.mrb[3].mxu1  ;;  %1071 = sbr.rel (%p1352_p5) target bundleno = 405 (0x195), region = 101 }
 0x181   : > { %v1060_v20 = vadd.f32 %v1052_v12, %v562_v10  ;;  %v1056_v21 = vadd.f32 %v1055_v19, %v1012_v17  ;;  %v1057_v24 = vpop.f32.mrb[3].mxu0 }
 0x182   : > { %v1061_v25 = vadd.f32 %v1054_v16, %v563_v14  ;;  %v1058_v26 = vadd.f32 %v1057_v24, %v1014_v22 }
 0x183   : > { %1064 = vst [vmem:[#allocation2] sm:$0xff] %v1060_v20  ;;  %v1062_v27 = vadd.f32 %v1056_v21, %v564_v18 }
 0x184   : > { %1065 = vst [vmem:[#allocation2 + $0x8] sm:$0xff] %v1061_v25  ;;  %v1063_v28 = vadd.f32 %v1058_v26, %v565_v23 }
 0x185   : > { %1066 = vst [vmem:[#allocation2 + $0x10] sm:$0xff] %v1062_v27 }
 0x186   : > { %1067 = vst [vmem:[#allocation2 + $0x18] sm:$0xff] %v1063_v28 }
 0x18a   : > { %v1072_v32 = vld [vmem:[#allocation2] sm:$0xff] }
 0x18b   : > { %v1073_v35 = vld [vmem:[#allocation2 + $0x8] sm:$0xff]  ;;  %v1088_v40 = vadd.f32 %v1081_v38, %v1072_v32 }
 0x18c   : > { %v1074_v36 = vld [vmem:[#allocation2 + $0x10] sm:$0xff]  ;;  %v1089_v41 = vadd.f32 %v1085_v39, %v1073_v35 }
 0x18d   : > { %v1075_v37 = vld [vmem:[#allocation2 + $0x18] sm:$0xff]  ;;  %v1090_v42 = vadd.f32 %v1081_v38, %v1074_v36  ;;  %v1092_v44 = vmax.f32 %v1088_v40, 0.0 }
 0x18e   : > { %v1091_v43 = vadd.f32 %v1085_v39, %v1075_v37  ;;  %v1093_v45 = vmax.f32 %v1089_v41, 0.0 }
 0x18f   : > { %v1094_v46 = vmax.f32 %v1090_v42, 0.0 }
 0x190   : > { %v1095_v47 = vmax.f32 %v1091_v43, 0.0  ;;  %v1362_v48 = vpack.c.bf16 %v1093_v45, %v1092_v44 }
 0x192   : > { %v1363_v49 = vpack.c.bf16 %v1095_v47, %v1094_v46  ;;  %1108 = vst [vmem:[%s1931_s1] sm:$0xff] %v1362_v48 }
 0x194   : > { %1109 = vst [vmem:[%s1931_s1 + $0x8] sm:$0xff] %v1363_v49 }
 0x195 PF: > { %1116 = sbr.rel (!%p1763_p12) target bundleno = 413 (0x19d), region = 105  ;;  %s1364_s16 = sshll.u32 (%p1763_p12), %s1634_s19, 3 }
 0x196   : > { %s1122_s5 = scalar_lea.vmem (%p1763_p12), %s2054_s3, %s1364_s16 }
 0x199   : > { %v1152_v50 = vld [vmem:[%s1931_s1] sm:$0xff] (%p1763_p12) }
 0x19a   : > { %1153 = vst [vmem:[%s1122_s5] sm:$0xff] (%p1763_p12), %v1152_v50 }
 0x19b   : > { %v1154_v51 = vld [vmem:[%s1931_s1 + $0x8] sm:$0xff] (%p1763_p12) }
 0x19c   : > { %1155 = vst [vmem:[%s1122_s5 + $0x10] sm:$0xff] %v1154_v51 }
 0x19d PF: > { %s13_s22 = sadd.s32 1, %s1646_s22   ;;  %s2064_s1 = sld [smem:[#allocation6_spill]] }
 0x19e   : > { %p10_p6 = scmp.ge.s32.totalorder %s13_s22, 12   ;;  %s2065_s12 = smov %s1610_s13 }
 0x19f   : > { %s2066_s13 = smov %s1761_s9  ;;  %s2067_s14 = smov %s1618_s15 }
 0x1a0   : > { %s2068_s15 = smov %s1758_s8  ;;  %s2069_s16 = smov %s1626_s17 }
 0x1a1   : > { %s2070_s17 = smov %s1744_s30  ;;  %s2071_s18 = smov %s1638_s20 }
 0x1a2   : > { %s2072_s19 = smov %s1642_s21  ;;  %s2073_s20 = smov %s2076_s24 }
 0x1a3   : > { %s2074_s21 = smov %s2064_s1  ;;  %12 = sbr.rel (!%p10_p6) target bundleno = 9 (0x9), region = 185 }

// kernel: classifier_forward.37
= control target key start
LH: loop header
LB: loop body
LE: loop exit
PB: predicated region body
PF: predicated region fallthrough
CT: control target
= control target key end

     0   :  { %s1079_s12 = smov 0   ;;  %s1081_s13 = smov 0   ;;  %s1267_s0 = inlined_call_operand.vmem [shape: bf16[16,256], index: 0, kind: input, shape index: {}]   ;;  %s1268_s1 = inlined_call_operand.vmem [shape: bf16[256,512], index: 1, kind: input, shape index: {}]   ;;  %s1269_s2 = inlined_call_operand.vmem [shape: f32[1,512], index: 2, kind: input, shape index: {}]   ;;  %s1270_s3 = inlined_call_operand.vmem [shape: bf16[16,512], index: 3, kind: output, shape index: {}]  }
   0x1   :  { %s1083_s14 = smov 0   ;;  %s1085_s15 = smov 0  }
   0x2   :  { %s1087_s16 = smov 0  }
   0x3 LB: > { %s28_s17 = sadd.s32 1, %s1053_s15  ;;  %s871_s18 = sadd.s32 4294967295, %s1057_s16   ;;  %s1057_s16 = sphi %s1087_s16, %s13_s16   ;;  %s1053_s15 = sphi %s1085_s15, %s1275_s15   ;;  %s1049_s14 = sphi %s1083_s14, %s1274_s14   ;;  %s1045_s13 = sphi %s1081_s13, %s1273_s13   ;;  %s1041_s12 = sphi %s1079_s12, %s1272_s12  }
   0x4   : > { %p30_p0 = scmp.ge.s32.totalorder %s28_s17, 2  ;;  %p76_p1 = scmp.ne.s32.totalorder %s1045_s13, %s1041_s12 }
   0x5   : > { %p77_p2 = scmp.eq.s32.totalorder %s1057_s16, 0  ;;  %p134_p4 = scmp.eq.s32.totalorder %s871_s18, 1 }
   0x6   : > { %s1277_s17 = smov (%p30_p0, %s28_s17), 0  ;;  %s69_s20 = sadd.s32 1, %s1045_s13 }
   0x7   : > { %p78_p3 = por %p77_p2, %p76_p1  ;;  %s65_s19 = ssub.s32 %s1053_s15, %s1277_s17 }
   0x8   : > { %p67_p5 = scmp.eq.s32.totalorder %s65_s19, 0  ;;  %p1114_p6 = por %p134_p4, %p76_p1 }
   0x9   : > { %p875_p7 = scmp.ge.s32.totalorder %s1057_s16, 2 }
   0xa   : > { %s1119_s22 = scalar_select %p67_p5, %s1045_s13, %s69_s20  }
   0xb   : > { %171 = sbr.rel (%p875_p7) target bundleno = 38 (0x26), region = 20 }
  0x12   : > { %174 = sbr.rel (!%p78_p3) target bundleno = 38 (0x26), region = 24  ;;  %s176_s23 = sand.u32 (%p78_p3), 1, %s1045_s13  }
  0x13   : > { %s924_s24 = sshll.u32 (%p78_p3), %s1053_s15, 3  ;;  %s876_s25 = sshll.u32 (%p78_p3), %s176_s23, 8 }
  0x14   : > { %s1127_s28 = scalar_lea.vmem (%p78_p3), %s1268_s1, %s924_s24  ;;  %s1132_s29 = scalar_lea.vmem (%p78_p3), [#allocation3], %s876_s25 }
  0x15   : > { %v274_v0 = vld [vmem:[%s1127_s28] sm:$0xff] (%p78_p3)  ;;  %v276_v1 = vld [vmem:[%s1127_s28 + $0x10] sm:$0xff] (%p78_p3) }
  0x16   : > { %v278_v2 = vld [vmem:[%s1127_s28 + $0x20] sm:$0xff] (%p78_p3)  ;;  %275 = vst [vmem:[%s1132_s29] sm:$0xff] (%p78_p3), %v274_v0  ;;  %277 = vst [vmem:[%s1132_s29 + $0x8] sm:$0xff] (%p78_p3), %v276_v1  ;;  %v280_v3 = vld [vmem:[%s1127_s28 + $0x30] sm:$0xff] (%p78_p3) }
  0x17   : > { %279 = vst [vmem:[%s1132_s29 + $0x10] sm:$0xff] (%p78_p3), %v278_v2  ;;  %v282_v4 = vld [vmem:[%s1127_s28 + $0x40] sm:$0xff] (%p78_p3)  ;;  %v284_v5 = vld [vmem:[%s1127_s28 + $0x50] sm:$0xff] (%p78_p3)  ;;  %281 = vst [vmem:[%s1132_s29 + $0x18] sm:$0xff] (%p78_p3), %v280_v3 }
  0x18   : > { %283 = vst [vmem:[%s1132_s29 + $0x20] sm:$0xff] (%p78_p3), %v282_v4  ;;  %285 = vst [vmem:[%s1132_s29 + $0x28] sm:$0xff] (%p78_p3), %v284_v5  ;;  %v286_v6 = vld [vmem:[%s1127_s28 + $0x60] sm:$0xff] (%p78_p3)  ;;  %v288_v7 = vld [vmem:[%s1127_s28 + $0x70] sm:$0xff] (%p78_p3) }
  0x19   : > { %v290_v8 = vld [vmem:[%s1127_s28 + $0x80] sm:$0xff]  ;;  %287 = vst [vmem:[%s1132_s29 + $0x30] sm:$0xff] %v286_v6  ;;  %289 = vst [vmem:[%s1132_s29 + $0x38] sm:$0xff] %v288_v7  ;;  %v292_v9 = vld [vmem:[%s1127_s28 + $0x90] sm:$0xff] }
  0x1a   : > { %291 = vst [vmem:[%s1132_s29 + $0x40] sm:$0xff] %v290_v8  ;;  %v294_v10 = vld [vmem:[%s1127_s28 + $0xa0] sm:$0xff]  ;;  %v296_v11 = vld [vmem:[%s1127_s28 + $0xb0] sm:$0xff]  ;;  %293 = vst [vmem:[%s1132_s29 + $0x48] sm:$0xff] %v292_v9 }
  0x1b   : > { %295 = vst [vmem:[%s1132_s29 + $0x50] sm:$0xff] %v294_v10  ;;  %297 = vst [vmem:[%s1132_s29 + $0x58] sm:$0xff] %v296_v11  ;;  %v298_v12 = vld [vmem:[%s1127_s28 + $0xc0] sm:$0xff]  ;;  %v300_v13 = vld [vmem:[%s1127_s28 + $0xd0] sm:$0xff] }
  0x1c   : > { %v302_v14 = vld [vmem:[%s1127_s28 + $0xe0] sm:$0xff]  ;;  %299 = vst [vmem:[%s1132_s29 + $0x60] sm:$0xff] %v298_v12  ;;  %301 = vst [vmem:[%s1132_s29 + $0x68] sm:$0xff] %v300_v13  ;;  %v304_v15 = vld [vmem:[%s1127_s28 + $0xf0] sm:$0xff] }
  0x1d   : > { %303 = vst [vmem:[%s1132_s29 + $0x70] sm:$0xff] %v302_v14  ;;  %v306_v16 = vld [vmem:[%s1127_s28 + $0x100] sm:$0xff]  ;;  %v308_v17 = vld [vmem:[%s1127_s28 + $0x110] sm:$0xff]  ;;  %305 = vst [vmem:[%s1132_s29 + $0x78] sm:$0xff] %v304_v15 }
  0x1e   : > { %307 = vst [vmem:[%s1132_s29 + $0x80] sm:$0xff] %v306_v16  ;;  %309 = vst [vmem:[%s1132_s29 + $0x88] sm:$0xff] %v308_v17  ;;  %v310_v18 = vld [vmem:[%s1127_s28 + $0x120] sm:$0xff]  ;;  %v312_v19 = vld [vmem:[%s1127_s28 + $0x130] sm:$0xff] }
  0x1f   : > { %v314_v20 = vld [vmem:[%s1127_s28 + $0x140] sm:$0xff]  ;;  %311 = vst [vmem:[%s1132_s29 + $0x90] sm:$0xff] %v310_v18  ;;  %313 = vst [vmem:[%s1132_s29 + $0x98] sm:$0xff] %v312_v19  ;;  %v316_v21 = vld [vmem:[%s1127_s28 + $0x150] sm:$0xff] }
  0x20   : > { %315 = vst [vmem:[%s1132_s29 + $0xa0] sm:$0xff] %v314_v20  ;;  %v318_v22 = vld [vmem:[%s1127_s28 + $0x160] sm:$0xff]  ;;  %v320_v23 = vld [vmem:[%s1127_s28 + $0x170] sm:$0xff]  ;;  %317 = vst [vmem:[%s1132_s29 + $0xa8] sm:$0xff] %v316_v21 }
  0x21   : > { %319 = vst [vmem:[%s1132_s29 + $0xb0] sm:$0xff] %v318_v22  ;;  %321 = vst [vmem:[%s1132_s29 + $0xb8] sm:$0xff] %v320_v23  ;;  %v322_v24 = vld [vmem:[%s1127_s28 + $0x180] sm:$0xff]  ;;  %v324_v25 = vld [vmem:[%s1127_s28 + $0x190] sm:$0xff] }
  0x22   : > { %v326_v26 = vld [vmem:[%s1127_s28 + $0x1a0] sm:$0xff]  ;;  %323 = vst [vmem:[%s1132_s29 + $0xc0] sm:$0xff] %v322_v24  ;;  %325 = vst [vmem:[%s1132_s29 + $0xc8] sm:$0xff] %v324_v25  ;;  %v328_v27 = vld [vmem:[%s1127_s28 + $0x1b0] sm:$0xff] }
  0x23   : > { %327 = vst [vmem:[%s1132_s29 + $0xd0] sm:$0xff] %v326_v26  ;;  %v330_v28 = vld [vmem:[%s1127_s28 + $0x1c0] sm:$0xff]  ;;  %v332_v29 = vld [vmem:[%s1127_s28 + $0x1d0] sm:$0xff]  ;;  %329 = vst [vmem:[%s1132_s29 + $0xd8] sm:$0xff] %v328_v27 }
  0x24   : > { %331 = vst [vmem:[%s1132_s29 + $0xe0] sm:$0xff] %v330_v28  ;;  %333 = vst [vmem:[%s1132_s29 + $0xe8] sm:$0xff] %v332_v29  ;;  %v334_v30 = vld [vmem:[%s1127_s28 + $0x1e0] sm:$0xff]  ;;  %v336_v31 = vld [vmem:[%s1127_s28 + $0x1f0] sm:$0xff] }
  0x25   : > { %335 = vst [vmem:[%s1132_s29 + $0xf0] sm:$0xff] %v334_v30  ;;  %337 = vst [vmem:[%s1132_s29 + $0xf8] sm:$0xff] %v336_v31 }
  0x26 PF: > { %p879_p8 = scmp.ge.s32.totalorder %s1057_s16, 1  ;;  %p350_p9 = scmp.lt.s32.totalorder %s1057_s16, 3 }
  0x28   : > { %p351_p10 = pnand %p879_p8, %p350_p9 }
  0x29   : > { %s357_s30 = sand.u32 (!%p351_p10), 1, %s1041_s12   ;;  %v1018_v32 = vld [vmem:[%s1267_s0 + $0x4] ss:$8 sps:$4 sm:$0xff] (!%p351_p10)   ;;  %v1016_v1 = vld [vmem:[%s1267_s0] ss:$8 sps:$4 sm:$0xff] (!%p351_p10)   ;;  %s882_s10 = sshll.u32 (!%p351_p10), %s1049_s14, 1  ;;  %v690_v2 = vlaneseq (!%p351_p10) }
  0x2a   : > { %354 = sbr.rel (%p351_p10) target bundleno = 337 (0x151), region = 66  ;;  %s880_s4 = sshll.u32 (!%p351_p10), %s357_s30, 8  ;;  %662 = vmatprep.mubr.bf16.mxu0 (!%p351_p10), %v1018_v32 }
  0x2b   : > { %s1203_s7 = scalar_lea.vmem (!%p351_p10), [#allocation3], %s880_s4  ;;  %p408_p11 = scmp.lt.s32.totalorder (!%p351_p10), %s882_s10, 3  ;;  %v691_v3 = vshrl.u32 (!%p351_p10), %v690_v2, 7 }
  0x2c   : > { %v968_v33 = vld [vmem:[%s1203_s7 + $0x4] ss:$8 sps:$4 sm:$0xff] (!%p351_p10)   ;;  %v970_v34 = vld [vmem:[%s1203_s7] ss:$8 sps:$4 sm:$0xff] (!%p351_p10)   ;;  %v971_v35 = vld [vmem:[%s1203_s7 + $0x14] ss:$8 sps:$4 sm:$0xff] (!%p351_p10)  }
  0x2d   : > { %630 = vmatprep.subr.bf16.mxu0 (!%p351_p10), %v968_v33  ;;  %v973_v36 = vld [vmem:[%s1203_s7 + $0x10] ss:$8 sps:$4 sm:$0xff] (!%p351_p10)   ;;  %v974_v37 = vld [vmem:[%s1203_s7 + $0x24] ss:$8 sps:$4 sm:$0xff] (!%p351_p10)   ;;  %v976_v38 = vld [vmem:[%s1203_s7 + $0x20] ss:$8 sps:$4 sm:$0xff] (!%p351_p10)  }
  0x2e   : > { %631 = vmatpush1.bf16.msra.mxu0 (!%p351_p10), %v970_v34  ;;  %v977_v39 = vld [vmem:[%s1203_s7 + $0x34] ss:$8 sps:$4 sm:$0xff] (!%p351_p10)   ;;  %v979_v40 = vld [vmem:[%s1203_s7 + $0x30] ss:$8 sps:$4 sm:$0xff] (!%p351_p10)   ;;  %v980_v41 = vld [vmem:[%s1203_s7 + $0x44] ss:$8 sps:$4 sm:$0xff] (!%p351_p10)  }
  0x2f   : > { %632 = vmatprep.subr.bf16.mxu0 (!%p351_p10), %v971_v35  ;;  %v982_v42 = vld [vmem:[%s1203_s7 + $0x40] ss:$8 sps:$4 sm:$0xff] (!%p351_p10)   ;;  %v983_v43 = vld [vmem:[%s1203_s7 + $0x54] ss:$8 sps:$4 sm:$0xff] (!%p351_p10)   ;;  %v985_v44 = vld [vmem:[%s1203_s7 + $0x50] ss:$8 sps:$4 sm:$0xff] (!%p351_p10)  }
  0x30   : > { %v986_v45 = vld [vmem:[%s1203_s7 + $0x64] ss:$8 sps:$4 sm:$0xff] (!%p351_p10)   ;;  %v988_v46 = vld [vmem:[%s1203_s7 + $0x60] ss:$8 sps:$4 sm:$0xff] (!%p351_p10)   ;;  %v989_v47 = vld [vmem:[%s1203_s7 + $0x74] ss:$8 sps:$4 sm:$0xff] (!%p351_p10)  }
  0x31   : > { %v991_v48 = vld [vmem:[%s1203_s7 + $0x70] ss:$8 sps:$4 sm:$0xff]   ;;  %v992_v49 = vld [vmem:[%s1203_s7 + $0x84] ss:$8 sps:$4 sm:$0xff]   ;;  %v994_v50 = vld [vmem:[%s1203_s7 + $0x80] ss:$8 sps:$4 sm:$0xff]  }
  0x32   : > { %633 = vmatpush1.bf16.msra.mxu0 %v973_v36  ;;  %v995_v51 = vld [vmem:[%s1203_s7 + $0x94] ss:$8 sps:$4 sm:$0xff]   ;;  %v997_v52 = vld [vmem:[%s1203_s7 + $0x90] ss:$8 sps:$4 sm:$0xff]   ;;  %v998_v53 = vld [vmem:[%s1203_s7 + $0xa4] ss:$8 sps:$4 sm:$0xff]  }
  0x33   : > { %634 = vmatprep.subr.bf16.mxu0 %v974_v37  ;;  %v1000_v54 = vld [vmem:[%s1203_s7 + $0xa0] ss:$8 sps:$4 sm:$0xff]   ;;  %v1001_v55 = vld [vmem:[%s1203_s7 + $0xb4] ss:$8 sps:$4 sm:$0xff]   ;;  %v1003_v56 = vld [vmem:[%s1203_s7 + $0xb0] ss:$8 sps:$4 sm:$0xff]  }
  0x34   : > { %v1004_v57 = vld [vmem:[%s1203_s7 + $0xc4] ss:$8 sps:$4 sm:$0xff]   ;;  %v1006_v58 = vld [vmem:[%s1203_s7 + $0xc0] ss:$8 sps:$4 sm:$0xff]   ;;  %v1007_v59 = vld [vmem:[%s1203_s7 + $0xd4] ss:$8 sps:$4 sm:$0xff]  }
  0x35   : > { %v1009_v60 = vld [vmem:[%s1203_s7 + $0xd0] ss:$8 sps:$4 sm:$0xff]   ;;  %v1010_v61 = vld [vmem:[%s1203_s7 + $0xe4] ss:$8 sps:$4 sm:$0xff]   ;;  %v1012_v62 = vld [vmem:[%s1203_s7 + $0xe0] ss:$8 sps:$4 sm:$0xff]  }
  0x36   : > { %635 = vmatpush1.bf16.msra.mxu0 %v976_v38  ;;  %v1013_v63 = vld [vmem:[%s1203_s7 + $0xf4] ss:$8 sps:$4 sm:$0xff]   ;;  %v1015_v0 = vld [vmem:[%s1203_s7 + $0xf0] ss:$8 sps:$4 sm:$0xff]   ;;  %s1279_s10 = smov (!%p408_p11, %s882_s10), 3  ;;  %v692_v4 = vsub.s32 0, %v691_v3 }
  0x37   : > { %636 = vmatprep.subr.bf16.mxu0 %v977_v39  ;;  %s410_s19 = scalar_lea.vmem %s1269_s2, %s1279_s10  ;;  %v696_v6 = vsub.s32 1, %v691_v3  ;;  %s881_s20 = sshll.u32 %s357_s30, 4 }
  0x38   : > { %v688_v5 = vld [vmem:[%s410_s19] sm:$0x3]  ;;  %s392_s23 = scalar_lea.vmem [#allocation4], %s881_s20  ;;  %s927_s24 = sshll.u32 (%p1114_p6), %s1049_s14, 3 }
  0x39   : > { %v693_v7 = vrot.slane %v688_v5, %v692_v4  ;;  %v697_v8 = vrot.slane %v688_v5, %v696_v6  ;;  %s730_s26 = scalar_lea.vmem (%p1114_p6), %s1270_s3, %s927_s24 }
  0x3a   : > { %637 = vmatpush1.bf16.msra.mxu0 %v979_v40 }
  0x3b   : > { %638 = vmatprep.subr.bf16.mxu0 %v980_v41 }
  0x3e   : > { %639 = vmatpush1.bf16.msra.mxu0 %v982_v42 }
  0x3f   : > { %640 = vmatprep.subr.bf16.mxu0 %v983_v43 }
  0x42   : > { %641 = vmatpush1.bf16.msra.mxu0 %v985_v44 }
  0x43   : > { %642 = vmatprep.subr.bf16.mxu0 %v986_v45 }
  0x46   : > { %643 = vmatpush1.bf16.msra.mxu0 %v988_v46 }
  0x47   : > { %644 = vmatprep.subr.bf16.mxu0 %v989_v47 }
  0x4a   : > { %645 = vmatpush1.bf16.msra.mxu0 %v991_v48 }
  0x4b   : > { %646 = vmatprep.subr.bf16.mxu0 %v992_v49 }
  0x4e   : > { %647 = vmatpush1.bf16.msra.mxu0 %v994_v50 }
  0x4f   : > { %648 = vmatprep.subr.bf16.mxu0 %v995_v51 }
  0x52   : > { %649 = vmatpush1.bf16.msra.mxu0 %v997_v52 }
  0x53   : > { %650 = vmatprep.subr.bf16.mxu0 %v998_v53 }
  0x56   : > { %651 = vmatpush1.bf16.msra.mxu0 %v1000_v54 }
  0x57   : > { %652 = vmatprep.subr.bf16.mxu0 %v1001_v55 }
  0x5a   : > { %653 = vmatpush1.bf16.msra.mxu0 %v1003_v56 }
  0x5b   : > { %654 = vmatprep.subr.bf16.mxu0 %v1004_v57 }
  0x5e   : > { %655 = vmatpush1.bf16.msra.mxu0 %v1006_v58 }
  0x5f   : > { %656 = vmatprep.subr.bf16.mxu0 %v1007_v59 }
  0x62   : > { %657 = vmatpush1.bf16.msra.mxu0 %v1009_v60 }
  0x63   : > { %658 = vmatprep.subr.bf16.mxu0 %v1010_v61 }
  0x66   : > { %659 = vmatpush1.bf16.msra.mxu0 %v1012_v62 }
  0x67   : > { %660 = vmatprep.subr.bf16.mxu0 %v1013_v63 }
  0x6a   : > { %661 = vmatpush1.bf16.msra.mxu0 %v1015_v0 }
  0x6d   : > { %663 = vmatmul.mubr.bf16.vlgmr.msra.gmra.mrb[0].mxu0 %v1016_v1 }
 0x140   : > { %v664_v9 = vpop.f32.mrb[0].mxu0 }
 0x141   : > { %v700_v10 = vadd.f32 %v693_v7, %v664_v9  ;;  %v666_v11 = vpop.f32.mrb[1].mxu0 }
 0x142   : > { %v701_v12 = vadd.f32 %v697_v8, %v666_v11  ;;  %v668_v13 = vpop.f32.mrb[2].mxu0  ;;  %724 = sbr.rel (!%p1114_p6) target bundleno = 337 (0x151), region = 82 }
 0x143   : > { %v702_v14 = vadd.f32 %v693_v7, %v668_v13  ;;  %v670_v15 = vpop.f32.mrb[3].mxu0 }
 0x144   : > { %v925_v16 = vpack.c.bf16 %v701_v12, %v700_v10  ;;  %v703_v17 = vadd.f32 %v697_v8, %v670_v15 }
 0x146   : > { %716 = vst [vmem:[%s392_s23] sm:$0xff] %v925_v16  ;;  %v926_v18 = vpack.c.bf16 %v703_v17, %v702_v14 }
 0x148   : > { %717 = vst [vmem:[%s392_s23 + $0x8] sm:$0xff] %v926_v18 }
 0x14d   : > { %v760_v19 = vld [vmem:[%s392_s23] sm:$0xff] }
 0x14e   : > { %761 = vst [vmem:[%s730_s26] sm:$0xff] %v760_v19 }
 0x14f   : > { %v762_v20 = vld [vmem:[%s392_s23 + $0x8] sm:$0xff] }
 0x150   : > { %763 = vst [vmem:[%s730_s26 + $0x10] sm:$0xff] %v762_v20 }
 0x151 PF: > { %s13_s16 = sadd.s32 1, %s1057_s16   ;;  %s1272_s12 = smov %s1045_s13 }
 0x152   : > { %p10_p12 = scmp.ge.s32.totalorder %s13_s16, 4   ;;  %s1273_s13 = smov %s1119_s22 }
 0x153   : > { %s1274_s14 = smov %s1053_s15  ;;  %s1275_s15 = smov %s1277_s17 }
 0x154   :  { %12 = sbr.rel (!%p10_p12) target bundleno = 3 (0x3), region = 157 }

// kernel: classifier_forward.38
= control target key start
LH: loop header
LB: loop body
LE: loop exit
PB: predicated region body
PF: predicated region fallthrough
CT: control target
= control target key end

     0   :  { %s2210_s0 = inlined_call_operand.vmem [shape: bf16[16,4608], index: 0, kind: input, shape index: {}]   ;;  %s2211_s1 = inlined_call_operand.vmem [shape: bf16[4608,512], index: 1, kind: input, shape index: {}]   ;;  %s2212_s2 = inlined_call_operand.vmem [shape: f32[1,512], index: 2, kind: input, shape index: {}]   ;;  %s2213_s3 = inlined_call_operand.vmem [shape: bf16[16,512], index: 3, kind: input, shape index: {}]   ;;  %s2214_s4 = inlined_call_operand.vmem [shape: bf16[16,512], index: 4, kind: output, shape index: {}]  }
   0x1   :  { %2217 = sst [smem:[#allocation10_spill]] %s2210_s0 }
   0x2   :  { %s1803_s15 = smov 0   ;;  %s1805_s16 = smov 0  }
   0x3   :  { %s1807_s17 = smov 0   ;;  %s1809_s18 = smov 0  }
   0x4   :  { %s1811_s19 = smov 0   ;;  %s1813_s20 = smov 0  }
   0x5   :  { %s1815_s21 = smov 0   ;;  %s1817_s22 = smov 0  }
   0x6   :  { %s1819_s23 = smov 0   ;;  %s1821_s24 = smov 0  }
   0x7   :  { %s1823_s25 = smov 0  }
   0x8 LB: > { %s1390_s26 = sadd.s32 4294967295, %s1775_s25   ;;  %s26_s27 = sadd.s32 1, %s1767_s23  ;;  %s1775_s25 = sphi %s1823_s25, %s14_s25   ;;  %s1771_s24 = sphi %s1821_s24, %s2238_s24   ;;  %s1767_s23 = sphi %s1819_s23, %s2237_s23   ;;  %s1763_s22 = sphi %s1817_s22, %s2236_s22   ;;  %s1759_s21 = sphi %s1815_s21, %s2235_s21   ;;  %s1755_s20 = sphi %s1813_s20, %s2234_s20   ;;  %s1751_s19 = sphi %s1811_s19, %s2233_s19   ;;  %s1747_s18 = sphi %s1809_s18, %s2232_s18   ;;  %s1743_s17 = sphi %s1807_s17, %s2231_s17   ;;  %s1739_s16 = sphi %s1805_s16, %s2230_s16   ;;  %s1735_s15 = sphi %s1803_s15, %s2229_s15  }
   0x9   : > { %p27_p0 = scmp.ge.s32.totalorder %s26_s27, 9  ;;  %s29_s28 = sadd.s32 1, %s1771_s24 }
   0xa   : > { %s42_s29 = sadd.s32 1, %s1755_s20  ;;  %p49_p1 = scmp.ne.s32.totalorder %s1755_s20, %s1751_s19 }
   0xb   : > { %s2240_s27 = smov (%p27_p0, %s26_s27), 0  ;;  %s2242_s28 = smov (!%p27_p0, %s29_s28), %s1771_s24 }
   0xc   : > { %2218 = sst [smem:[#allocation7_spill]] %s2240_s27  ;;  %s38_s30 = ssub.s32 %s1767_s23, %s2240_s27 }
   0xd   : > { %p50_p2 = scmp.eq.s32.totalorder %s1775_s25, 0  ;;  %p31_p3 = scmp.ge.s32.totalorder %s2242_s28, 2 }
   0xe   : > { %p40_p4 = scmp.eq.s32.totalorder %s38_s30, 0  ;;  %s70_s6 = sadd.s32 1, %s1747_s18 }
   0xf   : > { %p1872_p5 = por %p50_p2, %p49_p1  ;;  %s2244_s28 = smov (%p31_p3, %s2242_s28), 0 }
  0x10   : > { %2220 = sst [smem:[#allocation8_spill]] %s2244_s28  ;;  %s66_s8 = ssub.s32 %s1771_s24, %s2244_s28 }
  0x11   : > { %s1880_s7 = scalar_select %p40_p4, %s1755_s20, %s42_s29  }
  0x12   : > { %p77_p6 = scmp.ne.s32.totalorder %s1747_s18, %s1743_s17  ;;  %s67_s9 = sor.u32 %s66_s8, %s38_s30 }
  0x13   : > { %2221 = sst [smem:[#allocation9_spill]] %s1880_s7  ;;  %p122_p7 = scmp.eq.s32.totalorder %s66_s8, 0 }
  0x14   : > { %p68_p8 = scmp.eq.s32.totalorder %s67_s9, 0  ;;  %p1888_p9 = por %p77_p6, %p50_p2 }
  0x15   : > { %s124_s11 = sadd.s32 1, %s1739_s16  ;;  %p131_p10 = scmp.ne.s32.totalorder %s1739_s16, %s1735_s15 }
  0x16   : > { %s1896_s12 = scalar_select %p68_p8, %s1747_s18, %s70_s6  }
  0x17   : > { %s1899_s13 = scalar_select %p122_p7, %s1739_s16, %s124_s11  }
  0x18   : > { %p1903_p11 = por %p131_p10, %p50_p2  ;;  %p163_p12 = scmp.eq.s32.totalorder %s1390_s26, 17 }
  0x19   : > { %p1393_p0 = scmp.ge.s32.totalorder %s1775_s25, 18 }
  0x1a   : > { %p1907_p13 = por %p163_p12, %p131_p10 }
  0x1b   : > { %185 = sbr.rel (%p1393_p0) target bundleno = 92 (0x5c), region = 16 }
  0x22   : > { %188 = sbr.rel (!%p1872_p5) target bundleno = 46 (0x2e), region = 20  ;;  %s190_s30 = sand.u32 (%p1872_p5), 1, %s1755_s20  }
  0x23   : > { %s1488_s6 = sshll.u32 (%p1872_p5), %s1767_s23, 4  ;;  %s1394_s8 = sshll.u32 (%p1872_p5), %s190_s30, 5 }
  0x24   : > { %s2225_s0 = sld [smem:[#allocation10_spill]] (%p1872_p5)  ;;  %s192_s26 = scalar_lea.vmem (%p1872_p5), [#allocation3], %s1394_s8 }
  0x2a   : > { %s198_s28 = scalar_lea.vmem %s2225_s0, %s1488_s6 }
  0x2b   : > { %v211_v0 = vld [vmem:[%s198_s28] sm:$0xff]  ;;  %v213_v1 = vld [vmem:[%s198_s28 + $0x8] sm:$0xff]  ;;  %v215_v2 = vld [vmem:[%s198_s28 + $0x90] sm:$0xff] }
  0x2c   : > { %212 = vst [vmem:[%s192_s26] sm:$0xff] %v211_v0  ;;  %214 = vst [vmem:[%s192_s26 + $0x8] sm:$0xff] %v213_v1  ;;  %v217_v3 = vld [vmem:[%s198_s28 + $0x98] sm:$0xff] }
  0x2d   : > { %216 = vst [vmem:[%s192_s26 + $0x10] sm:$0xff] %v215_v2  ;;  %218 = vst [vmem:[%s192_s26 + $0x18] sm:$0xff] %v217_v3 }
  0x2e PF: > { %224 = sbr.rel (!%p1888_p9) target bundleno = 85 (0x55), region = 43  ;;  %s226_s5 = sand.u32 (%p1888_p9), 1, %s1747_s18  }
  0x2f   : > { %s1399_s30 = sshll.u32 (%p1888_p9), %s1771_s24, 1  ;;  %s1397_s9 = sshll.u32 (%p1888_p9), %s226_s5, 9 }
  0x30   : > { %s1489_s6 = sshll.u32 (%p1888_p9), %s1767_s23, 8  ;;  %s1932_s28 = scalar_lea.vmem (%p1888_p9), [#allocation4], %s1397_s9 }
  0x31   : > { %s232_s11 = sadd.s32 (%p1888_p9), %s1489_s6, %s1399_s30 }
  0x32   : > { %s1401_s0 = sshll.u32 (%p1888_p9), %s232_s11, 2 }
  0x33   : > { %s1927_s7 = scalar_lea.vmem (%p1888_p9), %s2211_s1, %s1401_s0 }
  0x34   : > { %v388_v4 = vld [vmem:[%s1927_s7] sm:$0xff] (%p1888_p9)  ;;  %v390_v5 = vld [vmem:[%s1927_s7 + $0x10] sm:$0xff] (%p1888_p9) }
  0x35   : > { %v392_v6 = vld [vmem:[%s1927_s7 + $0x20] sm:$0xff]  ;;  %389 = vst [vmem:[%s1932_s28] sm:$0xff] %v388_v4  ;;  %391 = vst [vmem:[%s1932_s28 + $0x8] sm:$0xff] %v390_v5  ;;  %v394_v7 = vld [vmem:[%s1927_s7 + $0x30] sm:$0xff] }
  0x36   : > { %393 = vst [vmem:[%s1932_s28 + $0x10] sm:$0xff] %v392_v6  ;;  %v396_v8 = vld [vmem:[%s1927_s7 + $0x40] sm:$0xff]  ;;  %v398_v9 = vld [vmem:[%s1927_s7 + $0x50] sm:$0xff]  ;;  %395 = vst [vmem:[%s1932_s28 + $0x18] sm:$0xff] %v394_v7 }
  0x37   : > { %397 = vst [vmem:[%s1932_s28 + $0x20] sm:$0xff] %v396_v8  ;;  %399 = vst [vmem:[%s1932_s28 + $0x28] sm:$0xff] %v398_v9  ;;  %v400_v10 = vld [vmem:[%s1927_s7 + $0x60] sm:$0xff]  ;;  %v402_v11 = vld [vmem:[%s1927_s7 + $0x70] sm:$0xff] }
  0x38   : > { %v404_v12 = vld [vmem:[%s1927_s7 + $0x80] sm:$0xff]  ;;  %401 = vst [vmem:[%s1932_s28 + $0x30] sm:$0xff] %v400_v10  ;;  %403 = vst [vmem:[%s1932_s28 + $0x38] sm:$0xff] %v402_v11  ;;  %v406_v13 = vld [vmem:[%s1927_s7 + $0x90] sm:$0xff] }
  0x39   : > { %405 = vst [vmem:[%s1932_s28 + $0x40] sm:$0xff] %v404_v12  ;;  %v408_v14 = vld [vmem:[%s1927_s7 + $0xa0] sm:$0xff]  ;;  %v410_v15 = vld [vmem:[%s1927_s7 + $0xb0] sm:$0xff]  ;;  %407 = vst [vmem:[%s1932_s28 + $0x48] sm:$0xff] %v406_v13 }
  0x3a   : > { %409 = vst [vmem:[%s1932_s28 + $0x50] sm:$0xff] %v408_v14  ;;  %411 = vst [vmem:[%s1932_s28 + $0x58] sm:$0xff] %v410_v15  ;;  %v412_v16 = vld [vmem:[%s1927_s7 + $0xc0] sm:$0xff]  ;;  %v414_v17 = vld [vmem:[%s1927_s7 + $0xd0] sm:$0xff] }
  0x3b   : > { %v416_v18 = vld [vmem:[%s1927_s7 + $0xe0] sm:$0xff]  ;;  %413 = vst [vmem:[%s1932_s28 + $0x60] sm:$0xff] %v412_v16  ;;  %415 = vst [vmem:[%s1932_s28 + $0x68] sm:$0xff] %v414_v17  ;;  %v418_v19 = vld [vmem:[%s1927_s7 + $0xf0] sm:$0xff] }
  0x3c   : > { %417 = vst [vmem:[%s1932_s28 + $0x70] sm:$0xff] %v416_v18  ;;  %v420_v20 = vld [vmem:[%s1927_s7 + $0x100] sm:$0xff]  ;;  %v422_v21 = vld [vmem:[%s1927_s7 + $0x110] sm:$0xff]  ;;  %419 = vst [vmem:[%s1932_s28 + $0x78] sm:$0xff] %v418_v19 }
  0x3d   : > { %421 = vst [vmem:[%s1932_s28 + $0x80] sm:$0xff] %v420_v20  ;;  %423 = vst [vmem:[%s1932_s28 + $0x88] sm:$0xff] %v422_v21  ;;  %v424_v22 = vld [vmem:[%s1927_s7 + $0x120] sm:$0xff]  ;;  %v426_v23 = vld [vmem:[%s1927_s7 + $0x130] sm:$0xff] }
  0x3e   : > { %v428_v24 = vld [vmem:[%s1927_s7 + $0x140] sm:$0xff]  ;;  %425 = vst [vmem:[%s1932_s28 + $0x90] sm:$0xff] %v424_v22  ;;  %427 = vst [vmem:[%s1932_s28 + $0x98] sm:$0xff] %v426_v23  ;;  %v430_v25 = vld [vmem:[%s1927_s7 + $0x150] sm:$0xff] }
  0x3f   : > { %429 = vst [vmem:[%s1932_s28 + $0xa0] sm:$0xff] %v428_v24  ;;  %v432_v26 = vld [vmem:[%s1927_s7 + $0x160] sm:$0xff]  ;;  %v434_v27 = vld [vmem:[%s1927_s7 + $0x170] sm:$0xff]  ;;  %431 = vst [vmem:[%s1932_s28 + $0xa8] sm:$0xff] %v430_v25 }
  0x40   : > { %433 = vst [vmem:[%s1932_s28 + $0xb0] sm:$0xff] %v432_v26  ;;  %435 = vst [vmem:[%s1932_s28 + $0xb8] sm:$0xff] %v434_v27  ;;  %v436_v28 = vld [vmem:[%s1927_s7 + $0x180] sm:$0xff]  ;;  %v438_v29 = vld [vmem:[%s1927_s7 + $0x190] sm:$0xff] }
  0x41   : > { %v440_v30 = vld [vmem:[%s1927_s7 + $0x1a0] sm:$0xff]  ;;  %437 = vst [vmem:[%s1932_s28 + $0xc0] sm:$0xff] %v436_v28  ;;  %439 = vst [vmem:[%s1932_s28 + $0xc8] sm:$0xff] %v438_v29  ;;  %v442_v31 = vld [vmem:[%s1927_s7 + $0x1b0] sm:$0xff] }
  0x42   : > { %441 = vst [vmem:[%s1932_s28 + $0xd0] sm:$0xff] %v440_v30  ;;  %v444_v32 = vld [vmem:[%s1927_s7 + $0x1c0] sm:$0xff]  ;;  %v446_v33 = vld [vmem:[%s1927_s7 + $0x1d0] sm:$0xff]  ;;  %443 = vst [vmem:[%s1932_s28 + $0xd8] sm:$0xff] %v442_v31 }
  0x43   : > { %445 = vst [vmem:[%s1932_s28 + $0xe0] sm:$0xff] %v444_v32  ;;  %447 = vst [vmem:[%s1932_s28 + $0xe8] sm:$0xff] %v446_v33  ;;  %v448_v34 = vld [vmem:[%s1927_s7 + $0x1e0] sm:$0xff]  ;;  %v450_v35 = vld [vmem:[%s1927_s7 + $0x1f0] sm:$0xff] }
  0x44   : > { %v452_v36 = vld [vmem:[%s1927_s7 + $0x200] sm:$0xff]  ;;  %449 = vst [vmem:[%s1932_s28 + $0xf0] sm:$0xff] %v448_v34  ;;  %451 = vst [vmem:[%s1932_s28 + $0xf8] sm:$0xff] %v450_v35  ;;  %v454_v37 = vld [vmem:[%s1927_s7 + $0x210] sm:$0xff] }
  0x45   : > { %453 = vst [vmem:[%s1932_s28 + $0x100] sm:$0xff] %v452_v36  ;;  %v456_v38 = vld [vmem:[%s1927_s7 + $0x220] sm:$0xff]  ;;  %v458_v39 = vld [vmem:[%s1927_s7 + $0x230] sm:$0xff]  ;;  %455 = vst [vmem:[%s1932_s28 + $0x108] sm:$0xff] %v454_v37 }
  0x46   : > { %457 = vst [vmem:[%s1932_s28 + $0x110] sm:$0xff] %v456_v38  ;;  %459 = vst [vmem:[%s1932_s28 + $0x118] sm:$0xff] %v458_v39  ;;  %v460_v40 = vld [vmem:[%s1927_s7 + $0x240] sm:$0xff]  ;;  %v462_v41 = vld [vmem:[%s1927_s7 + $0x250] sm:$0xff] }
  0x47   : > { %v464_v42 = vld [vmem:[%s1927_s7 + $0x260] sm:$0xff]  ;;  %461 = vst [vmem:[%s1932_s28 + $0x120] sm:$0xff] %v460_v40  ;;  %463 = vst [vmem:[%s1932_s28 + $0x128] sm:$0xff] %v462_v41  ;;  %v466_v43 = vld [vmem:[%s1927_s7 + $0x270] sm:$0xff] }
  0x48   : > { %465 = vst [vmem:[%s1932_s28 + $0x130] sm:$0xff] %v464_v42  ;;  %v468_v44 = vld [vmem:[%s1927_s7 + $0x280] sm:$0xff]  ;;  %v470_v45 = vld [vmem:[%s1927_s7 + $0x290] sm:$0xff]  ;;  %467 = vst [vmem:[%s1932_s28 + $0x138] sm:$0xff] %v466_v43 }
  0x49   : > { %469 = vst [vmem:[%s1932_s28 + $0x140] sm:$0xff] %v468_v44  ;;  %471 = vst [vmem:[%s1932_s28 + $0x148] sm:$0xff] %v470_v45  ;;  %v472_v46 = vld [vmem:[%s1927_s7 + $0x2a0] sm:$0xff]  ;;  %v474_v47 = vld [vmem:[%s1927_s7 + $0x2b0] sm:$0xff] }
  0x4a   : > { %v476_v48 = vld [vmem:[%s1927_s7 + $0x2c0] sm:$0xff]  ;;  %473 = vst [vmem:[%s1932_s28 + $0x150] sm:$0xff] %v472_v46  ;;  %475 = vst [vmem:[%s1932_s28 + $0x158] sm:$0xff] %v474_v47  ;;  %v478_v49 = vld [vmem:[%s1927_s7 + $0x2d0] sm:$0xff] }
  0x4b   : > { %477 = vst [vmem:[%s1932_s28 + $0x160] sm:$0xff] %v476_v48  ;;  %v480_v50 = vld [vmem:[%s1927_s7 + $0x2e0] sm:$0xff]  ;;  %v482_v51 = vld [vmem:[%s1927_s7 + $0x2f0] sm:$0xff]  ;;  %479 = vst [vmem:[%s1932_s28 + $0x168] sm:$0xff] %v478_v49 }
  0x4c   : > { %481 = vst [vmem:[%s1932_s28 + $0x170] sm:$0xff] %v480_v50  ;;  %483 = vst [vmem:[%s1932_s28 + $0x178] sm:$0xff] %v482_v51  ;;  %v484_v52 = vld [vmem:[%s1927_s7 + $0x300] sm:$0xff]  ;;  %v486_v53 = vld [vmem:[%s1927_s7 + $0x310] sm:$0xff] }
  0x4d   : > { %v488_v54 = vld [vmem:[%s1927_s7 + $0x320] sm:$0xff]  ;;  %485 = vst [vmem:[%s1932_s28 + $0x180] sm:$0xff] %v484_v52  ;;  %487 = vst [vmem:[%s1932_s28 + $0x188] sm:$0xff] %v486_v53  ;;  %v490_v55 = vld [vmem:[%s1927_s7 + $0x330] sm:$0xff] }
  0x4e   : > { %489 = vst [vmem:[%s1932_s28 + $0x190] sm:$0xff] %v488_v54  ;;  %v492_v56 = vld [vmem:[%s1927_s7 + $0x340] sm:$0xff]  ;;  %v494_v57 = vld [vmem:[%s1927_s7 + $0x350] sm:$0xff]  ;;  %491 = vst [vmem:[%s1932_s28 + $0x198] sm:$0xff] %v490_v55 }
  0x4f   : > { %493 = vst [vmem:[%s1932_s28 + $0x1a0] sm:$0xff] %v492_v56  ;;  %495 = vst [vmem:[%s1932_s28 + $0x1a8] sm:$0xff] %v494_v57  ;;  %v496_v58 = vld [vmem:[%s1927_s7 + $0x360] sm:$0xff]  ;;  %v498_v59 = vld [vmem:[%s1927_s7 + $0x370] sm:$0xff] }
  0x50   : > { %v500_v60 = vld [vmem:[%s1927_s7 + $0x380] sm:$0xff]  ;;  %497 = vst [vmem:[%s1932_s28 + $0x1b0] sm:$0xff] %v496_v58  ;;  %499 = vst [vmem:[%s1932_s28 + $0x1b8] sm:$0xff] %v498_v59  ;;  %v502_v61 = vld [vmem:[%s1927_s7 + $0x390] sm:$0xff] }
  0x51   : > { %501 = vst [vmem:[%s1932_s28 + $0x1c0] sm:$0xff] %v500_v60  ;;  %v504_v62 = vld [vmem:[%s1927_s7 + $0x3a0] sm:$0xff]  ;;  %v506_v63 = vld [vmem:[%s1927_s7 + $0x3b0] sm:$0xff]  ;;  %503 = vst [vmem:[%s1932_s28 + $0x1c8] sm:$0xff] %v502_v61 }
  0x52   : > { %505 = vst [vmem:[%s1932_s28 + $0x1d0] sm:$0xff] %v504_v62  ;;  %507 = vst [vmem:[%s1932_s28 + $0x1d8] sm:$0xff] %v506_v63  ;;  %v508_v0 = vld [vmem:[%s1927_s7 + $0x3c0] sm:$0xff]  ;;  %v510_v1 = vld [vmem:[%s1927_s7 + $0x3d0] sm:$0xff] }
  0x53   : > { %v512_v2 = vld [vmem:[%s1927_s7 + $0x3e0] sm:$0xff]  ;;  %509 = vst [vmem:[%s1932_s28 + $0x1e0] sm:$0xff] %v508_v0  ;;  %511 = vst [vmem:[%s1932_s28 + $0x1e8] sm:$0xff] %v510_v1  ;;  %v514_v3 = vld [vmem:[%s1927_s7 + $0x3f0] sm:$0xff] }
  0x54   : > { %513 = vst [vmem:[%s1932_s28 + $0x1f0] sm:$0xff] %v512_v2  ;;  %515 = vst [vmem:[%s1932_s28 + $0x1f8] sm:$0xff] %v514_v3 }
  0x55 PF: > { %529 = sbr.rel (!%p1903_p11) target bundleno = 92 (0x5c), region = 85  ;;  %s531_s0 = sand.u32 (%p1903_p11), 1, %s1739_s16  }
  0x56   : > { %s1490_s27 = sshll.u32 (%p1903_p11), %s1771_s24, 3  ;;  %s1402_s10 = sshll.u32 (%p1903_p11), %s531_s0, 4 }
  0x57   : > { %s539_s30 = scalar_lea.vmem (%p1903_p11), %s2213_s3, %s1490_s27  ;;  %s533_s9 = scalar_lea.vmem (%p1903_p11), [#allocation5], %s1402_s10 }
  0x58   : > { %v569_v4 = vld [vmem:[%s539_s30] sm:$0xff] (%p1903_p11)  ;;  %v571_v5 = vld [vmem:[%s539_s30 + $0x10] sm:$0xff] (%p1903_p11) }
  0x59   : > { %570 = vst [vmem:[%s533_s9] sm:$0xff] (%p1903_p11), %v569_v4  ;;  %572 = vst [vmem:[%s533_s9 + $0x8] sm:$0xff] (%p1903_p11), %v571_v5 }
  0x5c PF: > { %p1405_p1 = scmp.ge.s32.totalorder %s1775_s25, 1  ;;  %p577_p2 = scmp.lt.s32.totalorder %s1775_s25, 19 }
  0x5e   : > { %p578_p3 = pnand %p1405_p1, %p577_p2 }
  0x5f   : > { %s584_s7 = sand.u32 (!%p578_p3), 1, %s1751_s19   ;;  %s591_s14 = sand.u32 (!%p578_p3), 1, %s1743_s17  }
  0x60   : > { %581 = sbr.rel (%p578_p3) target bundleno = 420 (0x1a4), region = 123  ;;  %s1406_s6 = sshll.u32 (!%p578_p3), %s584_s7, 5 }
  0x61   : > { %s1407_s11 = sshll.u32 (!%p578_p3), %s591_s14, 9  ;;  %s598_s8 = sand.u32 (!%p578_p3), 1, %s1735_s15  }
  0x62   : > { %s1410_s28 = sshll.u32 (!%p578_p3), %s1763_s22, 1  ;;  %s2072_s0 = sshll.u32 (!%p578_p3), %s598_s8, 4 }
  0x63   : > { %p639_p4 = scmp.lt.s32.totalorder (!%p578_p3), %s1410_s28, 3  ;;  %s2080_s5 = scalar_lea.vmem (!%p578_p3), [#allocation3], %s1406_s6 }
  0x64   : > { %s2082_s19 = scalar_lea.vmem (!%p578_p3), [#allocation4], %s1407_s11  ;;  %s600_s17 = scalar_lea.vmem (!%p578_p3), [#allocation5], %s2072_s0 }
  0x65   : > { %s2086_s30 = scalar_lea.vmem (!%p578_p3), [#allocation6], %s2072_s0  ;;  %p1411_p5 = scmp.ne.s32.totalorder (!%p578_p3), %s1759_s21, 0 }
  0x67   : > { %s2246_s28 = smov (!%p639_p4, %s1410_s28), 3  ;;  %650 = sbr.rel (%p1411_p5) target bundleno = 110 (0x6e), region = 139 }
  0x68   : > { %s641_s26 = scalar_lea.vmem %s2212_s2, %s2246_s28  ;;  %v1777_v6 = vmov (!%p1411_p5), 0.0  }
  0x69   : > { %651 = vst [vmem:[#allocation2] sm:$0xff] (!%p1411_p5), %v1777_v6  ;;  %652 = vst [vmem:[#allocation2 + $0x8] sm:$0xff] (!%p1411_p5), %v1777_v6 }
  0x6a   : > { %653 = vst [vmem:[#allocation2 + $0x10] sm:$0xff] (!%p1411_p5), %v1777_v6  ;;  %654 = vst [vmem:[#allocation2 + $0x18] sm:$0xff] (!%p1411_p5), %v1777_v6 }
  0x6e PF: > { %v1587_v7 = vld [vmem:[%s2082_s19 + $0x4] ss:$8 sps:$4 sm:$0xff]   ;;  %v1591_v9 = vld [vmem:[%s2082_s19] ss:$8 sps:$4 sm:$0xff]   ;;  %v1593_v11 = vld [vmem:[%s2082_s19 + $0x14] ss:$8 sps:$4 sm:$0xff]  }
  0x6f   : > { %v1589_v8 = vld [vmem:[%s2082_s19 + $0x104] ss:$8 sps:$4 sm:$0xff]   ;;  %1067 = vmatprep.subr.bf16.mxu1 %v1587_v7  ;;  %v1592_v10 = vld [vmem:[%s2082_s19 + $0x100] ss:$8 sps:$4 sm:$0xff]   ;;  %v1595_v12 = vld [vmem:[%s2082_s19 + $0x114] ss:$8 sps:$4 sm:$0xff]  }
  0x70   : > { %1110 = vmatprep.subr.bf16.mxu0 %v1589_v8  ;;  %1068 = vmatpush1.bf16.msra.mxu1 %v1591_v9  ;;  %v1597_v13 = vld [vmem:[%s2082_s19 + $0x10] ss:$8 sps:$4 sm:$0xff]   ;;  %v1599_v15 = vld [vmem:[%s2082_s19 + $0x24] ss:$8 sps:$4 sm:$0xff]   ;;  %v1603_v17 = vld [vmem:[%s2082_s19 + $0x20] ss:$8 sps:$4 sm:$0xff]  }
  0x71   : > { %1111 = vmatpush1.bf16.msra.mxu0 %v1592_v10  ;;  %1069 = vmatprep.subr.bf16.mxu1 %v1593_v11  ;;  %v1598_v14 = vld [vmem:[%s2082_s19 + $0x110] ss:$8 sps:$4 sm:$0xff]   ;;  %v1601_v16 = vld [vmem:[%s2082_s19 + $0x124] ss:$8 sps:$4 sm:$0xff]   ;;  %v1604_v18 = vld [vmem:[%s2082_s19 + $0x120] ss:$8 sps:$4 sm:$0xff]  }
  0x72   : > { %1112 = vmatprep.subr.bf16.mxu0 %v1595_v12  ;;  %v1605_v19 = vld [vmem:[%s2082_s19 + $0x34] ss:$8 sps:$4 sm:$0xff]   ;;  %v1609_v21 = vld [vmem:[%s2082_s19 + $0x30] ss:$8 sps:$4 sm:$0xff]   ;;  %v1611_v23 = vld [vmem:[%s2082_s19 + $0x44] ss:$8 sps:$4 sm:$0xff]  }
  0x73   : > { %v1607_v20 = vld [vmem:[%s2082_s19 + $0x134] ss:$8 sps:$4 sm:$0xff]   ;;  %v1610_v22 = vld [vmem:[%s2082_s19 + $0x130] ss:$8 sps:$4 sm:$0xff]   ;;  %v1613_v24 = vld [vmem:[%s2082_s19 + $0x144] ss:$8 sps:$4 sm:$0xff]  }
  0x74   : > { %1070 = vmatpush1.bf16.msra.mxu1 %v1597_v13  ;;  %v1615_v25 = vld [vmem:[%s2082_s19 + $0x40] ss:$8 sps:$4 sm:$0xff]   ;;  %v1617_v27 = vld [vmem:[%s2082_s19 + $0x54] ss:$8 sps:$4 sm:$0xff]   ;;  %v1621_v29 = vld [vmem:[%s2082_s19 + $0x50] ss:$8 sps:$4 sm:$0xff]  }
  0x75   : > { %1113 = vmatpush1.bf16.msra.mxu0 %v1598_v14  ;;  %1071 = vmatprep.subr.bf16.mxu1 %v1599_v15  ;;  %v1616_v26 = vld [vmem:[%s2082_s19 + $0x140] ss:$8 sps:$4 sm:$0xff]   ;;  %v1619_v28 = vld [vmem:[%s2082_s19 + $0x154] ss:$8 sps:$4 sm:$0xff]   ;;  %v1622_v30 = vld [vmem:[%s2082_s19 + $0x150] ss:$8 sps:$4 sm:$0xff]  }
  0x76   : > { %1114 = vmatprep.subr.bf16.mxu0 %v1601_v16  ;;  %v1623_v31 = vld [vmem:[%s2082_s19 + $0x64] ss:$8 sps:$4 sm:$0xff]   ;;  %v1627_v33 = vld [vmem:[%s2082_s19 + $0x60] ss:$8 sps:$4 sm:$0xff]   ;;  %v1629_v35 = vld [vmem:[%s2082_s19 + $0x74] ss:$8 sps:$4 sm:$0xff]  }
  0x77   : > { %v1625_v32 = vld [vmem:[%s2082_s19 + $0x164] ss:$8 sps:$4 sm:$0xff]   ;;  %v1628_v34 = vld [vmem:[%s2082_s19 + $0x160] ss:$8 sps:$4 sm:$0xff]   ;;  %v1631_v36 = vld [vmem:[%s2082_s19 + $0x174] ss:$8 sps:$4 sm:$0xff]  }
  0x78   : > { %1072 = vmatpush1.bf16.msra.mxu1 %v1603_v17  ;;  %v1633_v37 = vld [vmem:[%s2082_s19 + $0x70] ss:$8 sps:$4 sm:$0xff]   ;;  %v1635_v39 = vld [vmem:[%s2082_s19 + $0x84] ss:$8 sps:$4 sm:$0xff]   ;;  %v1639_v41 = vld [vmem:[%s2082_s19 + $0x80] ss:$8 sps:$4 sm:$0xff]  }
  0x79   : > { %1115 = vmatpush1.bf16.msra.mxu0 %v1604_v18  ;;  %1073 = vmatprep.subr.bf16.mxu1 %v1605_v19  ;;  %v1634_v38 = vld [vmem:[%s2082_s19 + $0x170] ss:$8 sps:$4 sm:$0xff]   ;;  %v1637_v40 = vld [vmem:[%s2082_s19 + $0x184] ss:$8 sps:$4 sm:$0xff]   ;;  %v1640_v42 = vld [vmem:[%s2082_s19 + $0x180] ss:$8 sps:$4 sm:$0xff]  }
  0x7a   : > { %1116 = vmatprep.subr.bf16.mxu0 %v1607_v20  ;;  %v1641_v43 = vld [vmem:[%s2082_s19 + $0x94] ss:$8 sps:$4 sm:$0xff]   ;;  %v1645_v45 = vld [vmem:[%s2082_s19 + $0x90] ss:$8 sps:$4 sm:$0xff]   ;;  %v1647_v47 = vld [vmem:[%s2082_s19 + $0xa4] ss:$8 sps:$4 sm:$0xff]  }
  0x7b   : > { %v1643_v44 = vld [vmem:[%s2082_s19 + $0x194] ss:$8 sps:$4 sm:$0xff]   ;;  %v1646_v46 = vld [vmem:[%s2082_s19 + $0x190] ss:$8 sps:$4 sm:$0xff]   ;;  %v1649_v48 = vld [vmem:[%s2082_s19 + $0x1a4] ss:$8 sps:$4 sm:$0xff]  }
  0x7c   : > { %1074 = vmatpush1.bf16.msra.mxu1 %v1609_v21  ;;  %v1651_v49 = vld [vmem:[%s2082_s19 + $0xa0] ss:$8 sps:$4 sm:$0xff]   ;;  %v1653_v51 = vld [vmem:[%s2082_s19 + $0xb4] ss:$8 sps:$4 sm:$0xff]   ;;  %v1657_v53 = vld [vmem:[%s2082_s19 + $0xb0] ss:$8 sps:$4 sm:$0xff]  }
  0x7d   : > { %1117 = vmatpush1.bf16.msra.mxu0 %v1610_v22  ;;  %1075 = vmatprep.subr.bf16.mxu1 %v1611_v23  ;;  %v1652_v50 = vld [vmem:[%s2082_s19 + $0x1a0] ss:$8 sps:$4 sm:$0xff]   ;;  %v1655_v52 = vld [vmem:[%s2082_s19 + $0x1b4] ss:$8 sps:$4 sm:$0xff]   ;;  %v1658_v55 = vld [vmem:[%s2082_s19 + $0x1b0] ss:$8 sps:$4 sm:$0xff]  }
  0x7e   : > { %1118 = vmatprep.subr.bf16.mxu0 %v1613_v24  ;;  %v1685_v54 = vld [vmem:[%s2080_s5 + $0x4] ss:$16 sps:$4 sm:$0xff]   ;;  %v1688_v58 = vld [vmem:[%s2080_s5 + $0xc] ss:$16 sps:$4 sm:$0xff]   ;;  %v1663_v59 = vld [vmem:[%s2082_s19 + $0xc0] ss:$8 sps:$4 sm:$0xff]  }
  0x7f   : > { %v1659_v56 = vld [vmem:[%s2082_s19 + $0xc4] ss:$8 sps:$4 sm:$0xff]   ;;  %1099 = vmatprep.mubr.bf16.mxu1 %v1685_v54  ;;  %1142 = vmatprep.mubr.bf16.mxu0 %v1688_v58  ;;  %v1664_v60 = vld [vmem:[%s2082_s19 + $0x1c0] ss:$8 sps:$4 sm:$0xff]   ;;  %v1665_v61 = vld [vmem:[%s2082_s19 + $0xd4] ss:$8 sps:$4 sm:$0xff]  }
  0x80   : > { %1076 = vmatpush1.bf16.msra.mxu1 %v1615_v25  ;;  %v1661_v57 = vld [vmem:[%s2082_s19 + $0x1c4] ss:$8 sps:$4 sm:$0xff]   ;;  %v1667_v62 = vld [vmem:[%s2082_s19 + $0x1d4] ss:$8 sps:$4 sm:$0xff]   ;;  %v1669_v63 = vld [vmem:[%s2082_s19 + $0xd0] ss:$8 sps:$4 sm:$0xff]  }
  0x81   : > { %1119 = vmatpush1.bf16.msra.mxu0 %v1616_v26  ;;  %1077 = vmatprep.subr.bf16.mxu1 %v1617_v27  ;;  %v1670_v0 = vld [vmem:[%s2082_s19 + $0x1d0] ss:$8 sps:$4 sm:$0xff]   ;;  %v1671_v1 = vld [vmem:[%s2082_s19 + $0xe4] ss:$8 sps:$4 sm:$0xff]   ;;  %v1675_v3 = vld [vmem:[%s2082_s19 + $0xe0] ss:$8 sps:$4 sm:$0xff]  }
  0x82   : > { %1120 = vmatprep.subr.bf16.mxu0 %v1619_v28  ;;  %v1673_v2 = vld [vmem:[%s2082_s19 + $0x1e4] ss:$8 sps:$4 sm:$0xff]   ;;  %v1676_v4 = vld [vmem:[%s2082_s19 + $0x1e0] ss:$8 sps:$4 sm:$0xff]   ;;  %v1677_v5 = vld [vmem:[%s2082_s19 + $0xf4] ss:$8 sps:$4 sm:$0xff]  }
  0x83   : > { %v1679_v6 = vld [vmem:[%s2082_s19 + $0x1f4] ss:$8 sps:$4 sm:$0xff]   ;;  %v1681_v7 = vld [vmem:[%s2082_s19 + $0xf0] ss:$8 sps:$4 sm:$0xff]   ;;  %v655_v12 = vld [vmem:[#allocation2] sm:$0xff]  ;;  %p1480_p6 = scmp.ne.s32.totalorder %s1759_s21, 8 }
  0x84   : > { %1078 = vmatpush1.bf16.msra.mxu1 %v1621_v29  ;;  %v1682_v8 = vld [vmem:[%s2082_s19 + $0x1f0] ss:$8 sps:$4 sm:$0xff]   ;;  %v656_v16 = vld [vmem:[#allocation2 + $0x8] sm:$0xff] }
  0x85   : > { %1121 = vmatpush1.bf16.msra.mxu0 %v1622_v30  ;;  %1079 = vmatprep.subr.bf16.mxu1 %v1623_v31  ;;  %v1683_v9 = vld [vmem:[%s2080_s5] ss:$16 sps:$4 sm:$0xff]   ;;  %v1686_v10 = vld [vmem:[%s2080_s5 + $0x8] ss:$16 sps:$4 sm:$0xff]   ;;  %v1171_v31 = vlaneseq (!%p1480_p6) }
  0x86   : > { %1122 = vmatprep.subr.bf16.mxu0 %v1625_v32  ;;  %v657_v20 = vld [vmem:[#allocation2 + $0x10] sm:$0xff]  ;;  %v658_v25 = vld [vmem:[#allocation2 + $0x18] sm:$0xff] }
  0x87   : > { %v1172_v32 = vshrl.u32 (!%p1480_p6), %v1171_v31, 7 }
  0x88   : > { %1080 = vmatpush1.bf16.msra.mxu1 %v1627_v33  ;;  %v1185_v33 = vld [vmem:[%s600_s17] sm:$0xff] (!%p1480_p6) }
  0x89   : > { %1123 = vmatpush1.bf16.msra.mxu0 %v1628_v34  ;;  %1081 = vmatprep.subr.bf16.mxu1 %v1629_v35  ;;  %v1169_v34 = vld [vmem:[%s641_s26] sm:$0x3] (!%p1480_p6)  ;;  %v1186_v35 = vld [vmem:[%s600_s17 + $0x8] sm:$0xff] (!%p1480_p6) }
  0x8a   : > { %1124 = vmatprep.subr.bf16.mxu0 %v1631_v36 }
  0x8c   : > { %1082 = vmatpush1.bf16.msra.mxu1 %v1633_v37  ;;  %v1173_v37 = vsub.s32 (!%p1480_p6), 0, %v1172_v32 }
  0x8d   : > { %1125 = vmatpush1.bf16.msra.mxu0 %v1634_v38  ;;  %1083 = vmatprep.subr.bf16.mxu1 %v1635_v39  ;;  %v1177_v38 = vsub.s32 (!%p1480_p6), 1, %v1172_v32 }
  0x8e   : > { %1126 = vmatprep.subr.bf16.mxu0 %v1637_v40  ;;  %v1187_v40 = vunpack.c.l.bf16 (!%p1480_p6), %v1185_v33 }
  0x90   : > { %1084 = vmatpush1.bf16.msra.mxu1 %v1639_v41  ;;  %v1188_v41 = vunpack.c.h.bf16 (!%p1480_p6), %v1185_v33 }
  0x91   : > { %1127 = vmatpush1.bf16.msra.mxu0 %v1640_v42  ;;  %1085 = vmatprep.subr.bf16.mxu1 %v1641_v43 }
  0x92   : > { %1128 = vmatprep.subr.bf16.mxu0 %v1643_v44  ;;  %v1174_v44 = vrot.slane (!%p1480_p6), %v1169_v34, %v1173_v37 }
  0x94   : > { %1086 = vmatpush1.bf16.msra.mxu1 %v1645_v45  ;;  %v1178_v45 = vrot.slane (!%p1480_p6), %v1169_v34, %v1177_v38 }
  0x95   : > { %1129 = vmatpush1.bf16.msra.mxu0 %v1646_v46  ;;  %1087 = vmatprep.subr.bf16.mxu1 %v1647_v47  ;;  %v1189_v46 = vunpack.c.l.bf16 (!%p1480_p6), %v1186_v35  ;;  %v1190_v47 = vunpack.c.h.bf16 (!%p1480_p6), %v1186_v35 }
  0x96   : > { %1130 = vmatprep.subr.bf16.mxu0 %v1649_v48 }
  0x98   : > { %1088 = vmatpush1.bf16.msra.mxu1 %v1651_v49 }
  0x99   : > { %1131 = vmatpush1.bf16.msra.mxu0 %v1652_v50  ;;  %1089 = vmatprep.subr.bf16.mxu1 %v1653_v51 }
  0x9a   : > { %1132 = vmatprep.subr.bf16.mxu0 %v1655_v52 }
  0x9c   : > { %1090 = vmatpush1.bf16.msra.mxu1 %v1657_v53 }
  0x9d   : > { %1133 = vmatpush1.bf16.msra.mxu0 %v1658_v55  ;;  %1091 = vmatprep.subr.bf16.mxu1 %v1659_v56 }
  0x9e   : > { %1134 = vmatprep.subr.bf16.mxu0 %v1661_v57 }
  0xa0   : > { %1092 = vmatpush1.bf16.msra.mxu1 %v1663_v59 }
  0xa1   : > { %1135 = vmatpush1.bf16.msra.mxu0 %v1664_v60  ;;  %1093 = vmatprep.subr.bf16.mxu1 %v1665_v61 }
  0xa2   : > { %1136 = vmatprep.subr.bf16.mxu0 %v1667_v62 }
  0xa4   : > { %1094 = vmatpush1.bf16.msra.mxu1 %v1669_v63 }
  0xa5   : > { %1137 = vmatpush1.bf16.msra.mxu0 %v1670_v0  ;;  %1095 = vmatprep.subr.bf16.mxu1 %v1671_v1 }
  0xa6   : > { %1138 = vmatprep.subr.bf16.mxu0 %v1673_v2 }
  0xa8   : > { %1096 = vmatpush1.bf16.msra.mxu1 %v1675_v3 }
  0xa9   : > { %1139 = vmatpush1.bf16.msra.mxu0 %v1676_v4  ;;  %1097 = vmatprep.subr.bf16.mxu1 %v1677_v5 }
  0xaa   : > { %1140 = vmatprep.subr.bf16.mxu0 %v1679_v6 }
  0xac   : > { %1098 = vmatpush1.bf16.msra.mxu1 %v1681_v7 }
  0xad   : > { %1141 = vmatpush1.bf16.msra.mxu0 %v1682_v8 }
  0xaf   : > { %1100 = vmatmul.mubr.bf16.vlgmr.msra.gmra.mrb[0].mxu1 %v1683_v9 }
  0xb0   : > { %1143 = vmatmul.mubr.bf16.vlgmr.msra.gmra.mrb[0].mxu0 %v1686_v10 }
 0x182   : > { %v1101_v11 = vpop.f32.mrb[0].mxu1 }
 0x183   : > { %v1144_v13 = vpop.f32.mrb[0].mxu0  ;;  %v1103_v15 = vpop.f32.mrb[1].mxu1 }
 0x184   : > { %v1145_v14 = vadd.f32 %v1144_v13, %v1101_v11  ;;  %v1146_v17 = vpop.f32.mrb[1].mxu0  ;;  %v1105_v19 = vpop.f32.mrb[2].mxu1 }
 0x185   : > { %v1147_v18 = vadd.f32 %v1146_v17, %v1103_v15  ;;  %v1148_v21 = vpop.f32.mrb[2].mxu0  ;;  %v1107_v24 = vpop.f32.mrb[3].mxu1  ;;  %1164 = sbr.rel (%p1480_p6) target bundleno = 412 (0x19c), region = 143 }
 0x186   : > { %v1153_v22 = vadd.f32 %v1145_v14, %v655_v12  ;;  %v1149_v23 = vadd.f32 %v1148_v21, %v1105_v19  ;;  %v1150_v26 = vpop.f32.mrb[3].mxu0 }
 0x187   : > { %v1154_v27 = vadd.f32 %v1147_v18, %v656_v16  ;;  %v1151_v28 = vadd.f32 %v1150_v26, %v1107_v24 }
 0x188   : > { %1157 = vst [vmem:[#allocation2] sm:$0xff] %v1153_v22  ;;  %v1155_v29 = vadd.f32 %v1149_v23, %v657_v20 }
 0x189   : > { %1158 = vst [vmem:[#allocation2 + $0x8] sm:$0xff] %v1154_v27  ;;  %v1156_v30 = vadd.f32 %v1151_v28, %v658_v25 }
 0x18a   : > { %1159 = vst [vmem:[#allocation2 + $0x10] sm:$0xff] %v1155_v29 }
 0x18b   : > { %1160 = vst [vmem:[#allocation2 + $0x18] sm:$0xff] %v1156_v30 }
 0x18f   : > { %v1165_v36 = vld [vmem:[#allocation2] sm:$0xff] }
 0x190   : > { %v1166_v39 = vld [vmem:[#allocation2 + $0x8] sm:$0xff]  ;;  %v1181_v48 = vadd.f32 %v1174_v44, %v1165_v36 }
 0x191   : > { %v1167_v42 = vld [vmem:[#allocation2 + $0x10] sm:$0xff]  ;;  %v1182_v49 = vadd.f32 %v1178_v45, %v1166_v39 }
 0x192   : > { %v1168_v43 = vld [vmem:[#allocation2 + $0x18] sm:$0xff]  ;;  %v1183_v50 = vadd.f32 %v1174_v44, %v1167_v42  ;;  %v1191_v52 = vadd.f32 %v1187_v40, %v1181_v48 }
 0x193   : > { %v1184_v51 = vadd.f32 %v1178_v45, %v1168_v43  ;;  %v1192_v53 = vadd.f32 %v1188_v41, %v1182_v49 }
 0x194   : > { %v1193_v54 = vadd.f32 %v1189_v46, %v1183_v50  ;;  %v1195_v56 = vmax.f32 %v1191_v52, 0.0 }
 0x195   : > { %v1194_v55 = vadd.f32 %v1190_v47, %v1184_v51  ;;  %v1196_v57 = vmax.f32 %v1192_v53, 0.0 }
 0x196   : > { %v1197_v58 = vmax.f32 %v1193_v54, 0.0 }
 0x197   : > { %v1198_v59 = vmax.f32 %v1194_v55, 0.0  ;;  %v1491_v60 = vpack.c.bf16 %v1196_v57, %v1195_v56 }
 0x199   : > { %v1492_v61 = vpack.c.bf16 %v1198_v59, %v1197_v58  ;;  %1211 = vst [vmem:[%s2086_s30] sm:$0xff] %v1491_v60 }
 0x19b   : > { %1212 = vst [vmem:[%s2086_s30 + $0x8] sm:$0xff] %v1492_v61 }
 0x19c PF: > { %1219 = sbr.rel (!%p1907_p13) target bundleno = 420 (0x1a4), region = 147  ;;  %s1493_s21 = sshll.u32 (%p1907_p13), %s1763_s22, 3 }
 0x19d   : > { %s1225_s6 = scalar_lea.vmem (%p1907_p13), %s2214_s4, %s1493_s21 }
 0x1a0   : > { %v1255_v62 = vld [vmem:[%s2086_s30] sm:$0xff] (%p1907_p13) }
 0x1a1   : > { %1256 = vst [vmem:[%s1225_s6] sm:$0xff] (%p1907_p13), %v1255_v62 }
 0x1a2   : > { %v1257_v63 = vld [vmem:[%s2086_s30 + $0x8] sm:$0xff] (%p1907_p13) }
 0x1a3   : > { %1258 = vst [vmem:[%s1225_s6 + $0x10] sm:$0xff] %v1257_v63 }
 0x1a4 PF: > { %s14_s25 = sadd.s32 1, %s1775_s25   ;;  %s2226_s29 = sld [smem:[#allocation9_spill]] }
 0x1a5   : > { %p11_p7 = scmp.ge.s32.totalorder %s14_s25, 20   ;;  %s2227_s11 = sld [smem:[#allocation7_spill]] }
 0x1a6   : > { %s2228_s8 = sld [smem:[#allocation8_spill]]  ;;  %s2229_s15 = smov %s1739_s16 }
 0x1a7   : > { %s2230_s16 = smov %s1899_s13  ;;  %s2231_s17 = smov %s1747_s18 }
 0x1a8   : > { %s2232_s18 = smov %s1896_s12  ;;  %s2233_s19 = smov %s1755_s20 }
 0x1a9   : > { %s2235_s21 = smov %s1767_s23  ;;  %s2236_s22 = smov %s1771_s24 }
 0x1aa   : > { %s2234_s20 = smov %s2226_s29  ;;  %13 = sbr.rel (!%p11_p7) target bundleno = 8 (0x8), region = 235 }
 0x1ab   : > { %s2237_s23 = smov %s2227_s11 }
 0x1ac   : > { %s2238_s24 = smov %s2228_s8 }

// kernel: classifier_forward.39
= control target key start
LH: loop header
LB: loop body
LE: loop exit
PB: predicated region body
PF: predicated region fallthrough
CT: control target
= control target key end

     0   :  { %s2051_s0 = inlined_call_operand.vmem [shape: bf16[16,4608], index: 0, kind: input, shape index: {}]   ;;  %s2052_s1 = inlined_call_operand.vmem [shape: bf16[4608,512], index: 1, kind: input, shape index: {}]   ;;  %s2053_s2 = inlined_call_operand.vmem [shape: f32[1,512], index: 2, kind: input, shape index: {}]   ;;  %s2054_s3 = inlined_call_operand.vmem [shape: bf16[16,512], index: 3, kind: output, shape index: {}]  }
   0x1   :  { %2056 = sst [smem:[#allocation7_spill]] %s2051_s0 }
   0x2   :  { %2057 = sst [smem:[#allocation8_spill]] %s2052_s1 }
   0x3   :  { %s1669_s12 = smov 0   ;;  %s1671_s13 = smov 0  }
   0x4   :  { %s1673_s14 = smov 0   ;;  %s1675_s15 = smov 0  }
   0x5   :  { %s1677_s16 = smov 0   ;;  %s1679_s17 = smov 0  }
   0x6   :  { %s1681_s18 = smov 0   ;;  %s1683_s19 = smov 0  }
   0x7   :  { %s1685_s20 = smov 0   ;;  %s1687_s21 = smov 0  }
   0x8   :  { %s1689_s22 = smov 0  }
   0x9 LB: > { %s1266_s23 = sadd.s32 4294967295, %s1646_s22   ;;  %s25_s24 = sadd.s32 1, %s1638_s20  ;;  %s1646_s22 = sphi %s1689_s22, %s13_s22   ;;  %s1642_s21 = sphi %s1687_s21, %s2074_s21   ;;  %s1638_s20 = sphi %s1685_s20, %s2073_s20   ;;  %s1634_s19 = sphi %s1683_s19, %s2072_s19   ;;  %s1630_s18 = sphi %s1681_s18, %s2071_s18   ;;  %s1626_s17 = sphi %s1679_s17, %s2070_s17   ;;  %s1622_s16 = sphi %s1677_s16, %s2069_s16   ;;  %s1618_s15 = sphi %s1675_s15, %s2068_s15   ;;  %s1614_s14 = sphi %s1673_s14, %s2067_s14   ;;  %s1610_s13 = sphi %s1671_s13, %s2066_s13   ;;  %s1606_s12 = sphi %s1669_s12, %s2065_s12  }
   0xa   : > { %p26_p0 = scmp.ge.s32.totalorder %s25_s24, 9  ;;  %s28_s25 = sadd.s32 1, %s1642_s21 }
   0xb   : > { %s41_s26 = sadd.s32 1, %s1626_s17  ;;  %p48_p1 = scmp.ne.s32.totalorder %s1626_s17, %s1622_s16 }
   0xc   : > { %s2076_s24 = smov (%p26_p0, %s25_s24), 0  ;;  %s2078_s25 = smov (!%p26_p0, %s28_s25), %s1642_s21 }
   0xd   : > { %s37_s27 = ssub.s32 %s1638_s20, %s2076_s24  ;;  %p49_p2 = scmp.eq.s32.totalorder %s1646_s22, 0 }
   0xe   : > { %p30_p3 = scmp.ge.s32.totalorder %s2078_s25, 2  ;;  %p39_p4 = scmp.eq.s32.totalorder %s37_s27, 0 }
   0xf   : > { %p1736_p5 = por %p49_p2, %p48_p1  ;;  %s69_s29 = sadd.s32 1, %s1618_s15 }
  0x10   : > { %s2080_s25 = smov (%p30_p3, %s2078_s25), 0  ;;  %p76_p6 = scmp.ne.s32.totalorder %s1618_s15, %s1614_s14 }
  0x11   : > { %2059 = sst [smem:[#allocation6_spill]] %s2080_s25  ;;  %s65_s4 = ssub.s32 %s1642_s21, %s2080_s25 }
  0x12   : > { %s1744_s30 = scalar_select %p39_p4, %s1626_s17, %s41_s26  }
  0x13   : > { %s66_s5 = sor.u32 %s65_s4, %s37_s27  ;;  %p121_p7 = scmp.eq.s32.totalorder %s65_s4, 0 }
  0x14   : > { %p67_p8 = scmp.eq.s32.totalorder %s66_s5, 0  ;;  %p1750_p9 = por %p76_p6, %p49_p2 }
  0x15   : > { %s123_s7 = sadd.s32 1, %s1610_s13  ;;  %p133_p10 = scmp.ne.s32.totalorder %s1610_s13, %s1606_s12 }
  0x16   : > { %s1758_s8 = scalar_select %p67_p8, %s1618_s15, %s69_s29  }
  0x17   : > { %s1761_s9 = scalar_select %p121_p7, %s1610_s13, %s123_s7  }
  0x18   : > { %p134_p11 = scmp.eq.s32.totalorder %s1266_s23, 17  ;;  %p1269_p13 = scmp.ge.s32.totalorder %s1646_s22, 18 }
  0x1a   : > { %p1763_p12 = por %p134_p11, %p133_p10  ;;  %156 = sbr.rel (%p1269_p13) target bundleno = 87 (0x57), region = 16 }
  0x21   : > { %159 = sbr.rel (!%p1736_p5) target bundleno = 45 (0x2d), region = 20  ;;  %s161_s11 = sand.u32 (%p1736_p5), 1, %s1626_s17  }
  0x22   : > { %s1360_s26 = sshll.u32 (%p1736_p5), %s1638_s20, 4  ;;  %s1270_s27 = sshll.u32 (%p1736_p5), %s161_s11, 5 }
  0x23   : > { %s2062_s0 = sld [smem:[#allocation7_spill]] (%p1736_p5)  ;;  %s163_s23 = scalar_lea.vmem (%p1736_p5), [#allocation3], %s1270_s27 }
  0x29   : > { %s169_s5 = scalar_lea.vmem %s2062_s0, %s1360_s26 }
  0x2a   : > { %v182_v0 = vld [vmem:[%s169_s5] sm:$0xff]  ;;  %v184_v1 = vld [vmem:[%s169_s5 + $0x8] sm:$0xff]  ;;  %v186_v2 = vld [vmem:[%s169_s5 + $0x90] sm:$0xff] }
  0x2b   : > { %183 = vst [vmem:[%s163_s23] sm:$0xff] %v182_v0  ;;  %185 = vst [vmem:[%s163_s23 + $0x8] sm:$0xff] %v184_v1  ;;  %v188_v3 = vld [vmem:[%s169_s5 + $0x98] sm:$0xff] }
  0x2c   : > { %187 = vst [vmem:[%s163_s23 + $0x10] sm:$0xff] %v186_v2  ;;  %189 = vst [vmem:[%s163_s23 + $0x18] sm:$0xff] %v188_v3 }
  0x2d PF: > { %195 = sbr.rel (!%p1750_p9) target bundleno = 87 (0x57), region = 43  ;;  %s197_s28 = sand.u32 (%p1750_p9), 1, %s1618_s15  }
  0x2e   : > { %s1275_s7 = sshll.u32 (%p1750_p9), %s1642_s21, 1  ;;  %s1273_s11 = sshll.u32 (%p1750_p9), %s197_s28, 9 }
  0x2f   : > { %s1361_s26 = sshll.u32 (%p1750_p9), %s1638_s20, 8  ;;  %s2063_s1 = sld [smem:[#allocation8_spill]] (%p1750_p9) }
  0x30   : > { %s203_s29 = sadd.s32 (%p1750_p9), %s1361_s26, %s1275_s7  ;;  %s1788_s6 = scalar_lea.vmem (%p1750_p9), [#allocation4], %s1273_s11 }
  0x31   : > { %s1277_s4 = sshll.u32 (%p1750_p9), %s203_s29, 2 }
  0x35   : > { %s1783_s25 = scalar_lea.vmem %s2063_s1, %s1277_s4 }
  0x36   : > { %v359_v4 = vld [vmem:[%s1783_s25] sm:$0xff]  ;;  %v361_v5 = vld [vmem:[%s1783_s25 + $0x10] sm:$0xff] }
  0x37   : > { %v363_v6 = vld [vmem:[%s1783_s25 + $0x20] sm:$0xff]  ;;  %360 = vst [vmem:[%s1788_s6] sm:$0xff] %v359_v4  ;;  %362 = vst [vmem:[%s1788_s6 + $0x8] sm:$0xff] %v361_v5  ;;  %v365_v7 = vld [vmem:[%s1783_s25 + $0x30] sm:$0xff] }
  0x38   : > { %364 = vst [vmem:[%s1788_s6 + $0x10] sm:$0xff] %v363_v6  ;;  %v367_v8 = vld [vmem:[%s1783_s25 + $0x40] sm:$0xff]  ;;  %v369_v9 = vld [vmem:[%s1783_s25 + $0x50] sm:$0xff]  ;;  %366 = vst [vmem:[%s1788_s6 + $0x18] sm:$0xff] %v365_v7 }
  0x39   : > { %368 = vst [vmem:[%s1788_s6 + $0x20] sm:$0xff] %v367_v8  ;;  %370 = vst [vmem:[%s1788_s6 + $0x28] sm:$0xff] %v369_v9  ;;  %v371_v10 = vld [vmem:[%s1783_s25 + $0x60] sm:$0xff]  ;;  %v373_v11 = vld [vmem:[%s1783_s25 + $0x70] sm:$0xff] }
  0x3a   : > { %v375_v12 = vld [vmem:[%s1783_s25 + $0x80] sm:$0xff]  ;;  %372 = vst [vmem:[%s1788_s6 + $0x30] sm:$0xff] %v371_v10  ;;  %374 = vst [vmem:[%s1788_s6 + $0x38] sm:$0xff] %v373_v11  ;;  %v377_v13 = vld [vmem:[%s1783_s25 + $0x90] sm:$0xff] }
  0x3b   : > { %376 = vst [vmem:[%s1788_s6 + $0x40] sm:$0xff] %v375_v12  ;;  %v379_v14 = vld [vmem:[%s1783_s25 + $0xa0] sm:$0xff]  ;;  %v381_v15 = vld [vmem:[%s1783_s25 + $0xb0] sm:$0xff]  ;;  %378 = vst [vmem:[%s1788_s6 + $0x48] sm:$0xff] %v377_v13 }
  0x3c   : > { %380 = vst [vmem:[%s1788_s6 + $0x50] sm:$0xff] %v379_v14  ;;  %382 = vst [vmem:[%s1788_s6 + $0x58] sm:$0xff] %v381_v15  ;;  %v383_v16 = vld [vmem:[%s1783_s25 + $0xc0] sm:$0xff]  ;;  %v385_v17 = vld [vmem:[%s1783_s25 + $0xd0] sm:$0xff] }
  0x3d   : > { %v387_v18 = vld [vmem:[%s1783_s25 + $0xe0] sm:$0xff]  ;;  %384 = vst [vmem:[%s1788_s6 + $0x60] sm:$0xff] %v383_v16  ;;  %386 = vst [vmem:[%s1788_s6 + $0x68] sm:$0xff] %v385_v17  ;;  %v389_v19 = vld [vmem:[%s1783_s25 + $0xf0] sm:$0xff] }
  0x3e   : > { %388 = vst [vmem:[%s1788_s6 + $0x70] sm:$0xff] %v387_v18  ;;  %v391_v20 = vld [vmem:[%s1783_s25 + $0x100] sm:$0xff]  ;;  %v393_v21 = vld [vmem:[%s1783_s25 + $0x110] sm:$0xff]  ;;  %390 = vst [vmem:[%s1788_s6 + $0x78] sm:$0xff] %v389_v19 }
  0x3f   : > { %392 = vst [vmem:[%s1788_s6 + $0x80] sm:$0xff] %v391_v20  ;;  %394 = vst [vmem:[%s1788_s6 + $0x88] sm:$0xff] %v393_v21  ;;  %v395_v22 = vld [vmem:[%s1783_s25 + $0x120] sm:$0xff]  ;;  %v397_v23 = vld [vmem:[%s1783_s25 + $0x130] sm:$0xff] }
  0x40   : > { %v399_v24 = vld [vmem:[%s1783_s25 + $0x140] sm:$0xff]  ;;  %396 = vst [vmem:[%s1788_s6 + $0x90] sm:$0xff] %v395_v22  ;;  %398 = vst [vmem:[%s1788_s6 + $0x98] sm:$0xff] %v397_v23  ;;  %v401_v25 = vld [vmem:[%s1783_s25 + $0x150] sm:$0xff] }
  0x41   : > { %400 = vst [vmem:[%s1788_s6 + $0xa0] sm:$0xff] %v399_v24  ;;  %v403_v26 = vld [vmem:[%s1783_s25 + $0x160] sm:$0xff]  ;;  %v405_v27 = vld [vmem:[%s1783_s25 + $0x170] sm:$0xff]  ;;  %402 = vst [vmem:[%s1788_s6 + $0xa8] sm:$0xff] %v401_v25 }
  0x42   : > { %404 = vst [vmem:[%s1788_s6 + $0xb0] sm:$0xff] %v403_v26  ;;  %406 = vst [vmem:[%s1788_s6 + $0xb8] sm:$0xff] %v405_v27  ;;  %v407_v28 = vld [vmem:[%s1783_s25 + $0x180] sm:$0xff]  ;;  %v409_v29 = vld [vmem:[%s1783_s25 + $0x190] sm:$0xff] }
  0x43   : > { %v411_v30 = vld [vmem:[%s1783_s25 + $0x1a0] sm:$0xff]  ;;  %408 = vst [vmem:[%s1788_s6 + $0xc0] sm:$0xff] %v407_v28  ;;  %410 = vst [vmem:[%s1788_s6 + $0xc8] sm:$0xff] %v409_v29  ;;  %v413_v31 = vld [vmem:[%s1783_s25 + $0x1b0] sm:$0xff] }
  0x44   : > { %412 = vst [vmem:[%s1788_s6 + $0xd0] sm:$0xff] %v411_v30  ;;  %v415_v32 = vld [vmem:[%s1783_s25 + $0x1c0] sm:$0xff]  ;;  %v417_v33 = vld [vmem:[%s1783_s25 + $0x1d0] sm:$0xff]  ;;  %414 = vst [vmem:[%s1788_s6 + $0xd8] sm:$0xff] %v413_v31 }
  0x45   : > { %416 = vst [vmem:[%s1788_s6 + $0xe0] sm:$0xff] %v415_v32  ;;  %418 = vst [vmem:[%s1788_s6 + $0xe8] sm:$0xff] %v417_v33  ;;  %v419_v34 = vld [vmem:[%s1783_s25 + $0x1e0] sm:$0xff]  ;;  %v421_v35 = vld [vmem:[%s1783_s25 + $0x1f0] sm:$0xff] }
  0x46   : > { %v423_v36 = vld [vmem:[%s1783_s25 + $0x200] sm:$0xff]  ;;  %420 = vst [vmem:[%s1788_s6 + $0xf0] sm:$0xff] %v419_v34  ;;  %422 = vst [vmem:[%s1788_s6 + $0xf8] sm:$0xff] %v421_v35  ;;  %v425_v37 = vld [vmem:[%s1783_s25 + $0x210] sm:$0xff] }
  0x47   : > { %424 = vst [vmem:[%s1788_s6 + $0x100] sm:$0xff] %v423_v36  ;;  %v427_v38 = vld [vmem:[%s1783_s25 + $0x220] sm:$0xff]  ;;  %v429_v39 = vld [vmem:[%s1783_s25 + $0x230] sm:$0xff]  ;;  %426 = vst [vmem:[%s1788_s6 + $0x108] sm:$0xff] %v425_v37 }
  0x48   : > { %428 = vst [vmem:[%s1788_s6 + $0x110] sm:$0xff] %v427_v38  ;;  %430 = vst [vmem:[%s1788_s6 + $0x118] sm:$0xff] %v429_v39  ;;  %v431_v40 = vld [vmem:[%s1783_s25 + $0x240] sm:$0xff]  ;;  %v433_v41 = vld [vmem:[%s1783_s25 + $0x250] sm:$0xff] }
  0x49   : > { %v435_v42 = vld [vmem:[%s1783_s25 + $0x260] sm:$0xff]  ;;  %432 = vst [vmem:[%s1788_s6 + $0x120] sm:$0xff] %v431_v40  ;;  %434 = vst [vmem:[%s1788_s6 + $0x128] sm:$0xff] %v433_v41  ;;  %v437_v43 = vld [vmem:[%s1783_s25 + $0x270] sm:$0xff] }
  0x4a   : > { %436 = vst [vmem:[%s1788_s6 + $0x130] sm:$0xff] %v435_v42  ;;  %v439_v44 = vld [vmem:[%s1783_s25 + $0x280] sm:$0xff]  ;;  %v441_v45 = vld [vmem:[%s1783_s25 + $0x290] sm:$0xff]  ;;  %438 = vst [vmem:[%s1788_s6 + $0x138] sm:$0xff] %v437_v43 }
  0x4b   : > { %440 = vst [vmem:[%s1788_s6 + $0x140] sm:$0xff] %v439_v44  ;;  %442 = vst [vmem:[%s1788_s6 + $0x148] sm:$0xff] %v441_v45  ;;  %v443_v46 = vld [vmem:[%s1783_s25 + $0x2a0] sm:$0xff]  ;;  %v445_v47 = vld [vmem:[%s1783_s25 + $0x2b0] sm:$0xff] }
  0x4c   : > { %v447_v48 = vld [vmem:[%s1783_s25 + $0x2c0] sm:$0xff]  ;;  %444 = vst [vmem:[%s1788_s6 + $0x150] sm:$0xff] %v443_v46  ;;  %446 = vst [vmem:[%s1788_s6 + $0x158] sm:$0xff] %v445_v47  ;;  %v449_v49 = vld [vmem:[%s1783_s25 + $0x2d0] sm:$0xff] }
  0x4d   : > { %448 = vst [vmem:[%s1788_s6 + $0x160] sm:$0xff] %v447_v48  ;;  %v451_v50 = vld [vmem:[%s1783_s25 + $0x2e0] sm:$0xff]  ;;  %v453_v51 = vld [vmem:[%s1783_s25 + $0x2f0] sm:$0xff]  ;;  %450 = vst [vmem:[%s1788_s6 + $0x168] sm:$0xff] %v449_v49 }
  0x4e   : > { %452 = vst [vmem:[%s1788_s6 + $0x170] sm:$0xff] %v451_v50  ;;  %454 = vst [vmem:[%s1788_s6 + $0x178] sm:$0xff] %v453_v51  ;;  %v455_v52 = vld [vmem:[%s1783_s25 + $0x300] sm:$0xff]  ;;  %v457_v53 = vld [vmem:[%s1783_s25 + $0x310] sm:$0xff] }
  0x4f   : > { %v459_v54 = vld [vmem:[%s1783_s25 + $0x320] sm:$0xff]  ;;  %456 = vst [vmem:[%s1788_s6 + $0x180] sm:$0xff] %v455_v52  ;;  %458 = vst [vmem:[%s1788_s6 + $0x188] sm:$0xff] %v457_v53  ;;  %v461_v55 = vld [vmem:[%s1783_s25 + $0x330] sm:$0xff] }
  0x50   : > { %460 = vst [vmem:[%s1788_s6 + $0x190] sm:$0xff] %v459_v54  ;;  %v463_v56 = vld [vmem:[%s1783_s25 + $0x340] sm:$0xff]  ;;  %v465_v57 = vld [vmem:[%s1783_s25 + $0x350] sm:$0xff]  ;;  %462 = vst [vmem:[%s1788_s6 + $0x198] sm:$0xff] %v461_v55 }
  0x51   : > { %464 = vst [vmem:[%s1788_s6 + $0x1a0] sm:$0xff] %v463_v56  ;;  %466 = vst [vmem:[%s1788_s6 + $0x1a8] sm:$0xff] %v465_v57  ;;  %v467_v58 = vld [vmem:[%s1783_s25 + $0x360] sm:$0xff]  ;;  %v469_v59 = vld [vmem:[%s1783_s25 + $0x370] sm:$0xff] }
  0x52   : > { %v471_v60 = vld [vmem:[%s1783_s25 + $0x380] sm:$0xff]  ;;  %468 = vst [vmem:[%s1788_s6 + $0x1b0] sm:$0xff] %v467_v58  ;;  %470 = vst [vmem:[%s1788_s6 + $0x1b8] sm:$0xff] %v469_v59  ;;  %v473_v61 = vld [vmem:[%s1783_s25 + $0x390] sm:$0xff] }
  0x53   : > { %472 = vst [vmem:[%s1788_s6 + $0x1c0] sm:$0xff] %v471_v60  ;;  %v475_v62 = vld [vmem:[%s1783_s25 + $0x3a0] sm:$0xff]  ;;  %v477_v63 = vld [vmem:[%s1783_s25 + $0x3b0] sm:$0xff]  ;;  %474 = vst [vmem:[%s1788_s6 + $0x1c8] sm:$0xff] %v473_v61 }
  0x54   : > { %476 = vst [vmem:[%s1788_s6 + $0x1d0] sm:$0xff] %v475_v62  ;;  %478 = vst [vmem:[%s1788_s6 + $0x1d8] sm:$0xff] %v477_v63  ;;  %v479_v0 = vld [vmem:[%s1783_s25 + $0x3c0] sm:$0xff]  ;;  %v481_v1 = vld [vmem:[%s1783_s25 + $0x3d0] sm:$0xff] }
  0x55   : > { %v483_v2 = vld [vmem:[%s1783_s25 + $0x3e0] sm:$0xff]  ;;  %480 = vst [vmem:[%s1788_s6 + $0x1e0] sm:$0xff] %v479_v0  ;;  %482 = vst [vmem:[%s1788_s6 + $0x1e8] sm:$0xff] %v481_v1  ;;  %v485_v3 = vld [vmem:[%s1783_s25 + $0x3f0] sm:$0xff] }
  0x56   : > { %484 = vst [vmem:[%s1788_s6 + $0x1f0] sm:$0xff] %v483_v2  ;;  %486 = vst [vmem:[%s1788_s6 + $0x1f8] sm:$0xff] %v485_v3 }
  0x57 PF: > { %p1278_p0 = scmp.ge.s32.totalorder %s1646_s22, 1  ;;  %p499_p1 = scmp.lt.s32.totalorder %s1646_s22, 19 }
  0x59   : > { %p500_p2 = pnand %p1278_p0, %p499_p1 }
  0x5a   : > { %s506_s0 = sand.u32 (!%p500_p2), 1, %s1622_s16   ;;  %s513_s5 = sand.u32 (!%p500_p2), 1, %s1614_s14  }
  0x5b   : > { %503 = sbr.rel (%p500_p2) target bundleno = 413 (0x19d), region = 85  ;;  %s1279_s23 = sshll.u32 (!%p500_p2), %s506_s0, 5 }
  0x5c   : > { %s1280_s28 = sshll.u32 (!%p500_p2), %s513_s5, 9  ;;  %s540_s7 = sand.u32 (!%p500_p2), 1, %s1606_s12  }
  0x5d   : > { %s1282_s11 = sshll.u32 (!%p500_p2), %s1634_s19, 1  ;;  %s1281_s25 = sshll.u32 (!%p500_p2), %s540_s7, 4 }
  0x5e   : > { %p548_p3 = scmp.lt.s32.totalorder (!%p500_p2), %s1282_s11, 3  ;;  %s1927_s27 = scalar_lea.vmem (!%p500_p2), [#allocation3], %s1279_s23 }
  0x5f   : > { %s1929_s6 = scalar_lea.vmem (!%p500_p2), [#allocation4], %s1280_s28  ;;  %s1931_s1 = scalar_lea.vmem (!%p500_p2), [#allocation5], %s1281_s25 }
  0x60   : > { %p1283_p4 = scmp.ne.s32.totalorder (!%p500_p2), %s1630_s18, 0 }
  0x62   : > { %s2082_s11 = smov (!%p548_p3, %s1282_s11), 3  ;;  %557 = sbr.rel (%p1283_p4) target bundleno = 105 (0x69), region = 97 }
  0x63   : > { %s550_s4 = scalar_lea.vmem %s2053_s2, %s2082_s11  ;;  %v1648_v4 = vmov (!%p1283_p4), 0.0  }
  0x64   : > { %558 = vst [vmem:[#allocation2] sm:$0xff] (!%p1283_p4), %v1648_v4  ;;  %559 = vst [vmem:[#allocation2 + $0x8] sm:$0xff] (!%p1283_p4), %v1648_v4 }
  0x65   : > { %560 = vst [vmem:[#allocation2 + $0x10] sm:$0xff] (!%p1283_p4), %v1648_v4  ;;  %561 = vst [vmem:[#allocation2 + $0x18] sm:$0xff] (!%p1283_p4), %v1648_v4 }
  0x69 PF: > { %v1458_v5 = vld [vmem:[%s1929_s6 + $0x4] ss:$8 sps:$4 sm:$0xff]   ;;  %v1462_v7 = vld [vmem:[%s1929_s6] ss:$8 sps:$4 sm:$0xff]   ;;  %v1464_v9 = vld [vmem:[%s1929_s6 + $0x14] ss:$8 sps:$4 sm:$0xff]  }
  0x6a   : > { %v1460_v6 = vld [vmem:[%s1929_s6 + $0x104] ss:$8 sps:$4 sm:$0xff]   ;;  %974 = vmatprep.subr.bf16.mxu1 %v1458_v5  ;;  %v1463_v8 = vld [vmem:[%s1929_s6 + $0x100] ss:$8 sps:$4 sm:$0xff]   ;;  %v1466_v10 = vld [vmem:[%s1929_s6 + $0x114] ss:$8 sps:$4 sm:$0xff]  }
  0x6b   : > { %1017 = vmatprep.subr.bf16.mxu0 %v1460_v6  ;;  %975 = vmatpush1.bf16.msra.mxu1 %v1462_v7  ;;  %v1468_v11 = vld [vmem:[%s1929_s6 + $0x10] ss:$8 sps:$4 sm:$0xff]   ;;  %v1470_v13 = vld [vmem:[%s1929_s6 + $0x24] ss:$8 sps:$4 sm:$0xff]   ;;  %v1474_v15 = vld [vmem:[%s1929_s6 + $0x20] ss:$8 sps:$4 sm:$0xff]  }
  0x6c   : > { %1018 = vmatpush1.bf16.msra.mxu0 %v1463_v8  ;;  %976 = vmatprep.subr.bf16.mxu1 %v1464_v9  ;;  %v1469_v12 = vld [vmem:[%s1929_s6 + $0x110] ss:$8 sps:$4 sm:$0xff]   ;;  %v1472_v14 = vld [vmem:[%s1929_s6 + $0x124] ss:$8 sps:$4 sm:$0xff]   ;;  %v1475_v16 = vld [vmem:[%s1929_s6 + $0x120] ss:$8 sps:$4 sm:$0xff]  }
  0x6d   : > { %1019 = vmatprep.subr.bf16.mxu0 %v1466_v10  ;;  %v1476_v17 = vld [vmem:[%s1929_s6 + $0x34] ss:$8 sps:$4 sm:$0xff]   ;;  %v1480_v19 = vld [vmem:[%s1929_s6 + $0x30] ss:$8 sps:$4 sm:$0xff]   ;;  %v1482_v21 = vld [vmem:[%s1929_s6 + $0x44] ss:$8 sps:$4 sm:$0xff]  }
  0x6e   : > { %v1478_v18 = vld [vmem:[%s1929_s6 + $0x134] ss:$8 sps:$4 sm:$0xff]   ;;  %v1481_v20 = vld [vmem:[%s1929_s6 + $0x130] ss:$8 sps:$4 sm:$0xff]   ;;  %v1484_v22 = vld [vmem:[%s1929_s6 + $0x144] ss:$8 sps:$4 sm:$0xff]  }
  0x6f   : > { %977 = vmatpush1.bf16.msra.mxu1 %v1468_v11  ;;  %v1486_v23 = vld [vmem:[%s1929_s6 + $0x40] ss:$8 sps:$4 sm:$0xff]   ;;  %v1488_v25 = vld [vmem:[%s1929_s6 + $0x54] ss:$8 sps:$4 sm:$0xff]   ;;  %v1492_v27 = vld [vmem:[%s1929_s6 + $0x50] ss:$8 sps:$4 sm:$0xff]  }
  0x70   : > { %1020 = vmatpush1.bf16.msra.mxu0 %v1469_v12  ;;  %978 = vmatprep.subr.bf16.mxu1 %v1470_v13  ;;  %v1487_v24 = vld [vmem:[%s1929_s6 + $0x140] ss:$8 sps:$4 sm:$0xff]   ;;  %v1490_v26 = vld [vmem:[%s1929_s6 + $0x154] ss:$8 sps:$4 sm:$0xff]   ;;  %v1493_v28 = vld [vmem:[%s1929_s6 + $0x150] ss:$8 sps:$4 sm:$0xff]  }
  0x71   : > { %1021 = vmatprep.subr.bf16.mxu0 %v1472_v14  ;;  %v1494_v29 = vld [vmem:[%s1929_s6 + $0x64] ss:$8 sps:$4 sm:$0xff]   ;;  %v1498_v31 = vld [vmem:[%s1929_s6 + $0x60] ss:$8 sps:$4 sm:$0xff]   ;;  %v1500_v33 = vld [vmem:[%s1929_s6 + $0x74] ss:$8 sps:$4 sm:$0xff]  }
  0x72   : > { %v1496_v30 = vld [vmem:[%s1929_s6 + $0x164] ss:$8 sps:$4 sm:$0xff]   ;;  %v1499_v32 = vld [vmem:[%s1929_s6 + $0x160] ss:$8 sps:$4 sm:$0xff]   ;;  %v1502_v34 = vld [vmem:[%s1929_s6 + $0x174] ss:$8 sps:$4 sm:$0xff]  }
  0x73   : > { %979 = vmatpush1.bf16.msra.mxu1 %v1474_v15  ;;  %v1504_v35 = vld [vmem:[%s1929_s6 + $0x70] ss:$8 sps:$4 sm:$0xff]   ;;  %v1506_v37 = vld [vmem:[%s1929_s6 + $0x84] ss:$8 sps:$4 sm:$0xff]   ;;  %v1510_v39 = vld [vmem:[%s1929_s6 + $0x80] ss:$8 sps:$4 sm:$0xff]  }
  0x74   : > { %1022 = vmatpush1.bf16.msra.mxu0 %v1475_v16  ;;  %980 = vmatprep.subr.bf16.mxu1 %v1476_v17  ;;  %v1505_v36 = vld [vmem:[%s1929_s6 + $0x170] ss:$8 sps:$4 sm:$0xff]   ;;  %v1508_v38 = vld [vmem:[%s1929_s6 + $0x184] ss:$8 sps:$4 sm:$0xff]   ;;  %v1511_v40 = vld [vmem:[%s1929_s6 + $0x180] ss:$8 sps:$4 sm:$0xff]  }
  0x75   : > { %1023 = vmatprep.subr.bf16.mxu0 %v1478_v18  ;;  %v1512_v41 = vld [vmem:[%s1929_s6 + $0x94] ss:$8 sps:$4 sm:$0xff]   ;;  %v1516_v43 = vld [vmem:[%s1929_s6 + $0x90] ss:$8 sps:$4 sm:$0xff]   ;;  %v1518_v45 = vld [vmem:[%s1929_s6 + $0xa4] ss:$8 sps:$4 sm:$0xff]  }
  0x76   : > { %v1514_v42 = vld [vmem:[%s1929_s6 + $0x194] ss:$8 sps:$4 sm:$0xff]   ;;  %v1517_v44 = vld [vmem:[%s1929_s6 + $0x190] ss:$8 sps:$4 sm:$0xff]   ;;  %v1520_v46 = vld [vmem:[%s1929_s6 + $0x1a4] ss:$8 sps:$4 sm:$0xff]  }
  0x77   : > { %981 = vmatpush1.bf16.msra.mxu1 %v1480_v19  ;;  %v1522_v47 = vld [vmem:[%s1929_s6 + $0xa0] ss:$8 sps:$4 sm:$0xff]   ;;  %v1524_v49 = vld [vmem:[%s1929_s6 + $0xb4] ss:$8 sps:$4 sm:$0xff]   ;;  %v1528_v51 = vld [vmem:[%s1929_s6 + $0xb0] ss:$8 sps:$4 sm:$0xff]  }
  0x78   : > { %1024 = vmatpush1.bf16.msra.mxu0 %v1481_v20  ;;  %982 = vmatprep.subr.bf16.mxu1 %v1482_v21  ;;  %v1523_v48 = vld [vmem:[%s1929_s6 + $0x1a0] ss:$8 sps:$4 sm:$0xff]   ;;  %v1526_v50 = vld [vmem:[%s1929_s6 + $0x1b4] ss:$8 sps:$4 sm:$0xff]   ;;  %v1529_v53 = vld [vmem:[%s1929_s6 + $0x1b0] ss:$8 sps:$4 sm:$0xff]  }
  0x79   : > { %1025 = vmatprep.subr.bf16.mxu0 %v1484_v22  ;;  %v1556_v52 = vld [vmem:[%s1927_s27 + $0x4] ss:$16 sps:$4 sm:$0xff]   ;;  %v1559_v56 = vld [vmem:[%s1927_s27 + $0xc] ss:$16 sps:$4 sm:$0xff]   ;;  %v1534_v57 = vld [vmem:[%s1929_s6 + $0xc0] ss:$8 sps:$4 sm:$0xff]  }
  0x7a   : > { %v1530_v54 = vld [vmem:[%s1929_s6 + $0xc4] ss:$8 sps:$4 sm:$0xff]   ;;  %1006 = vmatprep.mubr.bf16.mxu1 %v1556_v52  ;;  %1049 = vmatprep.mubr.bf16.mxu0 %v1559_v56  ;;  %v1535_v58 = vld [vmem:[%s1929_s6 + $0x1c0] ss:$8 sps:$4 sm:$0xff]   ;;  %v1536_v59 = vld [vmem:[%s1929_s6 + $0xd4] ss:$8 sps:$4 sm:$0xff]  }
  0x7b   : > { %983 = vmatpush1.bf16.msra.mxu1 %v1486_v23  ;;  %v1532_v55 = vld [vmem:[%s1929_s6 + $0x1c4] ss:$8 sps:$4 sm:$0xff]   ;;  %v1538_v60 = vld [vmem:[%s1929_s6 + $0x1d4] ss:$8 sps:$4 sm:$0xff]   ;;  %v1540_v61 = vld [vmem:[%s1929_s6 + $0xd0] ss:$8 sps:$4 sm:$0xff]  }
  0x7c   : > { %1026 = vmatpush1.bf16.msra.mxu0 %v1487_v24  ;;  %984 = vmatprep.subr.bf16.mxu1 %v1488_v25  ;;  %v1541_v62 = vld [vmem:[%s1929_s6 + $0x1d0] ss:$8 sps:$4 sm:$0xff]   ;;  %v1542_v63 = vld [vmem:[%s1929_s6 + $0xe4] ss:$8 sps:$4 sm:$0xff]   ;;  %v1546_v1 = vld [vmem:[%s1929_s6 + $0xe0] ss:$8 sps:$4 sm:$0xff]  }
  0x7d   : > { %1027 = vmatprep.subr.bf16.mxu0 %v1490_v26  ;;  %v1544_v0 = vld [vmem:[%s1929_s6 + $0x1e4] ss:$8 sps:$4 sm:$0xff]   ;;  %v1547_v2 = vld [vmem:[%s1929_s6 + $0x1e0] ss:$8 sps:$4 sm:$0xff]   ;;  %v1548_v3 = vld [vmem:[%s1929_s6 + $0xf4] ss:$8 sps:$4 sm:$0xff]  }
  0x7e   : > { %v1550_v4 = vld [vmem:[%s1929_s6 + $0x1f4] ss:$8 sps:$4 sm:$0xff]   ;;  %v1552_v5 = vld [vmem:[%s1929_s6 + $0xf0] ss:$8 sps:$4 sm:$0xff]   ;;  %v562_v10 = vld [vmem:[#allocation2] sm:$0xff]  ;;  %p1352_p5 = scmp.ne.s32.totalorder %s1630_s18, 8 }
  0x7f   : > { %985 = vmatpush1.bf16.msra.mxu1 %v1492_v27  ;;  %v1553_v6 = vld [vmem:[%s1929_s6 + $0x1f0] ss:$8 sps:$4 sm:$0xff]   ;;  %v563_v14 = vld [vmem:[#allocation2 + $0x8] sm:$0xff] }
  0x80   : > { %1028 = vmatpush1.bf16.msra.mxu0 %v1493_v28  ;;  %986 = vmatprep.subr.bf16.mxu1 %v1494_v29  ;;  %v1554_v7 = vld [vmem:[%s1927_s27] ss:$16 sps:$4 sm:$0xff]   ;;  %v1557_v8 = vld [vmem:[%s1927_s27 + $0x8] ss:$16 sps:$4 sm:$0xff]   ;;  %v1078_v29 = vlaneseq (!%p1352_p5) }
  0x81   : > { %1029 = vmatprep.subr.bf16.mxu0 %v1496_v30  ;;  %v564_v18 = vld [vmem:[#allocation2 + $0x10] sm:$0xff]  ;;  %v565_v23 = vld [vmem:[#allocation2 + $0x18] sm:$0xff] }
  0x82   : > { %v1079_v30 = vshrl.u32 (!%p1352_p5), %v1078_v29, 7 }
  0x83   : > { %987 = vmatpush1.bf16.msra.mxu1 %v1498_v31  ;;  %v1076_v31 = vld [vmem:[%s550_s4] sm:$0x3] (!%p1352_p5) }
  0x84   : > { %1030 = vmatpush1.bf16.msra.mxu0 %v1499_v32  ;;  %988 = vmatprep.subr.bf16.mxu1 %v1500_v33  ;;  %v1080_v33 = vsub.s32 (!%p1352_p5), 0, %v1079_v30 }
  0x85   : > { %1031 = vmatprep.subr.bf16.mxu0 %v1502_v34  ;;  %v1084_v34 = vsub.s32 (!%p1352_p5), 1, %v1079_v30 }
  0x87   : > { %989 = vmatpush1.bf16.msra.mxu1 %v1504_v35 }
  0x88   : > { %1032 = vmatpush1.bf16.msra.mxu0 %v1505_v36  ;;  %990 = vmatprep.subr.bf16.mxu1 %v1506_v37 }
  0x89   : > { %1033 = vmatprep.subr.bf16.mxu0 %v1508_v38  ;;  %v1081_v38 = vrot.slane (!%p1352_p5), %v1076_v31, %v1080_v33 }
  0x8b   : > { %991 = vmatpush1.bf16.msra.mxu1 %v1510_v39  ;;  %v1085_v39 = vrot.slane (!%p1352_p5), %v1076_v31, %v1084_v34 }
  0x8c   : > { %1034 = vmatpush1.bf16.msra.mxu0 %v1511_v40  ;;  %992 = vmatprep.subr.bf16.mxu1 %v1512_v41 }
  0x8d   : > { %1035 = vmatprep.subr.bf16.mxu0 %v1514_v42 }
  0x8f   : > { %993 = vmatpush1.bf16.msra.mxu1 %v1516_v43 }
  0x90   : > { %1036 = vmatpush1.bf16.msra.mxu0 %v1517_v44  ;;  %994 = vmatprep.subr.bf16.mxu1 %v1518_v45 }
  0x91   : > { %1037 = vmatprep.subr.bf16.mxu0 %v1520_v46 }
  0x93   : > { %995 = vmatpush1.bf16.msra.mxu1 %v1522_v47 }
  0x94   : > { %1038 = vmatpush1.bf16.msra.mxu0 %v1523_v48  ;;  %996 = vmatprep.subr.bf16.mxu1 %v1524_v49 }
  0x95   : > { %1039 = vmatprep.subr.bf16.mxu0 %v1526_v50 }
  0x97   : > { %997 = vmatpush1.bf16.msra.mxu1 %v1528_v51 }
  0x98   : > { %1040 = vmatpush1.bf16.msra.mxu0 %v1529_v53  ;;  %998 = vmatprep.subr.bf16.mxu1 %v1530_v54 }
  0x99   : > { %1041 = vmatprep.subr.bf16.mxu0 %v1532_v55 }
  0x9b   : > { %999 = vmatpush1.bf16.msra.mxu1 %v1534_v57 }
  0x9c   : > { %1042 = vmatpush1.bf16.msra.mxu0 %v1535_v58  ;;  %1000 = vmatprep.subr.bf16.mxu1 %v1536_v59 }
  0x9d   : > { %1043 = vmatprep.subr.bf16.mxu0 %v1538_v60 }
  0x9f   : > { %1001 = vmatpush1.bf16.msra.mxu1 %v1540_v61 }
  0xa0   : > { %1044 = vmatpush1.bf16.msra.mxu0 %v1541_v62  ;;  %1002 = vmatprep.subr.bf16.mxu1 %v1542_v63 }
  0xa1   : > { %1045 = vmatprep.subr.bf16.mxu0 %v1544_v0 }
  0xa3   : > { %1003 = vmatpush1.bf16.msra.mxu1 %v1546_v1 }
  0xa4   : > { %1046 = vmatpush1.bf16.msra.mxu0 %v1547_v2  ;;  %1004 = vmatprep.subr.bf16.mxu1 %v1548_v3 }
  0xa5   : > { %1047 = vmatprep.subr.bf16.mxu0 %v1550_v4 }
  0xa7   : > { %1005 = vmatpush1.bf16.msra.mxu1 %v1552_v5 }
  0xa8   : > { %1048 = vmatpush1.bf16.msra.mxu0 %v1553_v6 }
  0xaa   : > { %1007 = vmatmul.mubr.bf16.vlgmr.msra.gmra.mrb[0].mxu1 %v1554_v7 }
  0xab   : > { %1050 = vmatmul.mubr.bf16.vlgmr.msra.gmra.mrb[0].mxu0 %v1557_v8 }
 0x17d   : > { %v1008_v9 = vpop.f32.mrb[0].mxu1 }
 0x17e   : > { %v1051_v11 = vpop.f32.mrb[0].mxu0  ;;  %v1010_v13 = vpop.f32.mrb[1].mxu1 }
 0x17f   : > { %v1052_v12 = vadd.f32 %v1051_v11, %v1008_v9  ;;  %v1053_v15 = vpop.f32.mrb[1].mxu0  ;;  %v1012_v17 = vpop.f32.mrb[2].mxu1 }
 0x180   : > { %v1054_v16 = vadd.f32 %v1053_v15, %v1010_v13  ;;  %v1055_v19 = vpop.f32.mrb[2].mxu0  ;;  %v1014_v22 = vpop.f32.mrb[3].mxu1  ;;  %1071 = sbr.rel (%p1352_p5) target bundleno = 405 (0x195), region = 101 }
 0x181   : > { %v1060_v20 = vadd.f32 %v1052_v12, %v562_v10  ;;  %v1056_v21 = vadd.f32 %v1055_v19, %v1012_v17  ;;  %v1057_v24 = vpop.f32.mrb[3].mxu0 }
 0x182   : > { %v1061_v25 = vadd.f32 %v1054_v16, %v563_v14  ;;  %v1058_v26 = vadd.f32 %v1057_v24, %v1014_v22 }
 0x183   : > { %1064 = vst [vmem:[#allocation2] sm:$0xff] %v1060_v20  ;;  %v1062_v27 = vadd.f32 %v1056_v21, %v564_v18 }
 0x184   : > { %1065 = vst [vmem:[#allocation2 + $0x8] sm:$0xff] %v1061_v25  ;;  %v1063_v28 = vadd.f32 %v1058_v26, %v565_v23 }
 0x185   : > { %1066 = vst [vmem:[#allocation2 + $0x10] sm:$0xff] %v1062_v27 }
 0x186   : > { %1067 = vst [vmem:[#allocation2 + $0x18] sm:$0xff] %v1063_v28 }
 0x18a   : > { %v1072_v32 = vld [vmem:[#allocation2] sm:$0xff] }
 0x18b   : > { %v1073_v35 = vld [vmem:[#allocation2 + $0x8] sm:$0xff]  ;;  %v1088_v40 = vadd.f32 %v1081_v38, %v1072_v32 }
 0x18c   : > { %v1074_v36 = vld [vmem:[#allocation2 + $0x10] sm:$0xff]  ;;  %v1089_v41 = vadd.f32 %v1085_v39, %v1073_v35 }
 0x18d   : > { %v1075_v37 = vld [vmem:[#allocation2 + $0x18] sm:$0xff]  ;;  %v1090_v42 = vadd.f32 %v1081_v38, %v1074_v36  ;;  %v1092_v44 = vmax.f32 %v1088_v40, 0.0 }
 0x18e   : > { %v1091_v43 = vadd.f32 %v1085_v39, %v1075_v37  ;;  %v1093_v45 = vmax.f32 %v1089_v41, 0.0 }
 0x18f   : > { %v1094_v46 = vmax.f32 %v1090_v42, 0.0 }
 0x190   : > { %v1095_v47 = vmax.f32 %v1091_v43, 0.0  ;;  %v1362_v48 = vpack.c.bf16 %v1093_v45, %v1092_v44 }
 0x192   : > { %v1363_v49 = vpack.c.bf16 %v1095_v47, %v1094_v46  ;;  %1108 = vst [vmem:[%s1931_s1] sm:$0xff] %v1362_v48 }
 0x194   : > { %1109 = vst [vmem:[%s1931_s1 + $0x8] sm:$0xff] %v1363_v49 }
 0x195 PF: > { %1116 = sbr.rel (!%p1763_p12) target bundleno = 413 (0x19d), region = 105  ;;  %s1364_s16 = sshll.u32 (%p1763_p12), %s1634_s19, 3 }
 0x196   : > { %s1122_s5 = scalar_lea.vmem (%p1763_p12), %s2054_s3, %s1364_s16 }
 0x199   : > { %v1152_v50 = vld [vmem:[%s1931_s1] sm:$0xff] (%p1763_p12) }
 0x19a   : > { %1153 = vst [vmem:[%s1122_s5] sm:$0xff] (%p1763_p12), %v1152_v50 }
 0x19b   : > { %v1154_v51 = vld [vmem:[%s1931_s1 + $0x8] sm:$0xff] (%p1763_p12) }
 0x19c   : > { %1155 = vst [vmem:[%s1122_s5 + $0x10] sm:$0xff] %v1154_v51 }
 0x19d PF: > { %s13_s22 = sadd.s32 1, %s1646_s22   ;;  %s2064_s1 = sld [smem:[#allocation6_spill]] }
 0x19e   : > { %p10_p6 = scmp.ge.s32.totalorder %s13_s22, 20   ;;  %s2065_s12 = smov %s1610_s13 }
 0x19f   : > { %s2066_s13 = smov %s1761_s9  ;;  %s2067_s14 = smov %s1618_s15 }
 0x1a0   : > { %s2068_s15 = smov %s1758_s8  ;;  %s2069_s16 = smov %s1626_s17 }
 0x1a1   : > { %s2070_s17 = smov %s1744_s30  ;;  %s2071_s18 = smov %s1638_s20 }
 0x1a2   : > { %s2072_s19 = smov %s1642_s21  ;;  %s2073_s20 = smov %s2076_s24 }
 0x1a3   : > { %s2074_s21 = smov %s2064_s1  ;;  %12 = sbr.rel (!%p10_p6) target bundleno = 9 (0x9), region = 185 }

// kernel: classifier_forward.41
= control target key start
LH: loop header
LB: loop body
LE: loop exit
PB: predicated region body
PF: predicated region fallthrough
CT: control target
= control target key end

     0   :  { %v94_v51 = vlaneseq  ;;  %s696_s0 = inlined_call_operand.vmem [shape: bf16[2,1,512], index: 0, kind: input, shape index: {}]   ;;  %s697_s1 = inlined_call_operand.vmem [shape: f32[512,10], index: 1, kind: input, shape index: {}]   ;;  %s698_s2 = inlined_call_operand.vmem [shape: f32[1,10], index: 2, kind: input, shape index: {}]   ;;  %s699_s3 = inlined_call_operand.hbm [shape: f32[2,10], index: 3, kind: output, shape index: {}]  }
   0x1   :  { %v37_v0 = vld [vmem:[%s697_s1 + $0x80] sm:$0xff]  ;;  %v38_v1 = vld [vmem:[%s697_s1 + $0x88] sm:$0xff]  ;;  %v39_v11 = vld [vmem:[%s697_s1 + $0x90] sm:$0xff] }
   0x2   :  { %v21_v2 = vld [vmem:[%s697_s1] sm:$0xff]  ;;  %v366_v3 = vpack.c.bf16 %v38_v1, %v37_v0  ;;  %v22_v4 = vld [vmem:[%s697_s1 + $0x8] sm:$0xff]  ;;  %v40_v13 = vld [vmem:[%s697_s1 + $0x98] sm:$0xff]  ;;  %v608_v0 = vshrl.u32 %v94_v51, 7 }
   0x3   :  { %v69_v5 = vld [vmem:[%s697_s1 + $0x180] sm:$0xff]  ;;  %v70_v6 = vld [vmem:[%s697_s1 + $0x188] sm:$0xff]  ;;  %v368_v7 = vpack.c.bf16 %v22_v4, %v21_v2  ;;  %v23_v14 = vld [vmem:[%s697_s1 + $0x10] sm:$0xff]  ;;  %v370_v16 = vpack.c.bf16 %v40_v13, %v39_v11 }
   0x4   :  { %v398_v8 = vpack.c.bf16 %v70_v6, %v69_v5  ;;  %v53_v9 = vld [vmem:[%s697_s1 + $0x100] sm:$0xff]  ;;  %v54_v10 = vld [vmem:[%s697_s1 + $0x108] sm:$0xff]  ;;  %367 = vmatprep.subr.bf16.mxu0 %v366_v3  ;;  %v24_v15 = vld [vmem:[%s697_s1 + $0x18] sm:$0xff] }
   0x5   :  { %v400_v12 = vpack.c.bf16 %v54_v10, %v53_v9  ;;  %369 = vmatpush3.bf16.msra.mxu0 %v368_v7  ;;  %v372_v17 = vpack.c.bf16 %v24_v15, %v23_v14  ;;  %v71_v18 = vld [vmem:[%s697_s1 + $0x190] sm:$0xff]  ;;  %v72_v19 = vld [vmem:[%s697_s1 + $0x198] sm:$0xff]  ;;  %v41_v23 = vld [vmem:[%s697_s1 + $0xa0] sm:$0xff] }
   0x6   :  { %399 = vmatprep.subr.bf16.mxu1 %v398_v8  ;;  %v55_v20 = vld [vmem:[%s697_s1 + $0x110] sm:$0xff]  ;;  %v402_v21 = vpack.c.bf16 %v72_v19, %v71_v18  ;;  %v56_v22 = vld [vmem:[%s697_s1 + $0x118] sm:$0xff]  ;;  %v42_v24 = vld [vmem:[%s697_s1 + $0xa8] sm:$0xff]  ;;  %371 = vmatprep.subr.bf16.mxu0 %v370_v16  ;;  %v100_v16 = vsub.s32 2, %v608_v0 }
   0x7   :  { %401 = vmatpush3.bf16.msra.mxu1 %v400_v12  ;;  %v404_v25 = vpack.c.bf16 %v56_v22, %v55_v20  ;;  %v374_v26 = vpack.c.bf16 %v42_v24, %v41_v23  ;;  %v25_v27 = vld [vmem:[%s697_s1 + $0x20] sm:$0xff]  ;;  %v26_v28 = vld [vmem:[%s697_s1 + $0x28] sm:$0xff]  ;;  %v43_v35 = vld [vmem:[%s697_s1 + $0xb0] sm:$0xff] }
   0x8   :  { %v73_v29 = vld [vmem:[%s697_s1 + $0x1a0] sm:$0xff]  ;;  %403 = vmatprep.subr.bf16.mxu1 %v402_v21  ;;  %v74_v30 = vld [vmem:[%s697_s1 + $0x1a8] sm:$0xff]  ;;  %v376_v33 = vpack.c.bf16 %v26_v28, %v25_v27  ;;  %v44_v36 = vld [vmem:[%s697_s1 + $0xb8] sm:$0xff]  ;;  %v108_v21 = vsub.s32 6, %v608_v0 }
   0x9   :  { %v57_v31 = vld [vmem:[%s697_s1 + $0x120] sm:$0xff]  ;;  %v58_v32 = vld [vmem:[%s697_s1 + $0x128] sm:$0xff]  ;;  %373 = vmatpush3.bf16.msra.mxu0 %v372_v17  ;;  %v406_v34 = vpack.c.bf16 %v74_v30, %v73_v29  ;;  %v27_v37 = vld [vmem:[%s697_s1 + $0x30] sm:$0xff]  ;;  %v378_v39 = vpack.c.bf16 %v44_v36, %v43_v35 }
   0xa   :  { %375 = vmatprep.subr.bf16.mxu0 %v374_v26  ;;  %v408_v38 = vpack.c.bf16 %v58_v32, %v57_v31  ;;  %v28_v40 = vld [vmem:[%s697_s1 + $0x38] sm:$0xff]  ;;  %v75_v41 = vld [vmem:[%s697_s1 + $0x1b0] sm:$0xff]  ;;  %v45_v46 = vld [vmem:[%s697_s1 + $0xc0] sm:$0xff] }
   0xb   :  { %405 = vmatpush3.bf16.msra.mxu1 %v404_v25  ;;  %v76_v42 = vld [vmem:[%s697_s1 + $0x1b8] sm:$0xff]  ;;  %v59_v44 = vld [vmem:[%s697_s1 + $0x130] sm:$0xff]  ;;  %v46_v47 = vld [vmem:[%s697_s1 + $0xc8] sm:$0xff]  ;;  %v380_v48 = vpack.c.bf16 %v28_v40, %v27_v37 }
   0xc   :  { %407 = vmatprep.subr.bf16.mxu1 %v406_v34  ;;  %v410_v43 = vpack.c.bf16 %v76_v42, %v75_v41  ;;  %v60_v45 = vld [vmem:[%s697_s1 + $0x138] sm:$0xff]  ;;  %v77_v49 = vld [vmem:[%s697_s1 + $0x1c0] sm:$0xff]  ;;  %v78_v50 = vld [vmem:[%s697_s1 + $0x1c8] sm:$0xff]  ;;  %v382_v53 = vpack.c.bf16 %v46_v47, %v45_v46 }
   0xd   :  { %377 = vmatpush3.bf16.msra.mxu0 %v376_v33  ;;  %v412_v52 = vpack.c.bf16 %v60_v45, %v59_v44  ;;  %v29_v54 = vld [vmem:[%s697_s1 + $0x40] sm:$0xff]  ;;  %v30_v55 = vld [vmem:[%s697_s1 + $0x48] sm:$0xff]  ;;  %v414_v57 = vpack.c.bf16 %v78_v50, %v77_v49  ;;  %v47_v59 = vld [vmem:[%s697_s1 + $0xd0] sm:$0xff] }
   0xe   :  { %379 = vmatprep.subr.bf16.mxu0 %v378_v39  ;;  %v61_v56 = vld [vmem:[%s697_s1 + $0x140] sm:$0xff]  ;;  %v62_v58 = vld [vmem:[%s697_s1 + $0x148] sm:$0xff]  ;;  %v48_v60 = vld [vmem:[%s697_s1 + $0xd8] sm:$0xff]  ;;  %v384_v63 = vpack.c.bf16 %v30_v55, %v29_v54 }
   0xf   :  { %409 = vmatpush3.bf16.msra.mxu1 %v408_v38  ;;  %v79_v61 = vld [vmem:[%s697_s1 + $0x1d0] sm:$0xff]  ;;  %v80_v62 = vld [vmem:[%s697_s1 + $0x1d8] sm:$0xff]  ;;  %v416_v1 = vpack.c.bf16 %v62_v58, %v61_v56  ;;  %v386_v2 = vpack.c.bf16 %v48_v60, %v47_v59  ;;  %v49_v8 = vld [vmem:[%s697_s1 + $0xe0] sm:$0xff] }
  0x10   :  { %411 = vmatprep.subr.bf16.mxu1 %v410_v43  ;;  %v31_v3 = vld [vmem:[%s697_s1 + $0x50] sm:$0xff]  ;;  %v32_v4 = vld [vmem:[%s697_s1 + $0x58] sm:$0xff]  ;;  %v418_v6 = vpack.c.bf16 %v80_v62, %v79_v61  ;;  %v50_v9 = vld [vmem:[%s697_s1 + $0xe8] sm:$0xff] }
  0x11   :  { %381 = vmatpush3.bf16.msra.mxu0 %v380_v48  ;;  %v63_v5 = vld [vmem:[%s697_s1 + $0x150] sm:$0xff]  ;;  %v64_v7 = vld [vmem:[%s697_s1 + $0x158] sm:$0xff]  ;;  %v81_v10 = vld [vmem:[%s697_s1 + $0x1e0] sm:$0xff]  ;;  %v388_v12 = vpack.c.bf16 %v32_v4, %v31_v3  ;;  %v390_v18 = vpack.c.bf16 %v50_v9, %v49_v8 }
  0x12   :  { %383 = vmatprep.subr.bf16.mxu0 %v382_v53  ;;  %v82_v11 = vld [vmem:[%s697_s1 + $0x1e8] sm:$0xff]  ;;  %v33_v13 = vld [vmem:[%s697_s1 + $0x60] sm:$0xff]  ;;  %v420_v17 = vpack.c.bf16 %v64_v7, %v63_v5 }
  0x13   :  { %413 = vmatpush3.bf16.msra.mxu1 %v412_v52  ;;  %v34_v14 = vld [vmem:[%s697_s1 + $0x68] sm:$0xff]  ;;  %v65_v15 = vld [vmem:[%s697_s1 + $0x160] sm:$0xff] }
  0x14   :  { %415 = vmatprep.subr.bf16.mxu1 %v414_v57  ;;  %v66_v19 = vld [vmem:[%s697_s1 + $0x168] sm:$0xff]  ;;  %v293_v20 = vld [vmem:[%s696_s0] sm:$0xff]  }
  0x15   :  { %385 = vmatpush3.bf16.msra.mxu0 %v384_v63 }
  0x16   :  { %387 = vmatprep.subr.bf16.mxu0 %v386_v2 }
  0x17   :  { %417 = vmatpush3.bf16.msra.mxu1 %v416_v1 }
  0x18   :  { %8 = vsyncpa [#allocation3], 0  ;;  %419 = vmatprep.subr.bf16.mxu1 %v418_v6  ;;  %v422_v22 = vpack.c.bf16 %v82_v11, %v81_v10  ;;  %v51_v23 = vld [vmem:[%s697_s1 + $0xf0] sm:$0xff]  ;;  %v52_v24 = vld [vmem:[%s697_s1 + $0xf8] sm:$0xff]  ;;  %v294_v25 = vunpack.c.l.bf16 %v293_v20  ;;  %v295_v26 = vunpack.c.h.bf16 %v293_v20  ;;  %vm126_vm0 = vcmask 1041409   ;;  %s455_s7 = smov [#allocation2]  }
  0x19   :  { %v83_v27 = vld [vmem:[%s697_s1 + $0x1f0] sm:$0xff]  ;;  %v84_v28 = vld [vmem:[%s697_s1 + $0x1f8] sm:$0xff]  ;;  %v96_v29 = vsub.s32 0, %v608_v0  ;;  %389 = vmatpush3.bf16.msra.mxu0 %v388_v12  ;;  %v392_v30 = vpack.c.bf16 %v34_v14, %v33_v13  ;;  %v424_v31 = vpack.c.bf16 %v66_v19, %v65_v15  ;;  %v394_v34 = vpack.c.bf16 %v52_v24, %v51_v23  ;;  %v291_v54 = vld [vmem:[%s698_s2] ss:$0 sm:$0xff]  ;;  %s283_s8 = sshll.u32 %s455_s7, 4  ;;  %s284_s8 = int_to_ptr.vmem [resolvable:$true] %s283_s8 }
  0x1a   :  { %v101_v32 = vrot.slane %v294_v25, %v100_v16  ;;  %v117_v33 = vrot.slane %v295_v26, %v100_v16  ;;  %391 = vmatprep.subr.bf16.mxu0 %v390_v18  ;;  %v35_v35 = vld [vmem:[%s697_s1 + $0x70] sm:$0xff]  ;;  %v36_v36 = vld [vmem:[%s697_s1 + $0x78] sm:$0xff]  ;;  %v109_v37 = vrot.slane %v294_v25, %v108_v21  ;;  %v125_v38 = vrot.slane %v295_v26, %v108_v21  ;;  %s431_s9 = scalar_lea.vmem %s284_s8, 32  ;;  %p436_p1 = scmp.lt.s32.totalorder %s284_s8, %s284_s8 }
  0x1b   :  { %421 = vmatpush3.bf16.msra.mxu1 %v420_v17  ;;  %v104_v39 = vsub.s32 4, %v608_v0  ;;  %v426_v40 = vpack.c.bf16 %v84_v28, %v83_v27  ;;  %v67_v41 = vld [vmem:[%s697_s1 + $0x170] sm:$0xff]  ;;  %v68_v42 = vld [vmem:[%s697_s1 + $0x178] sm:$0xff]  ;;  %v396_v45 = vpack.c.bf16 %v36_v36, %v35_v35  ;;  %v97_v46 = vrot.slane %v294_v25, %v96_v29  ;;  %p432_p0 = scmp.ne.s32.totalorder %s284_s8, %s431_s9  ;;  %p437_p2 = scmp.lt.s32.totalorder %s431_s9, %s431_s9 }
  0x1c   :  { %423 = vmatprep.subr.bf16.mxu1 %v422_v22  ;;  %v128_v43 = vsel %vm126_vm0, %v117_v33, %v101_v32  ;;  %v130_v44 = vsel %vm126_vm0, %v125_v38, %v109_v37  ;;  %v113_v47 = vrot.slane %v295_v26, %v96_v29  ;;  %v428_v48 = vpack.c.bf16 %v68_v42, %v67_v41 }
  0x1d   :  { %199 = vmatprep.mubr.f32.mxu0 %v128_v43  ;;  %393 = vmatpush3.bf16.msra.mxu0 %v392_v30  ;;  %v105_v49 = vrot.slane %v294_v25, %v104_v39  ;;  %v121_v50 = vrot.slane %v295_v26, %v104_v39  ;;  %vm275_vm1 = vcmask 74752   ;;  %p438_p3 = por %p437_p2, %p436_p1 }
  0x1e   :  { %269 = vmatprep.mubr.f32.mxu1 %v130_v44  ;;  %395 = vmatprep.subr.bf16.mxu0 %v394_v34  ;;  %v127_v51 = vsel %vm126_vm0, %v113_v47, %v97_v46 }
  0x1f   :  { %425 = vmatpush3.bf16.msra.mxu1 %v424_v31  ;;  %v129_v52 = vsel %vm126_vm0, %v121_v50, %v105_v49  ;;  %p439_p4 = pnand %p438_p3, %p432_p0 }
  0x20   :  { %427 = vmatprep.subr.bf16.mxu1 %v426_v40 }
  0x21   :  { %397 = vmatpush3.bf16.msra.mxu0 %v396_v45 }
  0x23   :  { %429 = vmatpush3.bf16.msra.mxu1 %v428_v48 }
  0x24   :  { %200 = vmatmul.mubr.f32.vlgmr.msra.gmra.mrb[0].mxu0 %v127_v51 }
  0x26   :  { %270 = vmatmul.mubr.f32.vlgmr.msra.gmra.mrb[0].mxu1 %v129_v52 }
  0xf7   :  { %v328_v53 = vpop.f32.mrb[0].mxu0 }
  0xf8   :  { %v329_v55 = vpop.f32.mrb[1].mxu0 }
  0xf9   :  { %v363_v56 = vpop.f32.mrb[0].mxu1  ;;  %v330_v57 = vadd.f32 %v329_v55, %v328_v53 }
  0xfa   :  { %v364_v58 = vpop.f32.mrb[1].mxu1 }
  0xfb   :  { %v365_v59 = vadd.f32 %v364_v58, %v363_v56  ;;  %v202_v60 = vadd.f32 %v330_v57, %v291_v54 }
  0xfd   :  { %v272_v61 = vadd.f32 %v365_v59, %v202_v60 }
  0xff   :  { %276 = vst.msk [vmem:[#allocation2] sm:$0x3] %vm275_vm1, %v272_v61 }
 0x100   :  { %442 = shalt.err (!%p439_p4)
}
 0x101   :  { %s443_s11 = scalar_lea.hbm %s699_s3, 32 }
 0x102   :  { %p444_p5 = scmp.ne.s32.totalorder %s699_s3, %s443_s11  ;;  %p447_p6 = scmp.lt.u32.totalorder %s443_s11, %s699_s3 }
 0x104   :  { %p449_p7 = pnand %p447_p6, %p444_p5 }
 0x106   :  { %452 = shalt.err (!%p449_p7)
}
 0x107   :  { %286 = dma.vmem_to_hbm [thread:$0]  %s284_s8, 32, %s699_s3, [#allocation3]  }
 0x108   :  { %453 = dma.done.wait [#allocation3], 32  }
 0x109   :  { %454 = vsyncadd [#allocation3], 4294967264 }
 0x10a   :  { %290 = vsyncpa [#allocation3], 1 }

</bundles_post_ra>
